<compile_context>
chip_gen: v5e
topology: v5e:2x2
jax: 0.10.0
libtpu: 0.0.40
codegen_flags: <defaults>
</compile_context>

<pallas_src>
import numpy as np
import jax
import jax.numpy as jnp
from jax import lax
from jax.experimental import pallas as pl
from jax.experimental.pallas import tpu as pltpu


def _char_lstm_attn_kernel(emb_ref, len_ref, wih_ref, whh_ref, b_ref,
                           attn_ref, hinit_ref, cinit_ref, out_ref, pre_ref):
    """One word-tile: char-LSTM recurrence + sigmoid-gated masked time sum.

    Word-on-lanes layout (words = lane axis, features = sublane axis):
      emb_ref : (E, T*tw)   compute dtype; column t*tw + w = word w at step t
      len_ref : (1, tw)     int32 word lengths (0 for padded words)
      wih_ref : (4H, E)     compute dtype (PyTorch weight_ih_l0 layout)
      whh_ref : (4H, H)     compute dtype (PyTorch weight_hh_l0 layout)
      b_ref   : (4H, 1)     f32  (b_ih + b_hh)
      attn_ref: (H, 1)      f32  char_attn.weight
      hinit/cinit : (H, 1)  f32
      out_ref : (H, tw)     f32  (lane-dense store)
      pre_ref : (4H, T*tw)  compute dtype scratch (fused input projections)
    """
    H, tw = out_ref.shape
    fourH, TtW = pre_ref.shape
    T = TtW // tw
    cdt = whh_ref.dtype

    # ---- fused input-to-hidden projection: a single (4H,E)@(E,T*tw) matmul
    # (no serial dependence; amortizes MXU fill/drain vs. T tiny-K matmuls).
    pre_ref[...] = jnp.dot(
        wih_ref[...], emb_ref[...],
        preferred_element_type=jnp.float32).astype(pre_ref.dtype)

    # Loop-invariant broadcasts hoisted once (JAX does not CSE broadcast_in_dim).
    bias_b = jnp.broadcast_to(b_ref[...], (fourH, tw))        # (4H, tw) f32
    attn_b = jnp.broadcast_to(attn_ref[...], (H, tw))         # (H, tw)  f32
    lens = len_ref[...]                                       # (1, tw)  i32

    h = jnp.broadcast_to(hinit_ref[...], (H, tw)).astype(jnp.float32)
    c = jnp.broadcast_to(cinit_ref[...], (H, tw)).astype(jnp.float32)
    acc = jnp.zeros((H, tw), jnp.float32)

    # T is small and static: fully unrolled so every pre slice is a static,
    # 128-aligned lane window and the LLO scheduler sees the whole recurrence.
    for t in range(T):
        pre_t = pre_ref[:, t * tw:(t + 1) * tw].astype(jnp.float32)
        rec = jnp.dot(whh_ref[...], h.astype(cdt),
                      preferred_element_type=jnp.float32)
        gates = pre_t + rec + bias_b                          # (4H, tw) f32
        # PyTorch LSTM gate order (rows): input, forget, cell, output.
        # Sublane row-block slices are full-lane -> activations only where needed.
        i_s = jax.nn.sigmoid(gates[0 * H:1 * H])
        f_s = jax.nn.sigmoid(gates[1 * H:2 * H])
        g_t = jnp.tanh(gates[2 * H:3 * H])
        o_s = jax.nn.sigmoid(gates[3 * H:4 * H])
        c = f_s * c + i_s * g_t
        h = o_s * jnp.tanh(c)
        # attention gate sigmoid(attn . h): VPU multiply + sublane reduce,
        # then ONE lane-dense (1, tw) sigmoid per step.
        w = jax.nn.sigmoid(jnp.sum(h * attn_b, axis=0, keepdims=True))
        valid = lens > t                                      # (1, tw) bool
        acc = acc + jnp.where(valid, w, 0.0) * h

    out_ref[...] = acc                                        # full-lane vst


def _round_up(x, m):
    return ((x + m - 1) // m) * m


def _default_tile_words():
    # v6e/v7x: 256-wide MXU -> 256-word tiles; v5e: 128-wide MXU, 1 vst slot,
    # no bf16 VPU/EUP -> keep 128 (bigger tiles only raise vreg pressure).
    try:
        kind = jax.devices()[0].device_kind.lower()
    except Exception:
        return 256
    if "v5 lite" in kind or "v5e" in kind or "v5lite" in kind:
        return 128
    return 256


def char_word_reps(emb, wordlens, w_ih, w_hh, b_ih, b_hh, attn_w,
                   h_init, c_init, *, tile_words=None,
                   compute_dtype=jnp.bfloat16):
    """Pallas wrapper: (W, T, E) char embeddings (sorted word order) -> (W, H)."""
    W, T, E = emb.shape
    H = w_hh.shape[1]
    if tile_words is None:
        tile_words = _default_tile_words()

    # Words live on the lane axis -> tile width must be a multiple of 128;
    # clamp for small inputs, and prefer >=2 grid steps when W allows it so
    # the "parallel" grid axis can shard across v7x's two TensorCores.
    tw = max(128, min(_round_up(tile_words, 128), _round_up(W, 128)))
    if tw > 128 and _round_up(W, tw) == tw:
        tw = max(128, min(tw, _round_up(-(-W // 2), 128)))
    Wp = _round_up(W, tw)
    ntiles = Wp // tw

    # Word-innermost HBM layout: (W,T,E) -> (E, ntiles*T*tw) so each grid step
    # reads one contiguous (E, T*tw) slab (long DMA bursts, lane-dense loads)
    # and the fused input projection is a single matmul.  Pure layout plumbing
    # in XLA (tiny tensors).
    emb_p = jnp.pad(emb.astype(compute_dtype), ((0, Wp - W), (0, 0), (0, 0)))
    emb_k = (emb_p.reshape(ntiles, tw, T, E)
             .transpose(3, 0, 2, 1)
             .reshape(E, ntiles * T * tw))

    lens = jnp.zeros((1, Wp), jnp.int32).at[0, :W].set(
        jnp.asarray(wordlens, dtype=jnp.int32))

    bias = (b_ih + b_hh).reshape(4 * H, 1).astype(jnp.float32)

    out = pl.pallas_call(
        _char_lstm_attn_kernel,
        out_shape=jax.ShapeDtypeStruct((H, Wp), jnp.float32),
        grid_spec=pltpu.PrefetchScalarGridSpec(
            num_scalar_prefetch=0,
            grid=(ntiles,),
            in_specs=[
                pl.BlockSpec((E, T * tw), lambda i: (0, i)),    # embeddings
                pl.BlockSpec((1, tw), lambda i: (0, i)),        # word lengths
                pl.BlockSpec((4 * H, E), lambda i: (0, 0)),     # W_ih
                pl.BlockSpec((4 * H, H), lambda i: (0, 0)),     # W_hh
                pl.BlockSpec((4 * H, 1), lambda i: (0, 0)),     # bias
                pl.BlockSpec((H, 1), lambda i: (0, 0)),         # attn col
                pl.BlockSpec((H, 1), lambda i: (0, 0)),         # h_init
                pl.BlockSpec((H, 1), lambda i: (0, 0)),         # c_init
            ],
            out_specs=pl.BlockSpec((H, tw), lambda i: (0, i)),
            scratch_shapes=[pltpu.VMEM((4 * H, T * tw), compute_dtype)],
        ),
        compiler_params=pltpu.CompilerParams(
            dimension_semantics=("parallel",)),
    )(emb_k, lens,
      w_ih.astype(compute_dtype), w_hh.astype(compute_dtype),
      bias, attn_w.reshape(H, 1).astype(jnp.float32),
      h_init.reshape(H, 1).astype(jnp.float32),
      c_init.reshape(H, 1).astype(jnp.float32))
    return out[:, :W].T                                       # (W, H)


def character_model_forward(params, chars, chars_mask, word_orig_idx,
                            sentlens, wordlens, pad=True,
                            compute_dtype=jnp.bfloat16):
    """Glue reproducing CharacterModel.forward (inference mode, 1 LSTM layer).

    chars     : (W, T) int32, already sorted by decreasing word length
    wordlens  : (W,) lengths matching `chars`
    word_orig_idx : (W,) original index of each sorted word
    sentlens  : python list of sentence lengths (decreasing), sum == W
    """
    del chars_mask  # unused in the reference forward as well
    # TODO(synk): training-mode dropout and char_num_layers > 1 / rec_dropout not implemented.
    emb = jnp.take(params["char_emb"], chars, axis=0)            # (W, T, E)
    H = params["w_hh"].shape[1]

    res_sorted = char_word_reps(
        emb, wordlens,
        params["w_ih"], params["w_hh"], params["b_ih"], params["b_hh"],
        params["attn_w"], params["h_init"], params["c_init"],
        compute_dtype=compute_dtype)

    # tensor_unsort(res, word_orig_idx)
    res = res_sorted[jnp.argsort(jnp.asarray(word_orig_idx))]

    if not pad:
        # TODO(synk): PackedSequence container has no JAX equivalent; return flat word reps.
        return res

    # res.split(sentlens) -> pack_sequence -> pad_packed_sequence(batch_first=True)
    num_sent = len(sentlens)
    max_len = int(max(sentlens))
    offsets = np.concatenate([[0], np.cumsum(sentlens)[:-1]]).astype(np.int32)
    idx = np.zeros((num_sent, max_len), dtype=np.int32)
    valid = np.zeros((num_sent, max_len, 1), dtype=np.float32)
    for i, L in enumerate(sentlens):
        idx[i, :L] = offsets[i] + np.arange(L)
        valid[i, :L, 0] = 1.0
    return res[jnp.asarray(idx)] * jnp.asarray(valid)


def _reference_word_reps(params, chars, wordlens):
    """Pure-JAX reference for the in-kernel compute (per-word gated LSTM sums)."""
    emb = params["char_emb"][chars]                              # (W, T, E)
    W, T, _ = emb.shape
    H = params["w_hh"].shape[1]
    b = params["b_ih"] + params["b_hh"]

    def step(carry, xt):
        h, c = carry
        gates = xt @ params["w_ih"].T + h @ params["w_hh"].T + b
        i_g, f_g, g_g, o_g = jnp.split(gates, 4, axis=-1)
        c = jax.nn.sigmoid(f_g) * c + jax.nn.sigmoid(i_g) * jnp.tanh(g_g)
        h = jax.nn.sigmoid(o_g) * jnp.tanh(c)
        return (h, c), h

    h0 = jnp.broadcast_to(params["h_init"].reshape(1, H), (W, H))
    c0 = jnp.broadcast_to(params["c_init"].reshape(1, H), (W, H))
    _, hs = lax.scan(step, (h0, c0), jnp.transpose(emb, (1, 0, 2)))  # (T, W, H)
    gate = jax.nn.sigmoid(hs @ params["attn_w"].reshape(H, 1))
    mask = (jnp.arange(T)[:, None] < jnp.asarray(wordlens)[None, :]
            ).astype(jnp.float32)[..., None]
    return jnp.sum(hs * gate * mask, axis=0)


if __name__ == "__main__":
    # args: char_emb_dim=16, char_hidden_dim=32, char_num_layers=1, dropout=0 (eval)
    V, E, H = 40, 16, 32
    num_words, T = 16, 8
    sentlens = [7, 5, 4]          # decreasing (pack_sequence enforce_sorted), sums to 16

    keys = jax.random.split(jax.random.PRNGKey(0), 10)
    bound = 1.0 / np.sqrt(H)
    char_emb = jax.random.normal(keys[0], (V, E), jnp.float32) * 0.1
    char_emb = char_emb.at[0].set(0.0)   # nn.Embedding padding_idx=0
    params = dict(
        char_emb=char_emb,
        w_ih=jax.random.uniform(keys[1], (4 * H, E), jnp.float32, -bound, bound),
        w_hh=jax.random.uniform(keys[2], (4 * H, H), jnp.float32, -bound, bound),
        b_ih=jax.random.uniform(keys[3], (4 * H,), jnp.float32, -bound, bound),
        b_hh=jax.random.uniform(keys[4], (4 * H,), jnp.float32, -bound, bound),
        # char_attn.weight / h_init / c_init are zero-initialized in __init__
        # but trained; use nonzero values here so those paths are exercised.
        attn_w=jax.random.normal(keys[7], (1, H), jnp.float32) * 0.1,
        h_init=jax.random.normal(keys[8], (1, 1, H), jnp.float32) * 0.1,
        c_init=jax.random.normal(keys[9], (1, 1, H), jnp.float32) * 0.1,
    )

    # Build inputs in "original" (sentence) order, then sort by word length
    # descending exactly like the model's caller does before pack_padded_sequence.
    wordlens_orig = np.array(jax.random.randint(keys[5], (num_words,), 1, T + 1))
    chars_orig = np.array(jax.random.randint(keys[6], (num_words, T), 1, V))
    chars_orig = np.where(np.arange(T)[None, :] < wordlens_orig[:, None], chars_orig, 0)

    order = np.argsort(-wordlens_orig, kind="stable")
    chars = jnp.asarray(chars_orig[order], dtype=jnp.int32)    # (W, T) sorted
    wordlens = wordlens_orig[order]                            # (W,) sorted desc
    word_orig_idx = order                                      # original index of sorted word i
    chars_mask = (chars == 0)

    # Cross-check the Pallas hot path against a pure-JAX reference.
    emb = jnp.take(params["char_emb"], chars, axis=0)          # (W, T, E)
    kern_args = (emb, wordlens, params["w_ih"], params["w_hh"],
                 params["b_ih"], params["b_hh"], params["attn_w"],
                 params["h_init"], params["c_init"])
    ref_reps = _reference_word_reps(params, chars, wordlens)

    # f32 path: tight check
    reps_f32 = char_word_reps(*kern_args, compute_dtype=jnp.float32)
    np.testing.assert_allclose(np.asarray(reps_f32), np.asarray(ref_reps),
                               rtol=2e-5, atol=2e-5)
    # bf16 matmul operands + bf16 pre-projection scratch (v6e/v7x fast path),
    # f32 recurrent state / accumulation: loose check.
    reps_bf16 = char_word_reps(*kern_args, compute_dtype=jnp.bfloat16)
    np.testing.assert_allclose(np.asarray(reps_bf16), np.asarray(ref_reps),
                               rtol=5e-2, atol=5e-2)

    # Full forward (pad=True branch): (num_sent, max_sentlen, char_hidden_dim)
    out = character_model_forward(params, chars, chars_mask, word_orig_idx,
                                  sentlens, wordlens, pad=True)
    out = jax.block_until_ready(out)
    assert out.shape == (len(sentlens), max(sentlens), H)
    print("KERNEL_OK")
</pallas_src>

<mosaic_0001>
module attributes {stable_mosaic.version = 11 : i64} {
  func.func @_char_lstm_attn_kernel(%arg0: i32, %arg1: memref<16x1024xf32, #tpu.memory_space<vmem>>, %arg2: memref<1x128xi32, #tpu.memory_space<vmem>>, %arg3: memref<128x16xf32, #tpu.memory_space<vmem>>, %arg4: memref<128x32xf32, #tpu.memory_space<vmem>>, %arg5: memref<128x1xf32, #tpu.memory_space<vmem>>, %arg6: memref<32x1xf32, #tpu.memory_space<vmem>>, %arg7: memref<32x1xf32, #tpu.memory_space<vmem>>, %arg8: memref<32x1xf32, #tpu.memory_space<vmem>>, %arg9: memref<32x128xf32, #tpu.memory_space<vmem>>, %arg10: memref<128x1024xf32, #tpu.memory_space<vmem>>) attributes {dimension_semantics = [#tpu.dimension_semantics<parallel>], iteration_bounds = array<i64: 1>, scalar_prefetch = 0 : i64, scratch_operands = 1 : i64, tpu.core_type = #tpu.core_type<tc>, window_params = [{transform_indices = @transform_0, window_bounds = array<i64: 16, 1024>}, {transform_indices = @transform_1, window_bounds = array<i64: 1, 128>}, {pipeline_mode = #tpu.pipeline_mode<synchronous>, transform_indices = @transform_2, window_bounds = array<i64: 128, 16>}, {pipeline_mode = #tpu.pipeline_mode<synchronous>, transform_indices = @transform_3, window_bounds = array<i64: 128, 32>}, {pipeline_mode = #tpu.pipeline_mode<synchronous>, transform_indices = @transform_4, window_bounds = array<i64: 128, 1>}, {pipeline_mode = #tpu.pipeline_mode<synchronous>, transform_indices = @transform_5, window_bounds = array<i64: 32, 1>}, {pipeline_mode = #tpu.pipeline_mode<synchronous>, transform_indices = @transform_6, window_bounds = array<i64: 32, 1>}, {pipeline_mode = #tpu.pipeline_mode<synchronous>, transform_indices = @transform_7, window_bounds = array<i64: 32, 1>}, {transform_indices = @transform_8, window_bounds = array<i64: 32, 128>}]} {
    %c0 = arith.constant 0 : index
    %c0_0 = arith.constant 0 : index
    %0 = vector.load %arg3[%c0, %c0_0] : memref<128x16xf32, #tpu.memory_space<vmem>>, vector<128x16xf32>
    %c0_1 = arith.constant 0 : index
    %c0_2 = arith.constant 0 : index
    %1 = vector.load %arg1[%c0_1, %c0_2] : memref<16x1024xf32, #tpu.memory_space<vmem>>, vector<16x1024xf32>
    %cst = arith.constant dense<0.000000e+00> : vector<128x1024xf32>
    %2 = tpu.matmul %0, %1, %cst {dimension_numbers = #tpu.dot_dimension_numbers<[1], [0], [0], [1], [0, 0, 1, 1], [], []>} : vector<128x16xf32>, vector<16x1024xf32>, vector<128x1024xf32> -> vector<128x1024xf32>
    %c0_3 = arith.constant 0 : index
    %c0_4 = arith.constant 0 : index
    %3 = vector.load %arg10[%c0_3, %c0_4] : memref<128x1024xf32, #tpu.memory_space<vmem>>, vector<128x1024xf32>
    tpu.vector_store %arg10[%c0_3, %c0_4], %2 {strides = array<i32>} : memref<128x1024xf32, #tpu.memory_space<vmem>>, vector<128x1024xf32>,
    %c0_5 = arith.constant 0 : index
    %c0_6 = arith.constant 0 : index
    %4 = vector.load %arg5[%c0_5, %c0_6] : memref<128x1xf32, #tpu.memory_space<vmem>>, vector<128x1xf32>
    %5 = vector.shape_cast %4 : vector<128x1xf32> to vector<128x1xf32>
    %6 = vector.broadcast %5 : vector<128x1xf32> to vector<128x128xf32>
    %c0_7 = arith.constant 0 : index
    %c0_8 = arith.constant 0 : index
    %7 = vector.load %arg6[%c0_7, %c0_8] : memref<32x1xf32, #tpu.memory_space<vmem>>, vector<32x1xf32>
    %8 = vector.shape_cast %7 : vector<32x1xf32> to vector<32x1xf32>
    %9 = vector.broadcast %8 : vector<32x1xf32> to vector<32x128xf32>
    %c0_9 = arith.constant 0 : index
    %c0_10 = arith.constant 0 : index
    %10 = vector.load %arg2[%c0_9, %c0_10] : memref<1x128xi32, #tpu.memory_space<vmem>>, vector<1x128xi32>
    %c0_11 = arith.constant 0 : index
    %c0_12 = arith.constant 0 : index
    %11 = vector.load %arg7[%c0_11, %c0_12] : memref<32x1xf32, #tpu.memory_space<vmem>>, vector<32x1xf32>
    %12 = vector.shape_cast %11 : vector<32x1xf32> to vector<32x1xf32>
    %13 = vector.broadcast %12 : vector<32x1xf32> to vector<32x128xf32>
    %c0_13 = arith.constant 0 : index
    %c0_14 = arith.constant 0 : index
    %14 = vector.load %arg8[%c0_13, %c0_14] : memref<32x1xf32, #tpu.memory_space<vmem>>, vector<32x1xf32>
    %15 = vector.shape_cast %14 : vector<32x1xf32> to vector<32x1xf32>
    %16 = vector.broadcast %15 : vector<32x1xf32> to vector<32x128xf32>
    %cst_15 = arith.constant 0.000000e+00 : f32
    %17 = vector.broadcast %cst_15 : f32 to vector<32x128xf32>
    %c0_16 = arith.constant 0 : index
    %c0_17 = arith.constant 0 : index
    %18 = vector.load %arg10[%c0_16, %c0_17] : memref<128x1024xf32, #tpu.memory_space<vmem>>, vector<128x128xf32>
    %c0_18 = arith.constant 0 : index
    %c0_19 = arith.constant 0 : index
    %19 = vector.load %arg4[%c0_18, %c0_19] : memref<128x32xf32, #tpu.memory_space<vmem>>, vector<128x32xf32>
    %cst_20 = arith.constant dense<0.000000e+00> : vector<128x128xf32>
    %20 = tpu.matmul %19, %13, %cst_20 {dimension_numbers = #tpu.dot_dimension_numbers<[1], [0], [0], [1], [0, 0, 1, 1], [], []>} : vector<128x32xf32>, vector<32x128xf32>, vector<128x128xf32> -> vector<128x128xf32>
    %21 = arith.addf %18, %20 : vector<128x128xf32>
    %22 = arith.addf %21, %6 : vector<128x128xf32>
    %23 = vector.extract_strided_slice %22 {offsets = [0, 0], sizes = [32, 128], strides = [1, 1]} : vector<128x128xf32> to vector<32x128xf32>
    %24 = arith.negf %23 : vector<32x128xf32>
    %25 = math.exp %24 : vector<32x128xf32>
    %cst_21 = arith.constant 1.000000e+00 : f32
    %26 = vector.broadcast %cst_21 : f32 to vector<32x128xf32>
    %27 = arith.addf %26, %25 : vector<32x128xf32>
    %28 = arith.divf %26, %27 : vector<32x128xf32>
    %29 = vector.extract_strided_slice %22 {offsets = [32, 0], sizes = [32, 128], strides = [1, 1]} : vector<128x128xf32> to vector<32x128xf32>
    %30 = arith.negf %29 : vector<32x128xf32>
    %31 = math.exp %30 : vector<32x128xf32>
    %cst_22 = arith.constant 1.000000e+00 : f32
    %32 = vector.broadcast %cst_22 : f32 to vector<32x128xf32>
    %33 = arith.addf %32, %31 : vector<32x128xf32>
    %34 = arith.divf %32, %33 : vector<32x128xf32>
    %35 = vector.extract_strided_slice %22 {offsets = [64, 0], sizes = [32, 128], strides = [1, 1]} : vector<128x128xf32> to vector<32x128xf32>
    %36 = math.tanh %35 : vector<32x128xf32>
    %37 = vector.extract_strided_slice %22 {offsets = [96, 0], sizes = [32, 128], strides = [1, 1]} : vector<128x128xf32> to vector<32x128xf32>
    %38 = arith.negf %37 : vector<32x128xf32>
    %39 = math.exp %38 : vector<32x128xf32>
    %cst_23 = arith.constant 1.000000e+00 : f32
    %40 = vector.broadcast %cst_23 : f32 to vector<32x128xf32>
    %41 = arith.addf %40, %39 : vector<32x128xf32>
    %42 = arith.divf %40, %41 : vector<32x128xf32>
    %43 = arith.mulf %34, %16 : vector<32x128xf32>
    %44 = arith.mulf %28, %36 : vector<32x128xf32>
    %45 = arith.addf %43, %44 : vector<32x128xf32>
    %46 = math.tanh %45 : vector<32x128xf32>
    %47 = arith.mulf %42, %46 : vector<32x128xf32>
    %48 = arith.mulf %47, %9 : vector<32x128xf32>
    %cst_24 = arith.constant dense<0.000000e+00> : vector<128xf32>
    %49 = vector.multi_reduction <add>, %48, %cst_24 [0] : vector<32x128xf32> to vector<128xf32>
    %50 = vector.shape_cast %49 : vector<128xf32> to vector<1x128xf32>
    %51 = arith.negf %50 : vector<1x128xf32>
    %52 = math.exp %51 : vector<1x128xf32>
    %cst_25 = arith.constant 1.000000e+00 : f32
    %53 = vector.broadcast %cst_25 : f32 to vector<1x128xf32>
    %54 = arith.addf %53, %52 : vector<1x128xf32>
    %55 = arith.divf %53, %54 : vector<1x128xf32>
    %c0_i32 = arith.constant 0 : i32
    %56 = vector.broadcast %c0_i32 : i32 to vector<1x128xi32>
    %57 = arith.cmpi sgt, %10, %56 : vector<1x128xi32>
    %cst_26 = arith.constant 0.000000e+00 : f32
    %58 = vector.broadcast %cst_26 : f32 to vector<1x128xf32>
    %59 = arith.select %57, %55, %58 : vector<1x128xi1>, vector<1x128xf32>
    %60 = vector.broadcast %59 : vector<1x128xf32> to vector<32x128xf32>
    %61 = arith.mulf %60, %47 : vector<32x128xf32>
    %62 = arith.addf %17, %61 : vector<32x128xf32>
    %c0_27 = arith.constant 0 : index
    %c128 = arith.constant 128 : index
    %63 = vector.load %arg10[%c0_27, %c128] : memref<128x1024xf32, #tpu.memory_space<vmem>>, vector<128x128xf32>
    %c0_28 = arith.constant 0 : index
    %c0_29 = arith.constant 0 : index
    %64 = vector.load %arg4[%c0_28, %c0_29] : memref<128x32xf32, #tpu.memory_space<vmem>>, vector<128x32xf32>
    %cst_30 = arith.constant dense<0.000000e+00> : vector<128x128xf32>
    %65 = tpu.matmul %64, %47, %cst_30 {dimension_numbers = #tpu.dot_dimension_numbers<[1], [0], [0], [1], [0, 0, 1, 1], [], []>} : vector<128x32xf32>, vector<32x128xf32>, vector<128x128xf32> -> vector<128x128xf32>
    %66 = arith.addf %63, %65 : vector<128x128xf32>
    %67 = arith.addf %66, %6 : vector<128x128xf32>
    %68 = vector.extract_strided_slice %67 {offsets = [0, 0], sizes = [32, 128], strides = [1, 1]} : vector<128x128xf32> to vector<32x128xf32>
    %69 = arith.negf %68 : vector<32x128xf32>
    %70 = math.exp %69 : vector<32x128xf32>
    %cst_31 = arith.constant 1.000000e+00 : f32
    %71 = vector.broadcast %cst_31 : f32 to vector<32x128xf32>
    %72 = arith.addf %71, %70 : vector<32x128xf32>
    %73 = arith.divf %71, %72 : vector<32x128xf32>
    %74 = vector.extract_strided_slice %67 {offsets = [32, 0], sizes = [32, 128], strides = [1, 1]} : vector<128x128xf32> to vector<32x128xf32>
    %75 = arith.negf %74 : vector<32x128xf32>
    %76 = math.exp %75 : vector<32x128xf32>
    %cst_32 = arith.constant 1.000000e+00 : f32
    %77 = vector.broadcast %cst_32 : f32 to vector<32x128xf32>
    %78 = arith.addf %77, %76 : vector<32x128xf32>
    %79 = arith.divf %77, %78 : vector<32x128xf32>
    %80 = vector.extract_strided_slice %67 {offsets = [64, 0], sizes = [32, 128], strides = [1, 1]} : vector<128x128xf32> to vector<32x128xf32>
    %81 = math.tanh %80 : vector<32x128xf32>
    %82 = vector.extract_strided_slice %67 {offsets = [96, 0], sizes = [32, 128], strides = [1, 1]} : vector<128x128xf32> to vector<32x128xf32>
    %83 = arith.negf %82 : vector<32x128xf32>
    %84 = math.exp %83 : vector<32x128xf32>
    %cst_33 = arith.constant 1.000000e+00 : f32
    %85 = vector.broadcast %cst_33 : f32 to vector<32x128xf32>
    %86 = arith.addf %85, %84 : vector<32x128xf32>
    %87 = arith.divf %85, %86 : vector<32x128xf32>
    %88 = arith.mulf %79, %45 : vector<32x128xf32>
    %89 = arith.mulf %73, %81 : vector<32x128xf32>
    %90 = arith.addf %88, %89 : vector<32x128xf32>
    %91 = math.tanh %90 : vector<32x128xf32>
    %92 = arith.mulf %87, %91 : vector<32x128xf32>
    %93 = arith.mulf %92, %9 : vector<32x128xf32>
    %cst_34 = arith.constant dense<0.000000e+00> : vector<128xf32>
    %94 = vector.multi_reduction <add>, %93, %cst_34 [0] : vector<32x128xf32> to vector<128xf32>
    %95 = vector.shape_cast %94 : vector<128xf32> to vector<1x128xf32>
    %96 = arith.negf %95 : vector<1x128xf32>
    %97 = math.exp %96 : vector<1x128xf32>
    %cst_35 = arith.constant 1.000000e+00 : f32
    %98 = vector.broadcast %cst_35 : f32 to vector<1x128xf32>
    %99 = arith.addf %98, %97 : vector<1x128xf32>
    %100 = arith.divf %98, %99 : vector<1x128xf32>
    %c1_i32 = arith.constant 1 : i32
    %101 = vector.broadcast %c1_i32 : i32 to vector<1x128xi32>
    %102 = arith.cmpi sgt, %10, %101 : vector<1x128xi32>
    %cst_36 = arith.constant 0.000000e+00 : f32
    %103 = vector.broadcast %cst_36 : f32 to vector<1x128xf32>
    %104 = arith.select %102, %100, %103 : vector<1x128xi1>, vector<1x128xf32>
    %105 = vector.broadcast %104 : vector<1x128xf32> to vector<32x128xf32>
    %106 = arith.mulf %105, %92 : vector<32x128xf32>
    %107 = arith.addf %62, %106 : vector<32x128xf32>
    %c0_37 = arith.constant 0 : index
    %c256 = arith.constant 256 : index
    %108 = vector.load %arg10[%c0_37, %c256] : memref<128x1024xf32, #tpu.memory_space<vmem>>, vector<128x128xf32>
    %c0_38 = arith.constant 0 : index
    %c0_39 = arith.constant 0 : index
    %109 = vector.load %arg4[%c0_38, %c0_39] : memref<128x32xf32, #tpu.memory_space<vmem>>, vector<128x32xf32>
    %cst_40 = arith.constant dense<0.000000e+00> : vector<128x128xf32>
    %110 = tpu.matmul %109, %92, %cst_40 {dimension_numbers = #tpu.dot_dimension_numbers<[1], [0], [0], [1], [0, 0, 1, 1], [], []>} : vector<128x32xf32>, vector<32x128xf32>, vector<128x128xf32> -> vector<128x128xf32>
    %111 = arith.addf %108, %110 : vector<128x128xf32>
    %112 = arith.addf %111, %6 : vector<128x128xf32>
    %113 = vector.extract_strided_slice %112 {offsets = [0, 0], sizes = [32, 128], strides = [1, 1]} : vector<128x128xf32> to vector<32x128xf32>
    %114 = arith.negf %113 : vector<32x128xf32>
    %115 = math.exp %114 : vector<32x128xf32>
    %cst_41 = arith.constant 1.000000e+00 : f32
    %116 = vector.broadcast %cst_41 : f32 to vector<32x128xf32>
    %117 = arith.addf %116, %115 : vector<32x128xf32>
    %118 = arith.divf %116, %117 : vector<32x128xf32>
    %119 = vector.extract_strided_slice %112 {offsets = [32, 0], sizes = [32, 128], strides = [1, 1]} : vector<128x128xf32> to vector<32x128xf32>
    %120 = arith.negf %119 : vector<32x128xf32>
    %121 = math.exp %120 : vector<32x128xf32>
    %cst_42 = arith.constant 1.000000e+00 : f32
    %122 = vector.broadcast %cst_42 : f32 to vector<32x128xf32>
    %123 = arith.addf %122, %121 : vector<32x128xf32>
    %124 = arith.divf %122, %123 : vector<32x128xf32>
    %125 = vector.extract_strided_slice %112 {offsets = [64, 0], sizes = [32, 128], strides = [1, 1]} : vector<128x128xf32> to vector<32x128xf32>
    %126 = math.tanh %125 : vector<32x128xf32>
    %127 = vector.extract_strided_slice %112 {offsets = [96, 0], sizes = [32, 128], strides = [1, 1]} : vector<128x128xf32> to vector<32x128xf32>
    %128 = arith.negf %127 : vector<32x128xf32>
    %129 = math.exp %128 : vector<32x128xf32>
    %cst_43 = arith.constant 1.000000e+00 : f32
    %130 = vector.broadcast %cst_43 : f32 to vector<32x128xf32>
    %131 = arith.addf %130, %129 : vector<32x128xf32>
    %132 = arith.divf %130, %131 : vector<32x128xf32>
    %133 = arith.mulf %124, %90 : vector<32x128xf32>
    %134 = arith.mulf %118, %126 : vector<32x128xf32>
    %135 = arith.addf %133, %134 : vector<32x128xf32>
    %136 = math.tanh %135 : vector<32x128xf32>
    %137 = arith.mulf %132, %136 : vector<32x128xf32>
    %138 = arith.mulf %137, %9 : vector<32x128xf32>
    %cst_44 = arith.constant dense<0.000000e+00> : vector<128xf32>
    %139 = vector.multi_reduction <add>, %138, %cst_44 [0] : vector<32x128xf32> to vector<128xf32>
    %140 = vector.shape_cast %139 : vector<128xf32> to vector<1x128xf32>
    %141 = arith.negf %140 : vector<1x128xf32>
    %142 = math.exp %141 : vector<1x128xf32>
    %cst_45 = arith.constant 1.000000e+00 : f32
    %143 = vector.broadcast %cst_45 : f32 to vector<1x128xf32>
    %144 = arith.addf %143, %142 : vector<1x128xf32>
    %145 = arith.divf %143, %144 : vector<1x128xf32>
    %c2_i32 = arith.constant 2 : i32
    %146 = vector.broadcast %c2_i32 : i32 to vector<1x128xi32>
    %147 = arith.cmpi sgt, %10, %146 : vector<1x128xi32>
    %cst_46 = arith.constant 0.000000e+00 : f32
    %148 = vector.broadcast %cst_46 : f32 to vector<1x128xf32>
    %149 = arith.select %147, %145, %148 : vector<1x128xi1>, vector<1x128xf32>
    %150 = vector.broadcast %149 : vector<1x128xf32> to vector<32x128xf32>
    %151 = arith.mulf %150, %137 : vector<32x128xf32>
    %152 = arith.addf %107, %151 : vector<32x128xf32>
    %c0_47 = arith.constant 0 : index
    %c384 = arith.constant 384 : index
    %153 = vector.load %arg10[%c0_47, %c384] : memref<128x1024xf32, #tpu.memory_space<vmem>>, vector<128x128xf32>
    %c0_48 = arith.constant 0 : index
    %c0_49 = arith.constant 0 : index
    %154 = vector.load %arg4[%c0_48, %c0_49] : memref<128x32xf32, #tpu.memory_space<vmem>>, vector<128x32xf32>
    %cst_50 = arith.constant dense<0.000000e+00> : vector<128x128xf32>
    %155 = tpu.matmul %154, %137, %cst_50 {dimension_numbers = #tpu.dot_dimension_numbers<[1], [0], [0], [1], [0, 0, 1, 1], [], []>} : vector<128x32xf32>, vector<32x128xf32>, vector<128x128xf32> -> vector<128x128xf32>
    %156 = arith.addf %153, %155 : vector<128x128xf32>
    %157 = arith.addf %156, %6 : vector<128x128xf32>
    %158 = vector.extract_strided_slice %157 {offsets = [0, 0], sizes = [32, 128], strides = [1, 1]} : vector<128x128xf32> to vector<32x128xf32>
    %159 = arith.negf %158 : vector<32x128xf32>
    %160 = math.exp %159 : vector<32x128xf32>
    %cst_51 = arith.constant 1.000000e+00 : f32
    %161 = vector.broadcast %cst_51 : f32 to vector<32x128xf32>
    %162 = arith.addf %161, %160 : vector<32x128xf32>
    %163 = arith.divf %161, %162 : vector<32x128xf32>
    %164 = vector.extract_strided_slice %157 {offsets = [32, 0], sizes = [32, 128], strides = [1, 1]} : vector<128x128xf32> to vector<32x128xf32>
    %165 = arith.negf %164 : vector<32x128xf32>
    %166 = math.exp %165 : vector<32x128xf32>
    %cst_52 = arith.constant 1.000000e+00 : f32
    %167 = vector.broadcast %cst_52 : f32 to vector<32x128xf32>
    %168 = arith.addf %167, %166 : vector<32x128xf32>
    %169 = arith.divf %167, %168 : vector<32x128xf32>
    %170 = vector.extract_strided_slice %157 {offsets = [64, 0], sizes = [32, 128], strides = [1, 1]} : vector<128x128xf32> to vector<32x128xf32>
    %171 = math.tanh %170 : vector<32x128xf32>
    %172 = vector.extract_strided_slice %157 {offsets = [96, 0], sizes = [32, 128], strides = [1, 1]} : vector<128x128xf32> to vector<32x128xf32>
    %173 = arith.negf %172 : vector<32x128xf32>
    %174 = math.exp %173 : vector<32x128xf32>
    %cst_53 = arith.constant 1.000000e+00 : f32
    %175 = vector.broadcast %cst_53 : f32 to vector<32x128xf32>
    %176 = arith.addf %175, %174 : vector<32x128xf32>
    %177 = arith.divf %175, %176 : vector<32x128xf32>
    %178 = arith.mulf %169, %135 : vector<32x128xf32>
    %179 = arith.mulf %163, %171 : vector<32x128xf32>
    %180 = arith.addf %178, %179 : vector<32x128xf32>
    %181 = math.tanh %180 : vector<32x128xf32>
    %182 = arith.mulf %177, %181 : vector<32x128xf32>
    %183 = arith.mulf %182, %9 : vector<32x128xf32>
    %cst_54 = arith.constant dense<0.000000e+00> : vector<128xf32>
    %184 = vector.multi_reduction <add>, %183, %cst_54 [0] : vector<32x128xf32> to vector<128xf32>
    %185 = vector.shape_cast %184 : vector<128xf32> to vector<1x128xf32>
    %186 = arith.negf %185 : vector<1x128xf32>
    %187 = math.exp %186 : vector<1x128xf32>
    %cst_55 = arith.constant 1.000000e+00 : f32
    %188 = vector.broadcast %cst_55 : f32 to vector<1x128xf32>
    %189 = arith.addf %188, %187 : vector<1x128xf32>
    %190 = arith.divf %188, %189 : vector<1x128xf32>
    %c3_i32 = arith.constant 3 : i32
    %191 = vector.broadcast %c3_i32 : i32 to vector<1x128xi32>
    %192 = arith.cmpi sgt, %10, %191 : vector<1x128xi32>
    %cst_56 = arith.constant 0.000000e+00 : f32
    %193 = vector.broadcast %cst_56 : f32 to vector<1x128xf32>
    %194 = arith.select %192, %190, %193 : vector<1x128xi1>, vector<1x128xf32>
    %195 = vector.broadcast %194 : vector<1x128xf32> to vector<32x128xf32>
    %196 = arith.mulf %195, %182 : vector<32x128xf32>
    %197 = arith.addf %152, %196 : vector<32x128xf32>
    %c0_57 = arith.constant 0 : index
    %c512 = arith.constant 512 : index
    %198 = vector.load %arg10[%c0_57, %c512] : memref<128x1024xf32, #tpu.memory_space<vmem>>, vector<128x128xf32>
    %c0_58 = arith.constant 0 : index
    %c0_59 = arith.constant 0 : index
    %199 = vector.load %arg4[%c0_58, %c0_59] : memref<128x32xf32, #tpu.memory_space<vmem>>, vector<128x32xf32>
    %cst_60 = arith.constant dense<0.000000e+00> : vector<128x128xf32>
    %200 = tpu.matmul %199, %182, %cst_60 {dimension_numbers = #tpu.dot_dimension_numbers<[1], [0], [0], [1], [0, 0, 1, 1], [], []>} : vector<128x32xf32>, vector<32x128xf32>, vector<128x128xf32> -> vector<128x128xf32>
    %201 = arith.addf %198, %200 : vector<128x128xf32>
    %202 = arith.addf %201, %6 : vector<128x128xf32>
    %203 = vector.extract_strided_slice %202 {offsets = [0, 0], sizes = [32, 128], strides = [1, 1]} : vector<128x128xf32> to vector<32x128xf32>
    %204 = arith.negf %203 : vector<32x128xf32>
    %205 = math.exp %204 : vector<32x128xf32>
    %cst_61 = arith.constant 1.000000e+00 : f32
    %206 = vector.broadcast %cst_61 : f32 to vector<32x128xf32>
    %207 = arith.addf %206, %205 : vector<32x128xf32>
    %208 = arith.divf %206, %207 : vector<32x128xf32>
    %209 = vector.extract_strided_slice %202 {offsets = [32, 0], sizes = [32, 128], strides = [1, 1]} : vector<128x128xf32> to vector<32x128xf32>
    %210 = arith.negf %209 : vector<32x128xf32>
    %211 = math.exp %210 : vector<32x128xf32>
    %cst_62 = arith.constant 1.000000e+00 : f32
    %212 = vector.broadcast %cst_62 : f32 to vector<32x128xf32>
    %213 = arith.addf %212, %211 : vector<32x128xf32>
    %214 = arith.divf %212, %213 : vector<32x128xf32>
    %215 = vector.extract_strided_slice %202 {offsets = [64, 0], sizes = [32, 128], strides = [1, 1]} : vector<128x128xf32> to vector<32x128xf32>
    %216 = math.tanh %215 : vector<32x128xf32>
    %217 = vector.extract_strided_slice %202 {offsets = [96, 0], sizes = [32, 128], strides = [1, 1]} : vector<128x128xf32> to vector<32x128xf32>
    %218 = arith.negf %217 : vector<32x128xf32>
    %219 = math.exp %218 : vector<32x128xf32>
    %cst_63 = arith.constant 1.000000e+00 : f32
    %220 = vector.broadcast %cst_63 : f32 to vector<32x128xf32>
    %221 = arith.addf %220, %219 : vector<32x128xf32>
    %222 = arith.divf %220, %221 : vector<32x128xf32>
    %223 = arith.mulf %214, %180 : vector<32x128xf32>
    %224 = arith.mulf %208, %216 : vector<32x128xf32>
    %225 = arith.addf %223, %224 : vector<32x128xf32>
    %226 = math.tanh %225 : vector<32x128xf32>
    %227 = arith.mulf %222, %226 : vector<32x128xf32>
    %228 = arith.mulf %227, %9 : vector<32x128xf32>
    %cst_64 = arith.constant dense<0.000000e+00> : vector<128xf32>
    %229 = vector.multi_reduction <add>, %228, %cst_64 [0] : vector<32x128xf32> to vector<128xf32>
    %230 = vector.shape_cast %229 : vector<128xf32> to vector<1x128xf32>
    %231 = arith.negf %230 : vector<1x128xf32>
    %232 = math.exp %231 : vector<1x128xf32>
    %cst_65 = arith.constant 1.000000e+00 : f32
    %233 = vector.broadcast %cst_65 : f32 to vector<1x128xf32>
    %234 = arith.addf %233, %232 : vector<1x128xf32>
    %235 = arith.divf %233, %234 : vector<1x128xf32>
    %c4_i32 = arith.constant 4 : i32
    %236 = vector.broadcast %c4_i32 : i32 to vector<1x128xi32>
    %237 = arith.cmpi sgt, %10, %236 : vector<1x128xi32>
    %cst_66 = arith.constant 0.000000e+00 : f32
    %238 = vector.broadcast %cst_66 : f32 to vector<1x128xf32>
    %239 = arith.select %237, %235, %238 : vector<1x128xi1>, vector<1x128xf32>
    %240 = vector.broadcast %239 : vector<1x128xf32> to vector<32x128xf32>
    %241 = arith.mulf %240, %227 : vector<32x128xf32>
    %242 = arith.addf %197, %241 : vector<32x128xf32>
    %c0_67 = arith.constant 0 : index
    %c640 = arith.constant 640 : index
    %243 = vector.load %arg10[%c0_67, %c640] : memref<128x1024xf32, #tpu.memory_space<vmem>>, vector<128x128xf32>
    %c0_68 = arith.constant 0 : index
    %c0_69 = arith.constant 0 : index
    %244 = vector.load %arg4[%c0_68, %c0_69] : memref<128x32xf32, #tpu.memory_space<vmem>>, vector<128x32xf32>
    %cst_70 = arith.constant dense<0.000000e+00> : vector<128x128xf32>
    %245 = tpu.matmul %244, %227, %cst_70 {dimension_numbers = #tpu.dot_dimension_numbers<[1], [0], [0], [1], [0, 0, 1, 1], [], []>} : vector<128x32xf32>, vector<32x128xf32>, vector<128x128xf32> -> vector<128x128xf32>
    %246 = arith.addf %243, %245 : vector<128x128xf32>
    %247 = arith.addf %246, %6 : vector<128x128xf32>
    %248 = vector.extract_strided_slice %247 {offsets = [0, 0], sizes = [32, 128], strides = [1, 1]} : vector<128x128xf32> to vector<32x128xf32>
    %249 = arith.negf %248 : vector<32x128xf32>
    %250 = math.exp %249 : vector<32x128xf32>
    %cst_71 = arith.constant 1.000000e+00 : f32
    %251 = vector.broadcast %cst_71 : f32 to vector<32x128xf32>
    %252 = arith.addf %251, %250 : vector<32x128xf32>
    %253 = arith.divf %251, %252 : vector<32x128xf32>
    %254 = vector.extract_strided_slice %247 {offsets = [32, 0], sizes = [32, 128], strides = [1, 1]} : vector<128x128xf32> to vector<32x128xf32>
    %255 = arith.negf %254 : vector<32x128xf32>
    %256 = math.exp %255 : vector<32x128xf32>
    %cst_72 = arith.constant 1.000000e+00 : f32
    %257 = vector.broadcast %cst_72 : f32 to vector<32x128xf32>
    %258 = arith.addf %257, %256 : vector<32x128xf32>
    %259 = arith.divf %257, %258 : vector<32x128xf32>
    %260 = vector.extract_strided_slice %247 {offsets = [64, 0], sizes = [32, 128], strides = [1, 1]} : vector<128x128xf32> to vector<32x128xf32>
    %261 = math.tanh %260 : vector<32x128xf32>
    %262 = vector.extract_strided_slice %247 {offsets = [96, 0], sizes = [32, 128], strides = [1, 1]} : vector<128x128xf32> to vector<32x128xf32>
    %263 = arith.negf %262 : vector<32x128xf32>
    %264 = math.exp %263 : vector<32x128xf32>
    %cst_73 = arith.constant 1.000000e+00 : f32
    %265 = vector.broadcast %cst_73 : f32 to vector<32x128xf32>
    %266 = arith.addf %265, %264 : vector<32x128xf32>
    %267 = arith.divf %265, %266 : vector<32x128xf32>
    %268 = arith.mulf %259, %225 : vector<32x128xf32>
    %269 = arith.mulf %253, %261 : vector<32x128xf32>
    %270 = arith.addf %268, %269 : vector<32x128xf32>
    %271 = math.tanh %270 : vector<32x128xf32>
    %272 = arith.mulf %267, %271 : vector<32x128xf32>
    %273 = arith.mulf %272, %9 : vector<32x128xf32>
    %cst_74 = arith.constant dense<0.000000e+00> : vector<128xf32>
    %274 = vector.multi_reduction <add>, %273, %cst_74 [0] : vector<32x128xf32> to vector<128xf32>
    %275 = vector.shape_cast %274 : vector<128xf32> to vector<1x128xf32>
    %276 = arith.negf %275 : vector<1x128xf32>
    %277 = math.exp %276 : vector<1x128xf32>
    %cst_75 = arith.constant 1.000000e+00 : f32
    %278 = vector.broadcast %cst_75 : f32 to vector<1x128xf32>
    %279 = arith.addf %278, %277 : vector<1x128xf32>
    %280 = arith.divf %278, %279 : vector<1x128xf32>
    %c5_i32 = arith.constant 5 : i32
    %281 = vector.broadcast %c5_i32 : i32 to vector<1x128xi32>
    %282 = arith.cmpi sgt, %10, %281 : vector<1x128xi32>
    %cst_76 = arith.constant 0.000000e+00 : f32
    %283 = vector.broadcast %cst_76 : f32 to vector<1x128xf32>
    %284 = arith.select %282, %280, %283 : vector<1x128xi1>, vector<1x128xf32>
    %285 = vector.broadcast %284 : vector<1x128xf32> to vector<32x128xf32>
    %286 = arith.mulf %285, %272 : vector<32x128xf32>
    %287 = arith.addf %242, %286 : vector<32x128xf32>
    %c0_77 = arith.constant 0 : index
    %c768 = arith.constant 768 : index
    %288 = vector.load %arg10[%c0_77, %c768] : memref<128x1024xf32, #tpu.memory_space<vmem>>, vector<128x128xf32>
    %c0_78 = arith.constant 0 : index
    %c0_79 = arith.constant 0 : index
    %289 = vector.load %arg4[%c0_78, %c0_79] : memref<128x32xf32, #tpu.memory_space<vmem>>, vector<128x32xf32>
    %cst_80 = arith.constant dense<0.000000e+00> : vector<128x128xf32>
    %290 = tpu.matmul %289, %272, %cst_80 {dimension_numbers = #tpu.dot_dimension_numbers<[1], [0], [0], [1], [0, 0, 1, 1], [], []>} : vector<128x32xf32>, vector<32x128xf32>, vector<128x128xf32> -> vector<128x128xf32>
    %291 = arith.addf %288, %290 : vector<128x128xf32>
    %292 = arith.addf %291, %6 : vector<128x128xf32>
    %293 = vector.extract_strided_slice %292 {offsets = [0, 0], sizes = [32, 128], strides = [1, 1]} : vector<128x128xf32> to vector<32x128xf32>
    %294 = arith.negf %293 : vector<32x128xf32>
    %295 = math.exp %294 : vector<32x128xf32>
    %cst_81 = arith.constant 1.000000e+00 : f32
    %296 = vector.broadcast %cst_81 : f32 to vector<32x128xf32>
    %297 = arith.addf %296, %295 : vector<32x128xf32>
    %298 = arith.divf %296, %297 : vector<32x128xf32>
    %299 = vector.extract_strided_slice %292 {offsets = [32, 0], sizes = [32, 128], strides = [1, 1]} : vector<128x128xf32> to vector<32x128xf32>
    %300 = arith.negf %299 : vector<32x128xf32>
    %301 = math.exp %300 : vector<32x128xf32>
    %cst_82 = arith.constant 1.000000e+00 : f32
    %302 = vector.broadcast %cst_82 : f32 to vector<32x128xf32>
    %303 = arith.addf %302, %301 : vector<32x128xf32>
    %304 = arith.divf %302, %303 : vector<32x128xf32>
    %305 = vector.extract_strided_slice %292 {offsets = [64, 0], sizes = [32, 128], strides = [1, 1]} : vector<128x128xf32> to vector<32x128xf32>
    %306 = math.tanh %305 : vector<32x128xf32>
    %307 = vector.extract_strided_slice %292 {offsets = [96, 0], sizes = [32, 128], strides = [1, 1]} : vector<128x128xf32> to vector<32x128xf32>
    %308 = arith.negf %307 : vector<32x128xf32>
    %309 = math.exp %308 : vector<32x128xf32>
    %cst_83 = arith.constant 1.000000e+00 : f32
    %310 = vector.broadcast %cst_83 : f32 to vector<32x128xf32>
    %311 = arith.addf %310, %309 : vector<32x128xf32>
    %312 = arith.divf %310, %311 : vector<32x128xf32>
    %313 = arith.mulf %304, %270 : vector<32x128xf32>
    %314 = arith.mulf %298, %306 : vector<32x128xf32>
    %315 = arith.addf %313, %314 : vector<32x128xf32>
    %316 = math.tanh %315 : vector<32x128xf32>
    %317 = arith.mulf %312, %316 : vector<32x128xf32>
    %318 = arith.mulf %317, %9 : vector<32x128xf32>
    %cst_84 = arith.constant dense<0.000000e+00> : vector<128xf32>
    %319 = vector.multi_reduction <add>, %318, %cst_84 [0] : vector<32x128xf32> to vector<128xf32>
    %320 = vector.shape_cast %319 : vector<128xf32> to vector<1x128xf32>
    %321 = arith.negf %320 : vector<1x128xf32>
    %322 = math.exp %321 : vector<1x128xf32>
    %cst_85 = arith.constant 1.000000e+00 : f32
    %323 = vector.broadcast %cst_85 : f32 to vector<1x128xf32>
    %324 = arith.addf %323, %322 : vector<1x128xf32>
    %325 = arith.divf %323, %324 : vector<1x128xf32>
    %c6_i32 = arith.constant 6 : i32
    %326 = vector.broadcast %c6_i32 : i32 to vector<1x128xi32>
    %327 = arith.cmpi sgt, %10, %326 : vector<1x128xi32>
    %cst_86 = arith.constant 0.000000e+00 : f32
    %328 = vector.broadcast %cst_86 : f32 to vector<1x128xf32>
    %329 = arith.select %327, %325, %328 : vector<1x128xi1>, vector<1x128xf32>
    %330 = vector.broadcast %329 : vector<1x128xf32> to vector<32x128xf32>
    %331 = arith.mulf %330, %317 : vector<32x128xf32>
    %332 = arith.addf %287, %331 : vector<32x128xf32>
    %c0_87 = arith.constant 0 : index
    %c896 = arith.constant 896 : index
    %333 = vector.load %arg10[%c0_87, %c896] : memref<128x1024xf32, #tpu.memory_space<vmem>>, vector<128x128xf32>
    %c0_88 = arith.constant 0 : index
    %c0_89 = arith.constant 0 : index
    %334 = vector.load %arg4[%c0_88, %c0_89] : memref<128x32xf32, #tpu.memory_space<vmem>>, vector<128x32xf32>
    %cst_90 = arith.constant dense<0.000000e+00> : vector<128x128xf32>
    %335 = tpu.matmul %334, %317, %cst_90 {dimension_numbers = #tpu.dot_dimension_numbers<[1], [0], [0], [1], [0, 0, 1, 1], [], []>} : vector<128x32xf32>, vector<32x128xf32>, vector<128x128xf32> -> vector<128x128xf32>
    %336 = arith.addf %333, %335 : vector<128x128xf32>
    %337 = arith.addf %336, %6 : vector<128x128xf32>
    %338 = vector.extract_strided_slice %337 {offsets = [0, 0], sizes = [32, 128], strides = [1, 1]} : vector<128x128xf32> to vector<32x128xf32>
    %339 = arith.negf %338 : vector<32x128xf32>
    %340 = math.exp %339 : vector<32x128xf32>
    %cst_91 = arith.constant 1.000000e+00 : f32
    %341 = vector.broadcast %cst_91 : f32 to vector<32x128xf32>
    %342 = arith.addf %341, %340 : vector<32x128xf32>
    %343 = arith.divf %341, %342 : vector<32x128xf32>
    %344 = vector.extract_strided_slice %337 {offsets = [32, 0], sizes = [32, 128], strides = [1, 1]} : vector<128x128xf32> to vector<32x128xf32>
    %345 = arith.negf %344 : vector<32x128xf32>
    %346 = math.exp %345 : vector<32x128xf32>
    %cst_92 = arith.constant 1.000000e+00 : f32
    %347 = vector.broadcast %cst_92 : f32 to vector<32x128xf32>
    %348 = arith.addf %347, %346 : vector<32x128xf32>
    %349 = arith.divf %347, %348 : vector<32x128xf32>
    %350 = vector.extract_strided_slice %337 {offsets = [64, 0], sizes = [32, 128], strides = [1, 1]} : vector<128x128xf32> to vector<32x128xf32>
    %351 = math.tanh %350 : vector<32x128xf32>
    %352 = vector.extract_strided_slice %337 {offsets = [96, 0], sizes = [32, 128], strides = [1, 1]} : vector<128x128xf32> to vector<32x128xf32>
    %353 = arith.negf %352 : vector<32x128xf32>
    %354 = math.exp %353 : vector<32x128xf32>
    %cst_93 = arith.constant 1.000000e+00 : f32
    %355 = vector.broadcast %cst_93 : f32 to vector<32x128xf32>
    %356 = arith.addf %355, %354 : vector<32x128xf32>
    %357 = arith.divf %355, %356 : vector<32x128xf32>
    %358 = arith.mulf %349, %315 : vector<32x128xf32>
    %359 = arith.mulf %343, %351 : vector<32x128xf32>
    %360 = arith.addf %358, %359 : vector<32x128xf32>
    %361 = math.tanh %360 : vector<32x128xf32>
    %362 = arith.mulf %357, %361 : vector<32x128xf32>
    %363 = arith.mulf %362, %9 : vector<32x128xf32>
    %cst_94 = arith.constant dense<0.000000e+00> : vector<128xf32>
    %364 = vector.multi_reduction <add>, %363, %cst_94 [0] : vector<32x128xf32> to vector<128xf32>
    %365 = vector.shape_cast %364 : vector<128xf32> to vector<1x128xf32>
    %366 = arith.negf %365 : vector<1x128xf32>
    %367 = math.exp %366 : vector<1x128xf32>
    %cst_95 = arith.constant 1.000000e+00 : f32
    %368 = vector.broadcast %cst_95 : f32 to vector<1x128xf32>
    %369 = arith.addf %368, %367 : vector<1x128xf32>
    %370 = arith.divf %368, %369 : vector<1x128xf32>
    %c7_i32 = arith.constant 7 : i32
    %371 = vector.broadcast %c7_i32 : i32 to vector<1x128xi32>
    %372 = arith.cmpi sgt, %10, %371 : vector<1x128xi32>
    %cst_96 = arith.constant 0.000000e+00 : f32
    %373 = vector.broadcast %cst_96 : f32 to vector<1x128xf32>
    %374 = arith.select %372, %370, %373 : vector<1x128xi1>, vector<1x128xf32>
    %375 = vector.broadcast %374 : vector<1x128xf32> to vector<32x128xf32>
    %376 = arith.mulf %375, %362 : vector<32x128xf32>
    %377 = arith.addf %332, %376 : vector<32x128xf32>
    %c0_97 = arith.constant 0 : index
    %c0_98 = arith.constant 0 : index
    %378 = vector.load %arg9[%c0_97, %c0_98] : memref<32x128xf32, #tpu.memory_space<vmem>>, vector<32x128xf32>
    tpu.vector_store %arg9[%c0_97, %c0_98], %377 {strides = array<i32>} : memref<32x128xf32, #tpu.memory_space<vmem>>, vector<32x128xf32>,
    return
  }
  func.func @transform_0(%arg0: i32) -> (i32, i32) {
    %c0_i32 = arith.constant 0 : i32
    %c0_i32_0 = arith.constant 0 : i32
    return %c0_i32, %arg0 : i32, i32
  }
  func.func @transform_1(%arg0: i32) -> (i32, i32) {
    %c0_i32 = arith.constant 0 : i32
    %c0_i32_0 = arith.constant 0 : i32
    return %c0_i32, %arg0 : i32, i32
  }
  func.func @transform_2(%arg0: i32) -> (i32, i32) {
    %c0_i32 = arith.constant 0 : i32
    %c0_i32_0 = arith.constant 0 : i32
    %c0_i32_1 = arith.constant 0 : i32
    return %c0_i32, %c0_i32_0 : i32, i32
  }
  func.func @transform_3(%arg0: i32) -> (i32, i32) {
    %c0_i32 = arith.constant 0 : i32
    %c0_i32_0 = arith.constant 0 : i32
    %c0_i32_1 = arith.constant 0 : i32
    return %c0_i32, %c0_i32_0 : i32, i32
  }
  func.func @transform_4(%arg0: i32) -> (i32, i32) {
    %c0_i32 = arith.constant 0 : i32
    %c0_i32_0 = arith.constant 0 : i32
    %c0_i32_1 = arith.constant 0 : i32
    return %c0_i32, %c0_i32_0 : i32, i32
  }
  func.func @transform_5(%arg0: i32) -> (i32, i32) {
    %c0_i32 = arith.constant 0 : i32
    %c0_i32_0 = arith.constant 0 : i32
    %c0_i32_1 = arith.constant 0 : i32
    return %c0_i32, %c0_i32_0 : i32, i32
  }
  func.func @transform_6(%arg0: i32) -> (i32, i32) {
    %c0_i32 = arith.constant 0 : i32
    %c0_i32_0 = arith.constant 0 : i32
    %c0_i32_1 = arith.constant 0 : i32
    return %c0_i32, %c0_i32_0 : i32, i32
  }
  func.func @transform_7(%arg0: i32) -> (i32, i32) {
    %c0_i32 = arith.constant 0 : i32
    %c0_i32_0 = arith.constant 0 : i32
    %c0_i32_1 = arith.constant 0 : i32
    return %c0_i32, %c0_i32_0 : i32, i32
  }
  func.func @transform_8(%arg0: i32) -> (i32, i32) {
    %c0_i32 = arith.constant 0 : i32
    %c0_i32_0 = arith.constant 0 : i32
    return %c0_i32, %arg0 : i32, i32
  }
}

</mosaic_0001>

<bundles_post_ra>
// kernel: tpu_custom_call.1
= control target key start
LH: loop header
LB: loop body
LE: loop exit
PB: predicated region body
PF: predicated region fallthrough
CT: control target
= control target key end

     0   :  { %vm62_vm0 = vcmask 130048   ;;  %s9239_s0 = inlined_call_operand.vmem [shape: f32[16,1024], index: 0, kind: input, shape index: {}]   ;;  %s9240_s1 = inlined_call_operand.vmem [shape: s32[1,128], index: 1, kind: input, shape index: {}]   ;;  %s9241_s2 = inlined_call_operand.vmem [shape: f32[128,16], index: 2, kind: input, shape index: {}]   ;;  %s9242_s3 = inlined_call_operand.vmem [shape: f32[128,32], index: 3, kind: input, shape index: {}]   ;;  %s9243_s4 = inlined_call_operand.vmem [shape: f32[128,1], index: 4, kind: input, shape index: {}]   ;;  %s9244_s5 = inlined_call_operand.vmem [shape: f32[32,1], index: 5, kind: input, shape index: {}]   ;;  %s9245_s6 = inlined_call_operand.vmem [shape: f32[32,1], index: 6, kind: input, shape index: {}]   ;;  %s9246_s7 = inlined_call_operand.vmem [shape: f32[32,1], index: 7, kind: input, shape index: {}]   ;;  %s9247_s8 = inlined_call_operand.hbm [shape: f32[32,128], index: 8, kind: output, shape index: {}]  }
   0x1   :  { %v54_v0 = vld [vmem:[%s9239_s0 + $0x40] sm:$0xff] }
   0x2   :  { %v46_v1 = vld [vmem:[%s9239_s0] sm:$0xff]  ;;  %125 = vmatpush.msra.mxu0 %v54_v0 }
   0x3   :  { %v5378_v2 = vld [vmem:[%s9241_s2] sm:$0xff] }
   0x4   :  { %13 = vsyncpa [#allocation4], 0  ;;  %126 = vmatpush.msra.mxu0 %v46_v1  ;;  %v5385_v3 = vld [vmem:[%s9241_s2 + $0x8] sm:$0xff]  ;;  %v5392_v4 = vld [vmem:[%s9241_s2 + $0x10] sm:$0xff]  ;;  %v5320_v8 = vmov 0   ;;  %vm960_vm1 = vcmask 261120  }
   0x5   :  { %4295 = vmatmul.msk.f32.vlgmr.msra.gmra.mxu0 %vm62_vm0, %v5378_v2  ;;  %v5399_v5 = vld [vmem:[%s9241_s2 + $0x18] sm:$0xff]  ;;  %v882_v6 = vld [vmem:[%s9245_s6 + $0x10] sm:$0xff]  ;;  %4659 = vset.pattern.permute.xlu0 %v5320_v8  ;;  %v5412_v10 = vld [vmem:[%s9241_s2 + $0x20] sm:$0xff]  ;;  %s4283_s11 = sshll.u32 %s9247_s8, 4  ;;  %s5322_s12 = smov 128   ;;  %s4284_s11 = int_to_ptr.hbm [resolvable:$true] %s4283_s11 }
   0x6   :  { %v883_v7 = vld [vmem:[%s9245_s6 + $0x18] sm:$0xff]  ;;  %4671 = vset.pattern.permute.xlu2 %v5320_v8  ;;  %4670 = vset.pattern.permute.xlu1 %v5320_v8  ;;  %v880_v11 = vld [vmem:[%s9245_s6] sm:$0xff]  ;;  %v881_v12 = vld [vmem:[%s9245_s6 + $0x8] sm:$0xff]  ;;  %s5323_s13 = smov 8  }
   0x7   :  { %v4660_v9 = vpack.i.bf16 %v882_v6, %v883_v7  ;;  %v4665_v13 = vpack.i.bf16 %v880_v11, %v881_v12  ;;  %v5425_v14 = vld [vmem:[%s9241_s2 + $0x28] sm:$0xff]  ;;  %v5435_v16 = vld [vmem:[%s9241_s2 + $0x30] sm:$0xff]  ;;  %v763_v17 = vld [vmem:[%s9243_s4 + $0x20] sm:$0xff] }
   0x8   :  { %v760_v15 = vld [vmem:[%s9243_s4 + $0x8] sm:$0xff]  ;;  %v5445_v18 = vld [vmem:[%s9241_s2 + $0x38] sm:$0xff]  ;;  %v5455_v20 = vld [vmem:[%s9241_s2 + $0x40] sm:$0xff] }
   0x9   :  { %4661 = vperm.xlu0 %4659, %v4660_v9   ;;  %v772_v19 = vld [vmem:[%s9243_s4 + $0x68] sm:$0xff]  ;;  %v769_v21 = vld [vmem:[%s9243_s4 + $0x50] sm:$0xff]  ;;  %v907_v23 = vld [vmem:[%s9246_s7 + $0x18] sm:$0xff] }
   0xa   :  { %v5465_v22 = vld [vmem:[%s9241_s2 + $0x48] sm:$0xff]  ;;  %v5475_v24 = vld [vmem:[%s9241_s2 + $0x50] sm:$0xff]  ;;  %v904_v25 = vld [vmem:[%s9246_s7] sm:$0xff] }
   0xb   :  { %v5485_v26 = vld [vmem:[%s9241_s2 + $0x58] sm:$0xff]  ;;  %v58_v27 = vld [vmem:[%s9239_s0 + $0x60] sm:$0xff]  ;;  %v857_v30 = vld [vmem:[%s9244_s5 + $0x10] sm:$0xff] }
   0xc   :  { %385 = vmatpush.msrb.mxu0 %v58_v27  ;;  %v5495_v28 = vld [vmem:[%s9241_s2 + $0x60] sm:$0xff]  ;;  %v5508_v31 = vld [vmem:[%s9241_s2 + $0x68] sm:$0xff]  ;;  %v5515_v32 = vld [vmem:[%s9241_s2 + $0x70] sm:$0xff] }
   0xd   :  { %4296 = vmatmul.msk.f32.gmra.mxu0 %vm62_vm0, %v5385_v3  ;;  %v50_v29 = vld [vmem:[%s9239_s0 + $0x20] sm:$0xff]  ;;  %v5522_v33 = vld [vmem:[%s9241_s2 + $0x78] sm:$0xff]  ;;  %v761_v55 = vld [vmem:[%s9243_s4 + $0x10] sm:$0xff] }
   0xe   :  { %386 = vmatpush.msrb.mxu0 %v50_v29  ;;  %787 = vperm.xlu2 %4671, %v761_v55   ;;  %v55_v57 = vld [vmem:[%s9239_s0 + $0x48] sm:$0xff]  ;;  %v765_v58 = vld [vmem:[%s9243_s4 + $0x30] sm:$0xff]  ;;  %v5604_v60 = vld [vmem:[%s9242_s3] sm:$0xff] }
   0xf   :  { %190 = vmatpush.msra.mxu1 %v55_v57  ;;  %v47_v61 = vld [vmem:[%s9239_s0 + $0x8] sm:$0xff]  ;;  %v762_v62 = vld [vmem:[%s9243_s4 + $0x18] sm:$0xff]  ;;  %v759_v63 = vld [vmem:[%s9243_s4] sm:$0xff] }
  0x10   :  { %792 = vperm.xlu1 %4670, %v762_v62   ;;  %v5624_v1 = vld [vmem:[%s9242_s3 + $0x8] sm:$0xff]  ;;  %v766_v6 = vld [vmem:[%s9243_s4 + $0x38] sm:$0xff]  ;;  %v5638_v8 = vld [vmem:[%s9242_s3 + $0x10] sm:$0xff] }
  0x11   :  { %4666 = vperm.xlu0 %4659, %v4665_v13   ;;  %191 = vmatpush.msra.mxu1 %v47_v61  ;;  %v764_v9 = vld [vmem:[%s9243_s4 + $0x28] sm:$0xff]  ;;  %v5652_v12 = vld [vmem:[%s9242_s3 + $0x18] sm:$0xff]  ;;  %v5691_v27 = vld [vmem:[%s9242_s3 + $0x30] sm:$0xff] }
  0x12   :  { %4311 = vmatmul.msk.f32.vlgmr.msra.gmra.mxu1 %vm62_vm0, %v5378_v2  ;;  %v768_v29 = vld [vmem:[%s9243_s4 + $0x48] sm:$0xff]  ;;  %v855_v55 = vld [vmem:[%s9244_s5] sm:$0xff]  ;;  %v858_v62 = vld [vmem:[%s9244_s5 + $0x18] sm:$0xff] }
  0x13   :  { %v767_v57 = vld [vmem:[%s9243_s4 + $0x40] sm:$0xff]  ;;  %v5742_v61 = vld [vmem:[%s9242_s3 + $0x48] sm:$0xff] }
  0x15   :  { %4297 = vmatmul.msk.f32.gmra.mxu0 %vm62_vm0, %v5392_v4 }
  0x16   :  { %807 = vperm.xlu2 %4671, %v765_v58  }
  0x18   :  { %812 = vperm.xlu1 %4670, %v766_v6  }
  0x19   :  { %782 = vperm.xlu0 %4659, %v760_v15   ;;  %v5663_v15 = vld [vmem:[%s9242_s3 + $0x20] sm:$0xff] }
  0x1a   :  { %4312 = vmatmul.msk.f32.gmra.mxu1 %vm62_vm0, %v5385_v3 }
  0x1d   :  { %4298 = vmatmul.msk.f32.gmra.mxu0 %vm62_vm0, %v5399_v5 }
  0x1e   :  { %777 = vperm.xlu2 %4671, %v759_v63   ;;  %v905_v63 = vld [vmem:[%s9246_s7 + $0x8] sm:$0xff] }
  0x20   :  { %802 = vperm.xlu1 %4670, %v764_v9   ;;  %v5759_v9 = vld [vmem:[%s9242_s3 + $0x50] sm:$0xff] }
  0x21   :  { %797 = vperm.xlu0 %4659, %v763_v17   ;;  %v774_v17 = vld [vmem:[%s9243_s4 + $0x78] sm:$0xff] }
  0x22   :  { %4313 = vmatmul.msk.f32.gmra.mxu1 %vm62_vm0, %v5392_v4 }
  0x25   :  { %4299 = vmatmul.msk.f32.gmra.mxu0 %vm62_vm0, %v5412_v10 }
  0x28   :  { %852 = vperm.xlu1 %4670, %v774_v17  }
  0x29   :  { %842 = vperm.xlu0 %4659, %v772_v19  }
  0x2a   :  { %4314 = vmatmul.msk.f32.gmra.mxu1 %vm62_vm0, %v5399_v5 }
  0x2d   :  { %4300 = vmatmul.msk.f32.gmra.mxu0 %vm62_vm0, %v5425_v14 }
  0x31   :  { %827 = vperm.xlu0 %4659, %v769_v21   ;;  %v5677_v21 = vld [vmem:[%s9242_s3 + $0x28] sm:$0xff] }
  0x32   :  { %4315 = vmatmul.msk.f32.gmra.mxu1 %vm62_vm0, %v5412_v10 }
  0x35   :  { %4301 = vmatmul.msk.f32.gmra.mxu0 %vm62_vm0, %v5435_v16 }
  0x39   :  { %925 = vperm.xlu0 %4659, %v907_v23   ;;  %v771_v23 = vld [vmem:[%s9243_s4 + $0x60] sm:$0xff] }
  0x3a   :  { %4316 = vmatmul.msk.f32.gmra.mxu1 %vm62_vm0, %v5425_v14  ;;  %837 = vperm.xlu1 %4670, %v771_v23   ;;  %v5770_v23 = vld [vmem:[%s9242_s3 + $0x58] sm:$0xff] }
  0x3d   :  { %4302 = vmatmul.msk.f32.gmra.mxu0 %vm62_vm0, %v5445_v18 }
  0x41   :  { %910 = vperm.xlu0 %4659, %v904_v25  }
  0x42   :  { %4317 = vmatmul.msk.f32.gmra.mxu1 %vm62_vm0, %v5435_v16  ;;  %822 = vperm.xlu1 %4670, %v768_v29  }
  0x45   :  { %4303 = vmatmul.msk.f32.gmra.mxu0 %vm62_vm0, %v5455_v20 }
  0x49   :  { %871 = vperm.xlu0 %4659, %v857_v30   ;;  %v773_v30 = vld [vmem:[%s9243_s4 + $0x70] sm:$0xff] }
  0x4a   :  { %847 = vperm.xlu2 %4671, %v773_v30   ;;  %4318 = vmatmul.msk.f32.gmra.mxu1 %vm62_vm0, %v5445_v18  ;;  %v5781_v30 = vld [vmem:[%s9242_s3 + $0x60] sm:$0xff] }
  0x4d   :  { %4304 = vmatmul.msk.f32.gmra.mxu0 %vm62_vm0, %v5465_v22 }
  0x52   :  { %4319 = vmatmul.msk.f32.gmra.mxu1 %vm62_vm0, %v5455_v20 }
  0x55   :  { %4305 = vmatmul.msk.f32.gmra.mxu0 %vm62_vm0, %v5475_v24 }
  0x5a   :  { %4320 = vmatmul.msk.f32.gmra.mxu1 %vm62_vm0, %v5465_v22 }
  0x5d   :  { %4306 = vmatmul.msk.f32.gmra.mxu0 %vm62_vm0, %v5485_v26 }
  0x62   :  { %4321 = vmatmul.msk.f32.gmra.mxu1 %vm62_vm0, %v5475_v24 }
  0x65   :  { %4307 = vmatmul.msk.f32.gmra.mxu0 %vm62_vm0, %v5495_v28 }
  0x6a   :  { %4322 = vmatmul.msk.f32.gmra.mxu1 %vm62_vm0, %v5485_v26 }
  0x6d   :  { %4308 = vmatmul.msk.f32.gmra.mxu0 %vm62_vm0, %v5508_v31 }
  0x72   :  { %4323 = vmatmul.msk.f32.gmra.mxu1 %vm62_vm0, %v5495_v28 }
  0x75   :  { %4309 = vmatmul.msk.f32.gmra.mxu0 %vm62_vm0, %v5515_v32 }
  0x7a   :  { %4324 = vmatmul.msk.f32.gmra.mxu1 %vm62_vm0, %v5508_v31 }
  0x7b   :  { %v4662_v37 = vpop.permute.xlu0 %4661 }
  0x7c   :  { %v4664_v38 = vunpack.i.h.bf16 %v4662_v37  ;;  %v4663_v39 = vunpack.i.l.bf16 %v4662_v37 }
  0x7d   :  { %4310 = vmatmul.msk.f32.gmra.mxu0 %vm62_vm0, %v5522_v33 }
  0x7e   :  { %1021 = vmatpush.msra.mxu0 %v4663_v39  ;;  %v906_v39 = vld [vmem:[%s9246_s7 + $0x10] sm:$0xff] }
  0x7f   :  { %920 = vperm.xlu1 %4670, %v906_v39   ;;  %v856_v39 = vld [vmem:[%s9244_s5 + $0x8] sm:$0xff] }
  0x80   :  { %1022 = vmatpush.msra.mxu0 %v4664_v38  ;;  %v5708_v38 = vld [vmem:[%s9242_s3 + $0x38] sm:$0xff] }
  0x82   :  { %v5526_v34 = vpop.f32.mrf.mxu0  ;;  %4325 = vmatmul.msk.f32.gmra.mxu1 %vm62_vm0, %v5515_v32 }
  0x83   :  { %v4667_v41 = vpop.permute.xlu0 %4666 }
  0x84   :  { %v4669_v42 = vunpack.i.h.bf16 %v4667_v41  ;;  %v4668_v43 = vunpack.i.l.bf16 %v4667_v41  ;;  %v770_v41 = vld [vmem:[%s9243_s4 + $0x58] sm:$0xff] }
  0x85   :  { %4359 = vmatmul.msk.f32.vlgmr.msrb.gmra.mxu0 %vm62_vm0, %v5378_v2  ;;  %832 = vperm.xlu2 %4671, %v770_v41  }
  0x86   :  { %1023 = vmatpush.msra.mxu0 %v4668_v43  ;;  %v5725_v43 = vld [vmem:[%s9242_s3 + $0x40] sm:$0xff] }
  0x87   :  { %861 = vperm.xlu1 %4670, %v855_v55   ;;  %v5795_v55 = vld [vmem:[%s9242_s3 + $0x68] sm:$0xff] }
  0x88   :  { %1024 = vmatpush.msra.mxu0 %v4669_v42 }
  0x8a   :  { %v5530_v35 = vpop.f32.mrf.mxu0  ;;  %4326 = vmatmul.msk.f32.gmra.mxu1 %vm62_vm0, %v5522_v33 }
  0x8d   :  { %4360 = vmatmul.msk.f32.gmra.mxu0 %vm62_vm0, %v5385_v3  ;;  %817 = vperm.xlu2 %4671, %v767_v57  }
  0x8f   :  { %876 = vperm.xlu1 %4670, %v858_v62   ;;  %v5806_v62 = vld [vmem:[%s9242_s3 + $0x70] sm:$0xff] }
  0x90   :  { %9331 = vst [vmem:[#allocation21_spill] sm:$0xff] %v5806_v62 }
  0x92   :  { %v5534_v36 = vpop.f32.mrf.mxu0 }
  0x95   :  { %4361 = vmatmul.msk.f32.gmra.mxu0 %vm62_vm0, %v5392_v4  ;;  %915 = vperm.xlu2 %4671, %v905_v63  }
  0x9a   :  { %v5538_v40 = vpop.f32.mrf.mxu0 }
  0x9d   :  { %4362 = vmatmul.msk.f32.gmra.mxu0 %vm62_vm0, %v5399_v5  ;;  %866 = vperm.xlu2 %4671, %v856_v39   ;;  %v5817_v39 = vld [vmem:[%s9242_s3 + $0x78] sm:$0xff] }
  0x9e   :  { %9333 = vst [vmem:[#allocation23_spill] sm:$0xff] %v5817_v39 }
  0xa2   :  { %v5542_v44 = vpop.f32.mrf.mxu0 }
  0xa5   :  { %4363 = vmatmul.msk.f32.gmra.mxu0 %vm62_vm0, %v5412_v10 }
  0xaa   :  { %v5546_v45 = vpop.f32.mrf.mxu0 }
  0xad   :  { %4364 = vmatmul.msk.f32.gmra.mxu0 %vm62_vm0, %v5425_v14 }
  0xb2   :  { %v5550_v46 = vpop.f32.mrf.mxu0 }
  0xb5   :  { %4365 = vmatmul.msk.f32.gmra.mxu0 %vm62_vm0, %v5435_v16 }
  0xba   :  { %v5554_v47 = vpop.f32.mrf.mxu0 }
  0xbd   :  { %4366 = vmatmul.msk.f32.gmra.mxu0 %vm62_vm0, %v5445_v18 }
  0xc2   :  { %v5558_v48 = vpop.f32.mrf.mxu0 }
  0xc5   :  { %4367 = vmatmul.msk.f32.gmra.mxu0 %vm62_vm0, %v5455_v20 }
  0xca   :  { %v5562_v49 = vpop.f32.mrf.mxu0 }
  0xcd   :  { %4368 = vmatmul.msk.f32.gmra.mxu0 %vm62_vm0, %v5465_v22 }
  0xd2   :  { %v5566_v50 = vpop.f32.mrf.mxu0 }
  0xd5   :  { %4369 = vmatmul.msk.f32.gmra.mxu0 %vm62_vm0, %v5475_v24 }
  0xda   :  { %v5570_v51 = vpop.f32.mrf.mxu0 }
  0xdd   :  { %4370 = vmatmul.msk.f32.gmra.mxu0 %vm62_vm0, %v5485_v26 }
  0xe2   :  { %v5574_v52 = vpop.f32.mrf.mxu0 }
  0xe5   :  { %4371 = vmatmul.msk.f32.gmra.mxu0 %vm62_vm0, %v5495_v28 }
  0xea   :  { %v5578_v53 = vpop.f32.mrf.mxu0 }
  0xed   :  { %4372 = vmatmul.msk.f32.gmra.mxu0 %vm62_vm0, %v5508_v31 }
  0xf2   :  { %v5582_v54 = vpop.f32.mrf.mxu0 }
  0xf5   :  { %4373 = vmatmul.msk.f32.gmra.mxu0 %vm62_vm0, %v5515_v32 }
  0xfa   :  { %v5589_v56 = vpop.f32.mrf.mxu0 }
  0xfd   :  { %4374 = vmatmul.msk.f32.gmra.mxu0 %vm62_vm0, %v5522_v33 }
 0x102   :  { %v5599_v59 = vpop.f32.mrf.mxu0 }
 0x103   :  { %9316 = vst [vmem:[#allocation6_spill] sm:$0xff] %v5599_v59 }
 0x105   :  { %4423 = vmatmul.msk.f32.vlgmr.msra.gmra.mxu0 %vm960_vm1, %v5604_v60 }
 0x10a   :  { %v5619_v0 = vpop.f32.mrf.mxu0 }
 0x10b   :  { %9317 = vst [vmem:[#allocation7_spill] sm:$0xff] %v5619_v0 }
 0x10d   :  { %4424 = vmatmul.msk.f32.gmra.mxu0 %vm960_vm1, %v5624_v1 }
 0x112   :  { %v5633_v7 = vpop.f32.mrf.mxu0 }
 0x113   :  { %9318 = vst [vmem:[#allocation8_spill] sm:$0xff] %v5633_v7 }
 0x115   :  { %4425 = vmatmul.msk.f32.gmra.mxu0 %vm960_vm1, %v5638_v8 }
 0x11a   :  { %v5647_v11 = vpop.f32.mrf.mxu0 }
 0x11b   :  { %9319 = vst [vmem:[#allocation9_spill] sm:$0xff] %v5647_v11 }
 0x11d   :  { %4426 = vmatmul.msk.f32.gmra.mxu0 %vm960_vm1, %v5652_v12 }
 0x122   :  { %v5658_v13 = vpop.f32.mrf.mxu0 }
 0x123   :  { %9320 = vst [vmem:[#allocation10_spill] sm:$0xff] %v5658_v13  ;;  %v5862_v13 = vpop.permute.xlu1 %792 }
 0x124   :  { %9343 = vst [vmem:[#allocation33_spill] sm:$0xff] %v5862_v13 }
 0x125   :  { %4427 = vmatmul.msk.f32.gmra.mxu0 %vm960_vm1, %v5663_v15 }
 0x12a   :  { %v5672_v19 = vpop.f32.mrf.mxu0 }
 0x12b   :  { %9321 = vst [vmem:[#allocation11_spill] sm:$0xff] %v5672_v19 }
 0x12d   :  { %4428 = vmatmul.msk.f32.gmra.mxu0 %vm960_vm1, %v5677_v21 }
 0x132   :  { %v5686_v25 = vpop.f32.mrf.mxu0 }
 0x133   :  { %9322 = vst [vmem:[#allocation12_spill] sm:$0xff] %v5686_v25 }
 0x135   :  { %4429 = vmatmul.msk.f32.gmra.mxu0 %vm960_vm1, %v5691_v27 }
 0x13a   :  { %v5703_v37 = vpop.f32.mrf.mxu0 }
 0x13b   :  { %9323 = vst [vmem:[#allocation13_spill] sm:$0xff] %v5703_v37 }
 0x13d   :  { %4430 = vmatmul.msk.f32.gmra.mxu0 %vm960_vm1, %v5708_v38 }
 0x142   :  { %v5720_v42 = vpop.f32.mrf.mxu0 }
 0x143   :  { %9324 = vst [vmem:[#allocation14_spill] sm:$0xff] %v5720_v42 }
 0x145   :  { %4431 = vmatmul.msk.f32.gmra.mxu0 %vm960_vm1, %v5725_v43 }
 0x14a   :  { %v5737_v58 = vpop.f32.mrf.mxu0 }
 0x14b   :  { %9325 = vst [vmem:[#allocation15_spill] sm:$0xff] %v5737_v58 }
 0x14d   :  { %4432 = vmatmul.msk.f32.gmra.mxu0 %vm960_vm1, %v5742_v61 }
 0x152   :  { %v5754_v6 = vpop.f32.mrf.mxu0 }
 0x153   :  { %9326 = vst [vmem:[#allocation16_spill] sm:$0xff] %v5754_v6 }
 0x155   :  { %4433 = vmatmul.msk.f32.gmra.mxu0 %vm960_vm1, %v5759_v9 }
 0x15a   :  { %v5765_v17 = vpop.f32.mrf.mxu0 }
 0x15b   :  { %9327 = vst [vmem:[#allocation17_spill] sm:$0xff] %v5765_v17  ;;  %v59_v17 = vld [vmem:[%s9239_s0 + $0x68] sm:$0xff] }
 0x15c   :  { %450 = vmatpush.msrb.mxu1 %v59_v17 }
 0x15d   :  { %4434 = vmatmul.msk.f32.gmra.mxu0 %vm960_vm1, %v5770_v23 }
 0x162   :  { %v5776_v29 = vpop.f32.mrf.mxu0 }
 0x163   :  { %9328 = vst [vmem:[#allocation18_spill] sm:$0xff] %v5776_v29 }
 0x165   :  { %4435 = vmatmul.msk.f32.gmra.mxu0 %vm960_vm1, %v5781_v30 }
 0x16a   :  { %v5790_v41 = vpop.f32.mrf.mxu0 }
 0x16b   :  { %9329 = vst [vmem:[#allocation19_spill] sm:$0xff] %v5790_v41 }
 0x16d   :  { %4436 = vmatmul.msk.f32.gmra.mxu0 %vm960_vm1, %v5795_v55 }
 0x172   :  { %v5801_v57 = vpop.f32.mrf.mxu0 }
 0x173   :  { %9330 = vst [vmem:[#allocation20_spill] sm:$0xff] %v5801_v57  ;;  %v5826_v57 = vpop.f32.mrf.mxu1 }
 0x174   :  { %9334 = vst [vmem:[#allocation24_spill] sm:$0xff] %v5826_v57 }
 0x175   :  { %4437 = vmatmul.msk.f32.gmra.mxu0 %vm960_vm1, %v5806_v62 }
 0x17a   :  { %v5812_v63 = vpop.f32.mrf.mxu0 }
 0x17b   :  { %9332 = vst [vmem:[#allocation22_spill] sm:$0xff] %v5812_v63  ;;  %v51_v63 = vld [vmem:[%s9239_s0 + $0x28] sm:$0xff]  ;;  %v5833_v41 = vpop.f32.mrf.mxu1 }
 0x17c   :  { %451 = vmatpush.msrb.mxu1 %v51_v63  ;;  %9335 = vst [vmem:[#allocation25_spill] sm:$0xff] %v5833_v41 }
 0x17d   :  { %4438 = vmatmul.msk.f32.gmra.mxu0 %vm960_vm1, %v5817_v39  ;;  %4375 = vmatmul.msk.f32.vlgmr.msrb.gmra.mxu1 %vm62_vm0, %v5378_v2  ;;  %v5847_v2 = vpop.permute.xlu2 %787 }
 0x17e   :  { %9339 = vst [vmem:[#allocation29_spill] sm:$0xff] %v5847_v2 }
 0x182   :  { %v1026_v6 = vpop.f32.mrf.mxu0 }
 0x183   :  { %v5837_v37 = vpop.f32.mrf.mxu1 }
 0x184   :  { %9336 = vst [vmem:[#allocation26_spill] sm:$0xff] %v5837_v37 }
 0x185   :  { %4376 = vmatmul.msk.f32.gmra.mxu1 %vm62_vm0, %v5385_v3  ;;  %v5853_v42 = vpop.permute.xlu2 %807 }
 0x186   :  { %9341 = vst [vmem:[#allocation31_spill] sm:$0xff] %v5853_v42 }
 0x18a   :  { %v1029_v29 = vpop.f32.mrf.mxu0 }
 0x18b   :  { %v5841_v25 = vpop.f32.mrf.mxu1 }
 0x18c   :  { %9337 = vst [vmem:[#allocation27_spill] sm:$0xff] %v5841_v25 }
 0x18d   :  { %4377 = vmatmul.msk.f32.gmra.mxu1 %vm62_vm0, %v5392_v4  ;;  %v5864_v0 = vpop.permute.xlu2 %777 }
 0x18e   :  { %9344 = vst [vmem:[#allocation34_spill] sm:$0xff] %v5864_v0 }
 0x192   :  { %v1032_v17 = vpop.f32.mrf.mxu0 }
 0x193   :  { %v5845_v63 = vpop.f32.mrf.mxu1 }
 0x194   :  { %9338 = vst [vmem:[#allocation28_spill] sm:$0xff] %v5845_v63 }
 0x195   :  { %4378 = vmatmul.msk.f32.gmra.mxu1 %vm62_vm0, %v5399_v5  ;;  %v1074_v5 = vadd.f32 %v1026_v6, %v5526_v34  ;;  %v5875_v6 = vpop.permute.xlu1 %812 }
 0x196   :  { %9347 = vst [vmem:[#allocation37_spill] sm:$0xff] %v5875_v6 }
 0x197   :  { %v1090_v59 = vadd.f32 %v1074_v5, %v5864_v0 }
 0x19a   :  { %v1035_v58 = vpop.f32.mrf.mxu0 }
 0x19b   :  { %v5851_v3 = vpop.f32.mrf.mxu1 }
 0x19c   :  { %9340 = vst [vmem:[#allocation30_spill] sm:$0xff] %v5851_v3  ;;  %v5868_v3 = vpop.permute.xlu0 %782 }
 0x19d   :  { %4379 = vmatmul.msk.f32.gmra.mxu1 %vm62_vm0, %v5412_v10  ;;  %v1075_v10 = vadd.f32 %v1029_v29, %v5530_v35  ;;  %9345 = vst [vmem:[#allocation35_spill] sm:$0xff] %v5868_v3 }
 0x1a2   :  { %v1038_v11 = vpop.f32.mrf.mxu0 }
 0x1a3   :  { %v5857_v19 = vpop.f32.mrf.mxu1  ;;  %v1078_v29 = vadd.f32 %v1038_v11, %v5542_v44  ;;  %v5892_v11 = vpop.permute.xlu1 %802 }
 0x1a4   :  { %9342 = vst [vmem:[#allocation32_spill] sm:$0xff] %v5857_v19  ;;  %v1076_v19 = vadd.f32 %v1032_v17, %v5534_v36 }
 0x1a5   :  { %4380 = vmatmul.msk.f32.gmra.mxu1 %vm62_vm0, %v5425_v14  ;;  %v1091_v14 = vadd.f32 %v1075_v10, %v5868_v3  ;;  %9350 = vst [vmem:[#allocation40_spill] sm:$0xff] %v5892_v11 }
 0x1a6   :  { %v1092_v10 = vadd.f32 %v1076_v19, %v5847_v2 }
 0x1a7   :  { %v4440_v34 = vmul.f32 -1.442695, %v1091_v14 }
 0x1aa   :  { %v1041_v7 = vpop.f32.mrf.mxu0 }
 0x1ab   :  { %v5871_v63 = vpop.f32.mrf.mxu1  ;;  %v1079_v36 = vadd.f32 %v1041_v7, %v5546_v45 }
 0x1ac   :  { %9346 = vst [vmem:[#allocation36_spill] sm:$0xff] %v5871_v63 }
 0x1ad   :  { %4381 = vmatmul.msk.f32.gmra.mxu1 %vm62_vm0, %v5435_v16  ;;  %v4439_v16 = vmul.f32 -1.442695, %v1090_v59  ;;  %v5887_v59 = vpop.permute.xlu0 %797 }
 0x1ae   :  { %9349 = vst [vmem:[#allocation39_spill] sm:$0xff] %v5887_v59 }
 0x1af   :  { %4672 = vpow2.f32 %v4439_v16  ;;  %v1094_v16 = vadd.f32 %v1078_v29, %v5887_v59  ;;  %v1095_v29 = vadd.f32 %v1079_v36, %v5892_v11 }
 0x1b0   :  { %4674 = vpow2.f32 %v4440_v34  ;;  %v4441_v34 = vmul.f32 -1.442695, %v1092_v10 }
 0x1b1   :  { %v4443_v19 = vmul.f32 -1.442695, %v1094_v16  ;;  %v4444_v10 = vmul.f32 -1.442695, %v1095_v29 }
 0x1b2   :  { %v1044_v4 = vpop.f32.mrf.mxu0  ;;  %4676 = vpow2.f32 %v4441_v34 }
 0x1b3   :  { %v5881_v5 = vpop.f32.mrf.mxu1 }
 0x1b4   :  { %9348 = vst [vmem:[#allocation38_spill] sm:$0xff] %v5881_v5 }
 0x1b5   :  { %4382 = vmatmul.msk.f32.gmra.mxu1 %vm62_vm0, %v5445_v18  ;;  %v1077_v18 = vadd.f32 %v1035_v58, %v5538_v40  ;;  %v4673_v14 = vpop.eup %4672  ;;  %v1080_v58 = vadd.f32 %v1044_v4, %v5550_v46 }
 0x1b6   :  { %v4675_v17 = vpop.eup %4674  ;;  %v5894_v5 = vadd.f32 1.0, %v4673_v14 }
 0x1b7   :  { %v1093_v44 = vadd.f32 %v1077_v18, %v5862_v13  ;;  %v5900_v40 = vadd.f32 1.0, %v4675_v17  ;;  %v1096_v7 = vadd.f32 %v1080_v58, %v5853_v42 }
 0x1b8   :  { %4678 = vrcp.f32 %v5894_v5  ;;  %v4677_v14 = vpop.eup %4676  ;;  %vm1127_vm2 = vweird.f32 %v5894_v5  ;;  %v1133_v13 = vand.u32 2147483648, %v5894_v5 }
 0x1b9   :  { %v4442_v45 = vmul.f32 -1.442695, %v1093_v44  ;;  %4680 = vpow2.f32 %v4443_v19  ;;  %v4445_v16 = vmul.f32 -1.442695, %v1096_v7  ;;  %v5919_v17 = vadd.f32 1.0, %v4677_v14  ;;  %v5931_v7 = vpop.permute.xlu1 %852 }
 0x1ba   :  { %v1047_v25 = vpop.f32.mrf.mxu0  ;;  %4682 = vrcp.f32 %v5900_v40  ;;  %v1146_v59 = vand.u32 2147483647, %v5900_v40  ;;  %vm1142_vm6 = vweird.f32 %v5900_v40  ;;  %v1148_v2 = vand.u32 2147483648, %v5900_v40 }
 0x1bb   :  { %v5898_v63 = vpop.f32.mrf.mxu1  ;;  %4684 = vpow2.f32 %v4442_v45  ;;  %v1081_v34 = vadd.f32 %v1047_v25, %v5554_v47  ;;  %v1134_v0 = vor.u32 1.1754944e-38, %v1133_v13  ;;  %vm1157_vm10 = vweird.f32 %v5919_v17 }
 0x1bc   :  { %9351 = vst [vmem:[#allocation41_spill] sm:$0xff] %v5898_v63  ;;  %4686 = vpow2.f32 %v4444_v10  ;;  %vm1147_vm9 = vcmp.eq.f32.partialorder %v1146_v59, 8.507059e+37 }
 0x1bd   :  { %4383 = vmatmul.msk.f32.gmra.mxu1 %vm62_vm0, %v5455_v20  ;;  %4688 = vpow2.f32 %v4445_v16  ;;  %v1097_v10 = vadd.f32 %v1081_v34, %v5875_v6  ;;  %v5946_v34 = vpop.permute.xlu0 %842 }
 0x1be   :  { %v5913_v4 = vpop.eup %4678  ;;  %4690 = vrcp.f32 %v5919_v17  ;;  %9355 = vst [vmem:[#allocation45_spill] sm:$0xff] %v5946_v34 }
 0x1bf   :  { %v1123_v19 = vmul.f32 %v5913_v4, %v5894_v5  ;;  %v4446_v63 = vmul.f32 -1.442695, %v1097_v10  ;;  %vm1128_vm3 = vweird.f32 %v5913_v4 }
 0x1c0   :  { %vm5982_vm5 = vmor %vm1127_vm2, %vm1128_vm3 }
 0x1c1   :  { %v1124_v25 = vsub.f32 1.0, %v1123_v19 }
 0x1c2   :  { %v5878_v35 = vpop.f32.mrf.mxu0 }
 0x1c3   :  { %v5911_v46 = vpop.f32.mrf.mxu1  ;;  %v1125_v19 = vmul.f32 %v5913_v4, %v1124_v25 }
 0x1c4   :  { %9352 = vst [vmem:[#allocation42_spill] sm:$0xff] %v5911_v46 }
 0x1c5   :  { %4384 = vmatmul.msk.f32.gmra.mxu1 %vm62_vm0, %v5465_v22  ;;  %v4681_v22 = vpop.eup %4680  ;;  %v1126_v42 = vadd.f32 %v5913_v4, %v1125_v19  ;;  %v6004_v41 = vpop.permute.xlu0 %827 }
 0x1c6   :  { %v5917_v36 = vpop.eup %4682  ;;  %v5924_v58 = vadd.f32 1.0, %v4681_v22  ;;  %v5941_v22 = vpop.permute.xlu2 %847  ;;  %9362 = vst [vmem:[#allocation48_spill] sm:$0xff] %v6004_v41 }
 0x1c7   :  { %v4685_v44 = vpop.eup %4684  ;;  %v1138_v29 = vmul.f32 %v5917_v36, %v5900_v40  ;;  %9354 = vst [vmem:[#allocation44_spill] sm:$0xff] %v5941_v22  ;;  %vm1143_vm4 = vweird.f32 %v5917_v36 }
 0x1c8   :  { %v4687_v45 = vpop.eup %4686  ;;  %4692 = vrcp.f32 %v5924_v58  ;;  %vm5999_vm8 = vmor %vm1142_vm6, %vm1143_vm4  ;;  %vm1203_vm15 = vweird.f32 %v5924_v58 }
 0x1c9   :  { %v1139_v16 = vsub.f32 1.0, %v1138_v29  ;;  %v5943_v46 = vadd.f32 1.0, %v4687_v45 }
 0x1ca   :  { %v5896_v20 = vpop.f32.mrf.mxu0 }
 0x1cb   :  { %v5936_v14 = vpop.f32.mrf.mxu1 }
 0x1cc   :  { %9353 = vst [vmem:[#allocation43_spill] sm:$0xff] %v5936_v14 }
 0x1cd   :  { %4385 = vmatmul.msk.f32.gmra.mxu1 %vm62_vm0, %v5475_v24  ;;  %v5929_v24 = vadd.f32 1.0, %v4685_v44  ;;  %v4689_v44 = vpop.eup %4688 }
 0x1ce   :  { %v5949_v6 = vpop.eup %4690  ;;  %v5951_v14 = vadd.f32 1.0, %v4689_v44  ;;  %v5990_v3 = vpop.permute.xlu2 %832 }
 0x1cf   :  { %4694 = vrcp.f32 %v5929_v24  ;;  %v5955_v29 = vpop.eup %4692  ;;  %v1153_v10 = vmul.f32 %v5949_v6, %v5919_v17  ;;  %vm1158_vm11 = vweird.f32 %v5949_v6  ;;  %vm1172_vm12 = vweird.f32 %v5929_v24 }
 0x1d0   :  { %4696 = vrcp.f32 %v5943_v46  ;;  %vm1204_vm14 = vweird.f32 %v5955_v29  ;;  %vm6070_vm2 = vmor %vm1157_vm10, %vm1158_vm11 }
 0x1d1   :  { %4698 = vpow2.f32 %v4446_v63  ;;  %v1131_v63 = vand.u32 2147483647, %v5894_v5  ;;  %v1154_v37 = vsub.f32 1.0, %v1153_v10  ;;  %v1163_v10 = vand.u32 2147483648, %v5919_v17  ;;  %vm6084_vm4 = vmor %vm1203_vm15, %vm1204_vm14 }
 0x1d2   :  { %v5909_v18 = vpop.f32.mrf.mxu0  ;;  %4700 = vrcp.f32 %v5951_v14 }
 0x1d3   :  { %v5963_v44 = vpop.f32.mrf.mxu1  ;;  %vm1132_vm7 = vcmp.eq.f32.partialorder %v1131_v63, 8.507059e+37 }
 0x1d4   :  { %9356 = vst [vmem:[#allocation46_spill] sm:$0xff] %v5963_v44  ;;  %v1149_v44 = vor.u32 1.1754944e-38, %v1148_v2  ;;  %v1161_v2 = vand.u32 2147483647, %v5919_v17  ;;  %v1224_v17 = vand.u32 2147483648, %v5943_v46 }
 0x1d5   :  { %4386 = vmatmul.msk.f32.gmra.mxu1 %vm62_vm0, %v5485_v26  ;;  %v1140_v26 = vmul.f32 %v5917_v36, %v1139_v16  ;;  %v5965_v11 = vpop.eup %4694  ;;  %v5967_v16 = vpop.permute.xlu1 %837 }
 0x1d6   :  { %9357 = vst [vmem:[#allocation47_spill] sm:$0xff] %v5967_v16  ;;  %v1168_v5 = vmul.f32 %v5965_v11, %v5929_v24  ;;  %vm1173_vm13 = vweird.f32 %v5965_v11  ;;  %vm6074_vm3 = vcmp.eq.f32.partialorder %v1161_v2, 8.507059e+37 }
 0x1d7   :  { %v1141_v19 = vadd.f32 %v5917_v36, %v1140_v26  ;;  %v1130_v26 = vsel %vm5982_vm5, %v5913_v4, %v1126_v42 }
 0x1d8   :  { %v6009_v4 = vsel %vm1132_vm7, %v1134_v0, %v1130_v26  ;;  %v1169_v62 = vsub.f32 1.0, %v1168_v5  ;;  %v1082_v5 = vadd.f32 %v5878_v35, %v5558_v48 }
 0x1d9   :  { %v1145_v42 = vsel %vm5999_vm8, %v5917_v36, %v1141_v19  ;;  %v6026_v19 = vor.u32 1.1754944e-38, %v1163_v10  ;;  %vm6116_vm8 = vmor %vm1172_vm12, %vm1173_vm13  ;;  %vm1233_vm13 = vweird.f32 %v5951_v14 }
 0x1da   :  { %v5934_v47 = vpop.f32.mrf.mxu0  ;;  %v6022_v0 = vsel %vm1147_vm9, %v1149_v44, %v1145_v42  ;;  %v1209_v42 = vand.u32 2147483648, %v5924_v58  ;;  %v1207_v44 = vand.u32 2147483647, %v5924_v58  ;;  %vm1218_vm9 = vweird.f32 %v5943_v46 }
 0x1db   :  { %v6020_v59 = vpop.f32.mrf.mxu1 }
 0x1dc   :  { %9363 = vst [vmem:[#allocation49_spill] sm:$0xff] %v6020_v59  ;;  %v6061_v59 = vpop.permute.xlu0 %925  ;;  %vm6088_vm5 = vcmp.eq.f32.partialorder %v1207_v44, 8.507059e+37 }
 0x1dd   :  { %4387 = vmatmul.msk.f32.gmra.mxu1 %vm62_vm0, %v5495_v28  ;;  %v5988_v28 = vpop.eup %4696  ;;  %v6048_v48 = vpop.permute.xlu1 %822 }
 0x1de   :  { %v1214_v13 = vmul.f32 %v5988_v28, %v5943_v46  ;;  %vm1219_vm7 = vweird.f32 %v5988_v28 }
 0x1df   :  { %vm6134_vm10 = vmor %vm1218_vm9, %vm1219_vm7 }
 0x1e2   :  { %v1062_v45 = vpop.f32.mrf.mxu0 }
 0x1e3   :  { %v1086_v25 = vadd.f32 %v1062_v45, %v5574_v52  ;;  %v1199_v52 = vmul.f32 %v5955_v29, %v5924_v58  ;;  %v6080_v58 = vpop.f32.mrf.mxu1 }
 0x1e5   :  { %v1102_v45 = vadd.f32 %v1086_v25, %v5967_v16  ;;  %v4699_v16 = vpop.eup %4698  ;;  %v1200_v57 = vsub.f32 1.0, %v1199_v52  ;;  %v1155_v52 = vmul.f32 %v5949_v6, %v1154_v37  ;;  %4388 = vmatmul.msk.f32.gmra.mxu1 %vm62_vm0, %v5508_v31  ;;  %v1083_v37 = vadd.f32 %v5896_v20, %v5562_v49 }
 0x1e6   :  { %v6016_v39 = vadd.f32 1.0, %v4699_v16  ;;  %v1178_v31 = vand.u32 2147483648, %v5929_v24 }
 0x1e7   :  { %v4447_v25 = vmul.f32 -1.442695, %v1102_v45  ;;  %v6014_v45 = vpop.eup %4700  ;;  %v1201_v16 = vmul.f32 %v5955_v29, %v1200_v57  ;;  %v6043_v49 = vadd.f32 %v5949_v6, %v1155_v52  ;;  %v1170_v57 = vmul.f32 %v5965_v11, %v1169_v62 }
 0x1e8   :  { %v1229_v40 = vmul.f32 %v6014_v45, %v5951_v14  ;;  %v1099_v52 = vadd.f32 %v1083_v37, %v6048_v48  ;;  %vm1234_vm11 = vweird.f32 %v6014_v45 }
 0x1e9   :  { %4702 = vpow2.f32 %v4447_v25  ;;  %v1215_v25 = vsub.f32 1.0, %v1214_v13  ;;  %v6053_v13 = vpop.permute.xlu2 %817  ;;  %v1160_v2 = vsel %vm6070_vm2, %v5949_v6, %v6043_v49  ;;  %vm6161_vm14 = vmor %vm1233_vm13, %vm1234_vm11  ;;  %vm1248_vm2 = vweird.f32 %v6016_v39 }
 0x1ea   :  { %v1065_v63 = vpop.f32.mrf.mxu0  ;;  %4704 = vrcp.f32 %v6016_v39  ;;  %v1098_v62 = vadd.f32 %v1082_v5, %v6053_v13 }
 0x1eb   :  { %v1087_v36 = vadd.f32 %v1065_v63, %v5578_v53  ;;  %v1176_v53 = vand.u32 2147483647, %v5929_v24  ;;  %v1202_v63 = vadd.f32 %v5955_v29, %v1201_v16  ;;  %v1084_v16 = vadd.f32 %v5909_v18, %v5566_v50 }
 0x1ec   :  { %v1222_v24 = vand.u32 2147483647, %v5943_v46  ;;  %v1239_v18 = vand.u32 2147483648, %v5951_v14 }
 0x1ed   :  { %v1103_v26 = vadd.f32 %v1087_v36, %v5946_v34  ;;  %v1216_v36 = vmul.f32 %v5988_v28, %v1215_v25  ;;  %v1171_v25 = vadd.f32 %v5965_v11, %v1170_v57  ;;  %vm6097_vm6 = vcmp.eq.f32.partialorder %v1176_v53, 8.507059e+37  ;;  %4389 = vmatmul.msk.f32.gmra.mxu1 %vm62_vm0, %v5515_v32 }
 0x1ee   :  { %v1206_v57 = vsel %vm6084_vm4, %v5955_v29, %v1202_v63  ;;  %vm1223_vm12 = vcmp.eq.f32.partialorder %v1222_v24, 8.507059e+37 }
 0x1ef   :  { %v4703_v10 = vpop.eup %4702  ;;  %v4448_v20 = vmul.f32 -1.442695, %v1103_v26  ;;  %v1230_v26 = vsub.f32 1.0, %v1229_v40  ;;  %v1217_v6 = vadd.f32 %v5988_v28, %v1216_v36  ;;  %v1175_v49 = vsel %vm6116_vm8, %v5965_v11, %v1171_v25 }
 0x1f0   :  { %v6051_v35 = vadd.f32 1.0, %v4703_v10  ;;  %v6103_v10 = vpop.eup %4704  ;;  %v1237_v11 = vand.u32 2147483647, %v5951_v14 }
 0x1f1   :  { %4706 = vpow2.f32 %v4448_v20  ;;  %v1210_v20 = vor.u32 1.1754944e-38, %v1209_v42  ;;  %v1231_v53 = vmul.f32 %v6014_v45, %v1230_v26  ;;  %v1221_v46 = vsel %vm6134_vm10, %v5988_v28, %v1217_v6  ;;  %v916_v32 = vpop.permute.xlu2 %915 }
 0x1f2   :  { %4708 = vrcp.f32 %v6051_v35  ;;  %v1068_v34 = vpop.f32.mrf.mxu0  ;;  %v1165_v6 = vsel %vm6074_vm3, %v6026_v19, %v1160_v2  ;;  %vm1238_vm15 = vcmp.eq.f32.partialorder %v1237_v11, 8.507059e+37  ;;  %v1254_v11 = vand.u32 2147483648, %v6016_v39 }
 0x1f3   :  { %v1088_v40 = vadd.f32 %v1068_v34, %v5582_v54  ;;  %v1179_v34 = vor.u32 1.1754944e-38, %v1178_v31  ;;  %4710 = vtanh.f32 %v1099_v52  ;;  %v1100_v31 = vadd.f32 %v1084_v16, %v6004_v41 }
 0x1f4   :  { %4712 = vtanh.f32 %v1098_v62  ;;  %v1244_v52 = vmul.f32 %v6103_v10, %v6016_v39  ;;  %v1225_v62 = vor.u32 1.1754944e-38, %v1224_v17  ;;  %v1211_v26 = vsel %vm6088_vm5, %v1210_v20, %v1206_v57  ;;  %v6151_v20 = vpop.f32.mrf.mxu1 }
 0x1f5   :  { %v1104_v44 = vadd.f32 %v1088_v40, %v5941_v22  ;;  %v1232_v25 = vadd.f32 %v6014_v45, %v1231_v53  ;;  %v1085_v17 = vadd.f32 %v5934_v47, %v5570_v51  ;;  %4390 = vmatmul.msk.f32.gmra.mxu1 %vm62_vm0, %v5522_v33  ;;  %v911_v53 = vpop.permute.xlu0 %910  ;;  %vm1249_vm3 = vweird.f32 %v6103_v10 }
 0x1f6   :  { %v1245_v28 = vsub.f32 1.0, %v1244_v52  ;;  %v1338_v19 = vmul.f32 %v1211_v26, %v911_v53  ;;  %v921_v26 = vpop.permute.xlu1 %920  ;;  %vm1283_vm7 = vweird.f32 %v6051_v35 }
 0x1f7   :  { %v4707_v29 = vpop.eup %4706  ;;  %v4449_v42 = vmul.f32 -1.442695, %v1104_v44  ;;  %v1236_v33 = vsel %vm6161_vm14, %v6014_v45, %v1232_v25  ;;  %v1101_v52 = vadd.f32 %v1085_v17, %v5990_v3 }
 0x1f8   :  { %v6125_v63 = vpop.eup %4708  ;;  %v6130_v36 = vadd.f32 1.0, %v4707_v29  ;;  %v1226_v29 = vsel %vm1223_vm12, %v1225_v62, %v1221_v46  ;;  %v1252_v46 = vand.u32 2147483647, %v6016_v39  ;;  %v1287_v39 = vand.u32 2147483647, %v6051_v35 }
 0x1f9   :  { %4714 = vpow2.f32 %v4449_v42  ;;  %v1279_v37 = vmul.f32 %v6125_v63, %v6051_v35  ;;  %v4711_v50 = vpop.eup %4710  ;;  %v1240_v42 = vor.u32 1.1754944e-38, %v1239_v18  ;;  %v1339_v24 = vmul.f32 %v1226_v29, %v916_v32 }
 0x1fa   :  { %4716 = vrcp.f32 %v6130_v36  ;;  %v1071_v40 = vpop.f32.mrf.mxu0  ;;  %v4713_v44 = vpop.eup %4712  ;;  %v1343_v5 = vmul.f32 %v4711_v50, %v6022_v0  ;;  %vm1284_vm4 = vweird.f32 %v6125_v63  ;;  %v1302_v29 = vand.u32 2147483647, %v6130_v36 }
 0x1fb   :  { %4718 = vtanh.f32 %v1100_v31  ;;  %v1089_v57 = vadd.f32 %v1071_v40, %v5589_v56  ;;  %v6167_v56 = vsel %vm6097_vm6, %v1179_v34, %v1175_v49  ;;  %v1280_v14 = vsub.f32 1.0, %v1279_v37  ;;  %vm6198_vm6 = vmor %vm1248_vm2, %vm1249_vm3 }
 0x1fc   :  { %v1342_v31 = vmul.f32 %v4713_v44, %v6009_v4  ;;  %v1246_v49 = vmul.f32 %v6103_v10, %v1245_v28  ;;  %v1241_v16 = vsel %vm1238_vm15, %v1240_v42, %v1236_v33  ;;  %v6183_v37 = vadd.f32 %v1343_v5, %v1339_v24  ;;  %v6190_v40 = vpop.f32.mrf.mxu1  ;;  %vm6207_vm9 = vmor %vm1283_vm7, %vm1284_vm4 }
 0x1fd   :  { %v1105_v47 = vadd.f32 %v1089_v57, %v5931_v7  ;;  %v1281_v4 = vmul.f32 %v6125_v63, %v1280_v14  ;;  %9380 = vst [vmem:[#allocation50_spill] sm:$0xff] %v6190_v40  ;;  %v1340_v18 = vmul.f32 %v1241_v16, %v921_v26  ;;  %v1304_v28 = vand.u32 2147483648, %v6130_v36 }
 0x1fe   :  { %v6187_v25 = vadd.f32 %v1342_v31, %v1338_v19  ;;  %v1247_v57 = vadd.f32 %v6103_v10, %v1246_v49  ;;  %vm1298_vm8 = vweird.f32 %v6130_v36  ;;  %vm1253_vm11 = vcmp.eq.f32.partialorder %v1252_v46, 8.507059e+37 }
 0x1ff   :  { %v4715_v2 = vpop.eup %4714  ;;  %v4450_v54 = vmul.f32 -1.442695, %v1105_v47  ;;  %v1282_v53 = vadd.f32 %v6125_v63, %v1281_v4  ;;  %v1255_v47 = vor.u32 1.1754944e-38, %v1254_v11  ;;  %vm1303_vm12 = vcmp.eq.f32.partialorder %v1302_v29, 8.507059e+37 }
 0x200   :  { %v4717_v34 = vpop.eup %4716  ;;  %v6178_v62 = vadd.f32 1.0, %v4715_v2  ;;  %v1251_v2 = vsel %vm6198_vm6, %v6103_v10, %v1247_v57  ;;  %vm1288_vm13 = vcmp.eq.f32.partialorder %v1287_v39, 8.507059e+37  ;;  %v6247_v39 = vpop.permute.xlu0 %871 }
 0x201   :  { %v4719_v0 = vpop.eup %4718  ;;  %4720 = vpow2.f32 %v4450_v54  ;;  %v1294_v45 = vmul.f32 %v4717_v34, %v6130_v36  ;;  %vm1299_vm5 = vweird.f32 %v4717_v34  ;;  %v1305_v54 = vor.u32 1.1754944e-38, %v1304_v28  ;;  %v6237_v28 = vpop.permute.xlu2 %866 }
 0x202   :  { %4722 = vrcp.f32 %v6178_v62  ;;  %v1344_v17 = vmul.f32 %v4719_v0, %v1165_v6  ;;  %v1289_v6 = vand.u32 2147483648, %v6051_v35  ;;  %vm1300_vm10 = vmor %vm1298_vm8, %vm1299_vm5  ;;  %v1286_v35 = vsel %vm6207_vm9, %v6125_v63, %v1282_v53 }
 0x203   :  { %4724 = vtanh.f32 %v1101_v52  ;;  %v1295_v50 = vsub.f32 1.0, %v1294_v45  ;;  %v1256_v24 = vsel %vm1253_vm11, %v1255_v47, %v1251_v2  ;;  %v1317_v63 = vand.u32 2147483647, %v6178_v62 }
 0x204   :  { %4726 = vtanh.f32 %v6183_v37  ;;  %v6212_v33 = vadd.f32 %v1344_v17, %v1340_v18  ;;  %v1290_v49 = vor.u32 1.1754944e-38, %v1289_v6  ;;  %v6223_v26 = vpop.f32.mrf.mxu1  ;;  %v1341_v18 = vmul.f32 %v1256_v24, %v6061_v59  ;;  %v6241_v59 = vpop.permute.xlu1 %861 }
 0x205   :  { %v1296_v44 = vmul.f32 %v4717_v34, %v1295_v50  ;;  %4728 = vtanh.f32 %v6187_v25  ;;  %9385 = vst [vmem:[#allocation51_spill] sm:$0xff] %v6223_v26  ;;  %vm1313_vm15 = vweird.f32 %v6178_v62  ;;  %vm1318_vm3 = vcmp.eq.f32.partialorder %v1317_v63, 8.507059e+37 }
 0x206   :  { %v1291_v4 = vsel %vm1288_vm13, %v1290_v49, %v1286_v35 }
 0x207   :  { %v4721_v51 = vpop.eup %4720  ;;  %v1297_v14 = vadd.f32 %v4717_v34, %v1296_v44 }
 0x208   :  { %v4723_v5 = vpop.eup %4722  ;;  %v1277_v31 = vadd.f32 1.0, %v4721_v51 }
 0x209   :  { %v4725_v42 = vpop.eup %4724  ;;  %v1309_v36 = vmul.f32 %v4723_v5, %v6178_v62  ;;  %v1301_v52 = vsel %vm1300_vm10, %v4717_v34, %v1297_v14  ;;  %v1319_v34 = vand.u32 2147483648, %v6178_v62  ;;  %vm1314_vm14 = vweird.f32 %v4723_v5 }
 0x20a   :  { %4730 = vrcp.f32 %v1277_v31  ;;  %v1306_v0 = vsel %vm1303_vm12, %v1305_v54, %v1301_v52  ;;  %v4727_v16 = vpop.eup %4726  ;;  %v1345_v45 = vmul.f32 %v4725_v42, %v6167_v56  ;;  %vm1315_vm2 = vmor %vm1313_vm15, %vm1314_vm14  ;;  %v1332_v2 = vand.u32 2147483647, %v1277_v31 }
 0x20b   :  { %v1310_v10 = vsub.f32 1.0, %v1309_v36  ;;  %4732 = vtanh.f32 %v6212_v33  ;;  %v6229_v46 = vmul.f32 %v4727_v16, %v1306_v0  ;;  %v4729_v50 = vpop.eup %4728  ;;  %v1320_v53 = vor.u32 1.1754944e-38, %v1319_v34 }
 0x20c   :  { %v6233_v57 = vmul.f32 %v4729_v50, %v1291_v4  ;;  %v6235_v44 = vadd.f32 %v1345_v45, %v1341_v18  ;;  %v6252_v54 = vpop.f32.mrf.mxu1  ;;  %vm1328_vm5 = vweird.f32 %v1277_v31  ;;  %vm1333_vm7 = vcmp.eq.f32.partialorder %v1332_v2, 8.507059e+37  ;;  %v6254_v34 = vpop.permute.xlu1 %876  ;;  %v48_v18 = vld [vmem:[%s9239_s0 + $0x10] sm:$0xff] }
 0x20d   :  { %v1311_v11 = vmul.f32 %v4723_v5, %v1310_v10  ;;  %v1359_v6 = vmul.f32 %v6229_v46, %v6237_v28  ;;  %9386 = vst [vmem:[#allocation52_spill] sm:$0xff] %v6252_v54 }
 0x20e   :  { %v1358_v19 = vmul.f32 %v6233_v57, %v6241_v59  ;;  %4734 = vtanh.f32 %v6235_v44 }
 0x20f   :  { %v1312_v17 = vadd.f32 %v4723_v5, %v1311_v11 }
 0x210   :  { %v4731_v56 = vpop.eup %4730  ;;  %v1362_v52 = vadd.f32 %v1359_v6, %v1358_v19  ;;  %v6295_v19 = vld [vmem:[%s9241_s2 + $0x10] sm:$0xff] }
 0x211   :  { %v1324_v32 = vmul.f32 %v4731_v56, %v1277_v31  ;;  %v1316_v29 = vsel %vm1315_vm2, %v4723_v5, %v1312_v17  ;;  %v4733_v51 = vpop.eup %4732  ;;  %v1334_v5 = vand.u32 2147483648, %v1277_v31  ;;  %vm1329_vm4 = vweird.f32 %v4731_v56  ;;  %v56_v31 = vld [vmem:[%s9239_s0 + $0x50] sm:$0xff] }
 0x212   :  { %v1321_v47 = vsel %vm1318_vm3, %v1320_v53, %v1316_v29  ;;  %vm1330_vm6 = vmor %vm1328_vm5, %vm1329_vm4  ;;  %255 = vmatpush.msra.mxu2 %v56_v31 }
 0x213   :  { %v1325_v62 = vsub.f32 1.0, %v1324_v32  ;;  %v6243_v14 = vmul.f32 %v4733_v51, %v1321_v47  ;;  %v1335_v24 = vor.u32 1.1754944e-38, %v1334_v5  ;;  %v6304_v5 = vld [vmem:[%s9241_s2 + $0x18] sm:$0xff] }
 0x214   :  { %v4735_v0 = vpop.eup %4734  ;;  %v6258_v63 = vpop.f32.mrf.mxu1  ;;  %256 = vmatpush.msra.mxu2 %v48_v18 }
 0x215   :  { %v1326_v42 = vmul.f32 %v4731_v56, %v1325_v62  ;;  %v1360_v36 = vmul.f32 %v6243_v14, %v6247_v39  ;;  %9387 = vst [vmem:[#allocation53_spill] sm:$0xff] %v6258_v63 }
 0x217   :  { %v1327_v35 = vadd.f32 %v4731_v56, %v1326_v42  ;;  %v1363_v49 = vadd.f32 %v1362_v52, %v1360_v36 }
 0x219   :  { %v1331_v10 = vsel %vm1330_vm6, %v4731_v56, %v1327_v35  ;;  %v6273_v56 = vld [vmem:[%s9241_s2] sm:$0xff] }
 0x21a   :  { %v1336_v16 = vsel %vm1333_vm7, %v1335_v24, %v1331_v10  ;;  %4327 = vmatmul.msk.f32.vlgmr.msra.gmra.mxu2 %vm62_vm0, %v6273_v56  ;;  %v6320_v10 = vld [vmem:[%s9241_s2 + $0x20] sm:$0xff] }
 0x21b   :  { %v1357_v45 = vmul.f32 %v4735_v0, %v1336_v16 }
 0x21c   :  { %v6277_v6 = vpop.f32.mrf.mxu1 }
 0x21d   :  { %v1361_v4 = vmul.f32 %v1357_v45, %v6254_v34  ;;  %1431 = vmatpush.msra.mxu1 %v1357_v45  ;;  %9388 = vst [vmem:[#allocation54_spill] sm:$0xff] %v6277_v6 }
 0x21f   :  { %1432 = vmatpush.msra.mxu1 %v6243_v14  ;;  %v1364_v11 = vadd.f32 %v1363_v49, %v1361_v4  ;;  %v6313_v49 = vld [vmem:[%s9240_s1] sm:$0x1] }
 0x220   :  { %vm1390_vm11 = vcmp.gt.s32.totalorder %v6313_v49, 0 }
 0x221   :  { %1433 = vmatpush.msra.mxu1 %v6229_v46  ;;  %v1365_v50 = vrot.slane %v1364_v11, 4 }
 0x223   :  { %v1366_v17 = vadd.f32 %v1365_v50, %v1364_v11  ;;  %1434 = vmatpush.msra.mxu1 %v6233_v57 }
 0x224   :  { %4452 = vmatmul.msk.f32.vlgmr.msra.gmra.mxu1 %vm960_vm1, %v5604_v60  ;;  %v6284_v60 = vld [vmem:[%s9241_s2 + $0x8] sm:$0xff]  ;;  %v6288_v62 = vpop.f32.mrf.mxu1 }
 0x225   :  { %v1367_v53 = vrot.slane %v1366_v17, 2  ;;  %4328 = vmatmul.msk.f32.gmra.mxu2 %vm62_vm0, %v6284_v60  ;;  %9389 = vst [vmem:[#allocation55_spill] sm:$0xff] %v6288_v62 }
 0x227   :  { %v1368_v32 = vadd.f32 %v1367_v53, %v1366_v17  ;;  %v6337_v17 = vld [vmem:[%s9241_s2 + $0x28] sm:$0xff] }
 0x228   :  { %9393 = vst [vmem:[#allocation59_spill] sm:$0xff] %v6337_v17 }
 0x229   :  { %v1369_v29 = vrot.slane %v1368_v32, 1 }
 0x22b   :  { %v1370_v51 = vadd.f32 %v1369_v29, %v1368_v32 }
 0x22c   :  { %4453 = vmatmul.msk.f32.gmra.mxu1 %vm960_vm1, %v5624_v1 }
 0x22d   :  { %v4451_v47 = vmul.f32 -1.442695, %v1370_v51  ;;  %4329 = vmatmul.msk.f32.gmra.mxu2 %vm62_vm0, %v6295_v19  ;;  %v6398_v51 = vld [vmem:[%s9241_s2 + $0x50] sm:$0xff] }
 0x22e   :  { %9404 = vst [vmem:[#allocation70_spill] sm:$0xff] %v6398_v51 }
 0x22f   :  { %4736 = vpow2.f32 %v4451_v47  ;;  %v6409_v47 = vld [vmem:[%s9241_s2 + $0x58] sm:$0xff] }
 0x230   :  { %9406 = vst [vmem:[#allocation72_spill] sm:$0xff] %v6409_v47 }
 0x234   :  { %4454 = vmatmul.msk.f32.gmra.mxu1 %vm960_vm1, %v5638_v8  ;;  %v6308_v8 = vpop.f32.mrf.mxu1 }
 0x235   :  { %v4737_v1 = vpop.eup %4736  ;;  %4330 = vmatmul.msk.f32.gmra.mxu2 %vm62_vm0, %v6304_v5  ;;  %9390 = vst [vmem:[#allocation56_spill] sm:$0xff] %v6308_v8 }
 0x236   :  { %v1374_v2 = vadd.f32 1.0, %v4737_v1  ;;  %v6420_v1 = vld [vmem:[%s9241_s2 + $0x60] sm:$0xff] }
 0x237   :  { %9408 = vst [vmem:[#allocation74_spill] sm:$0xff] %v6420_v1 }
 0x238   :  { %4738 = vrcp.f32 %v1374_v2  ;;  %v1386_v35 = vand.u32 2147483648, %v1374_v2  ;;  %v1384_v24 = vand.u32 2147483647, %v1374_v2  ;;  %vm1380_vm9 = vweird.f32 %v1374_v2 }
 0x23a   :  { %v1387_v16 = vor.u32 1.1754944e-38, %v1386_v35  ;;  %vm1385_vm12 = vcmp.eq.f32.partialorder %v1384_v24, 8.507059e+37  ;;  %v60_v35 = vld [vmem:[%s9239_s0 + $0x70] sm:$0xff] }
 0x23b   :  { %515 = vmatpush.msrb.mxu2 %v60_v35  ;;  %v52_v24 = vld [vmem:[%s9239_s0 + $0x30] sm:$0xff] }
 0x23c   :  { %4455 = vmatmul.msk.f32.gmra.mxu1 %vm960_vm1, %v5652_v12  ;;  %v6325_v11 = vpop.f32.mrf.mxu1 }
 0x23d   :  { %4331 = vmatmul.msk.f32.gmra.mxu2 %vm62_vm0, %v6320_v10  ;;  %9391 = vst [vmem:[#allocation57_spill] sm:$0xff] %v6325_v11 }
 0x23e   :  { %v4739_v42 = vpop.eup %4738  ;;  %516 = vmatpush.msrb.mxu2 %v52_v24 }
 0x23f   :  { %v1376_v36 = vmul.f32 %v4739_v42, %v1374_v2  ;;  %vm1381_vm8 = vweird.f32 %v4739_v42  ;;  %v9411_v2 = vld [vmem:[#allocation21_spill] sm:$0xff] }
 0x240   :  { %vm1382_vm10 = vmor %vm1380_vm9, %vm1381_vm8 }
 0x241   :  { %v1377_v52 = vsub.f32 1.0, %v1376_v36  ;;  %v9413_v36 = vld [vmem:[#allocation23_spill] sm:$0xff] }
 0x243   :  { %v1378_v12 = vmul.f32 %v4739_v42, %v1377_v52  ;;  %v6451_v52 = vld [vmem:[%s9241_s2 + $0x78] sm:$0xff] }
 0x244   :  { %4456 = vmatmul.msk.f32.gmra.mxu1 %vm960_vm1, %v5663_v15 }
 0x245   :  { %v1379_v0 = vadd.f32 %v4739_v42, %v1378_v12  ;;  %4332 = vmatmul.msk.f32.gmra.mxu2 %vm62_vm0, %v6337_v17 }
 0x247   :  { %v1383_v4 = vsel %vm1382_vm10, %v4739_v42, %v1379_v0  ;;  %v6440_v42 = vld [vmem:[%s9241_s2 + $0x70] sm:$0xff] }
 0x248   :  { %v1388_v31 = vsel %vm1385_vm12, %v1387_v16, %v1383_v4 }
 0x249   :  { %v1391_v15 = vsel %vm1390_vm11, %v1388_v31, 0.0 }
 0x24a   :  { %v6327_v50 = vperm.slane %v1391_v15, 0 }
 0x24c   :  { %v6330_v18 = vmul.f32 %v6327_v50, %v1357_v45  ;;  %4457 = vmatmul.msk.f32.gmra.mxu1 %vm960_vm1, %v5677_v21  ;;  %v6343_v53 = vmul.f32 %v6327_v50, %v6229_v46  ;;  %v6347_v32 = vmul.f32 %v6327_v50, %v6243_v14  ;;  %v6349_v45 = vpop.f32.mrf.mxu1  ;;  %v6356_v21 = vld [vmem:[%s9241_s2 + $0x30] sm:$0xff]  ;;  %v6367_v46 = vld [vmem:[%s9241_s2 + $0x38] sm:$0xff]  ;;  %v6387_v14 = vld [vmem:[%s9241_s2 + $0x48] sm:$0xff] }
 0x24d   :  { %9396 = vst [vmem:[#allocation62_spill] sm:$0xff] %v6349_v45  ;;  %4333 = vmatmul.msk.f32.gmra.mxu2 %vm62_vm0, %v6356_v21  ;;  %v9424_v45 = vld [vmem:[#allocation35_spill] sm:$0xff] }
 0x24e   :  { %9392 = vst [vmem:[#allocation58_spill] sm:$0xff] %v6330_v18 }
 0x24f   :  { %9394 = vst [vmem:[#allocation60_spill] sm:$0xff] %v6343_v53 }
 0x250   :  { %9395 = vst [vmem:[#allocation61_spill] sm:$0xff] %v6347_v32 }
 0x251   :  { %9397 = vst [vmem:[#allocation63_spill] sm:$0xff] %v6356_v21 }
 0x252   :  { %9399 = vst [vmem:[#allocation65_spill] sm:$0xff] %v6367_v46 }
 0x253   :  { %9402 = vst [vmem:[#allocation68_spill] sm:$0xff] %v6387_v14 }
 0x254   :  { %4458 = vmatmul.msk.f32.gmra.mxu1 %vm960_vm1, %v5691_v27  ;;  %v6360_v29 = vpop.f32.mrf.mxu1  ;;  %v6376_v27 = vld [vmem:[%s9241_s2 + $0x40] sm:$0xff] }
 0x255   :  { %9398 = vst [vmem:[#allocation64_spill] sm:$0xff] %v6360_v29  ;;  %4334 = vmatmul.msk.f32.gmra.mxu2 %vm62_vm0, %v6367_v46  ;;  %v9423_v29 = vld [vmem:[#allocation34_spill] sm:$0xff] }
 0x256   :  { %9400 = vst [vmem:[#allocation66_spill] sm:$0xff] %v6376_v27 }
 0x25c   :  { %4459 = vmatmul.msk.f32.gmra.mxu1 %vm960_vm1, %v5708_v38  ;;  %v6380_v38 = vpop.f32.mrf.mxu1 }
 0x25d   :  { %4335 = vmatmul.msk.f32.gmra.mxu2 %vm62_vm0, %v6376_v27  ;;  %9401 = vst [vmem:[#allocation67_spill] sm:$0xff] %v6380_v38  ;;  %v9420_v38 = vld [vmem:[#allocation24_spill] sm:$0xff] }
 0x264   :  { %4460 = vmatmul.msk.f32.gmra.mxu1 %vm960_vm1, %v5725_v43  ;;  %v6391_v43 = vpop.f32.mrf.mxu1 }
 0x265   :  { %4336 = vmatmul.msk.f32.gmra.mxu2 %vm62_vm0, %v6387_v14  ;;  %9403 = vst [vmem:[#allocation69_spill] sm:$0xff] %v6391_v43 }
 0x26c   :  { %4461 = vmatmul.msk.f32.gmra.mxu1 %vm960_vm1, %v5742_v61  ;;  %v6402_v61 = vpop.f32.mrf.mxu1 }
 0x26d   :  { %4337 = vmatmul.msk.f32.gmra.mxu2 %vm62_vm0, %v6398_v51  ;;  %9405 = vst [vmem:[#allocation71_spill] sm:$0xff] %v6402_v61  ;;  %v9421_v61 = vld [vmem:[#allocation25_spill] sm:$0xff] }
 0x274   :  { %4462 = vmatmul.msk.f32.gmra.mxu1 %vm960_vm1, %v5759_v9  ;;  %v6413_v9 = vpop.f32.mrf.mxu1 }
 0x275   :  { %4338 = vmatmul.msk.f32.gmra.mxu2 %vm62_vm0, %v6409_v47  ;;  %9407 = vst [vmem:[#allocation73_spill] sm:$0xff] %v6413_v9 }
 0x27c   :  { %4463 = vmatmul.msk.f32.gmra.mxu1 %vm960_vm1, %v5770_v23  ;;  %v6429_v23 = vld [vmem:[%s9241_s2 + $0x68] sm:$0xff] }
 0x27d   :  { %4339 = vmatmul.msk.f32.gmra.mxu2 %vm62_vm0, %v6420_v1  ;;  %9409 = vst [vmem:[#allocation75_spill] sm:$0xff] %v6429_v23 }
 0x284   :  { %4464 = vmatmul.msk.f32.gmra.mxu1 %vm960_vm1, %v5781_v30  ;;  %v6433_v30 = vpop.f32.mrf.mxu1 }
 0x285   :  { %4340 = vmatmul.msk.f32.gmra.mxu2 %vm62_vm0, %v6429_v23  ;;  %9410 = vst [vmem:[#allocation76_spill] sm:$0xff] %v6433_v30 }
 0x28c   :  { %4465 = vmatmul.msk.f32.gmra.mxu1 %vm960_vm1, %v5795_v55  ;;  %v6444_v55 = vpop.f32.mrf.mxu1 }
 0x28d   :  { %4341 = vmatmul.msk.f32.gmra.mxu2 %vm62_vm0, %v6440_v42  ;;  %9412 = vst [vmem:[#allocation21_spill] sm:$0xff] %v6444_v55 }
 0x294   :  { %4466 = vmatmul.msk.f32.gmra.mxu1 %vm960_vm1, %v9411_v2 }
 0x295   :  { %4342 = vmatmul.msk.f32.gmra.mxu2 %vm62_vm0, %v6451_v52 }
 0x29c   :  { %4467 = vmatmul.msk.f32.gmra.mxu1 %vm960_vm1, %v9413_v36 }
 0x29d   :  { %4391 = vmatmul.msk.f32.vlgmr.msrb.gmra.mxu2 %vm62_vm0, %v6273_v56  ;;  %v6463_v0 = vpop.f32.mrf.mxu2 }
 0x29e   :  { %9414 = vst [vmem:[#allocation23_spill] sm:$0xff] %v6463_v0 }
 0x2a1   :  { %v1436_v12 = vpop.f32.mrf.mxu1 }
 0x2a2   :  { %v1484_v9 = vadd.f32 %v1436_v12, %v9420_v38  ;;  %v9426_v38 = vld [vmem:[#allocation26_spill] sm:$0xff] }
 0x2a4   :  { %v1500_v63 = vadd.f32 %v1484_v9, %v9423_v29 }
 0x2a5   :  { %4392 = vmatmul.msk.f32.gmra.mxu2 %vm62_vm0, %v6284_v60 }
 0x2a6   :  { %v4468_v6 = vmul.f32 -1.442695, %v1500_v63 }
 0x2a8   :  { %v6467_v4 = vpop.f32.mrf.mxu2  ;;  %4740 = vpow2.f32 %v4468_v6 }
 0x2a9   :  { %v1439_v16 = vpop.f32.mrf.mxu1  ;;  %9415 = vst [vmem:[#allocation77_spill] sm:$0xff] %v6467_v4 }
 0x2aa   :  { %v1485_v11 = vadd.f32 %v1439_v16, %v9421_v61  ;;  %v9427_v61 = vld [vmem:[#allocation28_spill] sm:$0xff] }
 0x2ac   :  { %v1501_v62 = vadd.f32 %v1485_v11, %v9424_v45  ;;  %v9430_v11 = vld [vmem:[#allocation39_spill] sm:$0xff]  ;;  %v9433_v45 = vld [vmem:[#allocation33_spill] sm:$0xff] }
 0x2ad   :  { %4393 = vmatmul.msk.f32.gmra.mxu2 %vm62_vm0, %v6295_v19 }
 0x2ae   :  { %v4469_v26 = vmul.f32 -1.442695, %v1501_v62  ;;  %v4741_v63 = vpop.eup %4740 }
 0x2af   :  { %v6510_v29 = vadd.f32 1.0, %v4741_v63 }
 0x2b0   :  { %v6471_v15 = vpop.f32.mrf.mxu2  ;;  %4742 = vpow2.f32 %v4469_v26 }
 0x2b1   :  { %v1442_v31 = vpop.f32.mrf.mxu1  ;;  %9416 = vst [vmem:[#allocation78_spill] sm:$0xff] %v6471_v15  ;;  %v9431_v15 = vld [vmem:[#allocation30_spill] sm:$0xff]  ;;  %vm1537_vm13 = vweird.f32 %v6510_v29 }
 0x2b2   :  { %v1486_v12 = vadd.f32 %v1442_v31, %v9426_v38 }
 0x2b5   :  { %4394 = vmatmul.msk.f32.gmra.mxu2 %vm62_vm0, %v6304_v5 }
 0x2b6   :  { %v4743_v31 = vpop.eup %4742 }
 0x2b8   :  { %v6475_v36 = vpop.f32.mrf.mxu2 }
 0x2b9   :  { %v1445_v2 = vpop.f32.mrf.mxu1  ;;  %9417 = vst [vmem:[#allocation79_spill] sm:$0xff] %v6475_v36  ;;  %v9429_v36 = vld [vmem:[#allocation27_spill] sm:$0xff] }
 0x2bd   :  { %4395 = vmatmul.msk.f32.gmra.mxu2 %vm62_vm0, %v6320_v10 }
 0x2c0   :  { %v6479_v24 = vpop.f32.mrf.mxu2 }
 0x2c1   :  { %v1448_v35 = vpop.f32.mrf.mxu1  ;;  %9418 = vst [vmem:[#allocation80_spill] sm:$0xff] %v6479_v24  ;;  %v1487_v24 = vadd.f32 %v1445_v2, %v9429_v36  ;;  %v6514_v2 = vadd.f32 1.0, %v4743_v31  ;;  %v9434_v36 = vld [vmem:[#allocation40_spill] sm:$0xff] }
 0x2c2   :  { %v1488_v16 = vadd.f32 %v1448_v35, %v9427_v61 }
 0x2c3   :  { %v1503_v26 = vadd.f32 %v1487_v24, %v9433_v45  ;;  %vm1552_vm3 = vweird.f32 %v6514_v2 }
 0x2c4   :  { %v1504_v62 = vadd.f32 %v1488_v16, %v9430_v11 }
 0x2c5   :  { %4396 = vmatmul.msk.f32.gmra.mxu2 %vm62_vm0, %v6337_v17  ;;  %v4471_v16 = vmul.f32 -1.442695, %v1503_v26  ;;  %v9438_v26 = vld [vmem:[#allocation36_spill] sm:$0xff] }
 0x2c8   :  { %v6483_v43 = vpop.f32.mrf.mxu2 }
 0x2c9   :  { %v1451_v55 = vpop.f32.mrf.mxu1  ;;  %9419 = vst [vmem:[#allocation81_spill] sm:$0xff] %v6483_v43 }
 0x2cd   :  { %4397 = vmatmul.msk.f32.gmra.mxu2 %vm62_vm0, %v6356_v21  ;;  %v9449_v21 = vld [vmem:[#allocation49_spill] sm:$0xff] }
 0x2d0   :  { %v6489_v8 = vpop.f32.mrf.mxu2 }
 0x2d1   :  { %v1454_v30 = vpop.f32.mrf.mxu1  ;;  %9422 = vst [vmem:[#allocation24_spill] sm:$0xff] %v6489_v8  ;;  %v9428_v8 = vld [vmem:[#allocation29_spill] sm:$0xff] }
 0x2d2   :  { %v1502_v9 = vadd.f32 %v1486_v12, %v9428_v8  ;;  %v4472_v12 = vmul.f32 -1.442695, %v1504_v62  ;;  %v9435_v8 = vld [vmem:[#allocation32_spill] sm:$0xff] }
 0x2d3   :  { %v1490_v4 = vadd.f32 %v1454_v30, %v9435_v8 }
 0x2d4   :  { %v4470_v38 = vmul.f32 -1.442695, %v1502_v9 }
 0x2d5   :  { %4398 = vmatmul.msk.f32.gmra.mxu2 %vm62_vm0, %v6367_v46 }
 0x2d6   :  { %4744 = vpow2.f32 %v4470_v38 }
 0x2d7   :  { %4746 = vrcp.f32 %v6510_v29 }
 0x2d8   :  { %v6495_v40 = vpop.f32.mrf.mxu2  ;;  %4748 = vpow2.f32 %v4472_v12 }
 0x2d9   :  { %v1457_v54 = vpop.f32.mrf.mxu1  ;;  %9425 = vst [vmem:[#allocation25_spill] sm:$0xff] %v6495_v40  ;;  %v1489_v40 = vadd.f32 %v1451_v55, %v9431_v15  ;;  %4750 = vrcp.f32 %v6514_v2  ;;  %v9436_v15 = vld [vmem:[#allocation31_spill] sm:$0xff] }
 0x2da   :  { %v1506_v24 = vadd.f32 %v1490_v4, %v9436_v15  ;;  %4752 = vpow2.f32 %v4471_v16  ;;  %v1491_v4 = vadd.f32 %v1457_v54, %v9438_v26 }
 0x2db   :  { %v1505_v61 = vadd.f32 %v1489_v40, %v9434_v36 }
 0x2dc   :  { %v4745_v40 = vpop.eup %4744  ;;  %v4474_v30 = vmul.f32 -1.442695, %v1506_v24 }
 0x2dd   :  { %4399 = vmatmul.msk.f32.gmra.mxu2 %vm62_vm0, %v6376_v27  ;;  %v4473_v55 = vmul.f32 -1.442695, %v1505_v61  ;;  %v6527_v8 = vpop.eup %4746  ;;  %v6533_v38 = vadd.f32 1.0, %v4745_v40  ;;  %v9440_v40 = vld [vmem:[#allocation37_spill] sm:$0xff] }
 0x2de   :  { %v4749_v62 = vpop.eup %4748  ;;  %v1533_v61 = vmul.f32 %v6527_v8, %v6510_v29  ;;  %v1507_v15 = vadd.f32 %v1491_v4, %v9440_v40  ;;  %vm1538_vm14 = vweird.f32 %v6527_v8 }
 0x2df   :  { %4754 = vpow2.f32 %v4473_v55  ;;  %v6531_v31 = vpop.eup %4750  ;;  %v6538_v16 = vadd.f32 1.0, %v4749_v62  ;;  %vm6588_vm2 = vmor %vm1537_vm13, %vm1538_vm14  ;;  %vm1567_vm7 = vweird.f32 %v6533_v38 }
 0x2e0   :  { %v6507_v6 = vpop.f32.mrf.mxu2  ;;  %v4753_v12 = vpop.eup %4752  ;;  %4756 = vpow2.f32 %v4474_v30  ;;  %v1548_v55 = vmul.f32 %v6531_v31, %v6514_v2  ;;  %v1534_v26 = vsub.f32 1.0, %v1533_v61  ;;  %vm1553_vm15 = vweird.f32 %v6531_v31 }
 0x2e1   :  { %v6498_v43 = vpop.f32.mrf.mxu1  ;;  %9432 = vst [vmem:[#allocation26_spill] sm:$0xff] %v6507_v6  ;;  %4758 = vrcp.f32 %v6533_v38  ;;  %vm6603_vm5 = vmor %vm1552_vm3, %vm1553_vm15  ;;  %vm1613_vm12 = vweird.f32 %v6538_v16 }
 0x2e2   :  { %4760 = vrcp.f32 %v6538_v16  ;;  %v1549_v62 = vsub.f32 1.0, %v1548_v55 }
 0x2e4   :  { %v1550_v55 = vmul.f32 %v6531_v31, %v1549_v62  ;;  %v1543_v62 = vand.u32 2147483648, %v6510_v29 }
 0x2e5   :  { %4400 = vmatmul.msk.f32.gmra.mxu2 %vm62_vm0, %v6387_v14  ;;  %v4755_v24 = vpop.eup %4754 }
 0x2e6   :  { %v6551_v36 = vadd.f32 1.0, %v4755_v24  ;;  %v4757_v30 = vpop.eup %4756 }
 0x2e7   :  { %v6557_v45 = vpop.eup %4758  ;;  %v6562_v61 = vadd.f32 1.0, %v4757_v30  ;;  %v1541_v30 = vand.u32 2147483647, %v6510_v29 }
 0x2e8   :  { %v6523_v9 = vpop.f32.mrf.mxu2  ;;  %v6565_v24 = vpop.eup %4760  ;;  %vm1568_vm8 = vweird.f32 %v6557_v45 }
 0x2e9   :  { %v6512_v35 = vpop.f32.mrf.mxu1  ;;  %9437 = vst [vmem:[#allocation28_spill] sm:$0xff] %v6523_v9  ;;  %v6545_v9 = vadd.f32 1.0, %v4753_v12  ;;  %v1535_v12 = vmul.f32 %v6527_v8, %v1534_v26  ;;  %vm1542_vm4 = vcmp.eq.f32.partialorder %v1541_v30, 8.507059e+37  ;;  %vm1614_vm11 = vweird.f32 %v6565_v24  ;;  %vm6668_vm13 = vmor %vm1567_vm7, %vm1568_vm8 }
 0x2ea   :  { %vm6681_vm15 = vmor %vm1613_vm12, %vm1614_vm11 }
 0x2eb   :  { %4762 = vrcp.f32 %v6545_v9  ;;  %v1536_v26 = vadd.f32 %v6527_v8, %v1535_v12  ;;  %v1551_v12 = vadd.f32 %v6531_v31, %v1550_v55  ;;  %vm1582_vm9 = vweird.f32 %v6545_v9 }
 0x2ec   :  { %4764 = vrcp.f32 %v6551_v36 }
 0x2ed   :  { %4401 = vmatmul.msk.f32.gmra.mxu2 %vm62_vm0, %v6398_v51  ;;  %v9443_v51 = vld [vmem:[#allocation47_spill] sm:$0xff] }
 0x2f0   :  { %v6540_v6 = vpop.f32.mrf.mxu2 }
 0x2f1   :  { %v6525_v63 = vpop.f32.mrf.mxu1  ;;  %9439 = vst [vmem:[#allocation27_spill] sm:$0xff] %v6540_v6  ;;  %v4475_v6 = vmul.f32 -1.442695, %v1507_v15  ;;  %v1563_v15 = vmul.f32 %v6557_v45, %v6533_v38  ;;  %v6573_v0 = vpop.eup %4762 }
 0x2f2   :  { %v6594_v27 = vpop.eup %4764  ;;  %v1578_v55 = vmul.f32 %v6573_v0, %v6545_v9  ;;  %vm1583_vm10 = vweird.f32 %v6573_v0 }
 0x2f3   :  { %4766 = vpow2.f32 %v4475_v6  ;;  %v1556_v6 = vand.u32 2147483647, %v6514_v2  ;;  %v1564_v46 = vsub.f32 1.0, %v1563_v15 }
 0x2f4   :  { %4768 = vrcp.f32 %v6562_v61  ;;  %v1579_v32 = vsub.f32 1.0, %v1578_v55  ;;  %v1586_v55 = vand.u32 2147483647, %v6545_v9 }
 0x2f5   :  { %4402 = vmatmul.msk.f32.gmra.mxu2 %vm62_vm0, %v6409_v47  ;;  %v1609_v47 = vmul.f32 %v6565_v24, %v6538_v16  ;;  %vm1557_vm6 = vcmp.eq.f32.partialorder %v1556_v6, 8.507059e+37 }
 0x2f6   :  { %vm6693_vm3 = vcmp.eq.f32.partialorder %v1586_v55, 8.507059e+37 }
 0x2f7   :  { %v1610_v17 = vsub.f32 1.0, %v1609_v47  ;;  %v1565_v47 = vmul.f32 %v6557_v45, %v1564_v46  ;;  %v9451_v46 = vld [vmem:[#allocation45_spill] sm:$0xff] }
 0x2f8   :  { %v6559_v4 = vpop.f32.mrf.mxu2 }
 0x2f9   :  { %v6548_v54 = vpop.f32.mrf.mxu1  ;;  %9441 = vst [vmem:[#allocation30_spill] sm:$0xff] %v6559_v4  ;;  %v9442_v4 = vld [vmem:[#allocation46_spill] sm:$0xff]  ;;  %v4767_v29 = vpop.eup %4766 }
 0x2fd   :  { %4403 = vmatmul.msk.f32.gmra.mxu2 %vm62_vm0, %v6420_v1  ;;  %v1544_v1 = vor.u32 1.1754944e-38, %v1543_v62  ;;  %v6618_v62 = vpop.eup %4768 }
 0x2fe   :  { %vm1644_vm8 = vweird.f32 %v6618_v62 }
 0x300   :  { %v6608_v15 = vpop.f32.mrf.mxu2 }
 0x301   :  { %v1472_v40 = vpop.f32.mrf.mxu1  ;;  %9448 = vst [vmem:[#allocation32_spill] sm:$0xff] %v6608_v15  ;;  %v6620_v15 = vadd.f32 1.0, %v4767_v29 }
 0x302   :  { %v1496_v11 = vadd.f32 %v1472_v40, %v9442_v4  ;;  %v1558_v4 = vand.u32 2147483648, %v6514_v2  ;;  %v1573_v2 = vand.u32 2147483648, %v6533_v38  ;;  %v1555_v40 = vsel %vm6603_vm5, %v6531_v31, %v1551_v12  ;;  %vm6712_vm5 = vmor %vm1582_vm9, %vm1583_vm10 }
 0x303   :  { %v1611_v12 = vmul.f32 %v6565_v24, %v1610_v17  ;;  %v1588_v17 = vand.u32 2147483648, %v6545_v9  ;;  %v1632_v9 = vand.u32 2147483647, %v6551_v36  ;;  %vm1643_vm9 = vweird.f32 %v6562_v61 }
 0x304   :  { %v1512_v14 = vadd.f32 %v1496_v11, %v9443_v51  ;;  %v1540_v11 = vsel %vm6588_vm2, %v6527_v8, %v1536_v26  ;;  %v1559_v26 = vor.u32 1.1754944e-38, %v1558_v4  ;;  %v9450_v4 = vld [vmem:[#allocation41_spill] sm:$0xff]  ;;  %vm6755_vm11 = vmor %vm1643_vm9, %vm1644_vm8 }
 0x305   :  { %v6615_v8 = vsel %vm1542_vm4, %v1544_v1, %v1540_v11  ;;  %v6628_v1 = vor.u32 1.1754944e-38, %v1573_v2  ;;  %v1493_v11 = vadd.f32 %v6512_v35, %v9450_v4  ;;  %4404 = vmatmul.msk.f32.gmra.mxu2 %vm62_vm0, %v6429_v23  ;;  %v9452_v2 = vld [vmem:[#allocation38_spill] sm:$0xff]  ;;  %v6645_v35 = vadd.f32 %v6557_v45, %v1565_v47 }
 0x306   :  { %v4476_v51 = vmul.f32 -1.442695, %v1512_v14  ;;  %v1624_v14 = vmul.f32 %v6594_v27, %v6551_v36  ;;  %v6624_v6 = vsel %vm1557_vm6, %v1559_v26, %v1555_v40  ;;  %v1639_v26 = vmul.f32 %v6618_v62, %v6562_v61 }
 0x307   :  { %v1509_v47 = vadd.f32 %v1493_v11, %v6048_v48  ;;  %vm1629_vm4 = vweird.f32 %v6594_v27  ;;  %vm1628_vm6 = vweird.f32 %v6551_v36  ;;  %vm1633_vm10 = vcmp.eq.f32.partialorder %v1632_v9, 8.507059e+37 }
 0x308   :  { %4770 = vpow2.f32 %v4476_v51  ;;  %v1571_v51 = vand.u32 2147483647, %v6533_v38  ;;  %v1625_v40 = vsub.f32 1.0, %v1624_v14  ;;  %v1617_v14 = vand.u32 2147483647, %v6538_v16  ;;  %vm6735_vm7 = vmor %vm1628_vm6, %vm1629_vm4 }
 0x309   :  { %v1475_v30 = vpop.f32.mrf.mxu1  ;;  %4772 = vrcp.f32 %v6620_v15  ;;  %v1647_v38 = vand.u32 2147483647, %v6562_v61 }
 0x30a   :  { %v1497_v31 = vadd.f32 %v1475_v30, %v9449_v21  ;;  %v1492_v30 = vadd.f32 %v6498_v43, %v9452_v2  ;;  %v6653_v43 = vpop.f32.mrf.mxu2  ;;  %v1612_v2 = vadd.f32 %v6565_v24, %v1611_v12  ;;  %vm6672_vm14 = vcmp.eq.f32.partialorder %v1571_v51, 8.507059e+37 }
 0x30b   :  { %9453 = vst [vmem:[#allocation36_spill] sm:$0xff] %v6653_v43  ;;  %vm6685_vm2 = vcmp.eq.f32.partialorder %v1617_v14, 8.507059e+37  ;;  %v1570_v51 = vsel %vm6668_vm13, %v6557_v45, %v6645_v35  ;;  %v1649_v12 = vand.u32 2147483648, %v6562_v61  ;;  %vm1648_vm12 = vcmp.eq.f32.partialorder %v1647_v38, 8.507059e+37 }
 0x30c   :  { %v1513_v29 = vadd.f32 %v1497_v31, %v9451_v46  ;;  %v1580_v31 = vmul.f32 %v6573_v0, %v1579_v32  ;;  %v1619_v46 = vand.u32 2147483648, %v6538_v16  ;;  %v1626_v32 = vmul.f32 %v6594_v27, %v1625_v40 }
 0x30d   :  { %v1508_v53 = vadd.f32 %v1492_v30, %v6053_v13  ;;  %v1634_v16 = vand.u32 2147483648, %v6551_v36  ;;  %4405 = vmatmul.msk.f32.gmra.mxu2 %vm62_vm0, %v6440_v42  ;;  %vm1658_vm13 = vweird.f32 %v6620_v15 }
 0x30e   :  { %v4771_v21 = vpop.eup %4770  ;;  %v4477_v4 = vmul.f32 -1.442695, %v1513_v29  ;;  %v1640_v29 = vsub.f32 1.0, %v1639_v26  ;;  %v1581_v40 = vadd.f32 %v6573_v0, %v1580_v31  ;;  %v1616_v31 = vsel %vm6681_vm15, %v6565_v24, %v1612_v2 }
 0x30f   :  { %v6651_v23 = vadd.f32 1.0, %v4771_v21  ;;  %v9454_v21 = vld [vmem:[#allocation42_spill] sm:$0xff]  ;;  %v1627_v55 = vadd.f32 %v6594_v27, %v1626_v32  ;;  %v1635_v32 = vor.u32 1.1754944e-38, %v1634_v16 }
 0x310   :  { %4774 = vpow2.f32 %v4477_v4  ;;  %v1494_v43 = vadd.f32 %v6525_v63, %v9454_v21  ;;  %v1620_v4 = vor.u32 1.1754944e-38, %v1619_v46  ;;  %v1641_v45 = vmul.f32 %v6618_v62, %v1640_v29 }
 0x311   :  { %4776 = vrcp.f32 %v6651_v23  ;;  %v1478_v18 = vpop.f32.mrf.mxu1  ;;  %vm1693_vm4 = vweird.f32 %v6651_v23 }
 0x312   :  { %v1498_v26 = vadd.f32 %v1478_v18, %v6080_v58  ;;  %v1589_v58 = vor.u32 1.1754944e-38, %v1588_v17  ;;  %v6697_v18 = vpop.eup %4772  ;;  %4778 = vtanh.f32 %v1509_v47  ;;  %v1510_v17 = vadd.f32 %v1494_v43, %v6004_v41  ;;  %v6728_v21 = vpop.f32.mrf.mxu2 }
 0x313   :  { %4780 = vtanh.f32 %v1508_v53  ;;  %v1585_v53 = vsel %vm6712_vm5, %v6573_v0, %v1581_v40  ;;  %v1654_v47 = vmul.f32 %v6697_v18, %v6620_v15  ;;  %v1621_v43 = vsel %vm6685_vm2, %v1620_v4, %v1616_v31  ;;  %v9469_v31 = vld [vmem:[#allocation43_spill] sm:$0xff] }
 0x314   :  { %v1514_v14 = vadd.f32 %v1498_v26, %v5941_v22  ;;  %v1631_v40 = vsel %vm6735_vm7, %v6594_v27, %v1627_v55  ;;  %v1642_v26 = vadd.f32 %v6618_v62, %v1641_v45  ;;  %v1495_v4 = vadd.f32 %v6548_v54, %v9469_v31 }
 0x315   :  { %v1655_v27 = vsub.f32 1.0, %v1654_v47  ;;  %v1575_v45 = vsel %vm6672_vm14, %v6628_v1, %v1570_v51  ;;  %v1636_v55 = vsel %vm1633_vm10, %v1635_v32, %v1631_v40  ;;  %4406 = vmatmul.msk.f32.gmra.mxu2 %vm62_vm0, %v6451_v52  ;;  %v1748_v61 = vmul.f32 %v1621_v43, %v6187_v25 }
 0x316   :  { %v4775_v46 = vpop.eup %4774  ;;  %v4478_v35 = vmul.f32 -1.442695, %v1514_v14  ;;  %v1646_v1 = vsel %vm6755_vm11, %v6618_v62, %v1642_v26  ;;  %v1650_v51 = vor.u32 1.1754944e-38, %v1649_v12  ;;  %v1749_v25 = vmul.f32 %v1636_v55, %v6183_v37 }
 0x317   :  { %v6721_v2 = vpop.eup %4776  ;;  %v6726_v29 = vadd.f32 1.0, %v4775_v46  ;;  %v1656_v9 = vmul.f32 %v6697_v18, %v1655_v27  ;;  %v1664_v0 = vand.u32 2147483648, %v6620_v15  ;;  %v1662_v40 = vand.u32 2147483647, %v6620_v15 }
 0x318   :  { %4782 = vpow2.f32 %v4478_v35  ;;  %v1689_v36 = vmul.f32 %v6721_v2, %v6651_v23  ;;  %v4779_v63 = vpop.eup %4778  ;;  %v1651_v12 = vsel %vm1648_vm12, %v1650_v51, %v1646_v1  ;;  %vm1659_vm14 = vweird.f32 %v6697_v18 }
 0x319   :  { %4784 = vrcp.f32 %v6726_v29  ;;  %v1481_v16 = vpop.f32.mrf.mxu1  ;;  %v4781_v24 = vpop.eup %4780  ;;  %v1753_v11 = vmul.f32 %v4779_v63, %v6624_v6  ;;  %v1657_v38 = vadd.f32 %v6697_v18, %v1656_v9  ;;  %vm1694_vm15 = vweird.f32 %v6721_v2 }
 0x31a   :  { %4786 = vtanh.f32 %v1510_v17  ;;  %v1499_v14 = vadd.f32 %v1481_v16, %v6151_v20  ;;  %v6761_v17 = vsel %vm6693_vm3, %v1589_v58, %v1585_v53  ;;  %v1690_v54 = vsub.f32 1.0, %v1689_v36  ;;  %v6778_v32 = vpop.f32.mrf.mxu2  ;;  %vm6797_vm3 = vmor %vm1658_vm13, %vm1659_vm14 }
 0x31b   :  { %v1752_v30 = vmul.f32 %v4781_v24, %v6615_v8  ;;  %v1511_v58 = vadd.f32 %v1495_v4, %v5990_v3  ;;  %v6783_v36 = vadd.f32 %v1753_v11, %v1749_v25  ;;  %v1750_v16 = vmul.f32 %v1651_v12, %v6212_v33  ;;  %vm6806_vm6 = vmor %vm1693_vm4, %vm1694_vm15 }
 0x31c   :  { %v1515_v20 = vadd.f32 %v1499_v14, %v5931_v7  ;;  %v1691_v43 = vmul.f32 %v6721_v2, %v1690_v54  ;;  %v1714_v4 = vand.u32 2147483648, %v6726_v29  ;;  %v1712_v27 = vand.u32 2147483647, %v6726_v29 }
 0x31d   :  { %v6787_v37 = vadd.f32 %v1752_v30, %v1748_v61  ;;  %v1699_v33 = vand.u32 2147483648, %v6651_v23  ;;  %v1665_v55 = vor.u32 1.1754944e-38, %v1664_v0  ;;  %vm1708_vm5 = vweird.f32 %v6726_v29 }
 0x31e   :  { %v4783_v35 = vpop.eup %4782  ;;  %v4479_v53 = vmul.f32 -1.442695, %v1515_v20  ;;  %v1692_v14 = vadd.f32 %v6721_v2, %v1691_v43  ;;  %v1697_v15 = vand.u32 2147483647, %v6651_v23  ;;  %v1661_v11 = vsel %vm6797_vm3, %v6697_v18, %v1657_v38 }
 0x31f   :  { %v4785_v47 = vpop.eup %4784  ;;  %v6776_v6 = vadd.f32 1.0, %v4783_v35  ;;  %vm1663_vm8 = vcmp.eq.f32.partialorder %v1662_v40, 8.507059e+37  ;;  %vm1713_vm9 = vcmp.eq.f32.partialorder %v1712_v27, 8.507059e+37  ;;  %v1700_v18 = vor.u32 1.1754944e-38, %v1699_v33 }
 0x320   :  { %v4787_v62 = vpop.eup %4786  ;;  %4788 = vpow2.f32 %v4479_v53  ;;  %v1704_v8 = vmul.f32 %v4785_v47, %v6726_v29  ;;  %vm1709_vm2 = vweird.f32 %v4785_v47  ;;  %v1696_v23 = vsel %vm6806_vm6, %v6721_v2, %v1692_v14 }
 0x321   :  { %4790 = vrcp.f32 %v6776_v6  ;;  %v1754_v63 = vmul.f32 %v4787_v62, %v1575_v45  ;;  %vm1710_vm7 = vmor %vm1708_vm5, %vm1709_vm2  ;;  %v1666_v53 = vsel %vm1663_vm8, %v1665_v55, %v1661_v11  ;;  %vm1698_vm10 = vcmp.eq.f32.partialorder %v1697_v15, 8.507059e+37 }
 0x322   :  { %4792 = vtanh.f32 %v1511_v58  ;;  %v1705_v26 = vsub.f32 1.0, %v1704_v8  ;;  %v6818_v51 = vpop.f32.mrf.mxu2  ;;  %v1715_v58 = vor.u32 1.1754944e-38, %v1714_v4  ;;  %v1729_v8 = vand.u32 2147483648, %v6776_v6 }
 0x323   :  { %4794 = vtanh.f32 %v6783_v36  ;;  %v6811_v61 = vadd.f32 %v1754_v63, %v1750_v16  ;;  %9476 = vst [vmem:[#allocation46_spill] sm:$0xff] %v6818_v51  ;;  %v1727_v2 = vand.u32 2147483647, %v6776_v6  ;;  %vm1723_vm12 = vweird.f32 %v6776_v6 }
 0x324   :  { %v1706_v31 = vmul.f32 %v4785_v47, %v1705_v26  ;;  %4796 = vtanh.f32 %v6787_v37  ;;  %v1751_v26 = vmul.f32 %v1666_v53, %v6235_v44  ;;  %vm1800_vm8 = vcmp.gt.s32.totalorder %v6313_v49, 1 }
 0x325   :  { %vm1728_vm14 = vcmp.eq.f32.partialorder %v1727_v2, 8.507059e+37  ;;  %v57_v2 = vld [vmem:[%s9239_s0 + $0x58] sm:$0xff] }
 0x326   :  { %v4789_v45 = vpop.eup %4788  ;;  %v1707_v46 = vadd.f32 %v4785_v47, %v1706_v31  ;;  %v1730_v31 = vor.u32 1.1754944e-38, %v1729_v8  ;;  %v6856_v8 = vld [vmem:[%s9242_s3] sm:$0xff]  ;;  %320 = vmatpush.msra.mxu3 %v57_v2 }
 0x327   :  { %v4791_v54 = vpop.eup %4790  ;;  %v1687_v1 = vadd.f32 1.0, %v4789_v45 }
 0x328   :  { %v4793_v29 = vpop.eup %4792  ;;  %v1719_v35 = vmul.f32 %v4791_v54, %v6776_v6  ;;  %v1711_v30 = vsel %vm1710_vm7, %v4785_v47, %v1707_v46  ;;  %v1701_v47 = vsel %vm1698_vm10, %v1700_v18, %v1696_v23  ;;  %vm1724_vm11 = vweird.f32 %v4791_v54 }
 0x329   :  { %4798 = vrcp.f32 %v1687_v1  ;;  %v1716_v25 = vsel %vm1713_vm9, %v1715_v58, %v1711_v30  ;;  %v4795_v62 = vpop.eup %4794  ;;  %v1755_v12 = vmul.f32 %v4793_v29, %v6761_v17  ;;  %vm1725_vm13 = vmor %vm1723_vm12, %vm1724_vm11  ;;  %v1742_v46 = vand.u32 2147483647, %v1687_v1 }
 0x32a   :  { %v1720_v9 = vsub.f32 1.0, %v1719_v35  ;;  %4800 = vtanh.f32 %v6811_v61  ;;  %v6828_v0 = vmul.f32 %v4795_v62, %v1716_v25  ;;  %v4797_v40 = vpop.eup %4796  ;;  %v6838_v27 = vpop.f32.mrf.mxu2  ;;  %v1744_v20 = vand.u32 2147483648, %v1687_v1 }
 0x32b   :  { %v6832_v63 = vmul.f32 %v4797_v40, %v1701_v47  ;;  %v6834_v38 = vadd.f32 %v1755_v12, %v1751_v26  ;;  %9477 = vst [vmem:[#allocation49_spill] sm:$0xff] %v6838_v27  ;;  %vm1738_vm2 = vweird.f32 %v1687_v1  ;;  %vm1743_vm4 = vcmp.eq.f32.partialorder %v1742_v46, 8.507059e+37  ;;  %v49_v26 = vld [vmem:[%s9239_s0 + $0x18] sm:$0xff] }
 0x32c   :  { %v1721_v43 = vmul.f32 %v4791_v54, %v1720_v9  ;;  %v1769_v24 = vmul.f32 %v6828_v0, %v6237_v28  ;;  %v1745_v30 = vor.u32 1.1754944e-38, %v1744_v20  ;;  %321 = vmatpush.msra.mxu3 %v49_v26 }
 0x32d   :  { %v1768_v6 = vmul.f32 %v6832_v63, %v6241_v59  ;;  %4802 = vtanh.f32 %v6834_v38  ;;  %4343 = vmatmul.msk.f32.vlgmr.msra.gmra.mxu3 %vm62_vm0, %v6273_v56  ;;  %v6884_v56 = vld [vmem:[%s9242_s3 + $0x10] sm:$0xff] }
 0x32e   :  { %v1722_v16 = vadd.f32 %v4791_v54, %v1721_v43 }
 0x32f   :  { %v4799_v17 = vpop.eup %4798  ;;  %v1772_v11 = vadd.f32 %v1769_v24, %v1768_v6 }
 0x330   :  { %v1734_v4 = vmul.f32 %v4799_v17, %v1687_v1  ;;  %v1726_v14 = vsel %vm1725_vm13, %v4791_v54, %v1722_v16  ;;  %v4801_v33 = vpop.eup %4800  ;;  %vm1739_vm15 = vweird.f32 %v4799_v17 }
 0x331   :  { %v1731_v44 = vsel %vm1728_vm14, %v1730_v31, %v1726_v14  ;;  %vm1740_vm3 = vmor %vm1738_vm2, %vm1739_vm15  ;;  %v6873_v31 = vld [vmem:[%s9242_s3 + $0x8] sm:$0xff] }
 0x332   :  { %v1735_v45 = vsub.f32 1.0, %v1734_v4  ;;  %v6840_v55 = vmul.f32 %v4801_v33, %v1731_v44  ;;  %v6847_v9 = vpop.f32.mrf.mxu2 }
 0x333   :  { %v4803_v23 = vpop.eup %4802  ;;  %9478 = vst [vmem:[#allocation41_spill] sm:$0xff] %v6847_v9 }
 0x334   :  { %v1736_v15 = vmul.f32 %v4799_v17, %v1735_v45  ;;  %v1770_v54 = vmul.f32 %v6840_v55, %v6247_v39 }
 0x335   :  { %4344 = vmatmul.msk.f32.gmra.mxu3 %vm62_vm0, %v6284_v60  ;;  %v6895_v60 = vld [vmem:[%s9242_s3 + $0x18] sm:$0xff] }
 0x336   :  { %v1737_v29 = vadd.f32 %v4799_v17, %v1736_v15  ;;  %v1773_v35 = vadd.f32 %v1772_v11, %v1770_v54 }
 0x338   :  { %v1741_v58 = vsel %vm1740_vm3, %v4799_v17, %v1737_v29 }
 0x339   :  { %v1746_v18 = vsel %vm1743_vm4, %v1745_v30, %v1741_v58 }
 0x33a   :  { %v1767_v53 = vmul.f32 %v4803_v23, %v1746_v18  ;;  %v6860_v43 = vpop.f32.mrf.mxu2  ;;  %v1395_v18 = vmul.f32 %v6327_v50, %v6233_v57  ;;  %v9484_v57 = vld [vmem:[#allocation58_spill] sm:$0xff] }
 0x33b   :  { %9479 = vst [vmem:[#allocation38_spill] sm:$0xff] %v6860_v43 }
 0x33c   :  { %v1771_v25 = vmul.f32 %v1767_v53, %v6254_v34  ;;  %1841 = vmatpush.msra.mxu2 %v1767_v53 }
 0x33d   :  { %4345 = vmatmul.msk.f32.gmra.mxu3 %vm62_vm0, %v6295_v19  ;;  %v6906_v19 = vld [vmem:[%s9242_s3 + $0x20] sm:$0xff] }
 0x33e   :  { %1842 = vmatpush.msra.mxu2 %v6840_v55  ;;  %v1774_v62 = vadd.f32 %v1773_v35, %v1771_v25 }
 0x340   :  { %1843 = vmatpush.msra.mxu2 %v6828_v0  ;;  %v1775_v12 = vrot.slane %v1774_v62, 4 }
 0x342   :  { %v1776_v1 = vadd.f32 %v1775_v12, %v1774_v62  ;;  %1844 = vmatpush.msra.mxu2 %v6832_v63  ;;  %v6877_v14 = vpop.f32.mrf.mxu2  ;;  %v6919_v12 = vld [vmem:[%s9242_s3 + $0x28] sm:$0xff] }
 0x343   :  { %4481 = vmatmul.msk.f32.vlgmr.msra.gmra.mxu2 %vm960_vm1, %v6856_v8  ;;  %9480 = vst [vmem:[#allocation42_spill] sm:$0xff] %v6877_v14  ;;  %v9524_v14 = vld [vmem:[#allocation35_spill] sm:$0xff] }
 0x344   :  { %v1777_v47 = vrot.slane %v1776_v1, 2 }
 0x345   :  { %4346 = vmatmul.msk.f32.gmra.mxu3 %vm62_vm0, %v6304_v5 }
 0x346   :  { %v1778_v40 = vadd.f32 %v1777_v47, %v1776_v1 }
 0x348   :  { %v1779_v16 = vrot.slane %v1778_v40, 1 }
 0x34a   :  { %v1780_v17 = vadd.f32 %v1779_v16, %v1778_v40  ;;  %v6888_v44 = vpop.f32.mrf.mxu2  ;;  %v9486_v40 = vld [vmem:[#allocation61_spill] sm:$0xff]  ;;  %v9487_v16 = vld [vmem:[#allocation59_spill] sm:$0xff] }
 0x34b   :  { %4482 = vmatmul.msk.f32.gmra.mxu2 %vm960_vm1, %v6873_v31  ;;  %9481 = vst [vmem:[#allocation43_spill] sm:$0xff] %v6888_v44 }
 0x34c   :  { %v4480_v4 = vmul.f32 -1.442695, %v1780_v17  ;;  %v9490_v17 = vld [vmem:[#allocation63_spill] sm:$0xff] }
 0x34d   :  { %4347 = vmatmul.msk.f32.gmra.mxu3 %vm62_vm0, %v6320_v10 }
 0x34e   :  { %4804 = vpow2.f32 %v4480_v4  ;;  %v6954_v4 = vld [vmem:[%s9242_s3 + $0x38] sm:$0xff] }
 0x34f   :  { %9491 = vst [vmem:[#allocation61_spill] sm:$0xff] %v6954_v4 }
 0x352   :  { %v6901_v11 = vpop.f32.mrf.mxu2 }
 0x353   :  { %4483 = vmatmul.msk.f32.gmra.mxu2 %vm960_vm1, %v6884_v56  ;;  %9482 = vst [vmem:[#allocation82_spill] sm:$0xff] %v6901_v11  ;;  %v9520_v11 = vld [vmem:[#allocation23_spill] sm:$0xff] }
 0x354   :  { %v4805_v24 = vpop.eup %4804 }
 0x355   :  { %v1784_v33 = vadd.f32 1.0, %v4805_v24  ;;  %4348 = vmatmul.msk.f32.gmra.mxu3 %vm62_vm0, %v9487_v16 }
 0x357   :  { %4806 = vrcp.f32 %v1784_v33  ;;  %v1796_v20 = vand.u32 2147483648, %v1784_v33  ;;  %v1794_v54 = vand.u32 2147483647, %v1784_v33  ;;  %vm1790_vm6 = vweird.f32 %v1784_v33 }
 0x359   :  { %v1797_v35 = vor.u32 1.1754944e-38, %v1796_v20  ;;  %vm1795_vm9 = vcmp.eq.f32.partialorder %v1794_v54, 8.507059e+37  ;;  %v6976_v20 = vld [vmem:[%s9242_s3 + $0x48] sm:$0xff]  ;;  %v6985_v54 = vld [vmem:[%s9242_s3 + $0x50] sm:$0xff] }
 0x35a   :  { %v6925_v47 = vpop.f32.mrf.mxu2 }
 0x35b   :  { %4484 = vmatmul.msk.f32.gmra.mxu2 %vm960_vm1, %v6895_v60  ;;  %9483 = vst [vmem:[#allocation83_spill] sm:$0xff] %v6925_v47 }
 0x35d   :  { %v4807_v45 = vpop.eup %4806  ;;  %4349 = vmatmul.msk.f32.gmra.mxu3 %vm62_vm0, %v9490_v17 }
 0x35e   :  { %v1786_v6 = vmul.f32 %v4807_v45, %v1784_v33  ;;  %vm1791_vm5 = vweird.f32 %v4807_v45  ;;  %v9493_v33 = vld [vmem:[#allocation65_spill] sm:$0xff] }
 0x35f   :  { %vm1792_vm7 = vmor %vm1790_vm6, %vm1791_vm5 }
 0x360   :  { %v1787_v46 = vsub.f32 1.0, %v1786_v6  ;;  %v9495_v6 = vld [vmem:[#allocation66_spill] sm:$0xff] }
 0x361   :  { %9497 = vst [vmem:[#allocation66_spill] sm:$0xff] %v6976_v20 }
 0x362   :  { %v1788_v15 = vmul.f32 %v4807_v45, %v1787_v46 }
 0x363   :  { %4485 = vmatmul.msk.f32.gmra.mxu2 %vm960_vm1, %v6906_v19 }
 0x364   :  { %v1789_v29 = vadd.f32 %v4807_v45, %v1788_v15  ;;  %v9498_v15 = vld [vmem:[#allocation68_spill] sm:$0xff] }
 0x365   :  { %4350 = vmatmul.msk.f32.gmra.mxu3 %vm62_vm0, %v9493_v33  ;;  %9499 = vst [vmem:[#allocation68_spill] sm:$0xff] %v6985_v54 }
 0x366   :  { %v1793_v5 = vsel %vm1792_vm7, %v4807_v45, %v1789_v29  ;;  %v6965_v45 = vld [vmem:[%s9242_s3 + $0x40] sm:$0xff] }
 0x367   :  { %v1798_v30 = vsel %vm1795_vm9, %v1797_v35, %v1793_v5  ;;  %9494 = vst [vmem:[#allocation63_spill] sm:$0xff] %v6965_v45  ;;  %v9501_v35 = vld [vmem:[#allocation70_spill] sm:$0xff]  ;;  %v6996_v5 = vld [vmem:[%s9242_s3 + $0x58] sm:$0xff] }
 0x368   :  { %v1801_v58 = vsel %vm1800_vm8, %v1798_v30, 0.0  ;;  %9502 = vst [vmem:[#allocation70_spill] sm:$0xff] %v6996_v5 }
 0x369   :  { %v1803_v23 = vperm.slane %v1801_v58, 0  ;;  %v9504_v58 = vld [vmem:[#allocation72_spill] sm:$0xff] }
 0x36b   :  { %v1805_v25 = vmul.f32 %v1803_v23, %v6832_v63  ;;  %v1808_v62 = vmul.f32 %v1803_v23, %v1767_v53  ;;  %4486 = vmatmul.msk.f32.gmra.mxu2 %vm960_vm1, %v6919_v12  ;;  %v1806_v49 = vmul.f32 %v1803_v23, %v6828_v0  ;;  %v1807_v1 = vmul.f32 %v1803_v23, %v6840_v55  ;;  %v9485_v63 = vld [vmem:[#allocation60_spill] sm:$0xff]  ;;  %v6947_v55 = vpop.f32.mrf.mxu2  ;;  %v7007_v23 = vld [vmem:[%s9242_s3 + $0x60] sm:$0xff] }
 0x36c   :  { %v6943_v0 = vld [vmem:[%s9242_s3 + $0x30] sm:$0xff]  ;;  %9489 = vst [vmem:[#allocation60_spill] sm:$0xff] %v6947_v55  ;;  %v9523_v55 = vld [vmem:[#allocation34_spill] sm:$0xff] }
 0x36d   :  { %v6927_v2 = vadd.f32 %v1805_v25, %v1395_v18  ;;  %v6930_v50 = vadd.f32 %v1808_v62, %v9484_v57  ;;  %v6933_v53 = vadd.f32 %v1806_v49, %v9485_v63  ;;  %v6936_v26 = vadd.f32 %v1807_v1, %v9486_v40  ;;  %9488 = vst [vmem:[#allocation58_spill] sm:$0xff] %v6943_v0  ;;  %v9507_v25 = vld [vmem:[#allocation74_spill] sm:$0xff]  ;;  %v7018_v62 = vld [vmem:[%s9242_s3 + $0x68] sm:$0xff]  ;;  %v7029_v57 = vld [vmem:[%s9242_s3 + $0x70] sm:$0xff] }
 0x36e   :  { %4351 = vmatmul.msk.f32.gmra.mxu3 %vm62_vm0, %v9495_v6  ;;  %9505 = vst [vmem:[#allocation72_spill] sm:$0xff] %v7007_v23  ;;  %v9509_v49 = vld [vmem:[#allocation75_spill] sm:$0xff]  ;;  %v7038_v63 = vld [vmem:[%s9242_s3 + $0x78] sm:$0xff] }
 0x36f   :  { %9508 = vst [vmem:[#allocation74_spill] sm:$0xff] %v7018_v62 }
 0x370   :  { %9511 = vst [vmem:[#allocation87_spill] sm:$0xff] %v7029_v57 }
 0x371   :  { %9512 = vst [vmem:[#allocation88_spill] sm:$0xff] %v7038_v63 }
 0x373   :  { %4487 = vmatmul.msk.f32.gmra.mxu2 %vm960_vm1, %v6943_v0  ;;  %v6958_v24 = vpop.f32.mrf.mxu2 }
 0x374   :  { %9492 = vst [vmem:[#allocation59_spill] sm:$0xff] %v6958_v24 }
 0x376   :  { %4352 = vmatmul.msk.f32.gmra.mxu3 %vm62_vm0, %v9498_v15  ;;  %v61_v15 = vld [vmem:[%s9239_s0 + $0x78] sm:$0xff] }
 0x377   :  { %580 = vmatpush.msrb.mxu3 %v61_v15 }
 0x37b   :  { %4488 = vmatmul.msk.f32.gmra.mxu2 %vm960_vm1, %v6954_v4  ;;  %v6971_v46 = vpop.f32.mrf.mxu2 }
 0x37c   :  { %9496 = vst [vmem:[#allocation65_spill] sm:$0xff] %v6971_v46 }
 0x37e   :  { %4353 = vmatmul.msk.f32.gmra.mxu3 %vm62_vm0, %v9501_v35 }
 0x383   :  { %4489 = vmatmul.msk.f32.gmra.mxu2 %vm960_vm1, %v6965_v45  ;;  %v6989_v29 = vpop.f32.mrf.mxu2 }
 0x384   :  { %9500 = vst [vmem:[#allocation84_spill] sm:$0xff] %v6989_v29 }
 0x386   :  { %4354 = vmatmul.msk.f32.gmra.mxu3 %vm62_vm0, %v9504_v58  ;;  %v5248_v58 = vld [vmem:[%s9241_s2] sm:$0xff] }
 0x38b   :  { %4490 = vmatmul.msk.f32.gmra.mxu2 %vm960_vm1, %v6976_v20  ;;  %v7000_v30 = vpop.f32.mrf.mxu2 }
 0x38c   :  { %9503 = vst [vmem:[#allocation85_spill] sm:$0xff] %v7000_v30 }
 0x38e   :  { %4355 = vmatmul.msk.f32.gmra.mxu3 %vm62_vm0, %v9507_v25 }
 0x393   :  { %4491 = vmatmul.msk.f32.gmra.mxu2 %vm960_vm1, %v6985_v54  ;;  %v7011_v18 = vpop.f32.mrf.mxu2 }
 0x394   :  { %9506 = vst [vmem:[#allocation86_spill] sm:$0xff] %v7011_v18 }
 0x396   :  { %4356 = vmatmul.msk.f32.gmra.mxu3 %vm62_vm0, %v9509_v49  ;;  %v5249_v49 = vld [vmem:[%s9241_s2 + $0x8] sm:$0xff] }
 0x39b   :  { %4492 = vmatmul.msk.f32.gmra.mxu2 %vm960_vm1, %v6996_v5  ;;  %v7024_v1 = vpop.f32.mrf.mxu2  ;;  %v9549_v5 = vld [vmem:[#allocation36_spill] sm:$0xff] }
 0x39c   :  { %9510 = vst [vmem:[#allocation75_spill] sm:$0xff] %v7024_v1  ;;  %v5251_v1 = vld [vmem:[%s9241_s2 + $0x18] sm:$0xff] }
 0x39e   :  { %4357 = vmatmul.msk.f32.gmra.mxu3 %vm62_vm0, %v6440_v42  ;;  %v53_v42 = vld [vmem:[%s9239_s0 + $0x38] sm:$0xff] }
 0x39f   :  { %581 = vmatpush.msrb.mxu3 %v53_v42  ;;  %v5250_v42 = vld [vmem:[%s9241_s2 + $0x10] sm:$0xff] }
 0x3a3   :  { %4493 = vmatmul.msk.f32.gmra.mxu2 %vm960_vm1, %v7007_v23  ;;  %v7042_v40 = vpop.f32.mrf.mxu2 }
 0x3a4   :  { %9513 = vst [vmem:[#allocation89_spill] sm:$0xff] %v7042_v40 }
 0x3a6   :  { %4358 = vmatmul.msk.f32.gmra.mxu3 %vm62_vm0, %v6451_v52 }
 0x3ab   :  { %4494 = vmatmul.msk.f32.gmra.mxu2 %vm960_vm1, %v7018_v62 }
 0x3ae   :  { %4407 = vmatmul.msk.f32.vlgmr.msrb.gmra.mxu3 %vm62_vm0, %v5248_v58 }
 0x3b0   :  { %v7056_v25 = vpop.f32.mrf.mxu3 }
 0x3b1   :  { %9514 = vst [vmem:[#allocation90_spill] sm:$0xff] %v7056_v25  ;;  %v9543_v25 = vld [vmem:[#allocation47_spill] sm:$0xff] }
 0x3b3   :  { %4495 = vmatmul.msk.f32.gmra.mxu2 %vm960_vm1, %v7029_v57 }
 0x3b6   :  { %4408 = vmatmul.msk.f32.gmra.mxu3 %vm62_vm0, %v5249_v49 }
 0x3b8   :  { %v7062_v15 = vpop.f32.mrf.mxu3 }
 0x3b9   :  { %9515 = vst [vmem:[#allocation91_spill] sm:$0xff] %v7062_v15 }
 0x3bb   :  { %4496 = vmatmul.msk.f32.gmra.mxu2 %vm960_vm1, %v7038_v63 }
 0x3be   :  { %4409 = vmatmul.msk.f32.gmra.mxu3 %vm62_vm0, %v5250_v42 }
 0x3c0   :  { %v7068_v29 = vpop.f32.mrf.mxu3 }
 0x3c1   :  { %9516 = vst [vmem:[#allocation92_spill] sm:$0xff] %v7068_v29  ;;  %v9533_v29 = vld [vmem:[#allocation33_spill] sm:$0xff] }
 0x3c6   :  { %v1846_v35 = vpop.f32.mrf.mxu2  ;;  %4410 = vmatmul.msk.f32.gmra.mxu3 %vm62_vm0, %v5251_v1  ;;  %v9521_v1 = vld [vmem:[#allocation77_spill] sm:$0xff] }
 0x3c7   :  { %v1894_v24 = vadd.f32 %v1846_v35, %v9520_v11  ;;  %v9526_v11 = vld [vmem:[#allocation78_spill] sm:$0xff] }
 0x3c8   :  { %v7074_v46 = vpop.f32.mrf.mxu3 }
 0x3c9   :  { %9517 = vst [vmem:[#allocation93_spill] sm:$0xff] %v7074_v46  ;;  %v9529_v46 = vld [vmem:[#allocation79_spill] sm:$0xff] }
 0x3ce   :  { %v1849_v52 = vpop.f32.mrf.mxu2  ;;  %4411 = vmatmul.msk.f32.gmra.mxu3 %vm62_vm0, %v6320_v10  ;;  %v1910_v10 = vadd.f32 %v1894_v24, %v9523_v55 }
 0x3cf   :  { %v1895_v43 = vadd.f32 %v1849_v52, %v9521_v1  ;;  %v9527_v52 = vld [vmem:[#allocation80_spill] sm:$0xff] }
 0x3d0   :  { %v7078_v18 = vpop.f32.mrf.mxu3  ;;  %v4497_v51 = vmul.f32 -1.442695, %v1910_v10  ;;  %v9531_v10 = vld [vmem:[#allocation81_spill] sm:$0xff] }
 0x3d1   :  { %9518 = vst [vmem:[#allocation94_spill] sm:$0xff] %v7078_v18  ;;  %v1911_v27 = vadd.f32 %v1895_v43, %v9524_v14 }
 0x3d2   :  { %4808 = vpow2.f32 %v4497_v51 }
 0x3d6   :  { %v1852_v40 = vpop.f32.mrf.mxu2  ;;  %4412 = vmatmul.msk.f32.gmra.mxu3 %vm62_vm0, %v9487_v16  ;;  %v4498_v16 = vmul.f32 -1.442695, %v1911_v27 }
 0x3d7   :  { %v1896_v35 = vadd.f32 %v1852_v40, %v9526_v11 }
 0x3d8   :  { %v7082_v42 = vpop.f32.mrf.mxu3  ;;  %4810 = vpow2.f32 %v4498_v16  ;;  %v4809_v43 = vpop.eup %4808 }
 0x3d9   :  { %9519 = vst [vmem:[#allocation95_spill] sm:$0xff] %v7082_v42  ;;  %v7109_v14 = vadd.f32 1.0, %v4809_v43 }
 0x3db   :  { %vm1947_vm10 = vweird.f32 %v7109_v14 }
 0x3de   :  { %v1855_v58 = vpop.f32.mrf.mxu2  ;;  %4413 = vmatmul.msk.f32.gmra.mxu3 %vm62_vm0, %v9490_v17  ;;  %v4811_v40 = vpop.eup %4810 }
 0x3df   :  { %v1897_v18 = vadd.f32 %v1855_v58, %v9529_v46  ;;  %v7113_v46 = vadd.f32 1.0, %v4811_v40  ;;  %v9534_v58 = vld [vmem:[#allocation40_spill] sm:$0xff] }
 0x3e0   :  { %v7088_v9 = vpop.f32.mrf.mxu3 }
 0x3e1   :  { %9522 = vst [vmem:[#allocation23_spill] sm:$0xff] %v7088_v9  ;;  %v9528_v9 = vld [vmem:[#allocation29_spill] sm:$0xff]  ;;  %v1913_v16 = vadd.f32 %v1897_v18, %v9533_v29  ;;  %vm1962_vm14 = vweird.f32 %v7113_v46  ;;  %v1968_v57 = vand.u32 2147483648, %v7113_v46 }
 0x3e2   :  { %v1912_v24 = vadd.f32 %v1896_v35, %v9528_v9 }
 0x3e4   :  { %v4499_v11 = vmul.f32 -1.442695, %v1912_v24  ;;  %v9536_v24 = vld [vmem:[#allocation31_spill] sm:$0xff] }
 0x3e6   :  { %v1858_v49 = vpop.f32.mrf.mxu2  ;;  %4414 = vmatmul.msk.f32.gmra.mxu3 %vm62_vm0, %v9493_v33  ;;  %v9530_v33 = vld [vmem:[#allocation39_spill] sm:$0xff]  ;;  %4812 = vpow2.f32 %v4499_v11 }
 0x3e7   :  { %v1898_v1 = vadd.f32 %v1858_v49, %v9527_v52  ;;  %v9535_v52 = vld [vmem:[#allocation24_spill] sm:$0xff]  ;;  %4814 = vrcp.f32 %v7109_v14 }
 0x3e8   :  { %v7094_v42 = vpop.f32.mrf.mxu3 }
 0x3e9   :  { %9525 = vst [vmem:[#allocation77_spill] sm:$0xff] %v7094_v42  ;;  %v1914_v27 = vadd.f32 %v1898_v1, %v9530_v33  ;;  %v4500_v1 = vmul.f32 -1.442695, %v1913_v16  ;;  %v5253_v16 = vld [vmem:[%s9241_s2 + $0x50] sm:$0xff] }
 0x3eb   :  { %v4501_v35 = vmul.f32 -1.442695, %v1914_v27 }
 0x3ed   :  { %4816 = vpow2.f32 %v4501_v35 }
 0x3ee   :  { %v1861_v30 = vpop.f32.mrf.mxu2  ;;  %4415 = vmatmul.msk.f32.gmra.mxu3 %vm62_vm0, %v9495_v6  ;;  %4818 = vrcp.f32 %v7113_v46 }
 0x3ef   :  { %v1899_v42 = vadd.f32 %v1861_v30, %v9531_v10  ;;  %v5252_v30 = vld [vmem:[%s9241_s2 + $0x48] sm:$0xff]  ;;  %4820 = vpow2.f32 %v4500_v1 }
 0x3f1   :  { %v7106_v51 = vpop.f32.mrf.mxu3  ;;  %v1915_v6 = vadd.f32 %v1899_v42, %v9534_v58  ;;  %v4813_v42 = vpop.eup %4812 }
 0x3f2   :  { %9532 = vst [vmem:[#allocation78_spill] sm:$0xff] %v7106_v51  ;;  %v7128_v10 = vpop.eup %4814 }
 0x3f3   :  { %v4502_v18 = vmul.f32 -1.442695, %v1915_v6  ;;  %v4817_v11 = vpop.eup %4816  ;;  %v9538_v6 = vld [vmem:[#allocation25_spill] sm:$0xff]  ;;  %vm1948_vm11 = vweird.f32 %v7128_v10 }
 0x3f4   :  { %v7134_v35 = vpop.eup %4818  ;;  %v7141_v51 = vadd.f32 1.0, %v4817_v11  ;;  %vm7195_vm13 = vmor %vm1947_vm10, %vm1948_vm11 }
 0x3f5   :  { %4822 = vpow2.f32 %v4502_v18  ;;  %v4821_v1 = vpop.eup %4820  ;;  %vm1963_vm12 = vweird.f32 %v7134_v35 }
 0x3f6   :  { %v1864_v47 = vpop.f32.mrf.mxu2  ;;  %4416 = vmatmul.msk.f32.gmra.mxu3 %vm62_vm0, %v5252_v30  ;;  %v1943_v30 = vmul.f32 %v7128_v10, %v7109_v14  ;;  %vm7210_vm2 = vmor %vm1962_vm14, %vm1963_vm12  ;;  %vm2023_vm9 = vweird.f32 %v7141_v51 }
 0x3f7   :  { %v1900_v9 = vadd.f32 %v1864_v47, %v9535_v52 }
 0x3f9   :  { %v1916_v43 = vadd.f32 %v1900_v9, %v9536_v24  ;;  %v7124_v27 = vpop.f32.mrf.mxu3  ;;  %v7136_v9 = vadd.f32 1.0, %v4813_v42  ;;  %v9540_v42 = vld [vmem:[#allocation37_spill] sm:$0xff] }
 0x3fa   :  { %9537 = vst [vmem:[#allocation80_spill] sm:$0xff] %v7124_v27 }
 0x3fb   :  { %v4503_v40 = vmul.f32 -1.442695, %v1916_v43  ;;  %v1958_v43 = vmul.f32 %v7134_v35, %v7113_v46  ;;  %v4823_v27 = vpop.eup %4822  ;;  %vm1977_vm4 = vweird.f32 %v7136_v9 }
 0x3fc   :  { %v7154_v58 = vadd.f32 1.0, %v4823_v27 }
 0x3fd   :  { %4824 = vpow2.f32 %v4503_v40  ;;  %v1959_v11 = vsub.f32 1.0, %v1958_v43  ;;  %v5254_v40 = vld [vmem:[%s9241_s2 + $0x58] sm:$0xff] }
 0x3fe   :  { %v1867_v44 = vpop.f32.mrf.mxu2  ;;  %4417 = vmatmul.msk.f32.gmra.mxu3 %vm62_vm0, %v5253_v16  ;;  %4826 = vrcp.f32 %v7136_v9  ;;  %v7148_v16 = vadd.f32 1.0, %v4821_v1 }
 0x3ff   :  { %v1901_v52 = vadd.f32 %v1867_v44, %v9538_v6  ;;  %v1944_v6 = vsub.f32 1.0, %v1943_v30  ;;  %4828 = vrcp.f32 %v7141_v51  ;;  %v1960_v43 = vmul.f32 %v7134_v35, %v1959_v11 }
 0x400   :  { %4830 = vrcp.f32 %v7148_v16  ;;  %v1953_v11 = vand.u32 2147483648, %v7109_v14  ;;  %vm1992_vm6 = vweird.f32 %v7148_v16 }
 0x401   :  { %v7143_v18 = vpop.f32.mrf.mxu3  ;;  %v1917_v24 = vadd.f32 %v1901_v52, %v9540_v42  ;;  %v1945_v52 = vmul.f32 %v7128_v10, %v1944_v6  ;;  %4832 = vrcp.f32 %v7154_v58 }
 0x402   :  { %9539 = vst [vmem:[#allocation79_spill] sm:$0xff] %v7143_v18  ;;  %v1954_v23 = vor.u32 1.1754944e-38, %v1953_v11 }
 0x403   :  { %v4825_v18 = vpop.eup %4824  ;;  %v4504_v1 = vmul.f32 -1.442695, %v1917_v24  ;;  %v1946_v6 = vadd.f32 %v7128_v10, %v1945_v52  ;;  %v1961_v52 = vadd.f32 %v7134_v35, %v1960_v43 }
 0x404   :  { %v7162_v42 = vpop.eup %4826  ;;  %v7167_v27 = vadd.f32 1.0, %v4825_v18  ;;  %v1951_v18 = vand.u32 2147483647, %v7109_v14 }
 0x405   :  { %v7170_v29 = vpop.eup %4828  ;;  %4834 = vpow2.f32 %v4504_v1  ;;  %v1973_v24 = vmul.f32 %v7162_v42, %v7136_v9  ;;  %v1966_v1 = vand.u32 2147483647, %v7113_v46  ;;  %v1983_v46 = vand.u32 2147483648, %v7136_v9 }
 0x406   :  { %v7097_v17 = vpop.f32.mrf.mxu2  ;;  %4418 = vmatmul.msk.f32.gmra.mxu3 %vm62_vm0, %v5254_v40  ;;  %v7178_v55 = vpop.eup %4830  ;;  %v2019_v15 = vmul.f32 %v7170_v29, %v7141_v51  ;;  %4836 = vrcp.f32 %v7167_v27  ;;  %vm1952_vm15 = vcmp.eq.f32.partialorder %v1951_v18, 8.507059e+37  ;;  %vm1978_vm5 = vweird.f32 %v7162_v42 }
 0x407   :  { %v7201_v62 = vpop.eup %4832  ;;  %v1974_v43 = vsub.f32 1.0, %v1973_v24  ;;  %vm1967_vm3 = vcmp.eq.f32.partialorder %v1966_v1, 8.507059e+37  ;;  %vm1993_vm7 = vweird.f32 %v7178_v55  ;;  %vm2024_vm8 = vweird.f32 %v7170_v29  ;;  %vm7277_vm10 = vmor %vm1977_vm4, %vm1978_vm5 }
 0x408   :  { %v2020_v54 = vsub.f32 1.0, %v2019_v15  ;;  %vm7290_vm12 = vmor %vm2023_vm9, %vm2024_vm8 }
 0x409   :  { %v7164_v30 = vpop.f32.mrf.mxu3  ;;  %v1975_v15 = vmul.f32 %v7162_v42, %v1974_v43  ;;  %v9551_v43 = vld [vmem:[#allocation45_spill] sm:$0xff] }
 0x40a   :  { %9541 = vst [vmem:[#allocation81_spill] sm:$0xff] %v7164_v30  ;;  %v9542_v30 = vld [vmem:[#allocation32_spill] sm:$0xff] }
 0x40b   :  { %v4835_v14 = vpop.eup %4834 }
 0x40c   :  { %v7225_v11 = vpop.eup %4836 }
 0x40d   :  { %vm2054_vm5 = vweird.f32 %v7225_v11 }
 0x40e   :  { %v7111_v49 = vpop.f32.mrf.mxu2 }
 0x411   :  { %v7215_v24 = vpop.f32.mrf.mxu3 }
 0x412   :  { %9548 = vst [vmem:[#allocation24_spill] sm:$0xff] %v7215_v24  ;;  %v7227_v24 = vadd.f32 1.0, %v4835_v14 }
 0x416   :  { %v7126_v47 = vpop.f32.mrf.mxu2 }
 0x41e   :  { %v7151_v44 = vpop.f32.mrf.mxu2 }
 0x426   :  { %v1882_v40 = vpop.f32.mrf.mxu2 }
 0x427   :  { %v1906_v33 = vadd.f32 %v1882_v40, %v9542_v30  ;;  %v5255_v30 = vld [vmem:[%s9241_s2 + $0x60] sm:$0xff]  ;;  %v1965_v40 = vsel %vm7210_vm2, %v7134_v35, %v1961_v52  ;;  %v9550_v52 = vld [vmem:[#allocation28_spill] sm:$0xff]  ;;  %vm7323_vm2 = vmor %vm1992_vm6, %vm1993_vm7  ;;  %vm2053_vm6 = vweird.f32 %v7167_v27 }
 0x428   :  { %4419 = vmatmul.msk.f32.gmra.mxu3 %vm62_vm0, %v5255_v30  ;;  %v1950_v30 = vsel %vm7195_vm13, %v7128_v10, %v1946_v6  ;;  %v1969_v6 = vor.u32 1.1754944e-38, %v1968_v57  ;;  %v2021_v57 = vmul.f32 %v7170_v29, %v2020_v54  ;;  %v9552_v54 = vld [vmem:[#allocation26_spill] sm:$0xff]  ;;  %vm7366_vm8 = vmor %vm2053_vm6, %vm2054_vm5 }
 0x429   :  { %v1922_v63 = vadd.f32 %v1906_v33, %v9543_v25  ;;  %v1988_v33 = vmul.f32 %v7178_v55, %v7148_v16  ;;  %v7222_v10 = vsel %vm1952_vm15, %v1954_v23, %v1950_v30  ;;  %v1981_v23 = vand.u32 2147483647, %v7136_v9 }
 0x42a   :  { %v7231_v1 = vsel %vm1967_vm3, %v1969_v6, %v1965_v40  ;;  %v1903_v30 = vadd.f32 %v7111_v49, %v9550_v52  ;;  %v5256_v40 = vld [vmem:[%s9241_s2 + $0x68] sm:$0xff]  ;;  %v1998_v49 = vand.u32 2147483648, %v7148_v16  ;;  %vm2039_vm15 = vweird.f32 %v7201_v62 }
 0x42b   :  { %v4505_v25 = vmul.f32 -1.442695, %v1922_v63  ;;  %v2034_v63 = vmul.f32 %v7201_v62, %v7154_v58  ;;  %v1989_v20 = vsub.f32 1.0, %v1988_v33  ;;  %v1996_v33 = vand.u32 2147483647, %v7148_v16 }
 0x42c   :  { %vm7281_vm11 = vcmp.eq.f32.partialorder %v1981_v23, 8.507059e+37  ;;  %vm2038_vm3 = vweird.f32 %v7154_v58  ;;  %v2042_v16 = vand.u32 2147483647, %v7154_v58 }
 0x42d   :  { %4838 = vpow2.f32 %v4505_v25  ;;  %v7235_v25 = vor.u32 1.1754944e-38, %v1983_v46  ;;  %v2035_v6 = vsub.f32 1.0, %v2034_v63  ;;  %v2049_v46 = vmul.f32 %v7225_v11, %v7167_v27  ;;  %vm7346_vm4 = vmor %vm2038_vm3, %vm2039_vm15 }
 0x42e   :  { %v1885_v18 = vpop.f32.mrf.mxu2  ;;  %4840 = vrcp.f32 %v7227_v24  ;;  %v1990_v52 = vmul.f32 %v7178_v55, %v1989_v20  ;;  %v2027_v63 = vand.u32 2147483647, %v7141_v51  ;;  %vm7302_vm14 = vcmp.eq.f32.partialorder %v1996_v33, 8.507059e+37 }
 0x42f   :  { %v1907_v35 = vadd.f32 %v1885_v18, %v9549_v5  ;;  %v1902_v18 = vadd.f32 %v7097_v17, %v9552_v54  ;;  %v7262_v17 = vpop.f32.mrf.mxu3  ;;  %v2022_v54 = vadd.f32 %v7170_v29, %v2021_v57  ;;  %v2036_v20 = vmul.f32 %v7201_v62, %v2035_v6 }
 0x430   :  { %4420 = vmatmul.msk.f32.gmra.mxu3 %vm62_vm0, %v5256_v40  ;;  %v2029_v40 = vand.u32 2147483648, %v7141_v51  ;;  %9553 = vst [vmem:[#allocation25_spill] sm:$0xff] %v7262_v17  ;;  %v2044_v51 = vand.u32 2147483648, %v7154_v58  ;;  %vm7294_vm13 = vcmp.eq.f32.partialorder %v2027_v63, 8.507059e+37  ;;  %vm2043_vm7 = vcmp.eq.f32.partialorder %v2042_v16, 8.507059e+37 }
 0x431   :  { %v1923_v14 = vadd.f32 %v1907_v35, %v9551_v43  ;;  %v7254_v35 = vadd.f32 %v7162_v42, %v1975_v15  ;;  %v1919_v15 = vadd.f32 %v1903_v30, %v6048_v48  ;;  %v1918_v4 = vadd.f32 %v1902_v18, %v6053_v13 }
 0x432   :  { %v2026_v18 = vsel %vm7290_vm12, %v7170_v29, %v2022_v54  ;;  %v2037_v33 = vadd.f32 %v7201_v62, %v2036_v20  ;;  %v2045_v20 = vor.u32 1.1754944e-38, %v2044_v51 }
 0x433   :  { %v4839_v5 = vpop.eup %4838  ;;  %v4506_v43 = vmul.f32 -1.442695, %v1923_v14  ;;  %v2050_v14 = vsub.f32 1.0, %v2049_v46  ;;  %v1980_v23 = vsel %vm7277_vm10, %v7162_v42, %v7254_v35 }
 0x434   :  { %v7260_v45 = vadd.f32 1.0, %v4839_v5  ;;  %v9554_v5 = vld [vmem:[#allocation27_spill] sm:$0xff] }
 0x435   :  { %4842 = vpow2.f32 %v4506_v43  ;;  %v1904_v17 = vadd.f32 %v7126_v47, %v9554_v5  ;;  %v1991_v43 = vadd.f32 %v7178_v55, %v1990_v52  ;;  %v2030_v52 = vor.u32 1.1754944e-38, %v2029_v40  ;;  %v5257_v5 = vld [vmem:[%s9241_s2 + $0x70] sm:$0xff] }
 0x436   :  { %4844 = vrcp.f32 %v7260_v45  ;;  %v1888_v0 = vpop.f32.mrf.mxu2  ;;  %v2051_v42 = vmul.f32 %v7225_v11, %v2050_v14 }
 0x437   :  { %v1908_v6 = vadd.f32 %v1888_v0, %v6728_v21  ;;  %v1999_v21 = vor.u32 1.1754944e-38, %v1998_v49  ;;  %v7306_v0 = vpop.eup %4840  ;;  %4846 = vtanh.f32 %v1919_v15  ;;  %v1920_v35 = vadd.f32 %v1904_v17, %v6004_v41  ;;  %v7339_v57 = vpop.f32.mrf.mxu3 }
 0x438   :  { %4421 = vmatmul.msk.f32.gmra.mxu3 %vm62_vm0, %v5257_v5  ;;  %4848 = vtanh.f32 %v1918_v4  ;;  %v1995_v4 = vsel %vm7323_vm2, %v7178_v55, %v1991_v43  ;;  %v2064_v15 = vmul.f32 %v7306_v0, %v7227_v24  ;;  %v2031_v17 = vsel %vm7294_vm13, %v2030_v52, %v2026_v18  ;;  %v9569_v52 = vld [vmem:[#allocation30_spill] sm:$0xff] }
 0x439   :  { %v1924_v63 = vadd.f32 %v1908_v6, %v5941_v22  ;;  %v2059_v6 = vand.u32 2147483648, %v7167_v27  ;;  %v2041_v43 = vsel %vm7346_vm4, %v7201_v62, %v2037_v33  ;;  %v2052_v51 = vadd.f32 %v7225_v11, %v2051_v42 }
 0x43a   :  { %v2057_v18 = vand.u32 2147483647, %v7167_v27  ;;  %v2065_v62 = vsub.f32 1.0, %v2064_v15  ;;  %v1985_v42 = vsel %vm7281_vm11, %v7235_v25, %v1980_v23  ;;  %v2046_v33 = vsel %vm2043_vm7, %v2045_v20, %v2041_v43 }
 0x43b   :  { %v4843_v49 = vpop.eup %4842  ;;  %v4507_v40 = vmul.f32 -1.442695, %v1924_v63  ;;  %v1905_v63 = vadd.f32 %v7151_v44, %v9569_v52  ;;  %v5258_v44 = vld [vmem:[%s9241_s2 + $0x78] sm:$0xff]  ;;  %v2158_v25 = vmul.f32 %v2031_v17, %v6787_v37  ;;  %v2056_v23 = vsel %vm7366_vm8, %v7225_v11, %v2052_v51 }
 0x43c   :  { %v7332_v54 = vpop.eup %4844  ;;  %v7337_v14 = vadd.f32 1.0, %v4843_v49  ;;  %v2060_v46 = vor.u32 1.1754944e-38, %v2059_v6  ;;  %vm2058_vm9 = vcmp.eq.f32.partialorder %v2057_v18, 8.507059e+37  ;;  %v2066_v20 = vmul.f32 %v7306_v0, %v2065_v62 }
 0x43d   :  { %4850 = vpow2.f32 %v4507_v40  ;;  %v2099_v58 = vmul.f32 %v7332_v54, %v7260_v45  ;;  %v4847_v9 = vpop.eup %4846  ;;  %v1921_v40 = vadd.f32 %v1905_v63, %v5990_v3  ;;  %v2159_v37 = vmul.f32 %v2046_v33, %v6783_v36 }
 0x43e   :  { %4852 = vrcp.f32 %v7337_v14  ;;  %v1891_v47 = vpop.f32.mrf.mxu2  ;;  %v4849_v29 = vpop.eup %4848  ;;  %v2163_v30 = vmul.f32 %v4847_v9, %v7231_v1  ;;  %v2061_v6 = vsel %vm2058_vm9, %v2060_v46, %v2056_v23  ;;  %v2072_v51 = vand.u32 2147483647, %v7227_v24 }
 0x43f   :  { %4854 = vtanh.f32 %v1920_v35  ;;  %v1909_v5 = vadd.f32 %v1891_v47, %v6778_v32  ;;  %v7372_v35 = vsel %vm7302_vm14, %v1999_v21, %v1995_v4  ;;  %v2100_v27 = vsub.f32 1.0, %v2099_v58  ;;  %v7391_v17 = vpop.f32.mrf.mxu3 }
 0x440   :  { %4422 = vmatmul.msk.f32.gmra.mxu3 %vm62_vm0, %v5258_v44  ;;  %v2162_v4 = vmul.f32 %v4849_v29, %v7222_v10  ;;  %vm2068_vm0 = vweird.f32 %v7227_v24  ;;  %v2074_v58 = vand.u32 2147483648, %v7227_v24  ;;  %v7396_v43 = vadd.f32 %v2163_v30, %v2159_v37 }
 0x441   :  { %v1925_v32 = vadd.f32 %v1909_v5, %v5931_v7  ;;  %v2101_v55 = vmul.f32 %v7332_v54, %v2100_v27  ;;  %vm2069_vm10 = vweird.f32 %v7306_v0  ;;  %v2160_v9 = vmul.f32 %v2061_v6, %v6811_v61 }
 0x442   :  { %v7400_v36 = vadd.f32 %v2162_v4, %v2158_v25  ;;  %v2067_v52 = vadd.f32 %v7306_v0, %v2066_v20  ;;  %vm2104_vm11 = vweird.f32 %v7332_v54  ;;  %v2124_v5 = vand.u32 2147483648, %v7337_v14  ;;  %vm7410_vm13 = vmor %vm2068_vm0, %vm2069_vm10 }
 0x443   :  { %v4851_v21 = vpop.eup %4850  ;;  %v4508_v15 = vmul.f32 -1.442695, %v1925_v32  ;;  %v2102_v29 = vadd.f32 %v7332_v54, %v2101_v55  ;;  %v2122_v33 = vand.u32 2147483647, %v7337_v14  ;;  %vm2103_vm14 = vweird.f32 %v7260_v45 }
 0x444   :  { %v4853_v16 = vpop.eup %4852  ;;  %v7389_v1 = vadd.f32 1.0, %v4851_v21  ;;  %v2109_v61 = vand.u32 2147483648, %v7260_v45  ;;  %v2075_v49 = vor.u32 1.1754944e-38, %v2074_v58  ;;  %vm2118_vm15 = vweird.f32 %v7337_v14  ;;  %vm7419_vm2 = vmor %vm2103_vm14, %vm2104_vm11 }
 0x445   :  { %v4855_v11 = vpop.eup %4854  ;;  %4856 = vpow2.f32 %v4508_v15  ;;  %v2114_v10 = vmul.f32 %v4853_v16, %v7337_v14  ;;  %vm2119_vm12 = vweird.f32 %v4853_v16  ;;  %v2107_v24 = vand.u32 2147483647, %v7260_v45 }
 0x446   :  { %4858 = vrcp.f32 %v7389_v1  ;;  %v2164_v18 = vmul.f32 %v4855_v11, %v1985_v42  ;;  %v2071_v30 = vsel %vm7410_vm13, %v7306_v0, %v2067_v52  ;;  %vm2120_vm3 = vmor %vm2118_vm15, %vm2119_vm12  ;;  %v2106_v45 = vsel %vm7419_vm2, %v7332_v54, %v2102_v29 }
 0x447   :  { %4860 = vtanh.f32 %v1921_v40  ;;  %v2115_v47 = vsub.f32 1.0, %v2114_v10  ;;  %v7431_v46 = vpop.f32.mrf.mxu3  ;;  %v2125_v40 = vor.u32 1.1754944e-38, %v2124_v5  ;;  %vm2073_vm4 = vcmp.eq.f32.partialorder %v2072_v51, 8.507059e+37 }
 0x448   :  { %4862 = vtanh.f32 %v7396_v43  ;;  %v7424_v25 = vadd.f32 %v2164_v18, %v2160_v9  ;;  %9576 = vst [vmem:[#allocation32_spill] sm:$0xff] %v7431_v46  ;;  %vm2123_vm5 = vcmp.eq.f32.partialorder %v2122_v33, 8.507059e+37  ;;  %v2110_v0 = vor.u32 1.1754944e-38, %v2109_v61 }
 0x449   :  { %v2116_v63 = vmul.f32 %v4853_v16, %v2115_v47  ;;  %4864 = vtanh.f32 %v7400_v36  ;;  %v2076_v15 = vsel %vm2073_vm4, %v2075_v49, %v2071_v30  ;;  %vm2108_vm6 = vcmp.eq.f32.partialorder %v2107_v24, 8.507059e+37 }
 0x44a   :  { %v2139_v10 = vand.u32 2147483648, %v7389_v1  ;;  %v2137_v54 = vand.u32 2147483647, %v7389_v1  ;;  %v2161_v47 = vmul.f32 %v2076_v15, %v6834_v38  ;;  %vm2133_vm8 = vweird.f32 %v7389_v1 }
 0x44b   :  { %v4857_v42 = vpop.eup %4856  ;;  %v2117_v32 = vadd.f32 %v4853_v16, %v2116_v63 }
 0x44c   :  { %v4859_v27 = vpop.eup %4858  ;;  %v2097_v23 = vadd.f32 1.0, %v4857_v42  ;;  %v2140_v63 = vor.u32 1.1754944e-38, %v2139_v10  ;;  %vm2138_vm0 = vcmp.eq.f32.partialorder %v2137_v54, 8.507059e+37 }
 0x44d   :  { %v4861_v14 = vpop.eup %4860  ;;  %v2129_v21 = vmul.f32 %v4859_v27, %v7389_v1  ;;  %v2121_v4 = vsel %vm2120_vm3, %v4853_v16, %v2117_v32  ;;  %v2111_v16 = vsel %vm2108_vm6, %v2110_v0, %v2106_v45  ;;  %vm2134_vm7 = vweird.f32 %v4859_v27 }
 0x44e   :  { %4866 = vrcp.f32 %v2097_v23  ;;  %v2126_v37 = vsel %vm2123_vm5, %v2125_v40, %v2121_v4  ;;  %v4863_v11 = vpop.eup %4862  ;;  %v2165_v6 = vmul.f32 %v4861_v14, %v7372_v35  ;;  %vm2135_vm9 = vmor %vm2133_vm8, %vm2134_vm7  ;;  %v2152_v32 = vand.u32 2147483647, %v2097_v23 }
 0x44f   :  { %v2130_v20 = vsub.f32 1.0, %v2129_v21  ;;  %4868 = vtanh.f32 %v7424_v25  ;;  %v7441_v58 = vmul.f32 %v4863_v11, %v2126_v37  ;;  %v4865_v51 = vpop.eup %4864  ;;  %v7451_v33 = vpop.f32.mrf.mxu3  ;;  %v2154_v44 = vand.u32 2147483648, %v2097_v23 }
 0x450   :  { %v7445_v18 = vmul.f32 %v4865_v51, %v2111_v16  ;;  %v7447_v52 = vadd.f32 %v2165_v6, %v2161_v47  ;;  %9577 = vst [vmem:[#allocation36_spill] sm:$0xff] %v7451_v33  ;;  %vm2148_vm11 = vweird.f32 %v2097_v23  ;;  %vm2153_vm13 = vcmp.eq.f32.partialorder %v2152_v32, 8.507059e+37  ;;  %v9624_v33 = vld [vmem:[#allocation25_spill] sm:$0xff] }
 0x451   :  { %v2131_v55 = vmul.f32 %v4859_v27, %v2130_v20  ;;  %v2179_v62 = vmul.f32 %v7441_v58, %v6237_v28  ;;  %v2155_v4 = vor.u32 1.1754944e-38, %v2154_v44 }
 0x452   :  { %v2178_v1 = vmul.f32 %v7445_v18, %v6241_v59  ;;  %4870 = vtanh.f32 %v7447_v52 }
 0x453   :  { %v2132_v9 = vadd.f32 %v4859_v27, %v2131_v55 }
 0x454   :  { %v4867_v35 = vpop.eup %4866  ;;  %v2182_v30 = vadd.f32 %v2179_v62, %v2178_v1 }
 0x455   :  { %v2144_v5 = vmul.f32 %v4867_v35, %v2097_v23  ;;  %v2136_v29 = vsel %vm2135_vm9, %v4859_v27, %v2132_v9  ;;  %v4869_v61 = vpop.eup %4868  ;;  %vm2149_vm10 = vweird.f32 %v4867_v35 }
 0x456   :  { %v2141_v38 = vsel %vm2138_vm0, %v2140_v63, %v2136_v29  ;;  %vm2150_vm12 = vmor %vm2148_vm11, %vm2149_vm10 }
 0x457   :  { %v2145_v42 = vsub.f32 1.0, %v2144_v5  ;;  %v7453_v49 = vmul.f32 %v4869_v61, %v2141_v38  ;;  %v7460_v20 = vpop.f32.mrf.mxu3 }
 0x458   :  { %v4871_v45 = vpop.eup %4870  ;;  %9578 = vst [vmem:[#allocation28_spill] sm:$0xff] %v7460_v20 }
 0x459   :  { %v2146_v24 = vmul.f32 %v4867_v35, %v2145_v42  ;;  %v2180_v27 = vmul.f32 %v7453_v49, %v6247_v39 }
 0x45b   :  { %v2147_v14 = vadd.f32 %v4867_v35, %v2146_v24  ;;  %v2183_v21 = vadd.f32 %v2182_v30, %v2180_v27 }
 0x45d   :  { %v2151_v40 = vsel %vm2150_vm12, %v4867_v35, %v2147_v14 }
 0x45e   :  { %v2156_v0 = vsel %vm2153_vm13, %v2155_v4, %v2151_v40 }
 0x45f   :  { %v2177_v15 = vmul.f32 %v4871_v45, %v2156_v0  ;;  %v7468_v16 = vpop.f32.mrf.mxu3 }
 0x460   :  { %9579 = vst [vmem:[#allocation26_spill] sm:$0xff] %v7468_v16 }
 0x461   :  { %v2181_v37 = vmul.f32 %v2177_v15, %v6254_v34  ;;  %2251 = vmatpush.msra.mxu3 %v2177_v15 }
 0x463   :  { %2252 = vmatpush.msra.mxu3 %v7453_v49  ;;  %v2184_v11 = vadd.f32 %v2183_v21, %v2181_v37 }
 0x465   :  { %2253 = vmatpush.msra.mxu3 %v7441_v58  ;;  %v2185_v6 = vrot.slane %v2184_v11, 4 }
 0x467   :  { %v2186_v23 = vadd.f32 %v2185_v6, %v2184_v11  ;;  %2254 = vmatpush.msra.mxu3 %v7445_v18  ;;  %v7472_v9 = vpop.f32.mrf.mxu3  ;;  %v9593_v11 = vld [vmem:[#allocation70_spill] sm:$0xff] }
 0x468   :  { %4510 = vmatmul.msk.f32.vlgmr.msra.gmra.mxu3 %vm960_vm1, %v6856_v8  ;;  %9580 = vst [vmem:[#allocation27_spill] sm:$0xff] %v7472_v9 }
 0x469   :  { %v2187_v10 = vrot.slane %v2186_v23, 2 }
 0x46b   :  { %v2188_v55 = vadd.f32 %v2187_v10, %v2186_v23  ;;  %v9595_v23 = vld [vmem:[#allocation72_spill] sm:$0xff] }
 0x46d   :  { %v2189_v54 = vrot.slane %v2188_v55, 1 }
 0x46f   :  { %v2190_v51 = vadd.f32 %v2189_v54, %v2188_v55  ;;  %v7476_v8 = vpop.f32.mrf.mxu3  ;;  %v9597_v55 = vld [vmem:[#allocation74_spill] sm:$0xff] }
 0x470   :  { %4511 = vmatmul.msk.f32.gmra.mxu3 %vm960_vm1, %v6873_v31  ;;  %9581 = vst [vmem:[#allocation30_spill] sm:$0xff] %v7476_v8 }
 0x471   :  { %v4509_v47 = vmul.f32 -1.442695, %v2190_v51  ;;  %v9599_v51 = vld [vmem:[#allocation87_spill] sm:$0xff] }
 0x473   :  { %4872 = vpow2.f32 %v4509_v47  ;;  %v9600_v47 = vld [vmem:[#allocation88_spill] sm:$0xff] }
 0x477   :  { %v7480_v42 = vpop.f32.mrf.mxu3 }
 0x478   :  { %4512 = vmatmul.msk.f32.gmra.mxu3 %vm960_vm1, %v6884_v56  ;;  %9582 = vst [vmem:[#allocation96_spill] sm:$0xff] %v7480_v42  ;;  %v9619_v42 = vld [vmem:[#allocation47_spill] sm:$0xff] }
 0x479   :  { %v4873_v35 = vpop.eup %4872 }
 0x47a   :  { %v2194_v63 = vadd.f32 1.0, %v4873_v35 }
 0x47c   :  { %4874 = vrcp.f32 %v2194_v63  ;;  %v2206_v61 = vand.u32 2147483648, %v2194_v63  ;;  %v2204_v38 = vand.u32 2147483647, %v2194_v63  ;;  %vm2200_vm15 = vweird.f32 %v2194_v63 }
 0x47e   :  { %v2207_v1 = vor.u32 1.1754944e-38, %v2206_v61  ;;  %vm2205_vm4 = vcmp.eq.f32.partialorder %v2204_v38, 8.507059e+37 }
 0x47f   :  { %v7495_v4 = vpop.f32.mrf.mxu3 }
 0x480   :  { %4513 = vmatmul.msk.f32.gmra.mxu3 %vm960_vm1, %v6895_v60  ;;  %v7487_v60 = vld [vmem:[%s9240_s1] sm:$0x1]  ;;  %9583 = vst [vmem:[#allocation97_spill] sm:$0xff] %v7495_v4 }
 0x481   :  { %vm2210_vm3 = vcmp.gt.s32.totalorder %v7487_v60, 2 }
 0x482   :  { %v4875_v5 = vpop.eup %4874 }
 0x483   :  { %v2196_v29 = vmul.f32 %v4875_v5, %v2194_v63  ;;  %vm2201_vm14 = vweird.f32 %v4875_v5 }
 0x484   :  { %vm2202_vm2 = vmor %vm2200_vm15, %vm2201_vm14 }
 0x485   :  { %v2197_v62 = vsub.f32 1.0, %v2196_v29 }
 0x487   :  { %v2198_v31 = vmul.f32 %v4875_v5, %v2197_v62 }
 0x488   :  { %4514 = vmatmul.msk.f32.gmra.mxu3 %vm960_vm1, %v6906_v19 }
 0x489   :  { %v2199_v56 = vadd.f32 %v4875_v5, %v2198_v31 }
 0x48b   :  { %v2203_v32 = vsel %vm2202_vm2, %v4875_v5, %v2199_v56  ;;  %v9602_v56 = vld [vmem:[#allocation90_spill] sm:$0xff] }
 0x48c   :  { %v2208_v44 = vsel %vm2205_vm4, %v2207_v1, %v2203_v32  ;;  %v9603_v32 = vld [vmem:[#allocation91_spill] sm:$0xff] }
 0x48d   :  { %v2211_v24 = vsel %vm2210_vm3, %v2208_v44, 0.0 }
 0x48e   :  { %v2213_v27 = vperm.slane %v2211_v24, 0  ;;  %v9604_v24 = vld [vmem:[#allocation34_spill] sm:$0xff] }
 0x490   :  { %v2215_v30 = vmul.f32 %v2213_v27, %v7445_v18  ;;  %v2218_v14 = vmul.f32 %v2213_v27, %v2177_v15  ;;  %4515 = vmatmul.msk.f32.gmra.mxu3 %vm960_vm1, %v6919_v12  ;;  %v2216_v19 = vmul.f32 %v2213_v27, %v7441_v58  ;;  %v2217_v21 = vmul.f32 %v2213_v27, %v7453_v49  ;;  %v9584_v15 = vld [vmem:[#allocation58_spill] sm:$0xff]  ;;  %v7511_v12 = vpop.f32.mrf.mxu3  ;;  %v9586_v58 = vld [vmem:[#allocation61_spill] sm:$0xff] }
 0x491   :  { %9585 = vst [vmem:[#allocation58_spill] sm:$0xff] %v7511_v12 }
 0x492   :  { %v7498_v40 = vadd.f32 %v2215_v30, %v6927_v2  ;;  %v7501_v45 = vadd.f32 %v2218_v14, %v6930_v50  ;;  %v7504_v0 = vadd.f32 %v2216_v19, %v6933_v53  ;;  %v7507_v18 = vadd.f32 %v2217_v21, %v6936_v26  ;;  %v9588_v2 = vld [vmem:[#allocation63_spill] sm:$0xff]  ;;  %v9590_v53 = vld [vmem:[#allocation66_spill] sm:$0xff]  ;;  %v9591_v26 = vld [vmem:[#allocation68_spill] sm:$0xff] }
 0x493   :  { %v9605_v14 = vld [vmem:[#allocation35_spill] sm:$0xff] }
 0x498   :  { %4516 = vmatmul.msk.f32.gmra.mxu3 %vm960_vm1, %v9584_v15  ;;  %v7515_v49 = vpop.f32.mrf.mxu3 }
 0x499   :  { %9587 = vst [vmem:[#allocation61_spill] sm:$0xff] %v7515_v49 }
 0x4a0   :  { %4517 = vmatmul.msk.f32.gmra.mxu3 %vm960_vm1, %v9586_v58  ;;  %v7519_v50 = vpop.f32.mrf.mxu3  ;;  %v9606_v58 = vld [vmem:[#allocation92_spill] sm:$0xff] }
 0x4a1   :  { %9589 = vst [vmem:[#allocation63_spill] sm:$0xff] %v7519_v50 }
 0x4a8   :  { %4518 = vmatmul.msk.f32.gmra.mxu3 %vm960_vm1, %v9588_v2  ;;  %v7525_v37 = vpop.f32.mrf.mxu3 }
 0x4a9   :  { %9592 = vst [vmem:[#allocation66_spill] sm:$0xff] %v7525_v37 }
 0x4b0   :  { %4519 = vmatmul.msk.f32.gmra.mxu3 %vm960_vm1, %v9590_v53  ;;  %v7529_v6 = vpop.f32.mrf.mxu3 }
 0x4b1   :  { %9594 = vst [vmem:[#allocation68_spill] sm:$0xff] %v7529_v6 }
 0x4b8   :  { %4520 = vmatmul.msk.f32.gmra.mxu3 %vm960_vm1, %v9591_v26  ;;  %v7533_v10 = vpop.f32.mrf.mxu3  ;;  %v9607_v26 = vld [vmem:[#allocation94_spill] sm:$0xff] }
 0x4b9   :  { %9596 = vst [vmem:[#allocation70_spill] sm:$0xff] %v7533_v10 }
 0x4c0   :  { %4521 = vmatmul.msk.f32.gmra.mxu3 %vm960_vm1, %v9593_v11  ;;  %v7537_v54 = vpop.f32.mrf.mxu3 }
 0x4c1   :  { %9598 = vst [vmem:[#allocation72_spill] sm:$0xff] %v7537_v54 }
 0x4c8   :  { %4522 = vmatmul.msk.f32.gmra.mxu3 %vm960_vm1, %v9595_v23  ;;  %v7543_v35 = vpop.f32.mrf.mxu3  ;;  %v9608_v23 = vld [vmem:[#allocation29_spill] sm:$0xff] }
 0x4c9   :  { %9601 = vst [vmem:[#allocation74_spill] sm:$0xff] %v7543_v35 }
 0x4d0   :  { %4523 = vmatmul.msk.f32.gmra.mxu3 %vm960_vm1, %v9597_v55 }
 0x4d8   :  { %4524 = vmatmul.msk.f32.gmra.mxu3 %vm960_vm1, %v9599_v51  ;;  %v9609_v51 = vld [vmem:[#allocation93_spill] sm:$0xff] }
 0x4e0   :  { %4525 = vmatmul.msk.f32.gmra.mxu3 %vm960_vm1, %v9600_v47 }
 0x4eb   :  { %v2256_v63 = vpop.f32.mrf.mxu3 }
 0x4ec   :  { %v2304_v1 = vadd.f32 %v2256_v63, %v9602_v56 }
 0x4ee   :  { %v2320_v27 = vadd.f32 %v2304_v1, %v9604_v24  ;;  %v9611_v1 = vld [vmem:[#allocation95_spill] sm:$0xff] }
 0x4f0   :  { %v4526_v21 = vmul.f32 -1.442695, %v2320_v27 }
 0x4f2   :  { %4876 = vpow2.f32 %v4526_v21 }
 0x4f3   :  { %v2259_v5 = vpop.f32.mrf.mxu3 }
 0x4f4   :  { %v2305_v44 = vadd.f32 %v2259_v5, %v9603_v32  ;;  %v9610_v5 = vld [vmem:[#allocation39_spill] sm:$0xff] }
 0x4f6   :  { %v2321_v19 = vadd.f32 %v2305_v44, %v9605_v14 }
 0x4f8   :  { %v4527_v15 = vmul.f32 -1.442695, %v2321_v19  ;;  %v4877_v63 = vpop.eup %4876  ;;  %v9612_v19 = vld [vmem:[#allocation33_spill] sm:$0xff] }
 0x4f9   :  { %v7558_v35 = vadd.f32 1.0, %v4877_v63 }
 0x4fa   :  { %4878 = vpow2.f32 %v4527_v15 }
 0x4fb   :  { %v2262_v29 = vpop.f32.mrf.mxu3  ;;  %vm2357_vm5 = vweird.f32 %v7558_v35 }
 0x4fc   :  { %v2306_v2 = vadd.f32 %v2262_v29, %v9606_v58 }
 0x4fe   :  { %v2322_v55 = vadd.f32 %v2306_v2, %v9608_v23 }
 0x500   :  { %v4879_v44 = vpop.eup %4878  ;;  %v4528_v27 = vmul.f32 -1.442695, %v2322_v55 }
 0x501   :  { %v7562_v58 = vadd.f32 1.0, %v4879_v44 }
 0x502   :  { %4880 = vpow2.f32 %v4528_v27  ;;  %v9616_v27 = vld [vmem:[#allocation77_spill] sm:$0xff] }
 0x503   :  { %v2265_v62 = vpop.f32.mrf.mxu3  ;;  %4882 = vrcp.f32 %v7558_v35  ;;  %vm2372_vm9 = vweird.f32 %v7562_v58 }
 0x504   :  { %v2307_v47 = vadd.f32 %v2265_v62, %v9609_v51 }
 0x506   :  { %v2323_v21 = vadd.f32 %v2307_v47, %v9612_v19  ;;  %v9628_v19 = vld [vmem:[#allocation79_spill] sm:$0xff] }
 0x508   :  { %v4529_v51 = vmul.f32 -1.442695, %v2323_v21  ;;  %v4881_v63 = vpop.eup %4880 }
 0x509   :  { %v7575_v44 = vadd.f32 1.0, %v4881_v63 }
 0x50b   :  { %v2268_v61 = vpop.f32.mrf.mxu3  ;;  %vm2387_vm12 = vweird.f32 %v7575_v44 }
 0x50c   :  { %v2308_v11 = vadd.f32 %v2268_v61, %v9607_v26  ;;  %v9613_v61 = vld [vmem:[#allocation40_spill] sm:$0xff]  ;;  %v9614_v26 = vld [vmem:[#allocation23_spill] sm:$0xff] }
 0x50e   :  { %v2324_v56 = vadd.f32 %v2308_v11, %v9610_v5  ;;  %v9615_v11 = vld [vmem:[#allocation31_spill] sm:$0xff] }
 0x510   :  { %v4530_v15 = vmul.f32 -1.442695, %v2324_v56  ;;  %v7571_v56 = vpop.eup %4882 }
 0x511   :  { %vm2358_vm6 = vweird.f32 %v7571_v56 }
 0x512   :  { %4884 = vpow2.f32 %v4530_v15  ;;  %vm7622_vm8 = vmor %vm2357_vm5, %vm2358_vm6 }
 0x513   :  { %v2271_v31 = vpop.f32.mrf.mxu3  ;;  %4886 = vrcp.f32 %v7562_v58 }
 0x514   :  { %v2309_v32 = vadd.f32 %v2271_v31, %v9611_v1  ;;  %4888 = vpow2.f32 %v4529_v51 }
 0x516   :  { %v2325_v2 = vadd.f32 %v2309_v32, %v9613_v61 }
 0x518   :  { %v4531_v31 = vmul.f32 -1.442695, %v2325_v2  ;;  %v4885_v32 = vpop.eup %4884  ;;  %v2353_v2 = vmul.f32 %v7571_v56, %v7558_v35 }
 0x51a   :  { %4890 = vpow2.f32 %v4531_v31 }
 0x51b   :  { %v2274_v38 = vpop.f32.mrf.mxu3 }
 0x51c   :  { %v2310_v62 = vadd.f32 %v2274_v38, %v9614_v26  ;;  %v7573_v38 = vpop.eup %4886  ;;  %v7580_v26 = vadd.f32 1.0, %v4885_v32 }
 0x51d   :  { %v4889_v15 = vpop.eup %4888  ;;  %vm2373_vm7 = vweird.f32 %v7573_v38 }
 0x51e   :  { %v2326_v55 = vadd.f32 %v2310_v62, %v9615_v11  ;;  %v2368_v62 = vmul.f32 %v7573_v38, %v7562_v58  ;;  %v7585_v31 = vadd.f32 1.0, %v4889_v15  ;;  %vm7637_vm10 = vmor %vm2372_vm9, %vm2373_vm7  ;;  %vm2433_vm3 = vweird.f32 %v7580_v26 }
 0x520   :  { %v4532_v1 = vmul.f32 -1.442695, %v2326_v55  ;;  %v4891_v51 = vpop.eup %4890  ;;  %v9617_v55 = vld [vmem:[#allocation37_spill] sm:$0xff]  ;;  %vm2402_vm14 = vweird.f32 %v7585_v31 }
 0x521   :  { %v7591_v54 = vadd.f32 1.0, %v4891_v51 }
 0x522   :  { %4892 = vpow2.f32 %v4532_v1 }
 0x523   :  { %v2277_v30 = vpop.f32.mrf.mxu3  ;;  %4894 = vrcp.f32 %v7575_v44 }
 0x524   :  { %v2311_v21 = vadd.f32 %v2277_v30, %v9616_v27  ;;  %v2354_v30 = vsub.f32 1.0, %v2353_v2  ;;  %4896 = vrcp.f32 %v7580_v26  ;;  %v2369_v27 = vsub.f32 1.0, %v2368_v62 }
 0x525   :  { %4898 = vrcp.f32 %v7585_v31 }
 0x526   :  { %v2327_v63 = vadd.f32 %v2311_v21, %v9617_v55  ;;  %v2355_v50 = vmul.f32 %v7571_v56, %v2354_v30  ;;  %4900 = vrcp.f32 %v7591_v54  ;;  %v2370_v21 = vmul.f32 %v7573_v38, %v2369_v27  ;;  %v9618_v30 = vld [vmem:[#allocation24_spill] sm:$0xff] }
 0x527   :  { %v2363_v27 = vand.u32 2147483648, %v7558_v35 }
 0x528   :  { %v4893_v32 = vpop.eup %4892  ;;  %v4533_v1 = vmul.f32 -1.442695, %v2327_v63  ;;  %v2356_v63 = vadd.f32 %v7571_v56, %v2355_v50  ;;  %v2371_v50 = vadd.f32 %v7573_v38, %v2370_v21 }
 0x529   :  { %v7595_v10 = vpop.eup %4894  ;;  %v7598_v15 = vadd.f32 1.0, %v4893_v32  ;;  %v2361_v32 = vand.u32 2147483647, %v7558_v35  ;;  %v2364_v9 = vor.u32 1.1754944e-38, %v2363_v27 }
 0x52a   :  { %v7601_v2 = vpop.eup %4896  ;;  %4902 = vpow2.f32 %v4533_v1  ;;  %v2383_v51 = vmul.f32 %v7595_v10, %v7575_v44  ;;  %v2376_v1 = vand.u32 2147483647, %v7562_v58  ;;  %v2375_v46 = vsel %vm7637_vm10, %v7573_v38, %v2371_v50 }
 0x52b   :  { %v7550_v53 = vpop.f32.mrf.mxu3  ;;  %v7609_v4 = vpop.eup %4898  ;;  %v2429_v16 = vmul.f32 %v7601_v2, %v7580_v26  ;;  %4904 = vrcp.f32 %v7598_v15  ;;  %vm2362_vm0 = vcmp.eq.f32.partialorder %v2361_v32, 8.507059e+37  ;;  %vm2388_vm13 = vweird.f32 %v7595_v10 }
 0x52c   :  { %v7628_v12 = vpop.eup %4900  ;;  %v2384_v20 = vsub.f32 1.0, %v2383_v51  ;;  %v2398_v8 = vmul.f32 %v7609_v4, %v7585_v31  ;;  %vm2377_vm11 = vcmp.eq.f32.partialorder %v2376_v1, 8.507059e+37  ;;  %vm2403_vm15 = vweird.f32 %v7609_v4  ;;  %vm7696_vm4 = vmor %vm2387_vm12, %vm2388_vm13 }
 0x52d   :  { %v2430_v51 = vsub.f32 1.0, %v2429_v16  ;;  %vm2434_vm2 = vweird.f32 %v7601_v2  ;;  %vm2449_vm9 = vweird.f32 %v7628_v12  ;;  %vm2448_vm10 = vweird.f32 %v7591_v54 }
 0x52e   :  { %v2385_v16 = vmul.f32 %v7595_v10, %v2384_v20  ;;  %v9626_v20 = vld [vmem:[#allocation45_spill] sm:$0xff]  ;;  %vm7709_vm6 = vmor %vm2433_vm3, %vm2434_vm2  ;;  %vm2463_vm13 = vweird.f32 %v7598_v15 }
 0x530   :  { %v4903_v35 = vpop.eup %4902 }
 0x531   :  { %v7650_v27 = vpop.eup %4904 }
 0x532   :  { %vm2464_vm12 = vweird.f32 %v7650_v27 }
 0x533   :  { %v7560_v29 = vpop.f32.mrf.mxu3 }
 0x53b   :  { %v7569_v47 = vpop.f32.mrf.mxu3 }
 0x543   :  { %v7588_v37 = vpop.f32.mrf.mxu3 }
 0x54b   :  { %v2292_v62 = vpop.f32.mrf.mxu3 }
 0x54c   :  { %v2316_v6 = vadd.f32 %v2292_v62, %v9618_v30  ;;  %v2378_v30 = vand.u32 2147483648, %v7562_v58  ;;  %v2393_v58 = vand.u32 2147483648, %v7575_v44  ;;  %v2399_v62 = vsub.f32 1.0, %v2398_v8 }
 0x54d   :  { %v2406_v8 = vand.u32 2147483647, %v7585_v31 }
 0x54e   :  { %v2332_v49 = vadd.f32 %v2316_v6, %v9619_v42  ;;  %v2360_v6 = vsel %vm7622_vm8, %v7571_v56, %v2356_v63  ;;  %v2379_v63 = vor.u32 1.1754944e-38, %v2378_v30  ;;  %v7652_v42 = vadd.f32 1.0, %v4903_v35 }
 0x54f   :  { %v7647_v56 = vsel %vm2362_vm0, %v2364_v9, %v2360_v6  ;;  %v2391_v9 = vand.u32 2147483647, %v7575_v44  ;;  %v7660_v50 = vor.u32 1.1754944e-38, %v2393_v58  ;;  %v2431_v30 = vmul.f32 %v7601_v2, %v2430_v51  ;;  %v9625_v6 = vld [vmem:[#allocation80_spill] sm:$0xff]  ;;  %vm7738_vm0 = vmor %vm2402_vm14, %vm2403_vm15 }
 0x550   :  { %v4534_v21 = vmul.f32 -1.442695, %v2332_v49  ;;  %v2444_v49 = vmul.f32 %v7628_v12, %v7591_v54  ;;  %v7656_v1 = vsel %vm2377_vm11, %v2379_v63, %v2375_v46  ;;  %v2459_v46 = vmul.f32 %v7650_v27, %v7598_v15  ;;  %v9627_v63 = vld [vmem:[#allocation78_spill] sm:$0xff]  ;;  %vm7757_vm11 = vmor %vm2448_vm10, %vm2449_vm9 }
 0x551   :  { %v2408_v58 = vand.u32 2147483648, %v7585_v31  ;;  %v2400_v51 = vmul.f32 %v7609_v4, %v2399_v62  ;;  %vm7700_vm5 = vcmp.eq.f32.partialorder %v2391_v9, 8.507059e+37  ;;  %vm7721_vm8 = vcmp.eq.f32.partialorder %v2406_v8, 8.507059e+37  ;;  %vm7777_vm15 = vmor %vm2463_vm13, %vm2464_vm12 }
 0x552   :  { %4906 = vpow2.f32 %v4534_v21  ;;  %v2313_v21 = vadd.f32 %v7560_v29, %v9625_v6  ;;  %v7675_v29 = vadd.f32 %v7595_v10, %v2385_v16  ;;  %v2460_v11 = vsub.f32 1.0, %v2459_v46 }
 0x553   :  { %v2295_v32 = vpop.f32.mrf.mxu3  ;;  %4908 = vrcp.f32 %v7652_v42  ;;  %v2452_v31 = vand.u32 2147483647, %v7591_v54  ;;  %vm2478_vm3 = vweird.f32 %v7652_v42 }
 0x554   :  { %v2317_v38 = vadd.f32 %v2295_v32, %v9624_v33  ;;  %v2445_v32 = vsub.f32 1.0, %v2444_v49  ;;  %v2312_v33 = vadd.f32 %v7550_v53, %v9627_v63  ;;  %v2437_v49 = vand.u32 2147483647, %v7580_v26 }
 0x555   :  { %v2432_v53 = vadd.f32 %v7601_v2, %v2431_v30  ;;  %v2329_v63 = vadd.f32 %v2313_v21, %v6048_v48  ;;  %v2390_v44 = vsel %vm7696_vm4, %v7595_v10, %v7675_v29  ;;  %vm2453_vm14 = vcmp.eq.f32.partialorder %v2452_v31, 8.507059e+37 }
 0x556   :  { %v2333_v35 = vadd.f32 %v2317_v38, %v9626_v20  ;;  %v2439_v38 = vand.u32 2147483648, %v7580_v26  ;;  %v2446_v16 = vmul.f32 %v7628_v12, %v2445_v32  ;;  %v2328_v62 = vadd.f32 %v2312_v33, %v6053_v13 }
 0x557   :  { %v2401_v32 = vadd.f32 %v7609_v4, %v2400_v51  ;;  %v2454_v26 = vand.u32 2147483648, %v7591_v54  ;;  %vm7713_vm7 = vcmp.eq.f32.partialorder %v2437_v49, 8.507059e+37  ;;  %v2436_v51 = vsel %vm7709_vm6, %v7601_v2, %v2432_v53 }
 0x558   :  { %v4907_v55 = vpop.eup %4906  ;;  %v4535_v6 = vmul.f32 -1.442695, %v2333_v35  ;;  %v2447_v10 = vadd.f32 %v7628_v12, %v2446_v16  ;;  %v2482_v30 = vand.u32 2147483647, %v7652_v42 }
 0x559   :  { %v7681_v20 = vadd.f32 1.0, %v4907_v55  ;;  %v2314_v55 = vadd.f32 %v7569_v47, %v9628_v19  ;;  %v7725_v33 = vpop.eup %4908  ;;  %v2467_v19 = vand.u32 2147483647, %v7598_v15  ;;  %v9643_v47 = vld [vmem:[#allocation81_spill] sm:$0xff] }
 0x55a   :  { %4910 = vpow2.f32 %v4535_v6  ;;  %v2440_v6 = vor.u32 1.1754944e-38, %v2439_v38  ;;  %v2474_v53 = vmul.f32 %v7725_v33, %v7652_v42  ;;  %v2451_v54 = vsel %vm7757_vm11, %v7628_v12, %v2447_v10 }
 0x55b   :  { %4912 = vrcp.f32 %v7681_v20  ;;  %v2298_v35 = vpop.f32.mrf.mxu3  ;;  %vm2468_vm2 = vcmp.eq.f32.partialorder %v2467_v19, 8.507059e+37  ;;  %vm2479_vm4 = vweird.f32 %v7725_v33  ;;  %vm2483_vm11 = vcmp.eq.f32.partialorder %v2482_v30, 8.507059e+37 }
 0x55c   :  { %v2318_v46 = vadd.f32 %v2298_v35, %v7339_v57  ;;  %v2409_v57 = vor.u32 1.1754944e-38, %v2408_v58  ;;  %4914 = vtanh.f32 %v2329_v63  ;;  %v2461_v35 = vmul.f32 %v7650_v27, %v2460_v11 }
 0x55d   :  { %4916 = vtanh.f32 %v2328_v62  ;;  %v2330_v58 = vadd.f32 %v2314_v55, %v6004_v41  ;;  %v2405_v11 = vsel %vm7738_vm0, %v7609_v4, %v2401_v32  ;;  %v2455_v63 = vor.u32 1.1754944e-38, %v2454_v26 }
 0x55e   :  { %v2334_v49 = vadd.f32 %v2318_v46, %v5941_v22  ;;  %v2469_v62 = vand.u32 2147483648, %v7598_v15  ;;  %v2441_v55 = vsel %vm7713_vm7, %v2440_v6, %v2436_v51  ;;  %v2462_v32 = vadd.f32 %v7650_v27, %v2461_v35  ;;  %vm7815_vm7 = vmor %vm2478_vm3, %vm2479_vm4 }
 0x55f   :  { %v2315_v51 = vadd.f32 %v7588_v37, %v9643_v47  ;;  %v2475_v12 = vsub.f32 1.0, %v2474_v53  ;;  %v2395_v35 = vsel %vm7700_vm5, %v7660_v50, %v2390_v44  ;;  %v2456_v10 = vsel %vm2453_vm14, %v2455_v63, %v2451_v54 }
 0x560   :  { %v4911_v2 = vpop.eup %4910  ;;  %v4536_v29 = vmul.f32 -1.442695, %v2334_v49  ;;  %v2568_v15 = vmul.f32 %v2441_v55, %v7400_v36  ;;  %v2466_v50 = vsel %vm7777_vm15, %v7650_v27, %v2462_v32  ;;  %v2470_v21 = vor.u32 1.1754944e-38, %v2469_v62 }
 0x561   :  { %v7747_v38 = vpop.eup %4912  ;;  %v7752_v16 = vadd.f32 1.0, %v4911_v2  ;;  %v7783_v2 = vsel %vm7721_vm8, %v2409_v57, %v2405_v11  ;;  %v2331_v9 = vadd.f32 %v2315_v51, %v5990_v3  ;;  %v2476_v53 = vmul.f32 %v7725_v33, %v2475_v12 }
 0x562   :  { %4918 = vpow2.f32 %v4536_v29  ;;  %v2509_v4 = vmul.f32 %v7747_v38, %v7681_v20  ;;  %v4915_v26 = vpop.eup %4914  ;;  %v2569_v36 = vmul.f32 %v2456_v10, %v7396_v43  ;;  %v2471_v63 = vsel %vm2468_vm2, %v2470_v21, %v2466_v50 }
 0x563   :  { %4920 = vrcp.f32 %v7752_v16  ;;  %v2301_v46 = vpop.f32.mrf.mxu3  ;;  %v4917_v49 = vpop.eup %4916  ;;  %v2484_v62 = vand.u32 2147483648, %v7652_v42  ;;  %v2570_v54 = vmul.f32 %v2471_v63, %v7424_v25  ;;  %vm2514_vm5 = vweird.f32 %v7747_v38 }
 0x564   :  { %4922 = vtanh.f32 %v2330_v58  ;;  %v2319_v6 = vadd.f32 %v2301_v46, %v7391_v17  ;;  %v2510_v37 = vsub.f32 1.0, %v2509_v4  ;;  %v2573_v58 = vmul.f32 %v4915_v26, %v7656_v1 }
 0x565   :  { %v2572_v29 = vmul.f32 %v4917_v49, %v7647_v56  ;;  %v2477_v46 = vadd.f32 %v7725_v33, %v2476_v53  ;;  %v2534_v19 = vand.u32 2147483648, %v7752_v16  ;;  %vm2513_vm8 = vweird.f32 %v7681_v20 }
 0x566   :  { %v2335_v17 = vadd.f32 %v2319_v6, %v5931_v7  ;;  %v2511_v56 = vmul.f32 %v7747_v38, %v2510_v37  ;;  %v7801_v55 = vadd.f32 %v2573_v58, %v2569_v36  ;;  %v2532_v6 = vand.u32 2147483647, %v7752_v16  ;;  %vm7824_vm0 = vmor %vm2513_vm8, %vm2514_vm5 }
 0x567   :  { %v7805_v4 = vadd.f32 %v2572_v29, %v2568_v15  ;;  %v2519_v25 = vand.u32 2147483648, %v7681_v20  ;;  %v2485_v12 = vor.u32 1.1754944e-38, %v2484_v62  ;;  %vm2528_vm9 = vweird.f32 %v7752_v16 }
 0x568   :  { %v4919_v44 = vpop.eup %4918  ;;  %v4537_v57 = vmul.f32 -1.442695, %v2335_v17  ;;  %v2512_v47 = vadd.f32 %v7747_v38, %v2511_v56  ;;  %v2517_v42 = vand.u32 2147483647, %v7681_v20  ;;  %v2481_v37 = vsel %vm7815_vm7, %v7725_v33, %v2477_v46 }
 0x569   :  { %v4921_v11 = vpop.eup %4920  ;;  %v7796_v1 = vadd.f32 1.0, %v4919_v44  ;;  %v2535_v21 = vor.u32 1.1754944e-38, %v2534_v19  ;;  %vm2533_vm12 = vcmp.eq.f32.partialorder %v2532_v6, 8.507059e+37  ;;  %v2520_v44 = vor.u32 1.1754944e-38, %v2519_v25 }
 0x56a   :  { %v4923_v31 = vpop.eup %4922  ;;  %4924 = vpow2.f32 %v4537_v57  ;;  %v2524_v27 = vmul.f32 %v4921_v11, %v7752_v16  ;;  %vm2529_vm6 = vweird.f32 %v4921_v11  ;;  %v2516_v20 = vsel %vm7824_vm0, %v7747_v38, %v2512_v47 }
 0x56b   :  { %4926 = vrcp.f32 %v7796_v1  ;;  %v2574_v32 = vmul.f32 %v4923_v31, %v2395_v35  ;;  %vm2530_vm10 = vmor %vm2528_vm9, %vm2529_vm6  ;;  %v2486_v29 = vsel %vm2483_vm11, %v2485_v12, %v2481_v37  ;;  %vm2518_vm13 = vcmp.eq.f32.partialorder %v2517_v42, 8.507059e+37 }
 0x56c   :  { %4928 = vtanh.f32 %v2331_v9  ;;  %v2525_v43 = vsub.f32 1.0, %v2524_v27  ;;  %v2549_v36 = vand.u32 2147483648, %v7796_v1  ;;  %v2547_v38 = vand.u32 2147483647, %v7796_v1 }
 0x56d   :  { %4930 = vtanh.f32 %v7801_v55  ;;  %v7829_v17 = vadd.f32 %v2574_v32, %v2570_v54  ;;  %v2571_v56 = vmul.f32 %v2486_v29, %v7447_v52  ;;  %vm2543_vm15 = vweird.f32 %v7796_v1 }
 0x56e   :  { %v2526_v26 = vmul.f32 %v4921_v11, %v2525_v43  ;;  %4932 = vtanh.f32 %v7805_v4  ;;  %v2550_v54 = vor.u32 1.1754944e-38, %v2549_v36  ;;  %vm2548_vm3 = vcmp.eq.f32.partialorder %v2547_v38, 8.507059e+37  ;;  %v7875_v36 = vld [vmem:[%s9242_s3 + $0x8] sm:$0xff] }
 0x570   :  { %v4925_v49 = vpop.eup %4924  ;;  %v2527_v35 = vadd.f32 %v4921_v11, %v2526_v26 }
 0x571   :  { %v4927_v8 = vpop.eup %4926  ;;  %v2507_v15 = vadd.f32 1.0, %v4925_v49 }
 0x572   :  { %v4929_v58 = vpop.eup %4928  ;;  %v2539_v16 = vmul.f32 %v4927_v8, %v7796_v1  ;;  %v2531_v50 = vsel %vm2530_vm10, %v4921_v11, %v2527_v35  ;;  %v2521_v11 = vsel %vm2518_vm13, %v2520_v44, %v2516_v20  ;;  %vm2544_vm14 = vweird.f32 %v4927_v8 }
 0x573   :  { %4934 = vrcp.f32 %v2507_v15  ;;  %v2536_v9 = vsel %vm2533_vm12, %v2535_v21, %v2531_v50  ;;  %v4931_v57 = vpop.eup %4930  ;;  %v2575_v53 = vmul.f32 %v4929_v58, %v7783_v2  ;;  %vm2545_vm2 = vmor %vm2543_vm15, %vm2544_vm14  ;;  %v2562_v6 = vand.u32 2147483647, %v2507_v15 }
 0x574   :  { %v2540_v33 = vsub.f32 1.0, %v2539_v16  ;;  %4936 = vtanh.f32 %v7829_v17  ;;  %v7844_v63 = vmul.f32 %v4931_v57, %v2536_v9  ;;  %v4933_v27 = vpop.eup %4932  ;;  %v2564_v25 = vand.u32 2147483648, %v2507_v15 }
 0x575   :  { %v7848_v30 = vmul.f32 %v4933_v27, %v2521_v11  ;;  %v7850_v43 = vadd.f32 %v2575_v53, %v2571_v56  ;;  %vm2558_vm5 = vweird.f32 %v2507_v15  ;;  %vm2563_vm7 = vcmp.eq.f32.partialorder %v2562_v6, 8.507059e+37  ;;  %v7889_v56 = vld [vmem:[%s9242_s3 + $0x18] sm:$0xff] }
 0x576   :  { %v2541_v31 = vmul.f32 %v4927_v8, %v2540_v33  ;;  %v2589_v26 = vmul.f32 %v7844_v63, %v6237_v28  ;;  %vm2620_vm10 = vcmp.gt.s32.totalorder %v7487_v60, 3 }
 0x577   :  { %v2588_v1 = vmul.f32 %v7848_v30, %v6241_v59  ;;  %4938 = vtanh.f32 %v7850_v43 }
 0x578   :  { %v2542_v62 = vadd.f32 %v4927_v8, %v2541_v31  ;;  %v7882_v31 = vld [vmem:[%s9242_s3 + $0x10] sm:$0xff] }
 0x579   :  { %v4935_v2 = vpop.eup %4934  ;;  %v2592_v35 = vadd.f32 %v2589_v26, %v2588_v1 }
 0x57a   :  { %v2554_v32 = vmul.f32 %v4935_v2, %v2507_v15  ;;  %v2546_v46 = vsel %vm2545_vm2, %v4927_v8, %v2542_v62  ;;  %v4937_v19 = vpop.eup %4936  ;;  %vm2559_vm4 = vweird.f32 %v4935_v2  ;;  %v2565_v8 = vor.u32 1.1754944e-38, %v2564_v25  ;;  %v7868_v15 = vld [vmem:[%s9242_s3] sm:$0xff] }
 0x57b   :  { %v2551_v47 = vsel %vm2548_vm3, %v2550_v54, %v2546_v46  ;;  %vm2560_vm6 = vmor %vm2558_vm5, %vm2559_vm4 }
 0x57c   :  { %v2555_v51 = vsub.f32 1.0, %v2554_v32  ;;  %v7854_v52 = vmul.f32 %v4937_v19, %v2551_v47  ;;  %v7896_v19 = vld [vmem:[%s9242_s3 + $0x20] sm:$0xff] }
 0x57d   :  { %v4939_v58 = vpop.eup %4938 }
 0x57e   :  { %v2556_v49 = vmul.f32 %v4935_v2, %v2555_v51  ;;  %v2590_v12 = vmul.f32 %v7854_v52, %v6247_v39 }
 0x580   :  { %v2557_v10 = vadd.f32 %v4935_v2, %v2556_v49  ;;  %v2593_v42 = vadd.f32 %v2592_v35, %v2590_v12 }
 0x582   :  { %v2561_v37 = vsel %vm2560_vm6, %v4935_v2, %v2557_v10  ;;  %v7905_v10 = vld [vmem:[%s9242_s3 + $0x28] sm:$0xff] }
 0x583   :  { %v2566_v16 = vsel %vm2563_vm7, %v2565_v8, %v2561_v37 }
 0x584   :  { %v2587_v50 = vmul.f32 %v4939_v58, %v2566_v16  ;;  %v7926_v16 = vld [vmem:[%s9242_s3 + $0x30] sm:$0xff] }
 0x586   :  { %v2591_v21 = vmul.f32 %v2587_v50, %v6254_v34  ;;  %2661 = vmatpush.msrb.mxu0 %v2587_v50 }
 0x588   :  { %2662 = vmatpush.msrb.mxu0 %v7854_v52  ;;  %v2594_v20 = vadd.f32 %v2593_v42, %v2591_v21  ;;  %v7982_v21 = vld [vmem:[%s9242_s3 + $0x70] sm:$0xff] }
 0x589   :  { %9651 = vst [vmem:[#allocation88_spill] sm:$0xff] %v7982_v21 }
 0x58a   :  { %2663 = vmatpush.msrb.mxu0 %v7844_v63  ;;  %v2595_v44 = vrot.slane %v2594_v20, 4 }
 0x58c   :  { %v2596_v29 = vadd.f32 %v2595_v44, %v2594_v20  ;;  %2664 = vmatpush.msrb.mxu0 %v7848_v30  ;;  %v7989_v20 = vld [vmem:[%s9242_s3 + $0x78] sm:$0xff] }
 0x58d   :  { %4539 = vmatmul.msk.f32.vlgmr.msrb.gmra.mxu0 %vm960_vm1, %v7868_v15  ;;  %9652 = vst [vmem:[#allocation90_spill] sm:$0xff] %v7989_v20 }
 0x58e   :  { %v2597_v33 = vrot.slane %v2596_v29, 2 }
 0x590   :  { %v2598_v9 = vadd.f32 %v2597_v33, %v2596_v29 }
 0x592   :  { %v2599_v57 = vrot.slane %v2598_v9, 1 }
 0x594   :  { %v2600_v53 = vadd.f32 %v2599_v57, %v2598_v9  ;;  %v9653_v9 = vld [vmem:[#allocation6_spill] sm:$0xff] }
 0x595   :  { %4540 = vmatmul.msk.f32.gmra.mxu0 %vm960_vm1, %v7875_v36 }
 0x596   :  { %v4538_v11 = vmul.f32 -1.442695, %v2600_v53 }
 0x598   :  { %4940 = vpow2.f32 %v4538_v11 }
 0x59d   :  { %4541 = vmatmul.msk.f32.gmra.mxu0 %vm960_vm1, %v7882_v31 }
 0x59e   :  { %v4941_v38 = vpop.eup %4940 }
 0x59f   :  { %v2604_v27 = vadd.f32 1.0, %v4941_v38 }
 0x5a1   :  { %4942 = vrcp.f32 %v2604_v27  ;;  %v2616_v32 = vand.u32 2147483648, %v2604_v27  ;;  %v2614_v26 = vand.u32 2147483647, %v2604_v27  ;;  %vm2610_vm9 = vweird.f32 %v2604_v27 }
 0x5a3   :  { %v2617_v51 = vor.u32 1.1754944e-38, %v2616_v32  ;;  %vm2615_vm11 = vcmp.eq.f32.partialorder %v2614_v26, 8.507059e+37  ;;  %v9655_v32 = vld [vmem:[#allocation10_spill] sm:$0xff] }
 0x5a5   :  { %4542 = vmatmul.msk.f32.gmra.mxu0 %vm960_vm1, %v7889_v56 }
 0x5a7   :  { %v4943_v62 = vpop.eup %4942 }
 0x5a8   :  { %v2606_v2 = vmul.f32 %v4943_v62, %v2604_v27  ;;  %vm2611_vm8 = vweird.f32 %v4943_v62  ;;  %v9654_v27 = vld [vmem:[#allocation7_spill] sm:$0xff] }
 0x5a9   :  { %vm2612_vm0 = vmor %vm2610_vm9, %vm2611_vm8 }
 0x5aa   :  { %v2607_v54 = vsub.f32 1.0, %v2606_v2 }
 0x5ac   :  { %v2608_v46 = vmul.f32 %v4943_v62, %v2607_v54 }
 0x5ad   :  { %4543 = vmatmul.msk.f32.gmra.mxu0 %vm960_vm1, %v7896_v19 }
 0x5ae   :  { %v2609_v47 = vadd.f32 %v4943_v62, %v2608_v46 }
 0x5b0   :  { %v2613_v1 = vsel %vm2612_vm0, %v4943_v62, %v2609_v47 }
 0x5b1   :  { %v2618_v6 = vsel %vm2615_vm11, %v2617_v51, %v2613_v1 }
 0x5b2   :  { %v2621_v25 = vsel %vm2620_vm10, %v2618_v6, 0.0 }
 0x5b3   :  { %v2623_v49 = vperm.slane %v2621_v25, 0  ;;  %v9656_v25 = vld [vmem:[#allocation11_spill] sm:$0xff] }
 0x5b5   :  { %v2625_v12 = vmul.f32 %v2623_v49, %v7848_v30  ;;  %v2628_v35 = vmul.f32 %v2623_v49, %v2587_v50  ;;  %4544 = vmatmul.msk.f32.gmra.mxu0 %vm960_vm1, %v7905_v10  ;;  %v2626_v42 = vmul.f32 %v2623_v49, %v7844_v63  ;;  %v2627_v60 = vmul.f32 %v2623_v49, %v7854_v52  ;;  %v7961_v63 = vld [vmem:[%s9242_s3 + $0x58] sm:$0xff]  ;;  %v7968_v52 = vld [vmem:[%s9242_s3 + $0x60] sm:$0xff]  ;;  %v7975_v50 = vld [vmem:[%s9242_s3 + $0x68] sm:$0xff] }
 0x5b6   :  { %9650 = vst [vmem:[#allocation87_spill] sm:$0xff] %v7975_v50 }
 0x5b7   :  { %v7912_v8 = vadd.f32 %v2625_v12, %v7498_v40  ;;  %v7915_v37 = vadd.f32 %v2628_v35, %v7501_v45  ;;  %v7918_v30 = vadd.f32 %v2626_v42, %v7504_v0  ;;  %v7921_v58 = vadd.f32 %v2627_v60, %v7507_v18  ;;  %v7933_v40 = vld [vmem:[%s9242_s3 + $0x38] sm:$0xff]  ;;  %v7940_v45 = vld [vmem:[%s9242_s3 + $0x40] sm:$0xff]  ;;  %v7947_v0 = vld [vmem:[%s9242_s3 + $0x48] sm:$0xff] }
 0x5b8   :  { %v7954_v18 = vld [vmem:[%s9242_s3 + $0x50] sm:$0xff] }
 0x5bd   :  { %4545 = vmatmul.msk.f32.gmra.mxu0 %vm960_vm1, %v7926_v16 }
 0x5c5   :  { %4546 = vmatmul.msk.f32.gmra.mxu0 %vm960_vm1, %v7933_v40 }
 0x5cd   :  { %4547 = vmatmul.msk.f32.gmra.mxu0 %vm960_vm1, %v7940_v45 }
 0x5d5   :  { %4548 = vmatmul.msk.f32.gmra.mxu0 %vm960_vm1, %v7947_v0 }
 0x5dd   :  { %4549 = vmatmul.msk.f32.gmra.mxu0 %vm960_vm1, %v7954_v18 }
 0x5e5   :  { %4550 = vmatmul.msk.f32.gmra.mxu0 %vm960_vm1, %v7961_v63 }
 0x5ed   :  { %4551 = vmatmul.msk.f32.gmra.mxu0 %vm960_vm1, %v7968_v52 }
 0x5f5   :  { %4552 = vmatmul.msk.f32.gmra.mxu0 %vm960_vm1, %v7975_v50 }
 0x5fd   :  { %4553 = vmatmul.msk.f32.gmra.mxu0 %vm960_vm1, %v7982_v21 }
 0x605   :  { %4554 = vmatmul.msk.f32.gmra.mxu0 %vm960_vm1, %v7989_v20  ;;  %v9658_v20 = vld [vmem:[#allocation8_spill] sm:$0xff] }
 0x60a   :  { %v2666_v44 = vpop.f32.mrf.mxu0 }
 0x60b   :  { %v2714_v57 = vadd.f32 %v2666_v44, %v9653_v9 }
 0x60d   :  { %v2730_v11 = vadd.f32 %v2714_v57, %v9604_v24 }
 0x60f   :  { %v4555_v38 = vmul.f32 -1.442695, %v2730_v11 }
 0x611   :  { %4944 = vpow2.f32 %v4555_v38 }
 0x612   :  { %v2669_v29 = vpop.f32.mrf.mxu0 }
 0x613   :  { %v2715_v62 = vadd.f32 %v2669_v29, %v9654_v27 }
 0x615   :  { %v2731_v54 = vadd.f32 %v2715_v62, %v9605_v14 }
 0x617   :  { %v4556_v47 = vmul.f32 -1.442695, %v2731_v54  ;;  %v4945_v1 = vpop.eup %4944 }
 0x618   :  { %v2758_v12 = vadd.f32 1.0, %v4945_v1 }
 0x61a   :  { %v2672_v33 = vpop.f32.mrf.mxu0  ;;  %v2773_v14 = vand.u32 2147483648, %v2758_v12  ;;  %vm2767_vm2 = vweird.f32 %v2758_v12 }
 0x61b   :  { %v2716_v21 = vadd.f32 %v2672_v33, %v9658_v20 }
 0x61c   :  { %v2774_v33 = vor.u32 1.1754944e-38, %v2773_v14 }
 0x622   :  { %v7994_v53 = vpop.f32.mrf.mxu0 }
 0x62a   :  { %v2678_v2 = vpop.f32.mrf.mxu0 }
 0x62b   :  { %v2718_v46 = vadd.f32 %v2678_v2, %v9655_v32 }
 0x62d   :  { %v2734_v26 = vadd.f32 %v2718_v46, %v9610_v5 }
 0x62f   :  { %v4559_v51 = vmul.f32 -1.442695, %v2734_v26 }
 0x631   :  { %4946 = vpow2.f32 %v4559_v51 }
 0x632   :  { %v2681_v6 = vpop.f32.mrf.mxu0  ;;  %4948 = vpow2.f32 %v4556_v47 }
 0x633   :  { %v2719_v49 = vadd.f32 %v2681_v6, %v9656_v25  ;;  %4950 = vrcp.f32 %v2758_v12 }
 0x635   :  { %v2735_v35 = vadd.f32 %v2719_v49, %v9613_v61 }
 0x637   :  { %v4947_v42 = vpop.eup %4946  ;;  %v4560_v60 = vmul.f32 -1.442695, %v2735_v35 }
 0x638   :  { %v2834_v44 = vadd.f32 1.0, %v4947_v42  ;;  %v4949_v29 = vpop.eup %4948  ;;  %v9657_v42 = vld [vmem:[#allocation14_spill] sm:$0xff] }
 0x639   :  { %4952 = vpow2.f32 %v4560_v60  ;;  %v8003_v57 = vadd.f32 1.0, %v4949_v29  ;;  %v4951_v11 = vpop.eup %4950 }
 0x63a   :  { %4954 = vrcp.f32 %v2834_v44  ;;  %v2684_v9 = vpop.f32.mrf.mxu0  ;;  %v2763_v54 = vmul.f32 %v4951_v11, %v2758_v12  ;;  %v2849_v5 = vand.u32 2147483648, %v2834_v44  ;;  %vm2843_vm13 = vweird.f32 %v2834_v44 }
 0x63b   :  { %4956 = vrcp.f32 %v8003_v57  ;;  %vm2768_vm14 = vweird.f32 %v4951_v11  ;;  %v2847_v24 = vand.u32 2147483647, %v2834_v44  ;;  %vm2782_vm0 = vweird.f32 %v8003_v57 }
 0x63c   :  { %v2764_v47 = vsub.f32 1.0, %v2763_v54  ;;  %vm8029_vm3 = vmor %vm2767_vm2, %vm2768_vm14 }
 0x63d   :  { %vm2848_vm5 = vcmp.eq.f32.partialorder %v2847_v24, 8.507059e+37 }
 0x63e   :  { %v2765_v35 = vmul.f32 %v4951_v11, %v2764_v47 }
 0x63f   :  { %v4953_v38 = vpop.eup %4952 }
 0x640   :  { %v4955_v27 = vpop.eup %4954  ;;  %v8006_v62 = vadd.f32 1.0, %v4953_v38  ;;  %v2771_v38 = vand.u32 2147483647, %v2758_v12  ;;  %v9663_v12 = vld [vmem:[#allocation9_spill] sm:$0xff] }
 0x641   :  { %v2839_v2 = vmul.f32 %v4955_v27, %v2834_v44  ;;  %v8011_v26 = vpop.eup %4956  ;;  %vm2844_vm12 = vweird.f32 %v4955_v27  ;;  %v2717_v50 = vadd.f32 %v7994_v53, %v9663_v12 }
 0x642   :  { %4958 = vrcp.f32 %v8006_v62  ;;  %v8009_v32 = vpop.f32.mrf.mxu0  ;;  %v2778_v6 = vmul.f32 %v8011_v26, %v8003_v57  ;;  %vm8022_vm15 = vmor %vm2843_vm13, %vm2844_vm12  ;;  %vm2772_vm4 = vcmp.eq.f32.partialorder %v2771_v38, 8.507059e+37  ;;  %vm2783_vm7 = vweird.f32 %v8011_v26 }
 0x643   :  { %v2840_v46 = vsub.f32 1.0, %v2839_v2  ;;  %v2864_v24 = vand.u32 2147483648, %v8006_v62  ;;  %vm2858_vm8 = vweird.f32 %v8006_v62  ;;  %vm2784_vm10 = vmor %vm2782_vm0, %vm2783_vm7 }
 0x644   :  { %v2779_v61 = vsub.f32 1.0, %v2778_v6  ;;  %v2850_v6 = vor.u32 1.1754944e-38, %v2849_v5  ;;  %v9664_v5 = vld [vmem:[#allocation15_spill] sm:$0xff] }
 0x645   :  { %v2841_v1 = vmul.f32 %v4955_v27, %v2840_v46  ;;  %v2766_v46 = vadd.f32 %v4951_v11, %v2765_v35  ;;  %v2732_v35 = vadd.f32 %v2716_v21, %v9608_v23 }
 0x646   :  { %v2780_v44 = vmul.f32 %v8011_v26, %v2779_v61 }
 0x647   :  { %v2842_v2 = vadd.f32 %v4955_v27, %v2841_v1  ;;  %v2770_v20 = vsel %vm8029_vm3, %v4951_v11, %v2766_v46 }
 0x648   :  { %v8013_v51 = vpop.eup %4958  ;;  %v2775_v14 = vsel %vm2772_vm4, %v2774_v33, %v2770_v20  ;;  %v2781_v38 = vadd.f32 %v8011_v26, %v2780_v44  ;;  %v2865_v20 = vor.u32 1.1754944e-38, %v2864_v24  ;;  %v4557_v33 = vmul.f32 -1.442695, %v2732_v35 }
 0x649   :  { %v2854_v25 = vmul.f32 %v8013_v51, %v8006_v62  ;;  %v2846_v1 = vsel %vm8022_vm15, %v4955_v27, %v2842_v2  ;;  %vm2859_vm6 = vweird.f32 %v8013_v51 }
 0x64a   :  { %v2690_v49 = vpop.f32.mrf.mxu0  ;;  %v2851_v27 = vsel %vm2848_vm5, %v2850_v6, %v2846_v1  ;;  %vm8051_vm9 = vmor %vm2858_vm8, %vm2859_vm6  ;;  %v9669_v6 = vld [vmem:[#allocation31_spill] sm:$0xff]  ;;  %v9672_v1 = vld [vmem:[#allocation18_spill] sm:$0xff] }
 0x64b   :  { %v2722_v60 = vadd.f32 %v2690_v49, %v9657_v42  ;;  %v2855_v29 = vsub.f32 1.0, %v2854_v25  ;;  %v2978_v53 = vmul.f32 %v2851_v27, %v7805_v4  ;;  %v2786_v4 = vand.u32 2147483647, %v8003_v57 }
 0x64d   :  { %v2738_v54 = vadd.f32 %v2722_v60, %v6053_v13  ;;  %v2856_v47 = vmul.f32 %v8013_v51, %v2855_v29  ;;  %v9665_v60 = vld [vmem:[#allocation12_spill] sm:$0xff]  ;;  %vm2787_vm12 = vcmp.eq.f32.partialorder %v2786_v4, 8.507059e+37 }
 0x64e   :  { %v2720_v29 = vadd.f32 %v2684_v9, %v9665_v60  ;;  %v9666_v9 = vld [vmem:[#allocation33_spill] sm:$0xff] }
 0x64f   :  { %4960 = vtanh.f32 %v2738_v54  ;;  %v2857_v61 = vadd.f32 %v8013_v51, %v2856_v47  ;;  %v2862_v54 = vand.u32 2147483647, %v8006_v62  ;;  %v2733_v46 = vadd.f32 %v2717_v50, %v9666_v9 }
 0x650   :  { %v2788_v47 = vand.u32 2147483648, %v8003_v57  ;;  %v2736_v25 = vadd.f32 %v2720_v29, %v9669_v6  ;;  %v9670_v29 = vld [vmem:[#allocation13_spill] sm:$0xff] }
 0x651   :  { %v2861_v62 = vsel %vm8051_vm9, %v8013_v51, %v2857_v61  ;;  %vm2863_vm11 = vcmp.eq.f32.partialorder %v2862_v54, 8.507059e+37  ;;  %v4558_v50 = vmul.f32 -1.442695, %v2733_v46  ;;  %v2721_v51 = vadd.f32 %v8009_v32, %v9670_v29  ;;  %v9675_v29 = vld [vmem:[#allocation45_spill] sm:$0xff] }
 0x652   :  { %v2693_v49 = vpop.f32.mrf.mxu0  ;;  %v2789_v27 = vor.u32 1.1754944e-38, %v2788_v47 }
 0x653   :  { %v2723_v42 = vadd.f32 %v2693_v49, %v9664_v5  ;;  %v2785_v49 = vsel %vm2784_vm10, %v8011_v26, %v2781_v38  ;;  %v2866_v5 = vsel %vm2863_vm11, %v2865_v20, %v2861_v62  ;;  %v9671_v26 = vld [vmem:[#allocation37_spill] sm:$0xff] }
 0x654   :  { %v2790_v57 = vsel %vm2787_vm12, %v2789_v27, %v2785_v49  ;;  %v2979_v61 = vmul.f32 %v2866_v5, %v7801_v55  ;;  %v2737_v24 = vadd.f32 %v2721_v51, %v9671_v26 }
 0x655   :  { %v4961_v11 = vpop.eup %4960  ;;  %v2739_v21 = vadd.f32 %v2723_v42, %v6048_v48  ;;  %v4561_v42 = vmul.f32 -1.442695, %v2736_v25  ;;  %v9673_v25 = vld [vmem:[#allocation47_spill] sm:$0xff] }
 0x656   :  { %v2982_v2 = vmul.f32 %v4961_v11, %v2775_v14 }
 0x657   :  { %4962 = vtanh.f32 %v2739_v21 }
 0x658   :  { %v8058_v44 = vadd.f32 %v2982_v2, %v2978_v53  ;;  %4964 = vpow2.f32 %v4557_v33  ;;  %v4562_v2 = vmul.f32 -1.442695, %v2737_v24 }
 0x659   :  { %4966 = vpow2.f32 %v4558_v50 }
 0x65a   :  { %v2696_v12 = vpop.f32.mrf.mxu0  ;;  %4968 = vpow2.f32 %v4561_v42  ;;  %v9674_v42 = vld [vmem:[#allocation19_spill] sm:$0xff] }
 0x65b   :  { %4970 = vpow2.f32 %v4562_v2 }
 0x65d   :  { %v4963_v60 = vpop.eup %4962 }
 0x65e   :  { %v2983_v11 = vmul.f32 %v4963_v60, %v2790_v57  ;;  %v4965_v21 = vpop.eup %4964 }
 0x65f   :  { %v4967_v38 = vpop.eup %4966  ;;  %v8075_v54 = vadd.f32 1.0, %v4965_v21 }
 0x660   :  { %v8070_v35 = vadd.f32 %v2983_v11, %v2979_v61  ;;  %v4969_v53 = vpop.eup %4968  ;;  %v8077_v46 = vadd.f32 1.0, %v4967_v38 }
 0x661   :  { %v8079_v32 = vadd.f32 1.0, %v4969_v53  ;;  %4972 = vrcp.f32 %v8075_v54  ;;  %v4971_v20 = vpop.eup %4970  ;;  %vm2797_vm13 = vweird.f32 %v8075_v54 }
 0x662   :  { %v8073_v14 = vpop.f32.mrf.mxu0  ;;  %4974 = vrcp.f32 %v8077_v46  ;;  %v8092_v5 = vadd.f32 1.0, %v4971_v20  ;;  %vm2812_vm7 = vweird.f32 %v8077_v46 }
 0x663   :  { %4976 = vrcp.f32 %v8079_v32  ;;  %vm2873_vm3 = vweird.f32 %v8079_v32 }
 0x664   :  { %vm2888_vm10 = vweird.f32 %v8092_v5 }
 0x667   :  { %v8086_v33 = vpop.eup %4972 }
 0x668   :  { %v8088_v49 = vpop.eup %4974  ;;  %v2793_v57 = vmul.f32 %v8086_v33, %v8075_v54  ;;  %vm2798_vm14 = vweird.f32 %v8086_v33 }
 0x669   :  { %v8090_v27 = vpop.eup %4976  ;;  %v2808_v61 = vmul.f32 %v8088_v49, %v8077_v46  ;;  %vm2813_vm15 = vweird.f32 %v8088_v49  ;;  %vm8144_vm4 = vmor %vm2797_vm13, %vm2798_vm14 }
 0x66a   :  { %v2702_v55 = vpop.f32.mrf.mxu0  ;;  %v2869_v11 = vmul.f32 %v8090_v27, %v8079_v32  ;;  %v2794_v53 = vsub.f32 1.0, %v2793_v57  ;;  %v2801_v57 = vand.u32 2147483647, %v8075_v54  ;;  %vm2874_vm2 = vweird.f32 %v8090_v27  ;;  %vm8167_vm8 = vmor %vm2812_vm7, %vm2813_vm15 }
 0x66b   :  { %v2726_v47 = vadd.f32 %v2702_v55, %v9672_v1  ;;  %v2809_v2 = vsub.f32 1.0, %v2808_v61  ;;  %vm8153_vm6 = vmor %vm2873_vm3, %vm2874_vm2 }
 0x66c   :  { %v2870_v55 = vsub.f32 1.0, %v2869_v11  ;;  %vm8148_vm5 = vcmp.eq.f32.partialorder %v2801_v57, 8.507059e+37 }
 0x66d   :  { %v2742_v4 = vadd.f32 %v2726_v47, %v9673_v25  ;;  %v9676_v47 = vld [vmem:[#allocation16_spill] sm:$0xff]  ;;  %v2810_v61 = vmul.f32 %v8088_v49, %v2809_v2 }
 0x66f   :  { %v4563_v62 = vmul.f32 -1.442695, %v2742_v4  ;;  %v2724_v4 = vadd.f32 %v2696_v12, %v9676_v47  ;;  %v2803_v12 = vand.u32 2147483648, %v8075_v54  ;;  %v2818_v47 = vand.u32 2147483648, %v8077_v46 }
 0x671   :  { %4978 = vpow2.f32 %v4563_v62  ;;  %v9677_v62 = vld [vmem:[#allocation20_spill] sm:$0xff] }
 0x672   :  { %v2705_v50 = vpop.f32.mrf.mxu0  ;;  %4980 = vrcp.f32 %v8092_v5 }
 0x673   :  { %v2727_v60 = vadd.f32 %v2705_v50, %v9674_v42  ;;  %v2795_v42 = vmul.f32 %v8086_v33, %v2794_v53 }
 0x675   :  { %v2743_v51 = vadd.f32 %v2727_v60, %v9675_v29  ;;  %v2796_v2 = vadd.f32 %v8086_v33, %v2795_v42  ;;  %v9679_v29 = vld [vmem:[#allocation22_spill] sm:$0xff] }
 0x677   :  { %v4979_v24 = vpop.eup %4978  ;;  %v4564_v21 = vmul.f32 -1.442695, %v2743_v51  ;;  %v2871_v51 = vmul.f32 %v8090_v27, %v2870_v55  ;;  %v2816_v55 = vand.u32 2147483647, %v8077_v46 }
 0x678   :  { %v8103_v38 = vadd.f32 1.0, %v4979_v24  ;;  %v8108_v50 = vpop.eup %4980  ;;  %v2740_v24 = vadd.f32 %v2724_v4, %v6004_v41 }
 0x679   :  { %4982 = vpow2.f32 %v4564_v21  ;;  %v2884_v53 = vmul.f32 %v8108_v50, %v8092_v5  ;;  %vm8171_vm9 = vcmp.eq.f32.partialorder %v2816_v55, 8.507059e+37  ;;  %vm2889_vm11 = vweird.f32 %v8108_v50 }
 0x67a   :  { %4984 = vrcp.f32 %v8103_v38  ;;  %v2708_v1 = vpop.f32.mrf.mxu0  ;;  %vm8200_vm14 = vmor %vm2888_vm10, %vm2889_vm11  ;;  %vm2923_vm15 = vweird.f32 %v8103_v38 }
 0x67b   :  { %v2728_v20 = vadd.f32 %v2708_v1, %v9677_v62  ;;  %v2885_v25 = vsub.f32 1.0, %v2884_v53 }
 0x67d   :  { %v2744_v60 = vadd.f32 %v2728_v20, %v5941_v22  ;;  %v2872_v20 = vadd.f32 %v8090_v27, %v2871_v51  ;;  %v9678_v22 = vld [vmem:[#allocation17_spill] sm:$0xff] }
 0x67e   :  { %v2725_v42 = vadd.f32 %v8073_v14, %v9678_v22 }
 0x67f   :  { %v4983_v11 = vpop.eup %4982  ;;  %v4565_v21 = vmul.f32 -1.442695, %v2744_v60  ;;  %v2811_v60 = vadd.f32 %v8088_v49, %v2810_v61  ;;  %v2876_v57 = vsel %vm8153_vm6, %v8090_v27, %v2872_v20 }
 0x680   :  { %v8119_v1 = vpop.eup %4984  ;;  %v8125_v62 = vadd.f32 1.0, %v4983_v11  ;;  %v2879_v11 = vand.u32 2147483648, %v8079_v32 }
 0x681   :  { %4986 = vpow2.f32 %v4565_v21  ;;  %v2919_v4 = vmul.f32 %v8119_v1, %v8103_v38  ;;  %vm2924_vm12 = vweird.f32 %v8119_v1 }
 0x682   :  { %4988 = vrcp.f32 %v8125_v62  ;;  %v2711_v41 = vpop.f32.mrf.mxu0  ;;  %v2942_v53 = vand.u32 2147483647, %v8125_v62  ;;  %vm2938_vm2 = vweird.f32 %v8125_v62  ;;  %vm8209_vm3 = vmor %vm2923_vm15, %vm2924_vm12 }
 0x683   :  { %4990 = vtanh.f32 %v2740_v24  ;;  %v2729_v21 = vadd.f32 %v2711_v41, %v9679_v29  ;;  %v2877_v24 = vand.u32 2147483647, %v8079_v32  ;;  %v2800_v41 = vsel %vm8144_vm4, %v8086_v33, %v2796_v2 }
 0x684   :  { %v2920_v54 = vsub.f32 1.0, %v2919_v4  ;;  %v2804_v29 = vor.u32 1.1754944e-38, %v2803_v12  ;;  %v2819_v33 = vor.u32 1.1754944e-38, %v2818_v47  ;;  %v2880_v2 = vor.u32 1.1754944e-38, %v2879_v11 }
 0x685   :  { %v2745_v14 = vadd.f32 %v2729_v21, %v5931_v7  ;;  %v2741_v4 = vadd.f32 %v2725_v42, %v5990_v3  ;;  %v2815_v12 = vsel %vm8167_vm8, %v8088_v49, %v2811_v60  ;;  %v2886_v21 = vmul.f32 %v8108_v50, %v2885_v25 }
 0x686   :  { %v2805_v51 = vsel %vm8148_vm5, %v2804_v29, %v2800_v41  ;;  %vm2878_vm0 = vcmp.eq.f32.partialorder %v2877_v24, 8.507059e+37  ;;  %v2921_v42 = vmul.f32 %v8119_v1, %v2920_v54  ;;  %v2894_v49 = vand.u32 2147483648, %v8092_v5 }
 0x687   :  { %v4987_v46 = vpop.eup %4986  ;;  %v4566_v27 = vmul.f32 -1.442695, %v2745_v14  ;;  %v2881_v47 = vsel %vm2878_vm0, %v2880_v2, %v2876_v57  ;;  %v2820_v25 = vsel %vm8171_vm9, %v2819_v33, %v2815_v12  ;;  %v2892_v60 = vand.u32 2147483647, %v8092_v5 }
 0x688   :  { %v4989_v20 = vpop.eup %4988  ;;  %v8182_v55 = vadd.f32 1.0, %v4987_v46  ;;  %v2980_v24 = vmul.f32 %v2881_v47, %v7829_v17  ;;  %v2887_v14 = vadd.f32 %v8108_v50, %v2886_v21  ;;  %v2944_v29 = vand.u32 2147483648, %v8125_v62 }
 0x689   :  { %v4991_v22 = vpop.eup %4990  ;;  %4992 = vpow2.f32 %v4566_v27  ;;  %v2934_v11 = vmul.f32 %v4989_v20, %v8125_v62  ;;  %vm2939_vm13 = vweird.f32 %v4989_v20  ;;  %v2922_v57 = vadd.f32 %v8119_v1, %v2921_v42 }
 0x68a   :  { %4994 = vrcp.f32 %v8182_v55  ;;  %v2984_v41 = vmul.f32 %v4991_v22, %v2805_v51  ;;  %v2929_v17 = vand.u32 2147483648, %v8103_v38  ;;  %v2895_v46 = vor.u32 1.1754944e-38, %v2894_v49  ;;  %vm2940_vm4 = vmor %vm2938_vm2, %vm2939_vm13 }
 0x68b   :  { %4996 = vtanh.f32 %v2741_v4  ;;  %v2935_v61 = vsub.f32 1.0, %v2934_v11  ;;  %v2927_v5 = vand.u32 2147483647, %v8103_v38  ;;  %v2891_v21 = vsel %vm8200_vm14, %v8108_v50, %v2887_v14 }
 0x68c   :  { %4998 = vtanh.f32 %v8070_v35  ;;  %v8214_v27 = vadd.f32 %v2984_v41, %v2980_v24  ;;  %v2945_v11 = vor.u32 1.1754944e-38, %v2944_v29  ;;  %v2926_v38 = vsel %vm8209_vm3, %v8119_v1, %v2922_v57 }
 0x68d   :  { %v2936_v54 = vmul.f32 %v4989_v20, %v2935_v61  ;;  %5000 = vtanh.f32 %v8058_v44  ;;  %vm2893_vm5 = vcmp.eq.f32.partialorder %v2892_v60, 8.507059e+37  ;;  %vm2943_vm6 = vcmp.eq.f32.partialorder %v2942_v53, 8.507059e+37 }
 0x68e   :  { %v2930_v42 = vor.u32 1.1754944e-38, %v2929_v17  ;;  %v2896_v49 = vsel %vm2893_vm5, %v2895_v46, %v2891_v21  ;;  %vm2928_vm7 = vcmp.eq.f32.partialorder %v2927_v5, 8.507059e+37  ;;  %v2959_v14 = vand.u32 2147483648, %v8182_v55 }
 0x68f   :  { %v4993_v33 = vpop.eup %4992  ;;  %v2937_v2 = vadd.f32 %v4989_v20, %v2936_v54  ;;  %v2957_v29 = vand.u32 2147483647, %v8182_v55  ;;  %v2981_v57 = vmul.f32 %v2896_v49, %v7850_v43  ;;  %vm2953_vm9 = vweird.f32 %v8182_v55 }
 0x690   :  { %v4995_v12 = vpop.eup %4994  ;;  %v2917_v51 = vadd.f32 1.0, %v4993_v33  ;;  %v2960_v33 = vor.u32 1.1754944e-38, %v2959_v14 }
 0x691   :  { %v4997_v22 = vpop.eup %4996  ;;  %v2949_v62 = vmul.f32 %v4995_v12, %v8182_v55  ;;  %v2941_v47 = vsel %vm2940_vm4, %v4989_v20, %v2937_v2  ;;  %v2931_v20 = vsel %vm2928_vm7, %v2930_v42, %v2926_v38  ;;  %vm2954_vm8 = vweird.f32 %v4995_v12 }
 0x692   :  { %5002 = vrcp.f32 %v2917_v51  ;;  %v2946_v61 = vsel %vm2943_vm6, %v2945_v11, %v2941_v47  ;;  %v4999_v24 = vpop.eup %4998  ;;  %v2985_v41 = vmul.f32 %v4997_v22, %v2820_v25  ;;  %vm2955_vm0 = vmor %vm2953_vm9, %vm2954_vm8  ;;  %vm2958_vm10 = vcmp.eq.f32.partialorder %v2957_v29, 8.507059e+37 }
 0x693   :  { %v2950_v50 = vsub.f32 1.0, %v2949_v62  ;;  %5004 = vtanh.f32 %v8214_v27  ;;  %v8228_v1 = vmul.f32 %v4999_v24, %v2946_v61  ;;  %v5001_v60 = vpop.eup %5000  ;;  %v2972_v62 = vand.u32 2147483647, %v2917_v51 }
 0x694   :  { %v8232_v53 = vmul.f32 %v5001_v60, %v2931_v20  ;;  %v8234_v17 = vadd.f32 %v2985_v41, %v2981_v57  ;;  %v2974_v47 = vand.u32 2147483648, %v2917_v51  ;;  %vm2968_vm12 = vweird.f32 %v2917_v51 }
 0x695   :  { %v2951_v54 = vmul.f32 %v4995_v12, %v2950_v50  ;;  %v2999_v4 = vmul.f32 %v8228_v1, %v6237_v28  ;;  %vm2973_vm14 = vcmp.eq.f32.partialorder %v2972_v62, 8.507059e+37  ;;  %v8262_v62 = vld [vmem:[%s9240_s1] sm:$0x1] }
 0x696   :  { %v2998_v55 = vmul.f32 %v8232_v53, %v6241_v59  ;;  %5006 = vtanh.f32 %v8234_v17  ;;  %v2975_v50 = vor.u32 1.1754944e-38, %v2974_v47  ;;  %vm3030_vm4 = vcmp.gt.s32.totalorder %v8262_v62, 4 }
 0x697   :  { %v2952_v32 = vadd.f32 %v4995_v12, %v2951_v54 }
 0x698   :  { %v5003_v25 = vpop.eup %5002  ;;  %v3002_v38 = vadd.f32 %v2999_v4, %v2998_v55 }
 0x699   :  { %v2964_v46 = vmul.f32 %v5003_v25, %v2917_v51  ;;  %v2956_v2 = vsel %vm2955_vm0, %v4995_v12, %v2952_v32  ;;  %v5005_v5 = vpop.eup %5004  ;;  %vm2969_vm11 = vweird.f32 %v5003_v25 }
 0x69a   :  { %v2961_v21 = vsel %vm2958_vm10, %v2960_v33, %v2956_v2  ;;  %vm2970_vm13 = vmor %vm2968_vm12, %vm2969_vm11 }
 0x69b   :  { %v2965_v22 = vsub.f32 1.0, %v2964_v46  ;;  %v8238_v43 = vmul.f32 %v5005_v5, %v2961_v21 }
 0x69c   :  { %v5007_v24 = vpop.eup %5006 }
 0x69d   :  { %v2966_v11 = vmul.f32 %v5003_v25, %v2965_v22  ;;  %v3000_v12 = vmul.f32 %v8238_v43, %v6247_v39 }
 0x69f   :  { %v2967_v42 = vadd.f32 %v5003_v25, %v2966_v11  ;;  %v3003_v49 = vadd.f32 %v3002_v38, %v3000_v12 }
 0x6a1   :  { %v2971_v61 = vsel %vm2970_vm13, %v5003_v25, %v2967_v42 }
 0x6a2   :  { %v2976_v41 = vsel %vm2973_vm14, %v2975_v50, %v2971_v61 }
 0x6a3   :  { %v2997_v14 = vmul.f32 %v5007_v24, %v2976_v41 }
 0x6a5   :  { %v3001_v20 = vmul.f32 %v2997_v14, %v6254_v34  ;;  %3071 = vmatpush.msrb.mxu1 %v2997_v14 }
 0x6a7   :  { %3072 = vmatpush.msrb.mxu1 %v8238_v43  ;;  %v3004_v54 = vadd.f32 %v3003_v49, %v3001_v20 }
 0x6a9   :  { %3073 = vmatpush.msrb.mxu1 %v8228_v1  ;;  %v3005_v29 = vrot.slane %v3004_v54, 4 }
 0x6ab   :  { %v3006_v60 = vadd.f32 %v3005_v29, %v3004_v54  ;;  %3074 = vmatpush.msrb.mxu1 %v8232_v53  ;;  %v9701_v54 = vld [vmem:[#allocation54_spill] sm:$0xff] }
 0x6ac   :  { %4568 = vmatmul.msk.f32.vlgmr.msrb.gmra.mxu1 %vm960_vm1, %v7868_v15 }
 0x6ad   :  { %v3007_v51 = vrot.slane %v3006_v60, 2 }
 0x6af   :  { %v3008_v57 = vadd.f32 %v3007_v51, %v3006_v60  ;;  %v9702_v60 = vld [vmem:[#allocation39_spill] sm:$0xff] }
 0x6b1   :  { %v3009_v32 = vrot.slane %v3008_v57, 1 }
 0x6b3   :  { %v3010_v25 = vadd.f32 %v3009_v32, %v3008_v57 }
 0x6b4   :  { %4569 = vmatmul.msk.f32.gmra.mxu1 %vm960_vm1, %v7875_v36 }
 0x6b5   :  { %v4567_v33 = vmul.f32 -1.442695, %v3010_v25 }
 0x6b7   :  { %5008 = vpow2.f32 %v4567_v33 }
 0x6bc   :  { %4570 = vmatmul.msk.f32.gmra.mxu1 %vm960_vm1, %v7882_v31 }
 0x6bd   :  { %v5009_v46 = vpop.eup %5008 }
 0x6be   :  { %v3014_v2 = vadd.f32 1.0, %v5009_v46  ;;  %v9703_v46 = vld [vmem:[#allocation55_spill] sm:$0xff] }
 0x6c0   :  { %5010 = vrcp.f32 %v3014_v2  ;;  %v3026_v21 = vand.u32 2147483648, %v3014_v2  ;;  %v3024_v55 = vand.u32 2147483647, %v3014_v2  ;;  %vm3020_vm2 = vweird.f32 %v3014_v2 }
 0x6c2   :  { %v3027_v31 = vor.u32 1.1754944e-38, %v3026_v21  ;;  %vm3025_vm5 = vcmp.eq.f32.partialorder %v3024_v55, 8.507059e+37 }
 0x6c4   :  { %4571 = vmatmul.msk.f32.gmra.mxu1 %vm960_vm1, %v7889_v56 }
 0x6c6   :  { %v5011_v4 = vpop.eup %5010 }
 0x6c7   :  { %v3016_v15 = vmul.f32 %v5011_v4, %v3014_v2  ;;  %vm3021_vm15 = vweird.f32 %v5011_v4 }
 0x6c8   :  { %vm3022_vm3 = vmor %vm3020_vm2, %vm3021_vm15 }
 0x6c9   :  { %v3017_v5 = vsub.f32 1.0, %v3016_v15  ;;  %v9704_v15 = vld [vmem:[#allocation40_spill] sm:$0xff] }
 0x6cb   :  { %v3018_v22 = vmul.f32 %v5011_v4, %v3017_v5 }
 0x6cc   :  { %4572 = vmatmul.msk.f32.gmra.mxu1 %vm960_vm1, %v7896_v19 }
 0x6cd   :  { %v3019_v36 = vadd.f32 %v5011_v4, %v3018_v22 }
 0x6cf   :  { %v3023_v56 = vsel %vm3022_vm3, %v5011_v4, %v3019_v36 }
 0x6d0   :  { %v3028_v47 = vsel %vm3025_vm5, %v3027_v31, %v3023_v56 }
 0x6d1   :  { %v3031_v11 = vsel %vm3030_vm4, %v3028_v47, 0.0 }
 0x6d2   :  { %v3033_v12 = vperm.slane %v3031_v11, 0 }
 0x6d4   :  { %v3035_v38 = vmul.f32 %v3033_v12, %v8232_v53  ;;  %v3038_v42 = vmul.f32 %v3033_v12, %v2997_v14  ;;  %4573 = vmatmul.msk.f32.gmra.mxu1 %vm960_vm1, %v7905_v10  ;;  %v3036_v19 = vmul.f32 %v3033_v12, %v8228_v1  ;;  %v3037_v49 = vmul.f32 %v3033_v12, %v8238_v43  ;;  %v9694_v10 = vld [vmem:[#allocation87_spill] sm:$0xff] }
 0x6d5   :  { %v9700_v14 = vld [vmem:[#allocation35_spill] sm:$0xff] }
 0x6d6   :  { %v8271_v50 = vadd.f32 %v3035_v38, %v7912_v8  ;;  %v8274_v61 = vadd.f32 %v3036_v19, %v7918_v30  ;;  %v8277_v24 = vadd.f32 %v3037_v49, %v7921_v58  ;;  %v8280_v41 = vadd.f32 %v3038_v42, %v7915_v37  ;;  %v9695_v8 = vld [vmem:[#allocation88_spill] sm:$0xff]  ;;  %v9696_v37 = vld [vmem:[#allocation90_spill] sm:$0xff] }
 0x6dc   :  { %4574 = vmatmul.msk.f32.gmra.mxu1 %vm960_vm1, %v7926_v16 }
 0x6e4   :  { %4575 = vmatmul.msk.f32.gmra.mxu1 %vm960_vm1, %v7933_v40  ;;  %v9697_v40 = vld [vmem:[#allocation50_spill] sm:$0xff] }
 0x6ec   :  { %4576 = vmatmul.msk.f32.gmra.mxu1 %vm960_vm1, %v7940_v45 }
 0x6f4   :  { %4577 = vmatmul.msk.f32.gmra.mxu1 %vm960_vm1, %v7947_v0 }
 0x6fc   :  { %4578 = vmatmul.msk.f32.gmra.mxu1 %vm960_vm1, %v7954_v18  ;;  %v9698_v18 = vld [vmem:[#allocation34_spill] sm:$0xff] }
 0x704   :  { %4579 = vmatmul.msk.f32.gmra.mxu1 %vm960_vm1, %v7961_v63 }
 0x70c   :  { %4580 = vmatmul.msk.f32.gmra.mxu1 %vm960_vm1, %v7968_v52  ;;  %v9699_v52 = vld [vmem:[#allocation51_spill] sm:$0xff] }
 0x714   :  { %4581 = vmatmul.msk.f32.gmra.mxu1 %vm960_vm1, %v9694_v10 }
 0x71c   :  { %4582 = vmatmul.msk.f32.gmra.mxu1 %vm960_vm1, %v9695_v8 }
 0x724   :  { %4583 = vmatmul.msk.f32.gmra.mxu1 %vm960_vm1, %v9696_v37 }
 0x729   :  { %v3076_v30 = vpop.f32.mrf.mxu1 }
 0x72a   :  { %v3124_v45 = vadd.f32 %v3076_v30, %v9697_v40 }
 0x72c   :  { %v3140_v63 = vadd.f32 %v3124_v45, %v9698_v18 }
 0x72e   :  { %v4584_v1 = vmul.f32 -1.442695, %v3140_v63 }
 0x730   :  { %5012 = vpow2.f32 %v4584_v1 }
 0x731   :  { %v3079_v58 = vpop.f32.mrf.mxu1 }
 0x732   :  { %v3125_v53 = vadd.f32 %v3079_v58, %v9699_v52  ;;  %v9705_v52 = vld [vmem:[#allocation62_spill] sm:$0xff] }
 0x734   :  { %v3141_v20 = vadd.f32 %v3125_v53, %v9700_v14 }
 0x736   :  { %v4585_v57 = vmul.f32 -1.442695, %v3141_v20  ;;  %v5013_v25 = vpop.eup %5012 }
 0x737   :  { %v3168_v4 = vadd.f32 1.0, %v5013_v25 }
 0x739   :  { %v3082_v16 = vpop.f32.mrf.mxu1  ;;  %v3181_v20 = vand.u32 2147483647, %v3168_v4  ;;  %vm3177_vm0 = vweird.f32 %v3168_v4 }
 0x73b   :  { %vm3182_vm11 = vcmp.eq.f32.partialorder %v3181_v20, 8.507059e+37 }
 0x741   :  { %v8303_v0 = vpop.f32.mrf.mxu1 }
 0x749   :  { %v3088_v43 = vpop.f32.mrf.mxu1 }
 0x74a   :  { %v3128_v29 = vadd.f32 %v3088_v43, %v9701_v54 }
 0x74c   :  { %v3144_v51 = vadd.f32 %v3128_v29, %v9702_v60 }
 0x74e   :  { %v4588_v32 = vmul.f32 -1.442695, %v3144_v51 }
 0x750   :  { %5014 = vpow2.f32 %v4588_v32  ;;  %v3183_v32 = vand.u32 2147483648, %v3168_v4 }
 0x751   :  { %v3091_v33 = vpop.f32.mrf.mxu1  ;;  %5016 = vpow2.f32 %v4585_v57 }
 0x752   :  { %v3129_v2 = vadd.f32 %v3091_v33, %v9703_v46  ;;  %5018 = vrcp.f32 %v3168_v4  ;;  %v9706_v46 = vld [vmem:[#allocation52_spill] sm:$0xff] }
 0x754   :  { %v3145_v5 = vadd.f32 %v3129_v2, %v9704_v15  ;;  %v3126_v2 = vadd.f32 %v3082_v16, %v9706_v46 }
 0x756   :  { %v5015_v21 = vpop.eup %5014  ;;  %v4589_v22 = vmul.f32 -1.442695, %v3145_v5 }
 0x757   :  { %v3244_v55 = vadd.f32 1.0, %v5015_v21  ;;  %v5017_v36 = vpop.eup %5016 }
 0x758   :  { %5020 = vpow2.f32 %v4589_v22  ;;  %v8312_v56 = vadd.f32 1.0, %v5017_v36  ;;  %v5019_v47 = vpop.eup %5018 }
 0x759   :  { %5022 = vrcp.f32 %v3244_v55  ;;  %v3094_v31 = vpop.f32.mrf.mxu1  ;;  %v3173_v19 = vmul.f32 %v5019_v47, %v3168_v4  ;;  %v3259_v51 = vand.u32 2147483648, %v3244_v55  ;;  %vm3253_vm7 = vweird.f32 %v3244_v55  ;;  %v9711_v4 = vld [vmem:[#allocation53_spill] sm:$0xff] }
 0x75a   :  { %5024 = vrcp.f32 %v8312_v56  ;;  %vm3178_vm8 = vweird.f32 %v5019_v47  ;;  %v3257_v33 = vand.u32 2147483647, %v3244_v55  ;;  %vm3192_vm3 = vweird.f32 %v8312_v56 }
 0x75b   :  { %v3174_v37 = vsub.f32 1.0, %v3173_v19  ;;  %v3260_v36 = vor.u32 1.1754944e-38, %v3259_v51  ;;  %vm8338_vm10 = vmor %vm3177_vm0, %vm3178_vm8 }
 0x75c   :  { %vm3258_vm12 = vcmp.eq.f32.partialorder %v3257_v33, 8.507059e+37 }
 0x75d   :  { %v3175_v1 = vmul.f32 %v5019_v47, %v3174_v37  ;;  %v3127_v37 = vadd.f32 %v8303_v0, %v9711_v4 }
 0x75e   :  { %v5021_v11 = vpop.eup %5020 }
 0x75f   :  { %v5023_v12 = vpop.eup %5022  ;;  %v8315_v38 = vadd.f32 1.0, %v5021_v11  ;;  %v3176_v25 = vadd.f32 %v5019_v47, %v3175_v1 }
 0x760   :  { %v3249_v42 = vmul.f32 %v5023_v12, %v3244_v55  ;;  %v8320_v8 = vpop.eup %5024  ;;  %vm3254_vm6 = vweird.f32 %v5023_v12 }
 0x761   :  { %5026 = vrcp.f32 %v8315_v38  ;;  %v8318_v49 = vpop.f32.mrf.mxu1  ;;  %v3188_v40 = vmul.f32 %v8320_v8, %v8312_v56  ;;  %vm8331_vm9 = vmor %vm3253_vm7, %vm3254_vm6  ;;  %v3180_v16 = vsel %vm8338_vm10, %v5019_v47, %v3176_v25  ;;  %vm3193_vm14 = vweird.f32 %v8320_v8 }
 0x762   :  { %v3250_v10 = vsub.f32 1.0, %v3249_v42  ;;  %v3184_v42 = vor.u32 1.1754944e-38, %v3183_v32  ;;  %vm3268_vm15 = vweird.f32 %v8315_v38  ;;  %vm3194_vm4 = vmor %vm3192_vm3, %vm3193_vm14 }
 0x763   :  { %v3189_v29 = vsub.f32 1.0, %v3188_v40 }
 0x764   :  { %v3251_v58 = vmul.f32 %v5023_v12, %v3250_v10  ;;  %v3142_v10 = vadd.f32 %v3126_v2, %v9608_v23 }
 0x765   :  { %v3190_v55 = vmul.f32 %v8320_v8, %v3189_v29  ;;  %v3272_v29 = vand.u32 2147483647, %v8315_v38 }
 0x766   :  { %v3252_v54 = vadd.f32 %v5023_v12, %v3251_v58  ;;  %v9712_v58 = vld [vmem:[#allocation64_spill] sm:$0xff]  ;;  %v4586_v46 = vmul.f32 -1.442695, %v3142_v10 }
 0x767   :  { %v8322_v30 = vpop.eup %5026  ;;  %v3191_v20 = vadd.f32 %v8320_v8, %v3190_v55  ;;  %vm3273_vm5 = vcmp.eq.f32.partialorder %v3272_v29, 8.507059e+37 }
 0x768   :  { %v3264_v45 = vmul.f32 %v8322_v30, %v8315_v38  ;;  %v3256_v22 = vsel %vm8331_vm9, %v5023_v12, %v3252_v54  ;;  %vm3269_vm13 = vweird.f32 %v8322_v30 }
 0x769   :  { %v3100_v63 = vpop.f32.mrf.mxu1  ;;  %v3261_v12 = vsel %vm3258_vm12, %v3260_v36, %v3256_v22  ;;  %vm8360_vm2 = vmor %vm3268_vm15, %vm3269_vm13  ;;  %v3195_v2 = vsel %vm3194_vm4, %v8320_v8, %v3191_v20 }
 0x76a   :  { %v3132_v53 = vadd.f32 %v3100_v63, %v9705_v52  ;;  %v3265_v43 = vsub.f32 1.0, %v3264_v45  ;;  %v9713_v45 = vld [vmem:[#allocation56_spill] sm:$0xff]  ;;  %v3274_v52 = vand.u32 2147483648, %v8315_v38  ;;  %v3388_v0 = vmul.f32 %v3261_v12, %v8058_v44 }
 0x76b   :  { %v3130_v63 = vadd.f32 %v3094_v31, %v9713_v45  ;;  %v3143_v31 = vadd.f32 %v3127_v37, %v9666_v9  ;;  %v3196_v44 = vand.u32 2147483647, %v8312_v56 }
 0x76c   :  { %v3148_v57 = vadd.f32 %v3132_v53, %v6053_v13  ;;  %v3266_v21 = vmul.f32 %v8322_v30, %v3265_v43  ;;  %v3185_v53 = vsel %vm3182_vm11, %v3184_v42, %v3180_v16  ;;  %v3275_v33 = vor.u32 1.1754944e-38, %v3274_v52  ;;  %v9716_v16 = vld [vmem:[#allocation57_spill] sm:$0xff]  ;;  %v9718_v52 = vld [vmem:[#allocation47_spill] sm:$0xff] }
 0x76d   :  { %v3146_v32 = vadd.f32 %v3130_v63, %v9669_v6  ;;  %vm3197_vm6 = vcmp.eq.f32.partialorder %v3196_v44, 8.507059e+37 }
 0x76e   :  { %5028 = vtanh.f32 %v3148_v57  ;;  %v3267_v47 = vadd.f32 %v8322_v30, %v3266_v21  ;;  %v3198_v57 = vand.u32 2147483648, %v8312_v56  ;;  %v4587_v21 = vmul.f32 -1.442695, %v3143_v31 }
 0x76f   :  { %v4590_v11 = vmul.f32 -1.442695, %v3146_v32 }
 0x770   :  { %v3271_v38 = vsel %vm8360_vm2, %v8322_v30, %v3267_v47  ;;  %v3199_v22 = vor.u32 1.1754944e-38, %v3198_v57  ;;  %v3131_v30 = vadd.f32 %v8318_v49, %v9716_v16  ;;  %v9717_v47 = vld [vmem:[#allocation71_spill] sm:$0xff]  ;;  %v9719_v57 = vld [vmem:[#allocation73_spill] sm:$0xff] }
 0x771   :  { %v3103_v19 = vpop.f32.mrf.mxu1  ;;  %v3276_v36 = vsel %vm3273_vm5, %v3275_v33, %v3271_v38  ;;  %v9720_v38 = vld [vmem:[#allocation45_spill] sm:$0xff] }
 0x772   :  { %v3133_v40 = vadd.f32 %v3103_v19, %v9712_v58  ;;  %v3200_v56 = vsel %vm3197_vm6, %v3199_v22, %v3195_v2  ;;  %v3389_v42 = vmul.f32 %v3276_v36, %v8070_v35  ;;  %v3147_v8 = vadd.f32 %v3131_v30, %v9671_v26  ;;  %v9721_v30 = vld [vmem:[#allocation67_spill] sm:$0xff] }
 0x774   :  { %v5029_v1 = vpop.eup %5028  ;;  %v3149_v43 = vadd.f32 %v3133_v40, %v6048_v48  ;;  %v4591_v40 = vmul.f32 -1.442695, %v3147_v8 }
 0x775   :  { %v3392_v54 = vmul.f32 %v5029_v1, %v3185_v53 }
 0x776   :  { %5030 = vtanh.f32 %v3149_v43 }
 0x777   :  { %v8367_v25 = vadd.f32 %v3392_v54, %v3388_v0  ;;  %5032 = vpow2.f32 %v4586_v46 }
 0x778   :  { %5034 = vpow2.f32 %v4587_v21 }
 0x779   :  { %v3106_v5 = vpop.f32.mrf.mxu1  ;;  %5036 = vpow2.f32 %v4590_v11 }
 0x77a   :  { %5038 = vpow2.f32 %v4591_v40 }
 0x77c   :  { %v5031_v55 = vpop.eup %5030 }
 0x77d   :  { %v3393_v19 = vmul.f32 %v5031_v55, %v3200_v56  ;;  %v5033_v37 = vpop.eup %5032 }
 0x77e   :  { %v5035_v12 = vpop.eup %5034  ;;  %v8384_v45 = vadd.f32 1.0, %v5033_v37 }
 0x77f   :  { %v8379_v10 = vadd.f32 %v3393_v19, %v3389_v42  ;;  %v5037_v58 = vpop.eup %5036  ;;  %v8386_v63 = vadd.f32 1.0, %v5035_v12  ;;  %v3134_v42 = vadd.f32 %v3106_v5, %v9721_v30  ;;  %v9722_v19 = vld [vmem:[#allocation76_spill] sm:$0xff] }
 0x780   :  { %v8388_v49 = vadd.f32 1.0, %v5037_v58  ;;  %5040 = vrcp.f32 %v8384_v45  ;;  %v5039_v20 = vpop.eup %5038  ;;  %v9723_v58 = vld [vmem:[#allocation44_spill] sm:$0xff]  ;;  %vm3207_vm7 = vweird.f32 %v8384_v45  ;;  %v3213_v5 = vand.u32 2147483648, %v8384_v45 }
 0x781   :  { %v8382_v4 = vpop.f32.mrf.mxu1  ;;  %5042 = vrcp.f32 %v8386_v63  ;;  %v8401_v51 = vadd.f32 1.0, %v5039_v20  ;;  %vm3222_vm14 = vweird.f32 %v8386_v63 }
 0x782   :  { %5044 = vrcp.f32 %v8388_v49  ;;  %vm3283_vm10 = vweird.f32 %v8388_v49 }
 0x783   :  { %vm3298_vm4 = vweird.f32 %v8401_v51 }
 0x786   :  { %v8395_v0 = vpop.eup %5040 }
 0x787   :  { %v8397_v54 = vpop.eup %5042  ;;  %v3203_v44 = vmul.f32 %v8395_v0, %v8384_v45  ;;  %vm3208_vm8 = vweird.f32 %v8395_v0 }
 0x788   :  { %v8399_v31 = vpop.eup %5044  ;;  %v3218_v46 = vmul.f32 %v8397_v54, %v8386_v63  ;;  %vm3223_vm9 = vweird.f32 %v8397_v54  ;;  %vm8453_vm11 = vmor %vm3207_vm7, %vm3208_vm8 }
 0x789   :  { %v3112_v35 = vpop.f32.mrf.mxu1  ;;  %v3279_v2 = vmul.f32 %v8399_v31, %v8388_v49  ;;  %v3204_v11 = vsub.f32 1.0, %v3203_v44  ;;  %v3226_v44 = vand.u32 2147483647, %v8386_v63  ;;  %vm3284_vm0 = vweird.f32 %v8399_v31  ;;  %vm8476_vm15 = vmor %vm3222_vm14, %vm3223_vm9 }
 0x78a   :  { %v3136_v1 = vadd.f32 %v3112_v35, %v9717_v47  ;;  %v3219_v55 = vsub.f32 1.0, %v3218_v46  ;;  %v3211_v47 = vand.u32 2147483647, %v8384_v45  ;;  %vm8462_vm13 = vmor %vm3283_vm10, %vm3284_vm0 }
 0x78b   :  { %v3280_v56 = vsub.f32 1.0, %v3279_v2  ;;  %v3205_v12 = vmul.f32 %v8395_v0, %v3204_v11  ;;  %vm8480_vm2 = vcmp.eq.f32.partialorder %v3226_v44, 8.507059e+37 }
 0x78c   :  { %v3152_v53 = vadd.f32 %v3136_v1, %v9718_v52  ;;  %v3220_v1 = vmul.f32 %v8397_v54, %v3219_v55  ;;  %vm8457_vm12 = vcmp.eq.f32.partialorder %v3211_v47, 8.507059e+37 }
 0x78d   :  { %v3281_v35 = vmul.f32 %v8399_v31, %v3280_v56  ;;  %v3206_v2 = vadd.f32 %v8395_v0, %v3205_v12  ;;  %v3289_v56 = vand.u32 2147483648, %v8388_v49 }
 0x78e   :  { %v4592_v43 = vmul.f32 -1.442695, %v3152_v53  ;;  %v3221_v11 = vadd.f32 %v8397_v54, %v3220_v1 }
 0x78f   :  { %v3210_v1 = vsel %vm8453_vm11, %v8395_v0, %v3206_v2 }
 0x790   :  { %5046 = vpow2.f32 %v4592_v43  ;;  %v9724_v43 = vld [vmem:[#allocation48_spill] sm:$0xff] }
 0x791   :  { %v3115_v29 = vpop.f32.mrf.mxu1  ;;  %5048 = vrcp.f32 %v8401_v51  ;;  %v3150_v20 = vadd.f32 %v3134_v42, %v9724_v43  ;;  %v9726_v42 = vld [vmem:[#allocation21_spill] sm:$0xff] }
 0x792   :  { %v3137_v32 = vadd.f32 %v3115_v29, %v9719_v57 }
 0x794   :  { %v3153_v33 = vadd.f32 %v3137_v32, %v9720_v38 }
 0x796   :  { %v5047_v21 = vpop.eup %5046  ;;  %v4593_v22 = vmul.f32 -1.442695, %v3153_v33  ;;  %v3228_v33 = vand.u32 2147483648, %v8386_v63 }
 0x797   :  { %v8412_v36 = vadd.f32 1.0, %v5047_v21  ;;  %v8417_v37 = vpop.eup %5048 }
 0x798   :  { %5050 = vpow2.f32 %v4593_v22  ;;  %v3294_v32 = vmul.f32 %v8417_v37, %v8401_v51  ;;  %v3282_v22 = vadd.f32 %v8399_v31, %v3281_v35  ;;  %v3287_v35 = vand.u32 2147483647, %v8388_v49 }
 0x799   :  { %5052 = vrcp.f32 %v8412_v36  ;;  %v3118_v16 = vpop.f32.mrf.mxu1  ;;  %v3229_v0 = vor.u32 1.1754944e-38, %v3228_v33  ;;  %vm3299_vm5 = vweird.f32 %v8417_v37  ;;  %vm3333_vm9 = vweird.f32 %v8412_v36 }
 0x79a   :  { %v3138_v8 = vadd.f32 %v3118_v16, %v9722_v19  ;;  %v9725_v16 = vld [vmem:[#allocation69_spill] sm:$0xff]  ;;  %v3286_v47 = vsel %vm8462_vm13, %v8399_v31, %v3282_v22  ;;  %vm3288_vm3 = vcmp.eq.f32.partialorder %v3287_v35, 8.507059e+37  ;;  %vm8509_vm8 = vmor %vm3298_vm4, %vm3299_vm5 }
 0x79b   :  { %v3135_v30 = vadd.f32 %v8382_v4, %v9725_v16 }
 0x79c   :  { %v3154_v40 = vadd.f32 %v3138_v8, %v9723_v58  ;;  %v3295_v8 = vsub.f32 1.0, %v3294_v32  ;;  %v3290_v32 = vor.u32 1.1754944e-38, %v3289_v56 }
 0x79d   :  { %v3151_v2 = vadd.f32 %v3135_v30, %v5990_v3 }
 0x79e   :  { %v5051_v53 = vpop.eup %5050  ;;  %v4594_v29 = vmul.f32 -1.442695, %v3154_v40  ;;  %v3296_v22 = vmul.f32 %v8417_v37, %v3295_v8  ;;  %v3291_v33 = vsel %vm3288_vm3, %v3290_v32, %v3286_v47 }
 0x79f   :  { %v8428_v57 = vpop.eup %5052  ;;  %v8434_v46 = vadd.f32 1.0, %v5051_v53  ;;  %v3390_v8 = vmul.f32 %v3291_v33, %v8214_v27  ;;  %v3339_v27 = vand.u32 2147483648, %v8412_v36 }
 0x7a0   :  { %5054 = vpow2.f32 %v4594_v29  ;;  %v3329_v21 = vmul.f32 %v8428_v57, %v8412_v36  ;;  %v3297_v40 = vadd.f32 %v8417_v37, %v3296_v22  ;;  %vm3334_vm6 = vweird.f32 %v8428_v57 }
 0x7a1   :  { %5056 = vrcp.f32 %v8434_v46  ;;  %v3121_v55 = vpop.f32.mrf.mxu1  ;;  %v3354_v4 = vand.u32 2147483648, %v8434_v46  ;;  %vm3348_vm0 = vweird.f32 %v8434_v46  ;;  %vm8518_vm10 = vmor %vm3333_vm9, %vm3334_vm6 }
 0x7a2   :  { %5058 = vtanh.f32 %v3150_v20  ;;  %v3139_v19 = vadd.f32 %v3121_v55, %v9726_v42  ;;  %v3330_v53 = vsub.f32 1.0, %v3329_v21  ;;  %v3214_v20 = vor.u32 1.1754944e-38, %v3213_v5 }
 0x7a3   :  { %v3225_v5 = vsel %vm8476_vm15, %v8397_v54, %v3221_v11  ;;  %v3304_v54 = vand.u32 2147483648, %v8401_v51  ;;  %v3302_v42 = vand.u32 2147483647, %v8401_v51  ;;  %v3337_v51 = vand.u32 2147483647, %v8412_v36 }
 0x7a4   :  { %v3155_v45 = vadd.f32 %v3139_v19, %v5931_v7  ;;  %v3215_v55 = vsel %vm8457_vm12, %v3214_v20, %v3210_v1  ;;  %v3331_v30 = vmul.f32 %v8428_v57, %v3330_v53  ;;  %v3230_v11 = vsel %vm8480_vm2, %v3229_v0, %v3225_v5 }
 0x7a5   :  { %v3352_v53 = vand.u32 2147483647, %v8434_v46  ;;  %v3305_v47 = vor.u32 1.1754944e-38, %v3304_v54  ;;  %v3301_v32 = vsel %vm8509_vm8, %v8417_v37, %v3297_v40  ;;  %v3355_v22 = vor.u32 1.1754944e-38, %v3354_v4 }
 0x7a6   :  { %v5055_v63 = vpop.eup %5054  ;;  %v4595_v31 = vmul.f32 -1.442695, %v3155_v45  ;;  %v3332_v1 = vadd.f32 %v8428_v57, %v3331_v30  ;;  %vm3303_vm12 = vcmp.eq.f32.partialorder %v3302_v42, 8.507059e+37  ;;  %vm3338_vm14 = vcmp.eq.f32.partialorder %v3337_v51, 8.507059e+37 }
 0x7a7   :  { %v5057_v21 = vpop.eup %5056  ;;  %v8491_v44 = vadd.f32 1.0, %v5055_v63  ;;  %vm3353_vm13 = vcmp.eq.f32.partialorder %v3352_v53, 8.507059e+37 }
 0x7a8   :  { %v5059_v16 = vpop.eup %5058  ;;  %5060 = vpow2.f32 %v4595_v31  ;;  %v3344_v56 = vmul.f32 %v5057_v21, %v8434_v46  ;;  %vm3349_vm7 = vweird.f32 %v5057_v21  ;;  %v3336_v36 = vsel %vm8518_vm10, %v8428_v57, %v3332_v1 }
 0x7a9   :  { %5062 = vrcp.f32 %v8491_v44  ;;  %v3394_v12 = vmul.f32 %v5059_v16, %v3215_v55  ;;  %vm3350_vm11 = vmor %vm3348_vm0, %vm3349_vm7  ;;  %v3340_v55 = vor.u32 1.1754944e-38, %v3339_v27  ;;  %v3306_v16 = vsel %vm3303_vm12, %v3305_v47, %v3301_v32 }
 0x7aa   :  { %5064 = vtanh.f32 %v3151_v2  ;;  %v3345_v19 = vsub.f32 1.0, %v3344_v56  ;;  %v3369_v54 = vand.u32 2147483648, %v8491_v44  ;;  %vm3363_vm2 = vweird.f32 %v8491_v44 }
 0x7ab   :  { %5066 = vtanh.f32 %v8379_v10  ;;  %v8523_v63 = vadd.f32 %v3394_v12, %v3390_v8  ;;  %v3367_v8 = vand.u32 2147483647, %v8491_v44  ;;  %v3391_v12 = vmul.f32 %v3306_v16, %v8234_v17 }
 0x7ac   :  { %v3346_v35 = vmul.f32 %v5057_v21, %v3345_v19  ;;  %5068 = vtanh.f32 %v8367_v25  ;;  %v3370_v1 = vor.u32 1.1754944e-38, %v3369_v54 }
 0x7ad   :  { %vm3368_vm4 = vcmp.eq.f32.partialorder %v3367_v8, 8.507059e+37 }
 0x7ae   :  { %v5061_v20 = vpop.eup %5060  ;;  %v3347_v49 = vadd.f32 %v5057_v21, %v3346_v35 }
 0x7af   :  { %v5063_v0 = vpop.eup %5062  ;;  %v3327_v2 = vadd.f32 1.0, %v5061_v20 }
 0x7b0   :  { %v5065_v5 = vpop.eup %5064  ;;  %v3359_v46 = vmul.f32 %v5063_v0, %v8491_v44  ;;  %v3351_v31 = vsel %vm3350_vm11, %v5057_v21, %v3347_v49  ;;  %v3341_v21 = vsel %vm3338_vm14, %v3340_v55, %v3336_v36  ;;  %vm3364_vm15 = vweird.f32 %v5063_v0 }
 0x7b1   :  { %5070 = vrcp.f32 %v3327_v2  ;;  %v3356_v33 = vsel %vm3353_vm13, %v3355_v22, %v3351_v31  ;;  %v5067_v56 = vpop.eup %5066  ;;  %v3395_v30 = vmul.f32 %v5065_v5, %v3230_v11  ;;  %vm3365_vm3 = vmor %vm3363_vm2, %vm3364_vm15  ;;  %v3382_v29 = vand.u32 2147483647, %v3327_v2 }
 0x7b2   :  { %v3360_v37 = vsub.f32 1.0, %v3359_v46  ;;  %5072 = vtanh.f32 %v8523_v63  ;;  %v8537_v57 = vmul.f32 %v5067_v56, %v3356_v33  ;;  %v5069_v42 = vpop.eup %5068  ;;  %v3384_v51 = vand.u32 2147483648, %v3327_v2 }
 0x7b3   :  { %v8541_v35 = vmul.f32 %v5069_v42, %v3341_v21  ;;  %v8543_v4 = vadd.f32 %v3395_v30, %v3391_v12  ;;  %vm3378_vm6 = vweird.f32 %v3327_v2  ;;  %vm3383_vm8 = vcmp.eq.f32.partialorder %v3382_v29, 8.507059e+37  ;;  %v8568_v12 = vld [vmem:[%s9242_s3 + $0x8] sm:$0xff] }
 0x7b4   :  { %v3361_v19 = vmul.f32 %v5063_v0, %v3360_v37  ;;  %v3409_v27 = vmul.f32 %v8537_v57, %v6237_v28  ;;  %v3385_v22 = vor.u32 1.1754944e-38, %v3384_v51  ;;  %v8589_v51 = vld [vmem:[%s9242_s3 + $0x20] sm:$0xff]  ;;  %vm3440_vm11 = vcmp.gt.s32.totalorder %v8262_v62, 5 }
 0x7b5   :  { %v3408_v44 = vmul.f32 %v8541_v35, %v6241_v59  ;;  %5074 = vtanh.f32 %v8543_v4 }
 0x7b6   :  { %v3362_v40 = vadd.f32 %v5063_v0, %v3361_v19 }
 0x7b7   :  { %v5071_v11 = vpop.eup %5070  ;;  %v3412_v5 = vadd.f32 %v3409_v27, %v3408_v44 }
 0x7b8   :  { %v3374_v45 = vmul.f32 %v5071_v11, %v3327_v2  ;;  %v3366_v53 = vsel %vm3365_vm3, %v5063_v0, %v3362_v40  ;;  %v5073_v20 = vpop.eup %5072  ;;  %vm3379_vm5 = vweird.f32 %v5071_v11  ;;  %v8561_v2 = vld [vmem:[%s9242_s3] sm:$0xff] }
 0x7b9   :  { %v3371_v47 = vsel %vm3368_vm4, %v3370_v1, %v3366_v53  ;;  %vm3380_vm7 = vmor %vm3378_vm6, %vm3379_vm5  ;;  %v8582_v53 = vld [vmem:[%s9242_s3 + $0x18] sm:$0xff] }
 0x7ba   :  { %v3375_v49 = vsub.f32 1.0, %v3374_v45  ;;  %v8547_v17 = vmul.f32 %v5073_v20, %v3371_v47 }
 0x7bb   :  { %v5075_v55 = vpop.eup %5074 }
 0x7bc   :  { %v3376_v32 = vmul.f32 %v5071_v11, %v3375_v49  ;;  %v3410_v0 = vmul.f32 %v8547_v17, %v6247_v39 }
 0x7be   :  { %v3377_v46 = vadd.f32 %v5071_v11, %v3376_v32  ;;  %v3413_v31 = vadd.f32 %v3412_v5, %v3410_v0 }
 0x7c0   :  { %v3381_v36 = vsel %vm3380_vm7, %v5071_v11, %v3377_v46  ;;  %v8575_v11 = vld [vmem:[%s9242_s3 + $0x10] sm:$0xff] }
 0x7c1   :  { %v3386_v16 = vsel %vm3383_vm8, %v3385_v22, %v3381_v36 }
 0x7c2   :  { %v3407_v37 = vmul.f32 %v5075_v55, %v3386_v16  ;;  %v8598_v16 = vld [vmem:[%s9242_s3 + $0x28] sm:$0xff] }
 0x7c4   :  { %v3411_v33 = vmul.f32 %v3407_v37, %v6254_v34  ;;  %3481 = vmatpush.msrb.mxu2 %v3407_v37 }
 0x7c6   :  { %3482 = vmatpush.msrb.mxu2 %v8547_v17  ;;  %v3414_v56 = vadd.f32 %v3413_v31, %v3411_v33 }
 0x7c8   :  { %3483 = vmatpush.msrb.mxu2 %v8537_v57  ;;  %v3415_v30 = vrot.slane %v3414_v56, 4 }
 0x7ca   :  { %v3416_v54 = vadd.f32 %v3415_v30, %v3414_v56  ;;  %3484 = vmatpush.msrb.mxu2 %v8541_v35 }
 0x7cb   :  { %4597 = vmatmul.msk.f32.vlgmr.msrb.gmra.mxu2 %vm960_vm1, %v8561_v2 }
 0x7cc   :  { %v3417_v21 = vrot.slane %v3416_v54, 2 }
 0x7ce   :  { %v3418_v19 = vadd.f32 %v3417_v21, %v3416_v54  ;;  %v8619_v54 = vld [vmem:[%s9242_s3 + $0x30] sm:$0xff]  ;;  %v8668_v21 = vld [vmem:[%s9242_s3 + $0x68] sm:$0xff] }
 0x7cf   :  { %9746 = vst [vmem:[#allocation95_spill] sm:$0xff] %v8668_v21 }
 0x7d0   :  { %v3419_v8 = vrot.slane %v3418_v19, 1 }
 0x7d2   :  { %v3420_v42 = vadd.f32 %v3419_v8, %v3418_v19  ;;  %v8675_v19 = vld [vmem:[%s9242_s3 + $0x70] sm:$0xff]  ;;  %v8682_v8 = vld [vmem:[%s9242_s3 + $0x78] sm:$0xff] }
 0x7d3   :  { %4598 = vmatmul.msk.f32.gmra.mxu2 %vm960_vm1, %v8568_v12  ;;  %9747 = vst [vmem:[#allocation23_spill] sm:$0xff] %v8675_v19 }
 0x7d4   :  { %v4596_v40 = vmul.f32 -1.442695, %v3420_v42  ;;  %9748 = vst [vmem:[#allocation77_spill] sm:$0xff] %v8682_v8 }
 0x7d6   :  { %5076 = vpow2.f32 %v4596_v40 }
 0x7db   :  { %4599 = vmatmul.msk.f32.gmra.mxu2 %vm960_vm1, %v8575_v11 }
 0x7dc   :  { %v5077_v1 = vpop.eup %5076 }
 0x7dd   :  { %v3424_v45 = vadd.f32 1.0, %v5077_v1 }
 0x7df   :  { %5078 = vrcp.f32 %v3424_v45  ;;  %v3436_v49 = vand.u32 2147483648, %v3424_v45  ;;  %v3434_v29 = vand.u32 2147483647, %v3424_v45  ;;  %vm3430_vm0 = vweird.f32 %v3424_v45 }
 0x7e1   :  { %v3437_v0 = vor.u32 1.1754944e-38, %v3436_v49  ;;  %vm3435_vm12 = vcmp.eq.f32.partialorder %v3434_v29, 8.507059e+37 }
 0x7e3   :  { %4600 = vmatmul.msk.f32.gmra.mxu2 %vm960_vm1, %v8582_v53 }
 0x7e5   :  { %v5079_v27 = vpop.eup %5078 }
 0x7e6   :  { %v3426_v20 = vmul.f32 %v5079_v27, %v3424_v45  ;;  %vm3431_vm9 = vweird.f32 %v5079_v27  ;;  %v9749_v45 = vld [vmem:[#allocation46_spill] sm:$0xff] }
 0x7e7   :  { %vm3432_vm10 = vmor %vm3430_vm0, %vm3431_vm9 }
 0x7e8   :  { %v3427_v47 = vsub.f32 1.0, %v3426_v20 }
 0x7ea   :  { %v3428_v44 = vmul.f32 %v5079_v27, %v3427_v47 }
 0x7eb   :  { %4601 = vmatmul.msk.f32.gmra.mxu2 %vm960_vm1, %v8589_v51 }
 0x7ec   :  { %v3429_v32 = vadd.f32 %v5079_v27, %v3428_v44  ;;  %v9750_v44 = vld [vmem:[#allocation49_spill] sm:$0xff] }
 0x7ee   :  { %v3433_v5 = vsel %vm3432_vm10, %v5079_v27, %v3429_v32 }
 0x7ef   :  { %v3438_v46 = vsel %vm3435_vm12, %v3437_v0, %v3433_v5  ;;  %v9751_v5 = vld [vmem:[#allocation42_spill] sm:$0xff] }
 0x7f0   :  { %v3441_v31 = vsel %vm3440_vm11, %v3438_v46, 0.0 }
 0x7f1   :  { %v3443_v22 = vperm.slane %v3441_v31, 0 }
 0x7f3   :  { %v3445_v36 = vmul.f32 %v3443_v22, %v8541_v35  ;;  %v3448_v55 = vmul.f32 %v3443_v22, %v3407_v37  ;;  %4602 = vmatmul.msk.f32.gmra.mxu2 %vm960_vm1, %v8598_v16  ;;  %v3446_v33 = vmul.f32 %v3443_v22, %v8537_v57  ;;  %v3447_v62 = vmul.f32 %v3443_v22, %v8547_v17  ;;  %v8654_v57 = vld [vmem:[%s9242_s3 + $0x58] sm:$0xff]  ;;  %v8661_v17 = vld [vmem:[%s9242_s3 + $0x60] sm:$0xff] }
 0x7f4   :  { %9744 = vst [vmem:[#allocation29_spill] sm:$0xff] %v8654_v57 }
 0x7f5   :  { %v8605_v56 = vadd.f32 %v3445_v36, %v8271_v50  ;;  %v8608_v30 = vadd.f32 %v3446_v33, %v8274_v61  ;;  %v8611_v35 = vadd.f32 %v3447_v62, %v8277_v24  ;;  %v8614_v37 = vadd.f32 %v3448_v55, %v8280_v41  ;;  %v8626_v50 = vld [vmem:[%s9242_s3 + $0x38] sm:$0xff]  ;;  %v8633_v61 = vld [vmem:[%s9242_s3 + $0x40] sm:$0xff]  ;;  %v8640_v24 = vld [vmem:[%s9242_s3 + $0x48] sm:$0xff]  ;;  %9745 = vst [vmem:[#allocation93_spill] sm:$0xff] %v8661_v17 }
 0x7f6   :  { %9741 = vst [vmem:[#allocation91_spill] sm:$0xff] %v8633_v61  ;;  %v8647_v41 = vld [vmem:[%s9242_s3 + $0x50] sm:$0xff]  ;;  %v9752_v62 = vld [vmem:[#allocation43_spill] sm:$0xff] }
 0x7f7   :  { %9742 = vst [vmem:[#allocation92_spill] sm:$0xff] %v8640_v24 }
 0x7f8   :  { %9743 = vst [vmem:[#allocation94_spill] sm:$0xff] %v8647_v41 }
 0x7fb   :  { %4603 = vmatmul.msk.f32.gmra.mxu2 %vm960_vm1, %v8619_v54 }
 0x803   :  { %4604 = vmatmul.msk.f32.gmra.mxu2 %vm960_vm1, %v8626_v50 }
 0x80b   :  { %4605 = vmatmul.msk.f32.gmra.mxu2 %vm960_vm1, %v8633_v61 }
 0x813   :  { %4606 = vmatmul.msk.f32.gmra.mxu2 %vm960_vm1, %v8640_v24 }
 0x81b   :  { %4607 = vmatmul.msk.f32.gmra.mxu2 %vm960_vm1, %v8647_v41  ;;  %v9754_v41 = vld [vmem:[#allocation41_spill] sm:$0xff] }
 0x823   :  { %4608 = vmatmul.msk.f32.gmra.mxu2 %vm960_vm1, %v8654_v57 }
 0x82b   :  { %4609 = vmatmul.msk.f32.gmra.mxu2 %vm960_vm1, %v8661_v17 }
 0x833   :  { %4610 = vmatmul.msk.f32.gmra.mxu2 %vm960_vm1, %v8668_v21 }
 0x83b   :  { %4611 = vmatmul.msk.f32.gmra.mxu2 %vm960_vm1, %v8675_v19 }
 0x843   :  { %4612 = vmatmul.msk.f32.gmra.mxu2 %vm960_vm1, %v8682_v8 }
 0x84e   :  { %v3486_v42 = vpop.f32.mrf.mxu2 }
 0x84f   :  { %v3534_v27 = vadd.f32 %v3486_v42, %v9749_v45 }
 0x851   :  { %v3550_v47 = vadd.f32 %v3534_v27, %v9698_v18 }
 0x853   :  { %v4613_v49 = vmul.f32 -1.442695, %v3550_v47 }
 0x855   :  { %5080 = vpow2.f32 %v4613_v49 }
 0x856   :  { %v3489_v40 = vpop.f32.mrf.mxu2 }
 0x857   :  { %v3535_v29 = vadd.f32 %v3489_v40, %v9750_v44 }
 0x859   :  { %v3551_v0 = vadd.f32 %v3535_v29, %v9700_v14 }
 0x85b   :  { %v4614_v22 = vmul.f32 -1.442695, %v3551_v0  ;;  %v5081_v55 = vpop.eup %5080 }
 0x85c   :  { %v3578_v45 = vadd.f32 1.0, %v5081_v55 }
 0x85e   :  { %v3492_v1 = vpop.f32.mrf.mxu2  ;;  %v3591_v8 = vand.u32 2147483647, %v3578_v45  ;;  %v3593_v17 = vand.u32 2147483648, %v3578_v45  ;;  %vm3587_vm3 = vweird.f32 %v3578_v45 }
 0x85f   :  { %v3536_v24 = vadd.f32 %v3492_v1, %v9754_v41 }
 0x860   :  { %vm3592_vm5 = vcmp.eq.f32.partialorder %v3591_v8, 8.507059e+37  ;;  %v3594_v1 = vor.u32 1.1754944e-38, %v3593_v17 }
 0x866   :  { %v8687_v20 = vpop.f32.mrf.mxu2 }
 0x86e   :  { %v3498_v32 = vpop.f32.mrf.mxu2 }
 0x86f   :  { %v3538_v46 = vadd.f32 %v3498_v32, %v9751_v5 }
 0x871   :  { %v3554_v31 = vadd.f32 %v3538_v46, %v9702_v60  ;;  %v9753_v60 = vld [vmem:[#allocation60_spill] sm:$0xff] }
 0x873   :  { %v4617_v36 = vmul.f32 -1.442695, %v3554_v31 }
 0x875   :  { %5082 = vpow2.f32 %v4617_v36 }
 0x876   :  { %v3501_v33 = vpop.f32.mrf.mxu2  ;;  %5084 = vpow2.f32 %v4614_v22 }
 0x877   :  { %v3539_v42 = vadd.f32 %v3501_v33, %v9752_v62  ;;  %5086 = vrcp.f32 %v3578_v45 }
 0x879   :  { %v3555_v27 = vadd.f32 %v3539_v42, %v9704_v15 }
 0x87b   :  { %v5083_v40 = vpop.eup %5082  ;;  %v4618_v47 = vmul.f32 -1.442695, %v3555_v27 }
 0x87c   :  { %v3654_v49 = vadd.f32 1.0, %v5083_v40  ;;  %v5085_v44 = vpop.eup %5084 }
 0x87d   :  { %5088 = vpow2.f32 %v4618_v47  ;;  %v8696_v32 = vadd.f32 1.0, %v5085_v44  ;;  %v5087_v0 = vpop.eup %5086 }
 0x87e   :  { %5090 = vrcp.f32 %v3654_v49  ;;  %v3504_v29 = vpop.f32.mrf.mxu2  ;;  %v3583_v36 = vmul.f32 %v5087_v0, %v3578_v45  ;;  %v3669_v21 = vand.u32 2147483648, %v3654_v49  ;;  %vm3663_vm14 = vweird.f32 %v3654_v49  ;;  %v9759_v45 = vld [vmem:[#allocation38_spill] sm:$0xff] }
 0x87f   :  { %5092 = vrcp.f32 %v8696_v32  ;;  %vm3588_vm15 = vweird.f32 %v5087_v0  ;;  %v3667_v57 = vand.u32 2147483647, %v3654_v49  ;;  %v3537_v61 = vadd.f32 %v8687_v20, %v9759_v45 }
 0x880   :  { %v3584_v42 = vsub.f32 1.0, %v3583_v36  ;;  %vm8722_vm4 = vmor %vm3587_vm3, %vm3588_vm15  ;;  %vm3602_vm10 = vweird.f32 %v8696_v32 }
 0x881   :  { %vm3668_vm6 = vcmp.eq.f32.partialorder %v3667_v57, 8.507059e+37 }
 0x882   :  { %v3585_v15 = vmul.f32 %v5087_v0, %v3584_v42 }
 0x883   :  { %v5089_v5 = vpop.eup %5088 }
 0x884   :  { %v5091_v46 = vpop.eup %5090  ;;  %v8699_v31 = vadd.f32 1.0, %v5089_v5 }
 0x885   :  { %v3659_v22 = vmul.f32 %v5091_v46, %v3654_v49  ;;  %v8704_v62 = vpop.eup %5092  ;;  %vm3664_vm13 = vweird.f32 %v5091_v46 }
 0x886   :  { %5094 = vrcp.f32 %v8699_v31  ;;  %v8702_v55 = vpop.f32.mrf.mxu2  ;;  %v3598_v47 = vmul.f32 %v8704_v62, %v8696_v32  ;;  %vm8715_vm2 = vmor %vm3663_vm14, %vm3664_vm13  ;;  %vm3603_vm8 = vweird.f32 %v8704_v62  ;;  %v3684_v57 = vand.u32 2147483648, %v8699_v31 }
 0x887   :  { %v3660_v33 = vsub.f32 1.0, %v3659_v22  ;;  %vm3678_vm9 = vweird.f32 %v8699_v31  ;;  %vm3604_vm11 = vmor %vm3602_vm10, %vm3603_vm8 }
 0x888   :  { %v3599_v19 = vsub.f32 1.0, %v3598_v47 }
 0x889   :  { %v3661_v40 = vmul.f32 %v5091_v46, %v3660_v33  ;;  %v3586_v33 = vadd.f32 %v5087_v0, %v3585_v15 }
 0x88a   :  { %v3600_v15 = vmul.f32 %v8704_v62, %v3599_v19 }
 0x88b   :  { %v3662_v22 = vadd.f32 %v5091_v46, %v3661_v40  ;;  %v3670_v40 = vor.u32 1.1754944e-38, %v3669_v21  ;;  %v3590_v41 = vsel %vm8722_vm4, %v5087_v0, %v3586_v33  ;;  %v9760_v21 = vld [vmem:[#allocation59_spill] sm:$0xff] }
 0x88c   :  { %v8706_v27 = vpop.eup %5094  ;;  %v3595_v17 = vsel %vm3592_vm5, %v3594_v1, %v3590_v41  ;;  %v3601_v0 = vadd.f32 %v8704_v62, %v3600_v15 }
 0x88d   :  { %v3674_v44 = vmul.f32 %v8706_v27, %v8699_v31  ;;  %v3666_v42 = vsel %vm8715_vm2, %v5091_v46, %v3662_v22  ;;  %vm3679_vm7 = vweird.f32 %v8706_v27 }
 0x88e   :  { %v3510_v5 = vpop.f32.mrf.mxu2  ;;  %v3671_v46 = vsel %vm3668_vm6, %v3670_v40, %v3666_v42  ;;  %vm8744_vm0 = vmor %vm3678_vm9, %vm3679_vm7  ;;  %v3605_v41 = vsel %vm3604_vm11, %v8704_v62, %v3601_v0 }
 0x88f   :  { %v3542_v14 = vadd.f32 %v3510_v5, %v9753_v60  ;;  %v3675_v18 = vsub.f32 1.0, %v3674_v44  ;;  %v9761_v44 = vld [vmem:[#allocation82_spill] sm:$0xff]  ;;  %v3798_v20 = vmul.f32 %v3671_v46, %v8367_v25  ;;  %v3606_v25 = vand.u32 2147483647, %v8696_v32 }
 0x890   :  { %v3540_v5 = vadd.f32 %v3504_v29, %v9761_v44  ;;  %v3553_v29 = vadd.f32 %v3537_v61, %v9666_v9 }
 0x891   :  { %v3558_v36 = vadd.f32 %v3542_v14, %v6053_v13  ;;  %v3676_v60 = vmul.f32 %v8706_v27, %v3675_v18  ;;  %v3552_v18 = vadd.f32 %v3536_v24, %v9608_v23  ;;  %v3685_v14 = vor.u32 1.1754944e-38, %v3684_v57 }
 0x892   :  { %v3556_v42 = vadd.f32 %v3540_v5, %v9669_v6  ;;  %vm3607_vm13 = vcmp.eq.f32.partialorder %v3606_v25, 8.507059e+37 }
 0x893   :  { %5096 = vtanh.f32 %v3558_v36  ;;  %v3677_v19 = vadd.f32 %v8706_v27, %v3676_v60  ;;  %v3682_v36 = vand.u32 2147483647, %v8699_v31  ;;  %v3608_v60 = vand.u32 2147483648, %v8696_v32 }
 0x894   :  { %v4615_v15 = vmul.f32 -1.442695, %v3552_v18  ;;  %v4619_v46 = vmul.f32 -1.442695, %v3556_v42 }
 0x895   :  { %v3681_v31 = vsel %vm8744_vm0, %v8706_v27, %v3677_v19  ;;  %vm3683_vm12 = vcmp.eq.f32.partialorder %v3682_v36, 8.507059e+37  ;;  %v3609_v45 = vor.u32 1.1754944e-38, %v3608_v60 }
 0x896   :  { %v3513_v49 = vpop.f32.mrf.mxu2  ;;  %v3686_v61 = vsel %vm3683_vm12, %v3685_v14, %v3681_v31 }
 0x897   :  { %v3543_v47 = vadd.f32 %v3513_v49, %v9760_v21  ;;  %v4616_v49 = vmul.f32 -1.442695, %v3553_v29  ;;  %v3610_v32 = vsel %vm3607_vm13, %v3609_v45, %v3605_v41  ;;  %v3799_v44 = vmul.f32 %v3686_v61, %v8379_v10  ;;  %v9766_v41 = vld [vmem:[#allocation86_spill] sm:$0xff] }
 0x899   :  { %v5097_v8 = vpop.eup %5096  ;;  %v3559_v24 = vadd.f32 %v3543_v47, %v6048_v48  ;;  %v9764_v47 = vld [vmem:[#allocation83_spill] sm:$0xff] }
 0x89a   :  { %v3802_v22 = vmul.f32 %v5097_v8, %v3595_v17  ;;  %v3541_v27 = vadd.f32 %v8702_v55, %v9764_v47 }
 0x89b   :  { %5098 = vtanh.f32 %v3559_v24 }
 0x89c   :  { %v8751_v40 = vadd.f32 %v3802_v22, %v3798_v20  ;;  %5100 = vpow2.f32 %v4615_v15  ;;  %v3557_v62 = vadd.f32 %v3541_v27, %v9671_v26  ;;  %v9765_v22 = vld [vmem:[#allocation85_spill] sm:$0xff] }
 0x89d   :  { %5102 = vpow2.f32 %v4616_v49 }
 0x89e   :  { %v3516_v1 = vpop.f32.mrf.mxu2  ;;  %5104 = vpow2.f32 %v4619_v46  ;;  %v4620_v24 = vmul.f32 -1.442695, %v3557_v62 }
 0x8a0   :  { %5106 = vpow2.f32 %v4620_v24  ;;  %v9768_v24 = vld [vmem:[#allocation75_spill] sm:$0xff] }
 0x8a1   :  { %v5099_v21 = vpop.eup %5098 }
 0x8a2   :  { %v3803_v5 = vmul.f32 %v5099_v21, %v3610_v32  ;;  %v5101_v8 = vpop.eup %5100 }
 0x8a3   :  { %v5103_v57 = vpop.eup %5102  ;;  %v8768_v0 = vadd.f32 1.0, %v5101_v8 }
 0x8a4   :  { %v8763_v18 = vadd.f32 %v3803_v5, %v3799_v44  ;;  %v5105_v17 = vpop.eup %5104  ;;  %v8770_v20 = vadd.f32 1.0, %v5103_v57  ;;  %v9767_v57 = vld [vmem:[#allocation65_spill] sm:$0xff] }
 0x8a5   :  { %v8772_v55 = vadd.f32 1.0, %v5105_v17  ;;  %5108 = vrcp.f32 %v8768_v0  ;;  %v3544_v17 = vadd.f32 %v3516_v1, %v9767_v57  ;;  %vm3617_vm14 = vweird.f32 %v8768_v0 }
 0x8a6   :  { %v8766_v19 = vpop.f32.mrf.mxu2  ;;  %5110 = vrcp.f32 %v8770_v20  ;;  %v5107_v60 = vpop.eup %5106  ;;  %v3623_v1 = vand.u32 2147483648, %v8768_v0  ;;  %vm3632_vm8 = vweird.f32 %v8770_v20 }
 0x8a7   :  { %5112 = vrcp.f32 %v8772_v55  ;;  %v8785_v15 = vadd.f32 1.0, %v5107_v60  ;;  %v3621_v60 = vand.u32 2147483647, %v8768_v0  ;;  %vm3693_vm4 = vweird.f32 %v8772_v55 }
 0x8a9   :  { %vm8841_vm6 = vcmp.eq.f32.partialorder %v3621_v60, 8.507059e+37  ;;  %vm3708_vm11 = vweird.f32 %v8785_v15 }
 0x8ab   :  { %v8779_v42 = vpop.eup %5108 }
 0x8ac   :  { %v8781_v25 = vpop.eup %5110  ;;  %v3613_v45 = vmul.f32 %v8779_v42, %v8768_v0  ;;  %vm3618_vm15 = vweird.f32 %v8779_v42 }
 0x8ad   :  { %v8783_v14 = vpop.eup %5112  ;;  %v3628_v46 = vmul.f32 %v8781_v25, %v8770_v20  ;;  %vm3633_vm2 = vweird.f32 %v8781_v25  ;;  %vm8837_vm5 = vmor %vm3617_vm14, %vm3618_vm15 }
 0x8ae   :  { %v3522_v10 = vpop.f32.mrf.mxu2  ;;  %v3689_v21 = vmul.f32 %v8783_v14, %v8772_v55  ;;  %v3614_v44 = vsub.f32 1.0, %v3613_v45  ;;  %vm3694_vm3 = vweird.f32 %v8783_v14  ;;  %vm8860_vm9 = vmor %vm3632_vm8, %vm3633_vm2 }
 0x8af   :  { %v3546_v36 = vadd.f32 %v3522_v10, %v9765_v22  ;;  %v3629_v5 = vsub.f32 1.0, %v3628_v46  ;;  %vm8846_vm7 = vmor %vm3693_vm4, %vm3694_vm3 }
 0x8b0   :  { %v3690_v62 = vsub.f32 1.0, %v3689_v21  ;;  %v3636_v21 = vand.u32 2147483647, %v8770_v20 }
 0x8b1   :  { %v3562_v29 = vadd.f32 %v3546_v36, %v9718_v52  ;;  %v3615_v36 = vmul.f32 %v8779_v42, %v3614_v44 }
 0x8b2   :  { %vm8864_vm0 = vcmp.eq.f32.partialorder %v3636_v21, 8.507059e+37 }
 0x8b3   :  { %v4621_v33 = vmul.f32 -1.442695, %v3562_v29  ;;  %v3616_v44 = vadd.f32 %v8779_v42, %v3615_v36  ;;  %v9770_v36 = vld [vmem:[#allocation89_spill] sm:$0xff] }
 0x8b5   :  { %5114 = vpow2.f32 %v4621_v33  ;;  %v3691_v33 = vmul.f32 %v8783_v14, %v3690_v62 }
 0x8b6   :  { %v3525_v31 = vpop.f32.mrf.mxu2  ;;  %5116 = vrcp.f32 %v8785_v15 }
 0x8b7   :  { %v3547_v49 = vadd.f32 %v3525_v31, %v9766_v41  ;;  %v3630_v31 = vmul.f32 %v8781_v25, %v3629_v5  ;;  %v3692_v62 = vadd.f32 %v8783_v14, %v3691_v33 }
 0x8b9   :  { %v3563_v61 = vadd.f32 %v3547_v49, %v9720_v38  ;;  %v3560_v49 = vadd.f32 %v3544_v17, %v9724_v43  ;;  %v3699_v17 = vand.u32 2147483648, %v8772_v55  ;;  %v3696_v60 = vsel %vm8846_vm7, %v8783_v14, %v3692_v62 }
 0x8bb   :  { %v5115_v32 = vpop.eup %5114  ;;  %v4622_v47 = vmul.f32 -1.442695, %v3563_v61 }
 0x8bc   :  { %v8796_v27 = vadd.f32 1.0, %v5115_v32  ;;  %v8801_v22 = vpop.eup %5116  ;;  %v3638_v32 = vand.u32 2147483648, %v8770_v20 }
 0x8bd   :  { %5118 = vpow2.f32 %v4622_v47  ;;  %v3704_v46 = vmul.f32 %v8801_v22, %v8785_v15  ;;  %vm3709_vm12 = vweird.f32 %v8801_v22 }
 0x8be   :  { %5120 = vrcp.f32 %v8796_v27  ;;  %v3528_v8 = vpop.f32.mrf.mxu2  ;;  %vm8893_vm15 = vmor %vm3708_vm11, %vm3709_vm12  ;;  %vm3743_vm2 = vweird.f32 %v8796_v27 }
 0x8bf   :  { %v3548_v10 = vadd.f32 %v3528_v8, %v9768_v24  ;;  %v3631_v8 = vadd.f32 %v8781_v25, %v3630_v31  ;;  %v9769_v24 = vld [vmem:[#allocation84_spill] sm:$0xff] }
 0x8c1   :  { %v3564_v29 = vadd.f32 %v3548_v10, %v9723_v58  ;;  %v3545_v10 = vadd.f32 %v8766_v19, %v9769_v24 }
 0x8c3   :  { %v5119_v41 = vpop.eup %5118  ;;  %v4623_v45 = vmul.f32 -1.442695, %v3564_v29 }
 0x8c4   :  { %v8812_v61 = vpop.eup %5120  ;;  %v8818_v47 = vadd.f32 1.0, %v5119_v41  ;;  %v3705_v41 = vsub.f32 1.0, %v3704_v46 }
 0x8c5   :  { %5122 = vpow2.f32 %v4623_v45  ;;  %v3739_v5 = vmul.f32 %v8812_v61, %v8796_v27  ;;  %v3620_v45 = vsel %vm8837_vm5, %v8779_v42, %v3616_v44  ;;  %v3639_v42 = vor.u32 1.1754944e-38, %v3638_v32 }
 0x8c6   :  { %5124 = vrcp.f32 %v8818_v47  ;;  %v3531_v57 = vpop.f32.mrf.mxu2  ;;  %v3700_v44 = vor.u32 1.1754944e-38, %v3699_v17  ;;  %vm3744_vm13 = vweird.f32 %v8812_v61  ;;  %vm3758_vm3 = vweird.f32 %v8818_v47 }
 0x8c7   :  { %5126 = vtanh.f32 %v3560_v49  ;;  %v3549_v29 = vadd.f32 %v3531_v57, %v9770_v36  ;;  %v3697_v49 = vand.u32 2147483647, %v8772_v55  ;;  %v3740_v46 = vsub.f32 1.0, %v3739_v5  ;;  %vm8902_vm4 = vmor %vm3743_vm2, %vm3744_vm13 }
 0x8c8   :  { %v3624_v57 = vor.u32 1.1754944e-38, %v3623_v1  ;;  %v3561_v5 = vadd.f32 %v3545_v10, %v5990_v3  ;;  %v3635_v1 = vsel %vm8860_vm9, %v8781_v25, %v3631_v8  ;;  %v3706_v36 = vmul.f32 %v8801_v22, %v3705_v41 }
 0x8c9   :  { %v3565_v0 = vadd.f32 %v3549_v29, %v5931_v7  ;;  %vm3698_vm10 = vcmp.eq.f32.partialorder %v3697_v49, 8.507059e+37  ;;  %v3741_v10 = vmul.f32 %v8812_v61, %v3740_v46  ;;  %v3714_v25 = vand.u32 2147483648, %v8785_v15 }
 0x8ca   :  { %v3625_v29 = vsel %vm8841_vm6, %v3624_v57, %v3620_v45  ;;  %v3701_v32 = vsel %vm3698_vm10, %v3700_v44, %v3696_v60  ;;  %v3640_v8 = vsel %vm8864_vm0, %v3639_v42, %v3635_v1  ;;  %v3712_v41 = vand.u32 2147483647, %v8785_v15 }
 0x8cb   :  { %v5123_v20 = vpop.eup %5122  ;;  %v4624_v14 = vmul.f32 -1.442695, %v3565_v0  ;;  %v3800_v49 = vmul.f32 %v3701_v32, %v8523_v63  ;;  %v3707_v45 = vadd.f32 %v8801_v22, %v3706_v36  ;;  %v3764_v46 = vand.u32 2147483648, %v8818_v47 }
 0x8cc   :  { %v5125_v62 = vpop.eup %5124  ;;  %v8875_v21 = vadd.f32 1.0, %v5123_v20  ;;  %v3742_v57 = vadd.f32 %v8812_v61, %v3741_v10  ;;  %v3762_v55 = vand.u32 2147483647, %v8818_v47  ;;  %v3749_v63 = vand.u32 2147483648, %v8796_v27 }
 0x8cd   :  { %v5127_v33 = vpop.eup %5126  ;;  %5128 = vpow2.f32 %v4624_v14  ;;  %v3754_v17 = vmul.f32 %v5125_v62, %v8818_v47  ;;  %vm3759_vm14 = vweird.f32 %v5125_v62  ;;  %v3715_v42 = vor.u32 1.1754944e-38, %v3714_v25 }
 0x8ce   :  { %5130 = vrcp.f32 %v8875_v21  ;;  %v3804_v19 = vmul.f32 %v5127_v33, %v3625_v29  ;;  %v3747_v15 = vand.u32 2147483647, %v8796_v27  ;;  %v3711_v14 = vsel %vm8893_vm15, %v8801_v22, %v3707_v45  ;;  %vm3760_vm5 = vmor %vm3758_vm3, %vm3759_vm14 }
 0x8cf   :  { %5132 = vtanh.f32 %v3561_v5  ;;  %v3755_v31 = vsub.f32 1.0, %v3754_v17  ;;  %v3765_v32 = vor.u32 1.1754944e-38, %v3764_v46  ;;  %v3746_v27 = vsel %vm8902_vm4, %v8812_v61, %v3742_v57 }
 0x8d0   :  { %5134 = vtanh.f32 %v8763_v18  ;;  %v8907_v1 = vadd.f32 %v3804_v19, %v3800_v49  ;;  %vm3713_vm6 = vcmp.eq.f32.partialorder %v3712_v41, 8.507059e+37  ;;  %vm3763_vm7 = vcmp.eq.f32.partialorder %v3762_v55, 8.507059e+37 }
 0x8d1   :  { %v3756_v0 = vmul.f32 %v5125_v62, %v3755_v31  ;;  %5136 = vtanh.f32 %v8751_v40  ;;  %v3750_v17 = vor.u32 1.1754944e-38, %v3749_v63  ;;  %v3716_v10 = vsel %vm3713_vm6, %v3715_v42, %v3711_v14 }
 0x8d2   :  { %vm3748_vm8 = vcmp.eq.f32.partialorder %v3747_v15, 8.507059e+37  ;;  %v3779_v19 = vand.u32 2147483648, %v8875_v21  ;;  %v3801_v46 = vmul.f32 %v3716_v10, %v8543_v4  ;;  %vm3773_vm0 = vweird.f32 %v8875_v21 }
 0x8d3   :  { %v5129_v24 = vpop.eup %5128  ;;  %v3757_v20 = vadd.f32 %v5125_v62, %v3756_v0  ;;  %v3777_v0 = vand.u32 2147483647, %v8875_v21 }
 0x8d4   :  { %v5131_v5 = vpop.eup %5130  ;;  %v3737_v36 = vadd.f32 1.0, %v5129_v24  ;;  %v3780_v63 = vor.u32 1.1754944e-38, %v3779_v19 }
 0x8d5   :  { %v5133_v29 = vpop.eup %5132  ;;  %v3769_v47 = vmul.f32 %v5131_v5, %v8875_v21  ;;  %v3761_v33 = vsel %vm3760_vm5, %v5125_v62, %v3757_v20  ;;  %v3751_v62 = vsel %vm3748_vm8, %v3750_v17, %v3746_v27  ;;  %vm3774_vm9 = vweird.f32 %v5131_v5 }
 0x8d6   :  { %5138 = vrcp.f32 %v3737_v36  ;;  %v3766_v25 = vsel %vm3763_vm7, %v3765_v32, %v3761_v33  ;;  %v5135_v31 = vpop.eup %5134  ;;  %v3805_v49 = vmul.f32 %v5133_v29, %v3640_v8  ;;  %vm3775_vm10 = vmor %vm3773_vm0, %vm3774_vm9  ;;  %vm3778_vm11 = vcmp.eq.f32.partialorder %v3777_v0, 8.507059e+37 }
 0x8d7   :  { %v3770_v22 = vsub.f32 1.0, %v3769_v47  ;;  %5140 = vtanh.f32 %v8907_v1  ;;  %v8921_v61 = vmul.f32 %v5135_v31, %v3766_v25  ;;  %v5137_v41 = vpop.eup %5136  ;;  %v3792_v29 = vand.u32 2147483647, %v3737_v36 }
 0x8d8   :  { %v8925_v60 = vmul.f32 %v5137_v41, %v3751_v62  ;;  %v8927_v55 = vadd.f32 %v3805_v49, %v3801_v46  ;;  %v3794_v47 = vand.u32 2147483648, %v3737_v36  ;;  %vm3788_vm13 = vweird.f32 %v3737_v36 }
 0x8d9   :  { %v3771_v45 = vmul.f32 %v5131_v5, %v3770_v22  ;;  %v3819_v20 = vmul.f32 %v8921_v61, %v6237_v28  ;;  %vm3793_vm15 = vcmp.eq.f32.partialorder %v3792_v29, 8.507059e+37 }
 0x8da   :  { %v3818_v21 = vmul.f32 %v8925_v60, %v6241_v59  ;;  %5142 = vtanh.f32 %v8927_v55  ;;  %v3795_v10 = vor.u32 1.1754944e-38, %v3794_v47 }
 0x8db   :  { %v3772_v57 = vadd.f32 %v5131_v5, %v3771_v45 }
 0x8dc   :  { %v5139_v8 = vpop.eup %5138 }
 0x8dd   :  { %v3784_v24 = vmul.f32 %v5139_v8, %v3737_v36  ;;  %v3776_v42 = vsel %vm3775_vm10, %v5131_v5, %v3772_v57  ;;  %v5141_v44 = vpop.eup %5140  ;;  %vm3789_vm12 = vweird.f32 %v5139_v8  ;;  %v3822_v5 = vadd.f32 %v3819_v20, %v3818_v21  ;;  %v8951_v21 = vld [vmem:[%s9240_s1] sm:$0x1]  ;;  %s5321_s1 = smov [#allocation3]  }
 0x8de   :  { %v3781_v15 = vsel %vm3778_vm11, %v3780_v63, %v3776_v42  ;;  %vm3790_vm14 = vmor %vm3788_vm13, %vm3789_vm12  ;;  %vm3850_vm5 = vcmp.gt.s32.totalorder %v8951_v21, 6  ;;  %s4281_s10 = sshll.u32 %s5321_s1, 4  ;;  %s4282_s10 = int_to_ptr.vmem [resolvable:$true] %s4281_s10 }
 0x8df   :  { %v3785_v14 = vsub.f32 1.0, %v3784_v24  ;;  %v3816_v4 = vmul.f32 %v5141_v44, %v3781_v15 }
 0x8e0   :  { %v5143_v25 = vpop.eup %5142 }
 0x8e1   :  { %v3786_v33 = vmul.f32 %v5139_v8, %v3785_v14  ;;  %v3820_v32 = vmul.f32 %v3816_v4, %v6247_v39 }
 0x8e3   :  { %v3787_v27 = vadd.f32 %v5139_v8, %v3786_v33  ;;  %v3823_v17 = vadd.f32 %v3822_v5, %v3820_v32 }
 0x8e5   :  { %v3791_v22 = vsel %vm3790_vm14, %v5139_v8, %v3787_v27 }
 0x8e6   :  { %v3796_v31 = vsel %vm3793_vm15, %v3795_v10, %v3791_v22 }
 0x8e7   :  { %v3817_v49 = vmul.f32 %v5143_v25, %v3796_v31 }
 0x8e9   :  { %v3821_v19 = vmul.f32 %v3817_v49, %v6254_v34  ;;  %3891 = vmatpush.msrb.mxu3 %v3817_v49 }
 0x8eb   :  { %3892 = vmatpush.msrb.mxu3 %v3816_v4  ;;  %v3824_v62 = vadd.f32 %v3823_v17, %v3821_v19 }
 0x8ed   :  { %3893 = vmatpush.msrb.mxu3 %v8921_v61  ;;  %v3825_v45 = vrot.slane %v3824_v62, 4 }
 0x8ef   :  { %v3826_v0 = vadd.f32 %v3825_v45, %v3824_v62  ;;  %3894 = vmatpush.msrb.mxu3 %v8925_v60  ;;  %v9794_v45 = vld [vmem:[#allocation34_spill] sm:$0xff] }
 0x8f0   :  { %4626 = vmatmul.msk.f32.vlgmr.msrb.gmra.mxu3 %vm960_vm1, %v8561_v2 }
 0x8f1   :  { %v3827_v36 = vrot.slane %v3826_v0, 2 }
 0x8f3   :  { %v3828_v41 = vadd.f32 %v3827_v36, %v3826_v0 }
 0x8f5   :  { %v3829_v46 = vrot.slane %v3828_v41, 1 }
 0x8f7   :  { %v3830_v57 = vadd.f32 %v3829_v46, %v3828_v41  ;;  %v9795_v41 = vld [vmem:[#allocation36_spill] sm:$0xff] }
 0x8f8   :  { %4627 = vmatmul.msk.f32.gmra.mxu3 %vm960_vm1, %v8568_v12 }
 0x8f9   :  { %v4625_v8 = vmul.f32 -1.442695, %v3830_v57 }
 0x8fb   :  { %5144 = vpow2.f32 %v4625_v8  ;;  %v9796_v8 = vld [vmem:[#allocation35_spill] sm:$0xff] }
 0x900   :  { %4628 = vmatmul.msk.f32.gmra.mxu3 %vm960_vm1, %v8575_v11 }
 0x901   :  { %v5145_v63 = vpop.eup %5144 }
 0x902   :  { %v3834_v24 = vadd.f32 1.0, %v5145_v63 }
 0x904   :  { %5146 = vrcp.f32 %v3834_v24  ;;  %v3846_v44 = vand.u32 2147483648, %v3834_v24  ;;  %v3844_v14 = vand.u32 2147483647, %v3834_v24  ;;  %vm3840_vm3 = vweird.f32 %v3834_v24 }
 0x906   :  { %v3847_v11 = vor.u32 1.1754944e-38, %v3846_v44  ;;  %vm3845_vm6 = vcmp.eq.f32.partialorder %v3844_v14, 8.507059e+37 }
 0x908   :  { %4629 = vmatmul.msk.f32.gmra.mxu3 %vm960_vm1, %v8582_v53 }
 0x90a   :  { %v5147_v42 = vpop.eup %5146 }
 0x90b   :  { %v3836_v2 = vmul.f32 %v5147_v42, %v3834_v24  ;;  %vm3841_vm2 = vweird.f32 %v5147_v42  ;;  %v9797_v24 = vld [vmem:[#allocation27_spill] sm:$0xff] }
 0x90c   :  { %vm3842_vm4 = vmor %vm3840_vm3, %vm3841_vm2 }
 0x90d   :  { %v3837_v20 = vsub.f32 1.0, %v3836_v2  ;;  %v9798_v2 = vld [vmem:[#allocation39_spill] sm:$0xff] }
 0x90f   :  { %v3838_v15 = vmul.f32 %v5147_v42, %v3837_v20 }
 0x910   :  { %4630 = vmatmul.msk.f32.gmra.mxu3 %vm960_vm1, %v8589_v51 }
 0x911   :  { %v3839_v12 = vadd.f32 %v5147_v42, %v3838_v15 }
 0x913   :  { %v3843_v53 = vsel %vm3842_vm4, %v5147_v42, %v3839_v12 }
 0x914   :  { %v3848_v29 = vsel %vm3845_vm6, %v3847_v11, %v3843_v53  ;;  %v9799_v11 = vld [vmem:[#allocation30_spill] sm:$0xff] }
 0x915   :  { %v3851_v47 = vsel %vm3850_vm5, %v3848_v29, 0.0 }
 0x916   :  { %v3853_v33 = vperm.slane %v3851_v47, 0  ;;  %v9800_v47 = vld [vmem:[#allocation40_spill] sm:$0xff] }
 0x918   :  { %v3855_v32 = vmul.f32 %v3853_v33, %v8925_v60  ;;  %4631 = vmatmul.msk.f32.gmra.mxu3 %vm960_vm1, %v8598_v16  ;;  %v3856_v51 = vmul.f32 %v3853_v33, %v8921_v61  ;;  %v3857_v5 = vmul.f32 %v3853_v33, %v3816_v4  ;;  %v3858_v27 = vmul.f32 %v3853_v33, %v3817_v49  ;;  %v9785_v16 = vld [vmem:[#allocation91_spill] sm:$0xff]  ;;  %v9793_v49 = vld [vmem:[#allocation32_spill] sm:$0xff] }
 0x919   :  { %v9790_v61 = vld [vmem:[#allocation95_spill] sm:$0xff] }
 0x91a   :  { %v8959_v17 = vadd.f32 %v3855_v32, %v8605_v56  ;;  %v8962_v10 = vadd.f32 %v3856_v51, %v8608_v30  ;;  %v8965_v22 = vadd.f32 %v3857_v5, %v8611_v35  ;;  %v8968_v25 = vadd.f32 %v3858_v27, %v8614_v37  ;;  %v9786_v56 = vld [vmem:[#allocation92_spill] sm:$0xff]  ;;  %v9787_v30 = vld [vmem:[#allocation94_spill] sm:$0xff]  ;;  %v9788_v35 = vld [vmem:[#allocation29_spill] sm:$0xff] }
 0x91b   :  { %v9789_v37 = vld [vmem:[#allocation93_spill] sm:$0xff] }
 0x920   :  { %4632 = vmatmul.msk.f32.gmra.mxu3 %vm960_vm1, %v8619_v54  ;;  %v9791_v54 = vld [vmem:[#allocation23_spill] sm:$0xff] }
 0x928   :  { %4633 = vmatmul.msk.f32.gmra.mxu3 %vm960_vm1, %v8626_v50  ;;  %v9792_v50 = vld [vmem:[#allocation77_spill] sm:$0xff] }
 0x930   :  { %4634 = vmatmul.msk.f32.gmra.mxu3 %vm960_vm1, %v9785_v16 }
 0x938   :  { %4635 = vmatmul.msk.f32.gmra.mxu3 %vm960_vm1, %v9786_v56 }
 0x940   :  { %4636 = vmatmul.msk.f32.gmra.mxu3 %vm960_vm1, %v9787_v30 }
 0x948   :  { %4637 = vmatmul.msk.f32.gmra.mxu3 %vm960_vm1, %v9788_v35 }
 0x950   :  { %4638 = vmatmul.msk.f32.gmra.mxu3 %vm960_vm1, %v9789_v37 }
 0x958   :  { %4639 = vmatmul.msk.f32.gmra.mxu3 %vm960_vm1, %v9790_v61 }
 0x960   :  { %4640 = vmatmul.msk.f32.gmra.mxu3 %vm960_vm1, %v9791_v54 }
 0x968   :  { %4641 = vmatmul.msk.f32.gmra.mxu3 %vm960_vm1, %v9792_v50 }
 0x973   :  { %v3896_v60 = vpop.f32.mrf.mxu3 }
 0x974   :  { %v3944_v19 = vadd.f32 %v3896_v60, %v9793_v49 }
 0x976   :  { %v3960_v0 = vadd.f32 %v3944_v19, %v9794_v45 }
 0x978   :  { %v4642_v36 = vmul.f32 -1.442695, %v3960_v0 }
 0x97a   :  { %5148 = vpow2.f32 %v4642_v36 }
 0x97b   :  { %v3899_v4 = vpop.f32.mrf.mxu3 }
 0x97c   :  { %v3945_v46 = vadd.f32 %v3899_v4, %v9795_v41 }
 0x97e   :  { %v3961_v63 = vadd.f32 %v3945_v46, %v9796_v8  ;;  %v9801_v8 = vld [vmem:[#allocation28_spill] sm:$0xff] }
 0x980   :  { %v4643_v44 = vmul.f32 -1.442695, %v3961_v63  ;;  %v5149_v14 = vpop.eup %5148 }
 0x981   :  { %v3988_v29 = vadd.f32 1.0, %v5149_v14 }
 0x983   :  { %v3902_v31 = vpop.f32.mrf.mxu3  ;;  %vm3997_vm0 = vweird.f32 %v3988_v29 }
 0x984   :  { %v3946_v63 = vadd.f32 %v3902_v31, %v9801_v8  ;;  %v4003_v31 = vand.u32 2147483648, %v3988_v29 }
 0x98b   :  { %v8991_v62 = vpop.f32.mrf.mxu3 }
 0x993   :  { %v3908_v57 = vpop.f32.mrf.mxu3 }
 0x994   :  { %v3948_v42 = vadd.f32 %v3908_v57, %v9797_v24  ;;  %v9802_v24 = vld [vmem:[#allocation58_spill] sm:$0xff] }
 0x996   :  { %v3964_v20 = vadd.f32 %v3948_v42, %v9798_v2 }
 0x998   :  { %v4646_v15 = vmul.f32 -1.442695, %v3964_v20 }
 0x99a   :  { %5150 = vpow2.f32 %v4646_v15 }
 0x99b   :  { %v3911_v12 = vpop.f32.mrf.mxu3  ;;  %5152 = vpow2.f32 %v4643_v44 }
 0x99c   :  { %v3949_v53 = vadd.f32 %v3911_v12, %v9799_v11  ;;  %5154 = vrcp.f32 %v3988_v29  ;;  %v4001_v12 = vand.u32 2147483647, %v3988_v29 }
 0x99e   :  { %v3965_v33 = vadd.f32 %v3949_v53, %v9800_v47  ;;  %v3962_v47 = vadd.f32 %v3946_v63, %v9608_v23  ;;  %vm4002_vm11 = vcmp.eq.f32.partialorder %v4001_v12, 8.507059e+37 }
 0x9a0   :  { %v5151_v32 = vpop.eup %5150  ;;  %v4647_v51 = vmul.f32 -1.442695, %v3965_v33  ;;  %v9812_v33 = vld [vmem:[#allocation97_spill] sm:$0xff] }
 0x9a1   :  { %v4064_v5 = vadd.f32 1.0, %v5151_v32  ;;  %v5153_v27 = vpop.eup %5152 }
 0x9a2   :  { %5156 = vpow2.f32 %v4647_v51  ;;  %v9000_v56 = vadd.f32 1.0, %v5153_v27  ;;  %v5155_v30 = vpop.eup %5154 }
 0x9a3   :  { %5158 = vrcp.f32 %v4064_v5  ;;  %v3914_v16 = vpop.f32.mrf.mxu3  ;;  %v3993_v50 = vmul.f32 %v5155_v30, %v3988_v29  ;;  %v4079_v15 = vand.u32 2147483648, %v4064_v5  ;;  %vm4073_vm7 = vweird.f32 %v4064_v5  ;;  %v9807_v29 = vld [vmem:[#allocation61_spill] sm:$0xff] }
 0x9a4   :  { %5160 = vrcp.f32 %v9000_v56  ;;  %vm3998_vm8 = vweird.f32 %v5155_v30  ;;  %v4077_v53 = vand.u32 2147483647, %v4064_v5  ;;  %vm4012_vm3 = vweird.f32 %v9000_v56 }
 0x9a5   :  { %v3994_v19 = vsub.f32 1.0, %v3993_v50  ;;  %vm9027_vm10 = vmor %vm3997_vm0, %vm3998_vm8  ;;  %v4004_v50 = vor.u32 1.1754944e-38, %v4003_v31 }
 0x9a6   :  { %vm4078_vm12 = vcmp.eq.f32.partialorder %v4077_v53, 8.507059e+37 }
 0x9a7   :  { %v3995_v57 = vmul.f32 %v5155_v30, %v3994_v19 }
 0x9a8   :  { %v5157_v35 = vpop.eup %5156 }
 0x9a9   :  { %v5159_v37 = vpop.eup %5158  ;;  %v9003_v61 = vadd.f32 1.0, %v5157_v35  ;;  %v3996_v11 = vadd.f32 %v5155_v30, %v3995_v57 }
 0x9aa   :  { %v4069_v54 = vmul.f32 %v5159_v37, %v4064_v5  ;;  %v9008_v49 = vpop.eup %5160  ;;  %vm4074_vm1 = vweird.f32 %v5159_v37 }
 0x9ab   :  { %5162 = vrcp.f32 %v9003_v61  ;;  %v9006_v60 = vpop.f32.mrf.mxu3  ;;  %v4008_v36 = vmul.f32 %v9008_v49, %v9000_v56  ;;  %vm9020_vm9 = vmor %vm4073_vm7, %vm4074_vm1  ;;  %v4000_v23 = vsel %vm9027_vm10, %v5155_v30, %v3996_v11  ;;  %vm4013_vm14 = vweird.f32 %v9008_v49 }
 0x9ac   :  { %v4070_v4 = vsub.f32 1.0, %v4069_v54  ;;  %v4644_v54 = vmul.f32 -1.442695, %v3962_v47  ;;  %v4005_v30 = vsel %vm4002_vm11, %v4004_v50, %v4000_v23  ;;  %vm4088_vm15 = vweird.f32 %v9003_v61  ;;  %vm4014_vm4 = vmor %vm4012_vm3, %vm4013_vm14 }
 0x9ad   :  { %v4009_v44 = vsub.f32 1.0, %v4008_v36 }
 0x9ae   :  { %v4071_v0 = vmul.f32 %v5159_v37, %v4070_v4 }
 0x9af   :  { %v4010_v5 = vmul.f32 %v9008_v49, %v4009_v44 }
 0x9b0   :  { %v4072_v20 = vadd.f32 %v5159_v37, %v4071_v0 }
 0x9b1   :  { %v9010_v45 = vpop.eup %5162  ;;  %v4011_v8 = vadd.f32 %v9008_v49, %v4010_v5 }
 0x9b2   :  { %v4084_v41 = vmul.f32 %v9010_v45, %v9003_v61  ;;  %v4076_v51 = vsel %vm9020_vm9, %v5159_v37, %v4072_v20  ;;  %vm4089_vm13 = vweird.f32 %v9010_v45  ;;  %v9808_v37 = vld [vmem:[#allocation96_spill] sm:$0xff] }
 0x9b3   :  { %v3920_v46 = vpop.f32.mrf.mxu3  ;;  %v3950_v0 = vadd.f32 %v3914_v16, %v9808_v37  ;;  %v9809_v16 = vld [vmem:[#allocation26_spill] sm:$0xff]  ;;  %vm9047_vm2 = vmor %vm4088_vm15, %vm4089_vm13 }
 0x9b4   :  { %v3952_v42 = vadd.f32 %v3920_v46, %v9802_v24  ;;  %v4085_v2 = vsub.f32 1.0, %v4084_v41  ;;  %v4094_v46 = vand.u32 2147483648, %v9003_v61 }
 0x9b5   :  { %v3966_v44 = vadd.f32 %v3950_v0, %v9669_v6 }
 0x9b6   :  { %v3968_v14 = vadd.f32 %v3952_v42, %v6053_v13  ;;  %v4086_v32 = vmul.f32 %v9010_v45, %v4085_v2  ;;  %v4080_v13 = vor.u32 1.1754944e-38, %v4079_v15  ;;  %v4092_v42 = vand.u32 2147483647, %v9003_v61 }
 0x9b7   :  { %v3947_v2 = vadd.f32 %v8991_v62, %v9809_v16  ;;  %v4095_v62 = vor.u32 1.1754944e-38, %v4094_v46  ;;  %v4648_v47 = vmul.f32 -1.442695, %v3966_v44 }
 0x9b8   :  { %5164 = vtanh.f32 %v3968_v14  ;;  %v4081_v4 = vsel %vm4078_vm12, %v4080_v13, %v4076_v51  ;;  %v4087_v36 = vadd.f32 %v9010_v45, %v4086_v32  ;;  %v4015_v14 = vsel %vm4014_vm4, %v9008_v49, %v4011_v8  ;;  %v9814_v8 = vld [vmem:[#allocation70_spill] sm:$0xff] }
 0x9b9   :  { %v4208_v63 = vmul.f32 %v4081_v4, %v8751_v40  ;;  %v4016_v40 = vand.u32 2147483647, %v9000_v56  ;;  %vm4093_vm5 = vcmp.eq.f32.partialorder %v4092_v42, 8.507059e+37  ;;  %v3963_v11 = vadd.f32 %v3947_v2, %v9666_v9  ;;  %v9813_v4 = vld [vmem:[#allocation68_spill] sm:$0xff] }
 0x9ba   :  { %v4091_v61 = vsel %vm9047_vm2, %v9010_v45, %v4087_v36 }
 0x9bb   :  { %v3923_v35 = vpop.f32.mrf.mxu3  ;;  %v4096_v53 = vsel %vm4093_vm5, %v4095_v62, %v4091_v61  ;;  %vm4017_vm6 = vcmp.eq.f32.partialorder %v4016_v40, 8.507059e+37  ;;  %v4645_v13 = vmul.f32 -1.442695, %v3963_v11 }
 0x9bc   :  { %v3953_v19 = vadd.f32 %v3923_v35, %v9807_v29  ;;  %v4209_v32 = vmul.f32 %v4096_v53, %v8763_v18  ;;  %v9816_v53 = vld [vmem:[#allocation72_spill] sm:$0xff] }
 0x9be   :  { %v5165_v41 = vpop.eup %5164  ;;  %v3969_v57 = vadd.f32 %v3953_v19, %v6048_v48  ;;  %v4018_v48 = vand.u32 2147483648, %v9000_v56  ;;  %v3951_v56 = vadd.f32 %v9006_v60, %v9812_v33 }
 0x9bf   :  { %v4212_v24 = vmul.f32 %v5165_v41, %v4005_v30 }
 0x9c0   :  { %5166 = vtanh.f32 %v3969_v57  ;;  %v4019_v6 = vor.u32 1.1754944e-38, %v4018_v48  ;;  %v3967_v49 = vadd.f32 %v3951_v56, %v9671_v26 }
 0x9c1   :  { %v9054_v15 = vadd.f32 %v4212_v24, %v4208_v63  ;;  %5168 = vpow2.f32 %v4644_v54 }
 0x9c2   :  { %v4020_v45 = vsel %vm4017_vm6, %v4019_v6, %v4015_v14  ;;  %5170 = vpow2.f32 %v4648_v47  ;;  %v4649_v35 = vmul.f32 -1.442695, %v3967_v49  ;;  %v9815_v14 = vld [vmem:[#allocation63_spill] sm:$0xff] }
 0x9c3   :  { %v3926_v12 = vpop.f32.mrf.mxu3  ;;  %5172 = vpow2.f32 %v4645_v13 }
 0x9c4   :  { %v3954_v11 = vadd.f32 %v3926_v12, %v9815_v14 }
 0x9c6   :  { %v5167_v31 = vpop.eup %5166  ;;  %v3970_v12 = vadd.f32 %v3954_v11, %v9724_v43 }
 0x9c7   :  { %v4213_v51 = vmul.f32 %v5167_v31, %v4020_v45  ;;  %v5169_v27 = vpop.eup %5168 }
 0x9c8   :  { %v3990_v23 = vadd.f32 1.0, %v5169_v27  ;;  %v5171_v54 = vpop.eup %5170 }
 0x9c9   :  { %v9068_v5 = vadd.f32 %v4213_v51, %v4209_v32  ;;  %v5173_v60 = vpop.eup %5172  ;;  %v9072_v50 = vadd.f32 1.0, %v5171_v54 }
 0x9ca   :  { %5174 = vrcp.f32 %v3990_v23  ;;  %v9075_v19 = vadd.f32 1.0, %v5173_v60  ;;  %v4031_v6 = vand.u32 2147483647, %v3990_v23  ;;  %v4033_v56 = vand.u32 2147483648, %v3990_v23 }
 0x9cb   :  { %v9070_v9 = vpop.f32.mrf.mxu3  ;;  %5176 = vpow2.f32 %v4649_v35  ;;  %vm4027_vm7 = vweird.f32 %v3990_v23  ;;  %v4109_v43 = vand.u32 2147483648, %v9072_v50  ;;  %vm4103_vm10 = vweird.f32 %v9072_v50 }
 0x9cc   :  { %5178 = vrcp.f32 %v9072_v50  ;;  %vm9115_vm9 = vcmp.eq.f32.partialorder %v4031_v6, 8.507059e+37  ;;  %v4034_v60 = vor.u32 1.1754944e-38, %v4033_v56  ;;  %vm4042_vm12 = vweird.f32 %v9075_v19 }
 0x9cd   :  { %5180 = vrcp.f32 %v9075_v19 }
 0x9d0   :  { %v9077_v37 = vpop.eup %5174 }
 0x9d1   :  { %v5177_v0 = vpop.eup %5176  ;;  %v4023_v41 = vmul.f32 %v9077_v37, %v3990_v23  ;;  %vm4028_vm1 = vweird.f32 %v9077_v37  ;;  %v4048_v23 = vand.u32 2147483648, %v9075_v19 }
 0x9d2   :  { %v9083_v46 = vadd.f32 1.0, %v5177_v0  ;;  %v9085_v57 = vpop.eup %5178  ;;  %vm9111_vm8 = vmor %vm4027_vm7, %vm4028_vm1 }
 0x9d3   :  { %v3932_v18 = vpop.f32.mrf.mxu3  ;;  %v4024_v24 = vsub.f32 1.0, %v4023_v41  ;;  %v4099_v16 = vmul.f32 %v9085_v57, %v9072_v50  ;;  %vm4104_vm0 = vweird.f32 %v9085_v57 }
 0x9d4   :  { %v3956_v29 = vadd.f32 %v3932_v18, %v9813_v4  ;;  %vm9142_vm11 = vmor %vm4103_vm10, %vm4104_vm0  ;;  %vm4118_vm1 = vweird.f32 %v9083_v46 }
 0x9d5   :  { %v4025_v48 = vmul.f32 %v9077_v37, %v4024_v24  ;;  %v4100_v61 = vsub.f32 1.0, %v4099_v16  ;;  %v4107_v24 = vand.u32 2147483647, %v9072_v50  ;;  %v9140_v16 = vor.u32 1.1754944e-38, %v4048_v23 }
 0x9d6   :  { %v3972_v26 = vadd.f32 %v3956_v29, %v9718_v52  ;;  %v9090_v52 = vpop.eup %5180  ;;  %v4110_v50 = vor.u32 1.1754944e-38, %v4109_v43 }
 0x9d7   :  { %v4038_v40 = vmul.f32 %v9090_v52, %v9075_v19  ;;  %v4026_v33 = vadd.f32 %v9077_v37, %v4025_v48  ;;  %v4101_v32 = vmul.f32 %v9085_v57, %v4100_v61  ;;  %vm4043_vm13 = vweird.f32 %v9090_v52 }
 0x9d8   :  { %v4650_v36 = vmul.f32 -1.442695, %v3972_v26  ;;  %vm4108_vm15 = vcmp.eq.f32.partialorder %v4107_v24, 8.507059e+37  ;;  %vm9191_vm7 = vmor %vm4042_vm12, %vm4043_vm13 }
 0x9d9   :  { %v4039_v31 = vsub.f32 1.0, %v4038_v40  ;;  %v4102_v0 = vadd.f32 %v9085_v57, %v4101_v32 }
 0x9da   :  { %5182 = vpow2.f32 %v4650_v36  ;;  %v9821_v36 = vld [vmem:[#allocation66_spill] sm:$0xff] }
 0x9db   :  { %v3935_v30 = vpop.f32.mrf.mxu3  ;;  %5184 = vrcp.f32 %v9083_v46  ;;  %v4040_v4 = vmul.f32 %v9090_v52, %v4039_v31  ;;  %v3955_v41 = vadd.f32 %v9070_v9, %v9821_v36  ;;  %v4106_v61 = vsel %vm9142_vm11, %v9085_v57, %v4102_v0 }
 0x9dc   :  { %v3957_v63 = vadd.f32 %v3935_v30, %v9814_v8  ;;  %v9822_v8 = vld [vmem:[#allocation74_spill] sm:$0xff]  ;;  %v4124_v31 = vand.u32 2147483648, %v9083_v46 }
 0x9dd   :  { %v3971_v11 = vadd.f32 %v3955_v41, %v5990_v3 }
 0x9de   :  { %v3973_v42 = vadd.f32 %v3957_v63, %v9720_v38 }
 0x9e0   :  { %v5183_v2 = vpop.eup %5182  ;;  %v4651_v20 = vmul.f32 -1.442695, %v3973_v42  ;;  %v4046_v42 = vand.u32 2147483647, %v9075_v19 }
 0x9e1   :  { %v9095_v44 = vadd.f32 1.0, %v5183_v2  ;;  %v9100_v38 = vpop.eup %5184 }
 0x9e2   :  { %5186 = vpow2.f32 %v4651_v20  ;;  %v4114_v51 = vmul.f32 %v9100_v38, %v9083_v46  ;;  %vm4119_vm3 = vweird.f32 %v9100_v38  ;;  %vm4047_vm11 = vcmp.eq.f32.partialorder %v4046_v42, 8.507059e+37 }
 0x9e3   :  { %5188 = vrcp.f32 %v9095_v44  ;;  %v3938_v62 = vpop.f32.mrf.mxu3  ;;  %vm4153_vm2 = vweird.f32 %v9095_v44  ;;  %v4157_v56 = vand.u32 2147483647, %v9095_v44 }
 0x9e4   :  { %v3958_v47 = vadd.f32 %v3938_v62, %v9816_v53  ;;  %v4115_v26 = vsub.f32 1.0, %v4114_v51  ;;  %v9157_v62 = vadd.f32 %v9090_v52, %v4040_v4 }
 0x9e5   :  { %vm4158_vm5 = vcmp.eq.f32.partialorder %v4157_v56, 8.507059e+37 }
 0x9e6   :  { %v3974_v45 = vadd.f32 %v3958_v47, %v9723_v58  ;;  %v4030_v58 = vsel %vm9111_vm8, %v9077_v37, %v4026_v33  ;;  %v4116_v40 = vmul.f32 %v9100_v38, %v4115_v26  ;;  %vm9198_vm8 = vmor %vm4118_vm1, %vm4119_vm3 }
 0x9e7   :  { %v4035_v20 = vsel %vm9115_vm9, %v4034_v60, %v4030_v58 }
 0x9e8   :  { %v5187_v13 = vpop.eup %5186  ;;  %v4652_v35 = vmul.f32 -1.442695, %v3974_v45  ;;  %v4111_v45 = vsel %vm4108_vm15, %v4110_v50, %v4106_v61  ;;  %v4117_v32 = vadd.f32 %v9100_v38, %v4116_v40 }
 0x9e9   :  { %v9119_v54 = vpop.eup %5188  ;;  %v9125_v18 = vadd.f32 1.0, %v5187_v13  ;;  %v4210_v60 = vmul.f32 %v4111_v45, %v8907_v1  ;;  %v4045_v1 = vsel %vm9191_vm7, %v9090_v52, %v9157_v62 }
 0x9ea   :  { %v4149_v29 = vmul.f32 %v9119_v54, %v9095_v44  ;;  %5190 = vpow2.f32 %v4652_v35  ;;  %vm4154_vm14 = vweird.f32 %v9119_v54 }
 0x9eb   :  { %5192 = vrcp.f32 %v9125_v18  ;;  %v3941_v37 = vpop.f32.mrf.mxu3  ;;  %vm9173_vm4 = vmor %vm4153_vm2, %vm4154_vm14  ;;  %v4174_v27 = vand.u32 2147483648, %v9125_v18  ;;  %v4172_v35 = vand.u32 2147483647, %v9125_v18  ;;  %vm4168_vm9 = vweird.f32 %v9125_v18 }
 0x9ec   :  { %5194 = vtanh.f32 %v3970_v12  ;;  %v4150_v30 = vsub.f32 1.0, %v4149_v29  ;;  %v3959_v63 = vadd.f32 %v3941_v37, %v9822_v8  ;;  %v4125_v29 = vor.u32 1.1754944e-38, %v4124_v31 }
 0x9ed   :  { %5196 = vtanh.f32 %v9054_v15  ;;  %v4175_v36 = vor.u32 1.1754944e-38, %v4174_v27  ;;  %vm4173_vm10 = vcmp.eq.f32.partialorder %v4172_v35, 8.507059e+37 }
 0x9ee   :  { %v4151_v9 = vmul.f32 %v9119_v54, %v4150_v30  ;;  %v3975_v48 = vadd.f32 %v3959_v63, %v5931_v7  ;;  %v4159_v7 = vand.u32 2147483648, %v9095_v44 }
 0x9f0   :  { %v5191_v14 = vpop.eup %5190  ;;  %v4152_v6 = vadd.f32 %v9119_v54, %v4151_v9  ;;  %v4653_v53 = vmul.f32 -1.442695, %v3975_v48  ;;  %v4160_v12 = vor.u32 1.1754944e-38, %v4159_v7 }
 0x9f1   :  { %v5193_v47 = vpop.eup %5192  ;;  %v9164_v33 = vadd.f32 1.0, %v5191_v14 }
 0x9f2   :  { %v5195_v57 = vpop.eup %5194  ;;  %v4164_v3 = vmul.f32 %v5193_v47, %v9125_v18  ;;  %5198 = vpow2.f32 %v4653_v53  ;;  %v4156_v44 = vsel %vm9173_vm4, %v9119_v54, %v4152_v6  ;;  %vm4169_vm6 = vweird.f32 %v5193_v47 }
 0x9f3   :  { %5200 = vrcp.f32 %v9164_v33  ;;  %v4214_v13 = vmul.f32 %v5195_v57, %v4035_v20  ;;  %v5197_v58 = vpop.eup %5196  ;;  %v4122_v54 = vand.u32 2147483647, %v9083_v46  ;;  %v4161_v23 = vsel %vm4158_vm5, %v4160_v12, %v4156_v44  ;;  %vm4170_vm0 = vmor %vm4168_vm9, %vm4169_vm6 }
 0x9f4   :  { %5202 = vtanh.f32 %v3971_v11  ;;  %v4165_v51 = vsub.f32 1.0, %v4164_v3  ;;  %v4121_v46 = vsel %vm9198_vm8, %v9100_v38, %v4117_v32  ;;  %v9211_v8 = vmul.f32 %v5197_v58, %v4161_v23 }
 0x9f5   :  { %5204 = vtanh.f32 %v9068_v5  ;;  %v4218_v37 = vadd.f32 %v4214_v13, %v4210_v60  ;;  %vm4123_vm12 = vcmp.eq.f32.partialorder %v4122_v54, 8.507059e+37  ;;  %v4050_v38 = vsel %vm4047_vm11, %v9140_v16, %v4045_v1 }
 0x9f6   :  { %v4166_v49 = vmul.f32 %v5193_v47, %v4165_v51  ;;  %v4126_v2 = vsel %vm4123_vm12, %v4125_v29, %v4121_v46  ;;  %v4187_v50 = vand.u32 2147483647, %v9164_v33  ;;  %v4189_v40 = vand.u32 2147483648, %v9164_v33 }
 0x9f7   :  { %v4228_v61 = vmul.f32 %v9211_v8, %v6241_v59  ;;  %v4211_v16 = vmul.f32 %v4126_v2, %v8927_v55  ;;  %vm4183_vm14 = vweird.f32 %v9164_v33  ;;  %vm4260_vm9 = vcmp.gt.s32.totalorder %v8951_v21, 7 }
 0x9f8   :  { %v5199_v43 = vpop.eup %5198  ;;  %v4167_v26 = vadd.f32 %v5193_v47, %v4166_v49  ;;  %v4190_v53 = vor.u32 1.1754944e-38, %v4189_v40  ;;  %vm4188_vm2 = vcmp.eq.f32.partialorder %v4187_v50, 8.507059e+37 }
 0x9f9   :  { %v5201_v0 = vpop.eup %5200  ;;  %v4147_v41 = vadd.f32 1.0, %v5199_v43 }
 0x9fa   :  { %v5203_v30 = vpop.eup %5202  ;;  %v4171_v63 = vsel %vm4170_vm0, %v5193_v47, %v4167_v26  ;;  %v4179_v52 = vmul.f32 %v5201_v0, %v9164_v33  ;;  %vm4184_vm13 = vweird.f32 %v5201_v0 }
 0x9fb   :  { %v5205_v24 = vpop.eup %5204  ;;  %v4176_v18 = vsel %vm4173_vm10, %v4175_v36, %v4171_v63  ;;  %5206 = vrcp.f32 %v4147_v41  ;;  %v4215_v48 = vmul.f32 %v5203_v30, %v4050_v38  ;;  %vm4185_vm15 = vmor %vm4183_vm14, %vm4184_vm13  ;;  %v4202_v45 = vand.u32 2147483647, %v4147_v41 }
 0x9fc   :  { %v9217_v20 = vmul.f32 %v5205_v24, %v4176_v18  ;;  %v4180_v9 = vsub.f32 1.0, %v4179_v52  ;;  %5208 = vtanh.f32 %v4218_v37  ;;  %vm4198_vm4 = vweird.f32 %v4147_v41 }
 0x9fd   :  { %v4219_v6 = vadd.f32 %v4215_v48, %v4211_v16  ;;  %vm4203_vm6 = vcmp.eq.f32.partialorder %v4202_v45, 8.507059e+37 }
 0x9fe   :  { %v4229_v19 = vmul.f32 %v9217_v20, %v6237_v28  ;;  %v4181_v42 = vmul.f32 %v5201_v0, %v4180_v9  ;;  %v4204_v28 = vand.u32 2147483648, %v4147_v41 }
 0x9ff   :  { %5210 = vtanh.f32 %v4219_v6 }
 0xa00   :  { %v4232_v62 = vadd.f32 %v4229_v19, %v4228_v61  ;;  %v4182_v14 = vadd.f32 %v5201_v0, %v4181_v42  ;;  %v4205_v32 = vor.u32 1.1754944e-38, %v4204_v28 }
 0xa01   :  { %v5207_v11 = vpop.eup %5206 }
 0xa02   :  { %v4186_v47 = vsel %vm4185_vm15, %v5201_v0, %v4182_v14  ;;  %v4194_v7 = vmul.f32 %v5207_v11, %v4147_v41  ;;  %v5209_v57 = vpop.eup %5208  ;;  %vm4199_vm3 = vweird.f32 %v5207_v11 }
 0xa03   :  { %v4191_v59 = vsel %vm4188_vm2, %v4190_v53, %v4186_v47  ;;  %vm4200_vm5 = vmor %vm4198_vm4, %vm4199_vm3 }
 0xa04   :  { %v4226_v56 = vmul.f32 %v5209_v57, %v4191_v59  ;;  %v4195_v3 = vsub.f32 1.0, %v4194_v7 }
 0xa05   :  { %v5211_v51 = vpop.eup %5210 }
 0xa06   :  { %v4230_v31 = vmul.f32 %v4226_v56, %v6247_v39  ;;  %v4196_v55 = vmul.f32 %v5207_v11, %v4195_v3 }
 0xa08   :  { %v4233_v15 = vadd.f32 %v4232_v62, %v4230_v31  ;;  %v4197_v33 = vadd.f32 %v5207_v11, %v4196_v55 }
 0xa0a   :  { %v4201_v44 = vsel %vm4200_vm5, %v5207_v11, %v4197_v33 }
 0xa0b   :  { %v4206_v13 = vsel %vm4203_vm6, %v4205_v32, %v4201_v44 }
 0xa0c   :  { %v4227_v12 = vmul.f32 %v5211_v51, %v4206_v13 }
 0xa0e   :  { %v4231_v27 = vmul.f32 %v4227_v12, %v6254_v34 }
 0xa10   :  { %v4234_v49 = vadd.f32 %v4233_v15, %v4231_v27 }
 0xa12   :  { %v4235_v35 = vrot.slane %v4234_v49, 4 }
 0xa14   :  { %v4236_v58 = vadd.f32 %v4235_v35, %v4234_v49 }
 0xa16   :  { %v4237_v60 = vrot.slane %v4236_v58, 2 }
 0xa18   :  { %v4238_v39 = vadd.f32 %v4237_v60, %v4236_v58 }
 0xa1a   :  { %v4239_v5 = vrot.slane %v4238_v39, 1 }
 0xa1c   :  { %v4240_v54 = vadd.f32 %v4239_v5, %v4238_v39 }
 0xa1e   :  { %v4654_v23 = vmul.f32 -1.442695, %v4240_v54 }
 0xa20   :  { %5212 = vpow2.f32 %v4654_v23 }
 0xa26   :  { %v5213_v43 = vpop.eup %5212 }
 0xa27   :  { %v4244_v4 = vadd.f32 1.0, %v5213_v43 }
 0xa29   :  { %5214 = vrcp.f32 %v4244_v4  ;;  %v4256_v0 = vand.u32 2147483648, %v4244_v4  ;;  %v4254_v46 = vand.u32 2147483647, %v4244_v4  ;;  %vm4250_vm7 = vweird.f32 %v4244_v4 }
 0xa2b   :  { %v4257_v36 = vor.u32 1.1754944e-38, %v4256_v0  ;;  %vm4255_vm0 = vcmp.eq.f32.partialorder %v4254_v46, 8.507059e+37 }
 0xa2f   :  { %v5215_v29 = vpop.eup %5214 }
 0xa30   :  { %v4246_v1 = vmul.f32 %v5215_v29, %v4244_v4  ;;  %vm4251_vm1 = vweird.f32 %v5215_v29 }
 0xa31   :  { %vm4252_vm8 = vmor %vm4250_vm7, %vm4251_vm1 }
 0xa32   :  { %v4247_v26 = vsub.f32 1.0, %v4246_v1 }
 0xa34   :  { %v4248_v37 = vmul.f32 %v5215_v29, %v4247_v26 }
 0xa36   :  { %v4249_v34 = vadd.f32 %v5215_v29, %v4248_v37 }
 0xa38   :  { %v4253_v41 = vsel %vm4252_vm8, %v5215_v29, %v4249_v34 }
 0xa39   :  { %v4258_v30 = vsel %vm4255_vm0, %v4257_v36, %v4253_v41 }
 0xa3a   :  { %v4261_v63 = vsel %vm4260_vm9, %v4258_v30, 0.0 }
 0xa3b   :  { %v4263_v52 = vperm.slane %v4261_v63, 0 }
 0xa3d   :  { %v4265_v24 = vmul.f32 %v4263_v52, %v9211_v8  ;;  %v4266_v18 = vmul.f32 %v4263_v52, %v9217_v20  ;;  %v4267_v38 = vmul.f32 %v4263_v52, %v4226_v56  ;;  %v4268_v2 = vmul.f32 %v4263_v52, %v4227_v12 }
 0xa3f   :  { %v4269_v9 = vadd.f32 %v4265_v24, %v8959_v17  ;;  %v4270_v21 = vadd.f32 %v4266_v18, %v8962_v10  ;;  %v4271_v48 = vadd.f32 %v4267_v38, %v8965_v22  ;;  %v4272_v50 = vadd.f32 %v4268_v2, %v8968_v25 }
 0xa41   :  { %4273 = vst [vmem:[#allocation3] sm:$0xff] %v4269_v9 }
 0xa42   :  { %4274 = vst [vmem:[#allocation3 + $0x8] sm:$0xff] %v4270_v21 }
 0xa43   :  { %4275 = vst [vmem:[#allocation3 + $0x10] sm:$0xff] %v4271_v48 }
 0xa44   :  { %4276 = vst [vmem:[#allocation3 + $0x18] sm:$0xff] %v4272_v50 }
 0xa45   :  { %4289 = dma.vmem_to_hbm [thread:$0]  %s4282_s10, 512, %s4284_s11, [#allocation4], %s5322_s12, %s5322_s12, %s5323_s13  }
 0xa46   :  { %5318 = dma.done.wait [#allocation4], 512  }
 0xa47   :  { %5319 = vsyncadd [#allocation4], 4294966784 }
 0xa48   :  { %4294 = vsyncpa [#allocation4], 1 }

</bundles_post_ra>
